<compile_context>
chip_gen: v7x
topology: tpu7x:2x2x1
jax: 0.10.0
libtpu: 0.0.40
codegen_flags: <defaults>
</compile_context>

<pallas_src>
import jax
import jax.numpy as jnp
from jax.experimental import pallas as pl
from jax.experimental.pallas import tpu as pltpu


# ------------------------------- Pallas kernel -------------------------------

def _tinycnn2_kernel(xp_ref, m1_ref, b1_ref, m2_ref, b2_ref,
                     fc1w_ref, fc1b_ref, fc3w_ref, fc3b_ref,
                     out_ref, y1p_ref):
    f32 = jnp.float32
    bf16 = jnp.bfloat16
    tb = xp_ref.shape[0]

    # Halo rows (h = -1 and h = 14) of the layer-2 input must be zero; they never
    # change across grid steps, so zero the scratch exactly once.
    @pl.when(pl.program_id(0) == 0)
    def _():
        y1p_ref[...] = jnp.zeros_like(y1p_ref)

    def pool2x2(acc, rows_out, half):
        # acc: (tb * 2*rows_out, 2*half); lanes ordered (w%2, w//2, c); rows = (b, h).
        w = jnp.maximum(acc[:, :half], acc[:, half:])          # max over W pairs
        t = w.reshape(tb, rows_out, 2, half)
        return jnp.max(t, axis=2)                              # max over H pairs

    # -------- layer1: conv(1->32, 3x3, pad=1) + BN + ReLU + maxpool2 --------
    acc1 = jnp.zeros((tb * 28, 896), f32)
    for dy in range(3):
        a = xp_ref[:, dy:dy + 28, :].reshape(tb * 28, 30).astype(bf16)
        acc1 = acc1 + jnp.dot(a, m1_ref[dy], preferred_element_type=f32)
    acc1 = jnp.maximum(acc1 + b1_ref[...], 0.0)
    y1 = pool2x2(acc1, 14, 448)                                # (tb, 14, 448), lanes (w, c)

    # H-halo-padded layer-2 input, held in VMEM scratch (never written to HBM).
    # Lane-aligned full-width store; W zero-padding is folded into m2.
    y1p_ref[:, 1:15, :] = y1

    # -------- layer2: conv(32->64, 3x3, pad=1) + BN + ReLU + maxpool2 --------
    acc2 = jnp.zeros((tb * 14, 896), f32)
    for dy in range(3):
        a = y1p_ref[:, dy:dy + 14, :].reshape(tb * 14, 448).astype(bf16)
        acc2 = acc2 + jnp.dot(a, m2_ref[dy], preferred_element_type=f32)
    acc2 = jnp.maximum(acc2 + b2_ref[...], 0.0)
    y2 = pool2x2(acc2, 7, 448)                                 # (tb, 7, 448), lanes (w, c)

    # -------- fc1 as 7 per-row banded matmuls (no lane concat / flatten) + fc3 --------
    hid = jnp.zeros((tb, 128), f32)
    for h in range(7):
        hid = hid + jnp.dot(y2[:, h, :].astype(bf16), fc1w_ref[h],
                            preferred_element_type=f32)
    hid = hid + fc1b_ref[...]
    # TODO(synk): nn.Dropout2d(0.5) is identity in eval mode; training-mode dropout not implemented.
    out_ref[...] = jnp.dot(hid.astype(bf16), fc3w_ref[...],
                           preferred_element_type=f32) + fc3b_ref[...]


def _const_spec(shape):
    return pl.BlockSpec(shape, lambda i: (0,) * len(shape))


# ------------------------------ weight preparation ------------------------------

def _parity_major_cols(mat, n_w, n_c):
    """Reorder columns from natural (w, c) order to (w%2, w//2, c) order."""
    lead = mat.shape[:-1]
    m = mat.reshape(lead + (n_w // 2, 2, n_c))
    m = jnp.swapaxes(m, -3, -2)
    return m.reshape(lead + (n_w * n_c,))


def _banded_conv_mats(w_oihw, scale, w_in, c_in, w_out, c_out, k0):
    """Per-dy banded matrices implementing a 3x3 pad-1 conv along the (W, C) lane axis.

    Output width position j reads input width position j + dx - k0; out-of-range
    taps drop out (implicit zero padding).  Returns (3, w_in*c_in, w_out*c_out)
    with output columns in pool-friendly (w%2, w//2, c_out) order.  BN scale is
    folded into the weights.
    """
    wf = jnp.transpose(w_oihw, (2, 3, 1, 0)) * scale[None, None, None, :]  # (3,3,ci,co)
    mats = []
    for dy in range(3):
        nat = jnp.zeros((w_in * c_in, w_out * c_out), jnp.float32)
        for dx in range(3):
            sel = jnp.eye(w_in, w_out, k=k0 - dx, dtype=jnp.float32)  # sel[j+dx-k0, j] = 1
            nat = nat + jnp.kron(sel, wf[dy, dx])
        mats.append(_parity_major_cols(nat, w_out, c_out))
    return jnp.stack(mats, axis=0)


def _bias_slab(bias_fold, n_w_out, c_out):
    return jnp.broadcast_to(bias_fold, (2, n_w_out // 2, c_out)).reshape(1, n_w_out * c_out)


def prepare_params(params, num_class):
    """Fold BN, build banded conv matrices, permute/pad fc weights (done once)."""
    assert num_class <= 128
    eps = 1e-5
    scale1 = params["bn1_g"] / jnp.sqrt(params["bn1_v"] + eps)
    b1f = (params["b1"] - params["bn1_m"]) * scale1 + params["bn1_b"]
    scale2 = params["bn2_g"] / jnp.sqrt(params["bn2_v"] + eps)
    b2f = (params["b2"] - params["bn2_m"]) * scale2 + params["bn2_b"]

    # layer1 consumes the wrapper-padded 30-wide input (k0=0); layer2 consumes the
    # unpadded 14-wide pooled activations with padding folded into the band (k0=1).
    m1 = _banded_conv_mats(params["w1"], scale1, 30, 1, 28, 32, k0=0).astype(jnp.bfloat16)
    m2 = _banded_conv_mats(params["w2"], scale2, 14, 32, 14, 64, k0=1).astype(jnp.bfloat16)
    b1s = _bias_slab(b1f, 28, 32).astype(jnp.float32)
    b2s = _bias_slab(b2f, 14, 64).astype(jnp.float32)

    # fc1 rows: PyTorch NCHW flatten (c*49 + h*7 + w) -> per-h slabs with rows in
    # (w*64 + c) order matching the kernel's (w, c) lane layout; pad outputs to 128.
    fc1w = jnp.transpose(params["fc1_w"].reshape(64, 7, 7, 120), (1, 2, 0, 3))  # (h,w,c,out)
    fc1w = fc1w.reshape(7, 448, 120)
    fc1w = jnp.pad(fc1w, ((0, 0), (0, 0), (0, 8))).astype(jnp.bfloat16)         # (7,448,128)
    fc1b = jnp.pad(params["fc1_b"], (0, 8)).reshape(1, 128).astype(jnp.float32)

    fc3w = jnp.pad(params["fc3_w"], ((0, 8), (0, 128 - num_class))).astype(jnp.bfloat16)
    fc3b = jnp.pad(params["fc3_b"], (0, 128 - num_class)).reshape(1, 128).astype(jnp.float32)

    return dict(m1=m1, b1s=b1s, m2=m2, b2s=b2s,
                fc1w=fc1w, fc1b=fc1b, fc3w=fc3w, fc3b=fc3b)


# --------------------------------- forward ---------------------------------

def tinycnn2_forward(prep, x_nchw, *, num_class):
    B, C, H, W = x_nchw.shape
    assert (C, H, W) == (1, 28, 28), "TinyCNN2 expects 1x28x28 inputs"

    x = x_nchw.astype(jnp.float32).reshape(B, 28, 28)
    xp = jnp.pad(x, ((0, 0), (1, 1), (1, 1)))                 # spatial halo (pad=1)

    tb = min(8, pl.next_power_of_2(B))                        # batch tile
    bp = ((B + tb - 1) // tb) * tb
    if bp != B:
        xp = jnp.pad(xp, ((0, bp - B), (0, 0), (0, 0)))

    out = pl.pallas_call(
        _tinycnn2_kernel,
        out_shape=jax.ShapeDtypeStruct((bp, 128), jnp.float32),
        grid_spec=pltpu.PrefetchScalarGridSpec(
            num_scalar_prefetch=0,
            grid=(bp // tb,),
            in_specs=[
                pl.BlockSpec((tb, 30, 30), lambda i: (i, 0, 0)),
                _const_spec(prep["m1"].shape),
                _const_spec(prep["b1s"].shape),
                _const_spec(prep["m2"].shape),
                _const_spec(prep["b2s"].shape),
                _const_spec(prep["fc1w"].shape),
                _const_spec(prep["fc1b"].shape),
                _const_spec(prep["fc3w"].shape),
                _const_spec(prep["fc3b"].shape),
            ],
            out_specs=pl.BlockSpec((tb, 128), lambda i: (i, 0)),
            scratch_shapes=[pltpu.VMEM((tb, 16, 448), jnp.float32)],
        ),
        compiler_params=pltpu.CompilerParams(
            dimension_semantics=("parallel",),
            vmem_limit_bytes=32 * 1024 * 1024,
        ),
    )(xp, prep["m1"], prep["b1s"], prep["m2"], prep["b2s"],
      prep["fc1w"], prep["fc1b"], prep["fc3w"], prep["fc3b"])

    return out[:B, :num_class]


# ----------------------------------- init -----------------------------------

def init_params(key, num_class=10):
    ks = jax.random.split(key, 16)
    f32 = jnp.float32
    p = {}
    # layer1: Conv2d(1->32, 3x3, pad=1) + BN(32)
    p["w1"] = 0.10 * jax.random.normal(ks[0], (32, 1, 3, 3), f32)
    p["b1"] = 0.10 * jax.random.normal(ks[1], (32,), f32)
    p["bn1_g"] = 1.0 + 0.1 * jax.random.normal(ks[2], (32,), f32)
    p["bn1_b"] = 0.1 * jax.random.normal(ks[3], (32,), f32)
    p["bn1_m"] = 0.1 * jax.random.normal(ks[4], (32,), f32)
    p["bn1_v"] = jax.random.uniform(ks[5], (32,), f32, minval=0.5, maxval=1.5)
    # layer2: Conv2d(32->64, 3x3, pad=1) + BN(64)
    p["w2"] = 0.05 * jax.random.normal(ks[6], (64, 32, 3, 3), f32)
    p["b2"] = 0.05 * jax.random.normal(ks[7], (64,), f32)
    p["bn2_g"] = 1.0 + 0.1 * jax.random.normal(ks[8], (64,), f32)
    p["bn2_b"] = 0.1 * jax.random.normal(ks[9], (64,), f32)
    p["bn2_m"] = 0.1 * jax.random.normal(ks[10], (64,), f32)
    p["bn2_v"] = jax.random.uniform(ks[11], (64,), f32, minval=0.5, maxval=1.5)
    # fc1: 64*7*7 -> 120 ; fc3: 120 -> num_class   (stored as (in, out); fc1 rows in
    # PyTorch NCHW flatten order c*49 + h*7 + w)
    p["fc1_w"] = 0.02 * jax.random.normal(ks[12], (64 * 7 * 7, 120), f32)
    p["fc1_b"] = 0.02 * jax.random.normal(ks[13], (120,), f32)
    p["fc3_w"] = 0.05 * jax.random.normal(ks[14], (120, num_class), f32)
    p["fc3_b"] = 0.05 * jax.random.normal(ks[15], (num_class,), f32)
    return p


if __name__ == "__main__":
    num_class = 10
    key = jax.random.PRNGKey(0)
    k_params, k_x = jax.random.split(key)

    params = init_params(k_params, num_class=num_class)
    prep = prepare_params(params, num_class=num_class)

    # TinyCNN2's fc1 (64*7*7) implies 1x28x28 inputs (MNIST-style).
    x = jax.random.normal(k_x, (2, 1, 28, 28), jnp.float32)

    fwd = jax.jit(tinycnn2_forward, static_argnames=("num_class",))
    logits = fwd(prep, x, num_class=num_class)
    logits = jax.block_until_ready(logits)

    assert logits.shape == (2, num_class), logits.shape
    assert logits.dtype == jnp.float32
    print("KERNEL_OK")
</pallas_src>

<mosaic_0001>
module attributes {stable_mosaic.version = 11 : i64} {
  func.func @_tinycnn2_kernel(%arg0: i32, %arg1: memref<2x30x30xf32, #tpu.memory_space<vmem>>, %arg2: memref<3x30x896xbf16, #tpu.memory_space<vmem>>, %arg3: memref<1x896xf32, #tpu.memory_space<vmem>>, %arg4: memref<3x448x896xbf16, #tpu.memory_space<vmem>>, %arg5: memref<1x896xf32, #tpu.memory_space<vmem>>, %arg6: memref<7x448x128xbf16, #tpu.memory_space<vmem>>, %arg7: memref<1x128xf32, #tpu.memory_space<vmem>>, %arg8: memref<128x128xbf16, #tpu.memory_space<vmem>>, %arg9: memref<1x128xf32, #tpu.memory_space<vmem>>, %arg10: memref<2x128xf32, #tpu.memory_space<vmem>>, %arg11: memref<2x16x448xf32, #tpu.memory_space<vmem>>) attributes {dimension_semantics = [#tpu.dimension_semantics<parallel>], iteration_bounds = array<i64: 1>, scalar_prefetch = 0 : i64, scratch_operands = 1 : i64, tpu.core_type = #tpu.core_type<tc>, window_params = [{transform_indices = @transform_0, window_bounds = array<i64: 2, 30, 30>}, {pipeline_mode = #tpu.pipeline_mode<synchronous>, transform_indices = @transform_1, window_bounds = array<i64: 3, 30, 896>}, {pipeline_mode = #tpu.pipeline_mode<synchronous>, transform_indices = @transform_2, window_bounds = array<i64: 1, 896>}, {pipeline_mode = #tpu.pipeline_mode<synchronous>, transform_indices = @transform_3, window_bounds = array<i64: 3, 448, 896>}, {pipeline_mode = #tpu.pipeline_mode<synchronous>, transform_indices = @transform_4, window_bounds = array<i64: 1, 896>}, {pipeline_mode = #tpu.pipeline_mode<synchronous>, transform_indices = @transform_5, window_bounds = array<i64: 7, 448, 128>}, {pipeline_mode = #tpu.pipeline_mode<synchronous>, transform_indices = @transform_6, window_bounds = array<i64: 1, 128>}, {pipeline_mode = #tpu.pipeline_mode<synchronous>, transform_indices = @transform_7, window_bounds = array<i64: 128, 128>}, {pipeline_mode = #tpu.pipeline_mode<synchronous>, transform_indices = @transform_8, window_bounds = array<i64: 1, 128>}, {transform_indices = @transform_9, window_bounds = array<i64: 2, 128>}]} {
    %c0_i32 = arith.constant 0 : i32
    %0 = arith.cmpi eq, %arg0, %c0_i32 : i32
    %1 = arith.extui %0 : i1 to i32
    %c0_i32_0 = arith.constant 0 : i32
    %2 = arith.cmpi ne, %1, %c0_i32_0 : i32
    scf.if %2 {
      %cst_86 = arith.constant 0.000000e+00 : f32
      %128 = vector.broadcast %cst_86 : f32 to vector<2x16x448xf32>
      %c0_87 = arith.constant 0 : index
      %c0_88 = arith.constant 0 : index
      %c0_89 = arith.constant 0 : index
      %129 = vector.load %arg11[%c0_87, %c0_88, %c0_89] : memref<2x16x448xf32, #tpu.memory_space<vmem>>, vector<2x16x448xf32>
      tpu.vector_store %arg11[%c0_87, %c0_88, %c0_89], %128 {strides = array<i32>} : memref<2x16x448xf32, #tpu.memory_space<vmem>>, vector<2x16x448xf32>,
    } else {
    }
    %cst = arith.constant 0.000000e+00 : f32
    %3 = vector.broadcast %cst : f32 to vector<56x896xf32>
    %c0 = arith.constant 0 : index
    %c0_1 = arith.constant 0 : index
    %c0_2 = arith.constant 0 : index
    %4 = vector.load %arg1[%c0, %c0_1, %c0_2] : memref<2x30x30xf32, #tpu.memory_space<vmem>>, vector<2x28x30xf32>
    %5 = vector.shape_cast %4 : vector<2x28x30xf32> to vector<56x30xf32>
    %6 = arith.truncf %5 : vector<56x30xf32> to vector<56x30xbf16>
    %c0_3 = arith.constant 0 : index
    %c0_4 = arith.constant 0 : index
    %c0_5 = arith.constant 0 : index
    %7 = vector.load %arg2[%c0_3, %c0_4, %c0_5] : memref<3x30x896xbf16, #tpu.memory_space<vmem>>, vector<1x30x896xbf16>
    %8 = vector.shape_cast %7 : vector<1x30x896xbf16> to vector<30x896xbf16>
    %cst_6 = arith.constant dense<0.000000e+00> : vector<56x896xf32>
    %9 = tpu.matmul %6, %8, %cst_6 {dimension_numbers = #tpu.dot_dimension_numbers<[1], [0], [0], [1], [0, 0, 1, 1], [], []>} : vector<56x30xbf16>, vector<30x896xbf16>, vector<56x896xf32> -> vector<56x896xf32>
    %10 = arith.addf %3, %9 : vector<56x896xf32>
    %c0_7 = arith.constant 0 : index
    %c1 = arith.constant 1 : index
    %c0_8 = arith.constant 0 : index
    %11 = vector.load %arg1[%c0_7, %c1, %c0_8] : memref<2x30x30xf32, #tpu.memory_space<vmem>>, vector<2x28x30xf32>
    %12 = vector.shape_cast %11 : vector<2x28x30xf32> to vector<56x30xf32>
    %13 = arith.truncf %12 : vector<56x30xf32> to vector<56x30xbf16>
    %c1_9 = arith.constant 1 : index
    %c0_10 = arith.constant 0 : index
    %c0_11 = arith.constant 0 : index
    %14 = vector.load %arg2[%c1_9, %c0_10, %c0_11] : memref<3x30x896xbf16, #tpu.memory_space<vmem>>, vector<1x30x896xbf16>
    %15 = vector.shape_cast %14 : vector<1x30x896xbf16> to vector<30x896xbf16>
    %cst_12 = arith.constant dense<0.000000e+00> : vector<56x896xf32>
    %16 = tpu.matmul %13, %15, %cst_12 {dimension_numbers = #tpu.dot_dimension_numbers<[1], [0], [0], [1], [0, 0, 1, 1], [], []>} : vector<56x30xbf16>, vector<30x896xbf16>, vector<56x896xf32> -> vector<56x896xf32>
    %17 = arith.addf %10, %16 : vector<56x896xf32>
    %c0_13 = arith.constant 0 : index
    %c2 = arith.constant 2 : index
    %c0_14 = arith.constant 0 : index
    %18 = vector.load %arg1[%c0_13, %c2, %c0_14] : memref<2x30x30xf32, #tpu.memory_space<vmem>>, vector<2x28x30xf32>
    %19 = vector.shape_cast %18 : vector<2x28x30xf32> to vector<56x30xf32>
    %20 = arith.truncf %19 : vector<56x30xf32> to vector<56x30xbf16>
    %c2_15 = arith.constant 2 : index
    %c0_16 = arith.constant 0 : index
    %c0_17 = arith.constant 0 : index
    %21 = vector.load %arg2[%c2_15, %c0_16, %c0_17] : memref<3x30x896xbf16, #tpu.memory_space<vmem>>, vector<1x30x896xbf16>
    %22 = vector.shape_cast %21 : vector<1x30x896xbf16> to vector<30x896xbf16>
    %cst_18 = arith.constant dense<0.000000e+00> : vector<56x896xf32>
    %23 = tpu.matmul %20, %22, %cst_18 {dimension_numbers = #tpu.dot_dimension_numbers<[1], [0], [0], [1], [0, 0, 1, 1], [], []>} : vector<56x30xbf16>, vector<30x896xbf16>, vector<56x896xf32> -> vector<56x896xf32>
    %24 = arith.addf %17, %23 : vector<56x896xf32>
    %c0_19 = arith.constant 0 : index
    %c0_20 = arith.constant 0 : index
    %25 = vector.load %arg3[%c0_19, %c0_20] : memref<1x896xf32, #tpu.memory_space<vmem>>, vector<1x896xf32>
    %26 = vector.broadcast %25 : vector<1x896xf32> to vector<56x896xf32>
    %27 = arith.addf %24, %26 : vector<56x896xf32>
    %cst_21 = arith.constant 0.000000e+00 : f32
    %28 = vector.broadcast %cst_21 : f32 to vector<56x896xf32>
    %29 = arith.maximumf %27, %28 : vector<56x896xf32>
    %30 = vector.extract_strided_slice %29 {offsets = [0, 0], sizes = [56, 448], strides = [1, 1]} : vector<56x896xf32> to vector<56x448xf32>
    %31 = vector.extract_strided_slice %29 {offsets = [0, 448], sizes = [56, 448], strides = [1, 1]} : vector<56x896xf32> to vector<56x448xf32>
    %32 = arith.maximumf %30, %31 : vector<56x448xf32>
    %33 = vector.shape_cast %32 : vector<56x448xf32> to vector<2x14x2x448xf32>
    %cst_22 = arith.constant dense<0xFF800000> : vector<2x14x448xf32>
    %34 = vector.multi_reduction <maximumf>, %33, %cst_22 [2] : vector<2x14x2x448xf32> to vector<2x14x448xf32>
    %c0_23 = arith.constant 0 : index
    %c1_24 = arith.constant 1 : index
    %c0_25 = arith.constant 0 : index
    %35 = vector.load %arg11[%c0_23, %c1_24, %c0_25] : memref<2x16x448xf32, #tpu.memory_space<vmem>>, vector<2x14x448xf32>
    tpu.vector_store %arg11[%c0_23, %c1_24, %c0_25], %34 {strides = array<i32>} : memref<2x16x448xf32, #tpu.memory_space<vmem>>, vector<2x14x448xf32>,
    %cst_26 = arith.constant 0.000000e+00 : f32
    %36 = vector.broadcast %cst_26 : f32 to vector<28x896xf32>
    %c0_27 = arith.constant 0 : index
    %c0_28 = arith.constant 0 : index
    %c0_29 = arith.constant 0 : index
    %37 = vector.load %arg11[%c0_27, %c0_28, %c0_29] : memref<2x16x448xf32, #tpu.memory_space<vmem>>, vector<2x14x448xf32>
    %38 = vector.shape_cast %37 : vector<2x14x448xf32> to vector<28x448xf32>
    %39 = arith.truncf %38 : vector<28x448xf32> to vector<28x448xbf16>
    %c0_30 = arith.constant 0 : index
    %c0_31 = arith.constant 0 : index
    %c0_32 = arith.constant 0 : index
    %40 = vector.load %arg4[%c0_30, %c0_31, %c0_32] : memref<3x448x896xbf16, #tpu.memory_space<vmem>>, vector<1x448x896xbf16>
    %41 = vector.shape_cast %40 : vector<1x448x896xbf16> to vector<448x896xbf16>
    %cst_33 = arith.constant dense<0.000000e+00> : vector<28x896xf32>
    %42 = tpu.matmul %39, %41, %cst_33 {dimension_numbers = #tpu.dot_dimension_numbers<[1], [0], [0], [1], [0, 0, 1, 1], [], []>} : vector<28x448xbf16>, vector<448x896xbf16>, vector<28x896xf32> -> vector<28x896xf32>
    %43 = arith.addf %36, %42 : vector<28x896xf32>
    %c0_34 = arith.constant 0 : index
    %c1_35 = arith.constant 1 : index
    %c0_36 = arith.constant 0 : index
    %44 = vector.load %arg11[%c0_34, %c1_35, %c0_36] : memref<2x16x448xf32, #tpu.memory_space<vmem>>, vector<2x14x448xf32>
    %45 = vector.shape_cast %44 : vector<2x14x448xf32> to vector<28x448xf32>
    %46 = arith.truncf %45 : vector<28x448xf32> to vector<28x448xbf16>
    %c1_37 = arith.constant 1 : index
    %c0_38 = arith.constant 0 : index
    %c0_39 = arith.constant 0 : index
    %47 = vector.load %arg4[%c1_37, %c0_38, %c0_39] : memref<3x448x896xbf16, #tpu.memory_space<vmem>>, vector<1x448x896xbf16>
    %48 = vector.shape_cast %47 : vector<1x448x896xbf16> to vector<448x896xbf16>
    %cst_40 = arith.constant dense<0.000000e+00> : vector<28x896xf32>
    %49 = tpu.matmul %46, %48, %cst_40 {dimension_numbers = #tpu.dot_dimension_numbers<[1], [0], [0], [1], [0, 0, 1, 1], [], []>} : vector<28x448xbf16>, vector<448x896xbf16>, vector<28x896xf32> -> vector<28x896xf32>
    %50 = arith.addf %43, %49 : vector<28x896xf32>
    %c0_41 = arith.constant 0 : index
    %c2_42 = arith.constant 2 : index
    %c0_43 = arith.constant 0 : index
    %51 = vector.load %arg11[%c0_41, %c2_42, %c0_43] : memref<2x16x448xf32, #tpu.memory_space<vmem>>, vector<2x14x448xf32>
    %52 = vector.shape_cast %51 : vector<2x14x448xf32> to vector<28x448xf32>
    %53 = arith.truncf %52 : vector<28x448xf32> to vector<28x448xbf16>
    %c2_44 = arith.constant 2 : index
    %c0_45 = arith.constant 0 : index
    %c0_46 = arith.constant 0 : index
    %54 = vector.load %arg4[%c2_44, %c0_45, %c0_46] : memref<3x448x896xbf16, #tpu.memory_space<vmem>>, vector<1x448x896xbf16>
    %55 = vector.shape_cast %54 : vector<1x448x896xbf16> to vector<448x896xbf16>
    %cst_47 = arith.constant dense<0.000000e+00> : vector<28x896xf32>
    %56 = tpu.matmul %53, %55, %cst_47 {dimension_numbers = #tpu.dot_dimension_numbers<[1], [0], [0], [1], [0, 0, 1, 1], [], []>} : vector<28x448xbf16>, vector<448x896xbf16>, vector<28x896xf32> -> vector<28x896xf32>
    %57 = arith.addf %50, %56 : vector<28x896xf32>
    %c0_48 = arith.constant 0 : index
    %c0_49 = arith.constant 0 : index
    %58 = vector.load %arg5[%c0_48, %c0_49] : memref<1x896xf32, #tpu.memory_space<vmem>>, vector<1x896xf32>
    %59 = vector.broadcast %58 : vector<1x896xf32> to vector<28x896xf32>
    %60 = arith.addf %57, %59 : vector<28x896xf32>
    %cst_50 = arith.constant 0.000000e+00 : f32
    %61 = vector.broadcast %cst_50 : f32 to vector<28x896xf32>
    %62 = arith.maximumf %60, %61 : vector<28x896xf32>
    %63 = vector.extract_strided_slice %62 {offsets = [0, 0], sizes = [28, 448], strides = [1, 1]} : vector<28x896xf32> to vector<28x448xf32>
    %64 = vector.extract_strided_slice %62 {offsets = [0, 448], sizes = [28, 448], strides = [1, 1]} : vector<28x896xf32> to vector<28x448xf32>
    %65 = arith.maximumf %63, %64 : vector<28x448xf32>
    %66 = vector.shape_cast %65 : vector<28x448xf32> to vector<2x7x2x448xf32>
    %cst_51 = arith.constant dense<0xFF800000> : vector<2x7x448xf32>
    %67 = vector.multi_reduction <maximumf>, %66, %cst_51 [2] : vector<2x7x2x448xf32> to vector<2x7x448xf32>
    %cst_52 = arith.constant 0.000000e+00 : f32
    %68 = vector.broadcast %cst_52 : f32 to vector<2x128xf32>
    %69 = vector.extract_strided_slice %67 {offsets = [0, 0, 0], sizes = [2, 1, 448], strides = [1, 1, 1]} : vector<2x7x448xf32> to vector<2x1x448xf32>
    %70 = vector.shape_cast %69 : vector<2x1x448xf32> to vector<2x448xf32>
    %71 = arith.truncf %70 : vector<2x448xf32> to vector<2x448xbf16>
    %c0_53 = arith.constant 0 : index
    %c0_54 = arith.constant 0 : index
    %c0_55 = arith.constant 0 : index
    %72 = vector.load %arg6[%c0_53, %c0_54, %c0_55] : memref<7x448x128xbf16, #tpu.memory_space<vmem>>, vector<1x448x128xbf16>
    %73 = vector.shape_cast %72 : vector<1x448x128xbf16> to vector<448x128xbf16>
    %cst_56 = arith.constant dense<0.000000e+00> : vector<2x128xf32>
    %74 = tpu.matmul %71, %73, %cst_56 {dimension_numbers = #tpu.dot_dimension_numbers<[1], [0], [0], [1], [0, 0, 1, 1], [], []>} : vector<2x448xbf16>, vector<448x128xbf16>, vector<2x128xf32> -> vector<2x128xf32>
    %75 = arith.addf %68, %74 : vector<2x128xf32>
    %76 = vector.extract_strided_slice %67 {offsets = [0, 1, 0], sizes = [2, 1, 448], strides = [1, 1, 1]} : vector<2x7x448xf32> to vector<2x1x448xf32>
    %77 = vector.shape_cast %76 : vector<2x1x448xf32> to vector<2x448xf32>
    %78 = arith.truncf %77 : vector<2x448xf32> to vector<2x448xbf16>
    %c1_57 = arith.constant 1 : index
    %c0_58 = arith.constant 0 : index
    %c0_59 = arith.constant 0 : index
    %79 = vector.load %arg6[%c1_57, %c0_58, %c0_59] : memref<7x448x128xbf16, #tpu.memory_space<vmem>>, vector<1x448x128xbf16>
    %80 = vector.shape_cast %79 : vector<1x448x128xbf16> to vector<448x128xbf16>
    %cst_60 = arith.constant dense<0.000000e+00> : vector<2x128xf32>
    %81 = tpu.matmul %78, %80, %cst_60 {dimension_numbers = #tpu.dot_dimension_numbers<[1], [0], [0], [1], [0, 0, 1, 1], [], []>} : vector<2x448xbf16>, vector<448x128xbf16>, vector<2x128xf32> -> vector<2x128xf32>
    %82 = arith.addf %75, %81 : vector<2x128xf32>
    %83 = vector.extract_strided_slice %67 {offsets = [0, 2, 0], sizes = [2, 1, 448], strides = [1, 1, 1]} : vector<2x7x448xf32> to vector<2x1x448xf32>
    %84 = vector.shape_cast %83 : vector<2x1x448xf32> to vector<2x448xf32>
    %85 = arith.truncf %84 : vector<2x448xf32> to vector<2x448xbf16>
    %c2_61 = arith.constant 2 : index
    %c0_62 = arith.constant 0 : index
    %c0_63 = arith.constant 0 : index
    %86 = vector.load %arg6[%c2_61, %c0_62, %c0_63] : memref<7x448x128xbf16, #tpu.memory_space<vmem>>, vector<1x448x128xbf16>
    %87 = vector.shape_cast %86 : vector<1x448x128xbf16> to vector<448x128xbf16>
    %cst_64 = arith.constant dense<0.000000e+00> : vector<2x128xf32>
    %88 = tpu.matmul %85, %87, %cst_64 {dimension_numbers = #tpu.dot_dimension_numbers<[1], [0], [0], [1], [0, 0, 1, 1], [], []>} : vector<2x448xbf16>, vector<448x128xbf16>, vector<2x128xf32> -> vector<2x128xf32>
    %89 = arith.addf %82, %88 : vector<2x128xf32>
    %90 = vector.extract_strided_slice %67 {offsets = [0, 3, 0], sizes = [2, 1, 448], strides = [1, 1, 1]} : vector<2x7x448xf32> to vector<2x1x448xf32>
    %91 = vector.shape_cast %90 : vector<2x1x448xf32> to vector<2x448xf32>
    %92 = arith.truncf %91 : vector<2x448xf32> to vector<2x448xbf16>
    %c3 = arith.constant 3 : index
    %c0_65 = arith.constant 0 : index
    %c0_66 = arith.constant 0 : index
    %93 = vector.load %arg6[%c3, %c0_65, %c0_66] : memref<7x448x128xbf16, #tpu.memory_space<vmem>>, vector<1x448x128xbf16>
    %94 = vector.shape_cast %93 : vector<1x448x128xbf16> to vector<448x128xbf16>
    %cst_67 = arith.constant dense<0.000000e+00> : vector<2x128xf32>
    %95 = tpu.matmul %92, %94, %cst_67 {dimension_numbers = #tpu.dot_dimension_numbers<[1], [0], [0], [1], [0, 0, 1, 1], [], []>} : vector<2x448xbf16>, vector<448x128xbf16>, vector<2x128xf32> -> vector<2x128xf32>
    %96 = arith.addf %89, %95 : vector<2x128xf32>
    %97 = vector.extract_strided_slice %67 {offsets = [0, 4, 0], sizes = [2, 1, 448], strides = [1, 1, 1]} : vector<2x7x448xf32> to vector<2x1x448xf32>
    %98 = vector.shape_cast %97 : vector<2x1x448xf32> to vector<2x448xf32>
    %99 = arith.truncf %98 : vector<2x448xf32> to vector<2x448xbf16>
    %c4 = arith.constant 4 : index
    %c0_68 = arith.constant 0 : index
    %c0_69 = arith.constant 0 : index
    %100 = vector.load %arg6[%c4, %c0_68, %c0_69] : memref<7x448x128xbf16, #tpu.memory_space<vmem>>, vector<1x448x128xbf16>
    %101 = vector.shape_cast %100 : vector<1x448x128xbf16> to vector<448x128xbf16>
    %cst_70 = arith.constant dense<0.000000e+00> : vector<2x128xf32>
    %102 = tpu.matmul %99, %101, %cst_70 {dimension_numbers = #tpu.dot_dimension_numbers<[1], [0], [0], [1], [0, 0, 1, 1], [], []>} : vector<2x448xbf16>, vector<448x128xbf16>, vector<2x128xf32> -> vector<2x128xf32>
    %103 = arith.addf %96, %102 : vector<2x128xf32>
    %104 = vector.extract_strided_slice %67 {offsets = [0, 5, 0], sizes = [2, 1, 448], strides = [1, 1, 1]} : vector<2x7x448xf32> to vector<2x1x448xf32>
    %105 = vector.shape_cast %104 : vector<2x1x448xf32> to vector<2x448xf32>
    %106 = arith.truncf %105 : vector<2x448xf32> to vector<2x448xbf16>
    %c5 = arith.constant 5 : index
    %c0_71 = arith.constant 0 : index
    %c0_72 = arith.constant 0 : index
    %107 = vector.load %arg6[%c5, %c0_71, %c0_72] : memref<7x448x128xbf16, #tpu.memory_space<vmem>>, vector<1x448x128xbf16>
    %108 = vector.shape_cast %107 : vector<1x448x128xbf16> to vector<448x128xbf16>
    %cst_73 = arith.constant dense<0.000000e+00> : vector<2x128xf32>
    %109 = tpu.matmul %106, %108, %cst_73 {dimension_numbers = #tpu.dot_dimension_numbers<[1], [0], [0], [1], [0, 0, 1, 1], [], []>} : vector<2x448xbf16>, vector<448x128xbf16>, vector<2x128xf32> -> vector<2x128xf32>
    %110 = arith.addf %103, %109 : vector<2x128xf32>
    %111 = vector.extract_strided_slice %67 {offsets = [0, 6, 0], sizes = [2, 1, 448], strides = [1, 1, 1]} : vector<2x7x448xf32> to vector<2x1x448xf32>
    %112 = vector.shape_cast %111 : vector<2x1x448xf32> to vector<2x448xf32>
    %113 = arith.truncf %112 : vector<2x448xf32> to vector<2x448xbf16>
    %c6 = arith.constant 6 : index
    %c0_74 = arith.constant 0 : index
    %c0_75 = arith.constant 0 : index
    %114 = vector.load %arg6[%c6, %c0_74, %c0_75] : memref<7x448x128xbf16, #tpu.memory_space<vmem>>, vector<1x448x128xbf16>
    %115 = vector.shape_cast %114 : vector<1x448x128xbf16> to vector<448x128xbf16>
    %cst_76 = arith.constant dense<0.000000e+00> : vector<2x128xf32>
    %116 = tpu.matmul %113, %115, %cst_76 {dimension_numbers = #tpu.dot_dimension_numbers<[1], [0], [0], [1], [0, 0, 1, 1], [], []>} : vector<2x448xbf16>, vector<448x128xbf16>, vector<2x128xf32> -> vector<2x128xf32>
    %117 = arith.addf %110, %116 : vector<2x128xf32>
    %c0_77 = arith.constant 0 : index
    %c0_78 = arith.constant 0 : index
    %118 = vector.load %arg7[%c0_77, %c0_78] : memref<1x128xf32, #tpu.memory_space<vmem>>, vector<1x128xf32>
    %119 = vector.broadcast %118 : vector<1x128xf32> to vector<2x128xf32>
    %120 = arith.addf %117, %119 : vector<2x128xf32>
    %121 = arith.truncf %120 : vector<2x128xf32> to vector<2x128xbf16>
    %c0_79 = arith.constant 0 : index
    %c0_80 = arith.constant 0 : index
    %122 = vector.load %arg8[%c0_79, %c0_80] : memref<128x128xbf16, #tpu.memory_space<vmem>>, vector<128x128xbf16>
    %cst_81 = arith.constant dense<0.000000e+00> : vector<2x128xf32>
    %123 = tpu.matmul %121, %122, %cst_81 {dimension_numbers = #tpu.dot_dimension_numbers<[1], [0], [0], [1], [0, 0, 1, 1], [], []>} : vector<2x128xbf16>, vector<128x128xbf16>, vector<2x128xf32> -> vector<2x128xf32>
    %c0_82 = arith.constant 0 : index
    %c0_83 = arith.constant 0 : index
    %124 = vector.load %arg9[%c0_82, %c0_83] : memref<1x128xf32, #tpu.memory_space<vmem>>, vector<1x128xf32>
    %125 = vector.broadcast %124 : vector<1x128xf32> to vector<2x128xf32>
    %126 = arith.addf %123, %125 : vector<2x128xf32>
    %c0_84 = arith.constant 0 : index
    %c0_85 = arith.constant 0 : index
    %127 = vector.load %arg10[%c0_84, %c0_85] : memref<2x128xf32, #tpu.memory_space<vmem>>, vector<2x128xf32>
    tpu.vector_store %arg10[%c0_84, %c0_85], %126 {strides = array<i32>} : memref<2x128xf32, #tpu.memory_space<vmem>>, vector<2x128xf32>,
    return
  }
  func.func @transform_0(%arg0: i32) -> (i32, i32, i32) {
    %c0_i32 = arith.constant 0 : i32
    %c0_i32_0 = arith.constant 0 : i32
    %c0_i32_1 = arith.constant 0 : i32
    return %arg0, %c0_i32, %c0_i32_0 : i32, i32, i32
  }
  func.func @transform_1(%arg0: i32) -> (i32, i32, i32) {
    %c0_i32 = arith.constant 0 : i32
    %c0_i32_0 = arith.constant 0 : i32
    %c0_i32_1 = arith.constant 0 : i32
    %c0_i32_2 = arith.constant 0 : i32
    return %c0_i32, %c0_i32_0, %c0_i32_1 : i32, i32, i32
  }
  func.func @transform_2(%arg0: i32) -> (i32, i32) {
    %c0_i32 = arith.constant 0 : i32
    %c0_i32_0 = arith.constant 0 : i32
    %c0_i32_1 = arith.constant 0 : i32
    return %c0_i32, %c0_i32_0 : i32, i32
  }
  func.func @transform_3(%arg0: i32) -> (i32, i32, i32) {
    %c0_i32 = arith.constant 0 : i32
    %c0_i32_0 = arith.constant 0 : i32
    %c0_i32_1 = arith.constant 0 : i32
    %c0_i32_2 = arith.constant 0 : i32
    return %c0_i32, %c0_i32_0, %c0_i32_1 : i32, i32, i32
  }
  func.func @transform_4(%arg0: i32) -> (i32, i32) {
    %c0_i32 = arith.constant 0 : i32
    %c0_i32_0 = arith.constant 0 : i32
    %c0_i32_1 = arith.constant 0 : i32
    return %c0_i32, %c0_i32_0 : i32, i32
  }
  func.func @transform_5(%arg0: i32) -> (i32, i32, i32) {
    %c0_i32 = arith.constant 0 : i32
    %c0_i32_0 = arith.constant 0 : i32
    %c0_i32_1 = arith.constant 0 : i32
    %c0_i32_2 = arith.constant 0 : i32
    return %c0_i32, %c0_i32_0, %c0_i32_1 : i32, i32, i32
  }
  func.func @transform_6(%arg0: i32) -> (i32, i32) {
    %c0_i32 = arith.constant 0 : i32
    %c0_i32_0 = arith.constant 0 : i32
    %c0_i32_1 = arith.constant 0 : i32
    return %c0_i32, %c0_i32_0 : i32, i32
  }
  func.func @transform_7(%arg0: i32) -> (i32, i32) {
    %c0_i32 = arith.constant 0 : i32
    %c0_i32_0 = arith.constant 0 : i32
    %c0_i32_1 = arith.constant 0 : i32
    return %c0_i32, %c0_i32_0 : i32, i32
  }
  func.func @transform_8(%arg0: i32) -> (i32, i32) {
    %c0_i32 = arith.constant 0 : i32
    %c0_i32_0 = arith.constant 0 : i32
    %c0_i32_1 = arith.constant 0 : i32
    return %c0_i32, %c0_i32_0 : i32, i32
  }
  func.func @transform_9(%arg0: i32) -> (i32, i32) {
    %c0_i32 = arith.constant 0 : i32
    %c0_i32_0 = arith.constant 0 : i32
    return %arg0, %c0_i32 : i32, i32
  }
}

</mosaic_0001>

<bundles_post_ra>
// kernel: tinycnn2_forward.1
= control target key start
LH: loop header
LB: loop body
LE: loop exit
PB: predicated region body
PF: predicated region fallthrough
CT: control target
= control target key end

     0   :  { %14 = vsyncpa [#allocation4], 0  ;;  %s19093_s0 = inlined_call_operand.vmem [shape: f32[2,30,30], index: 0, kind: input, shape index: {}]   ;;  %s19094_s1 = inlined_call_operand.hbm [shape: bf16[3,30,896], index: 1, kind: input, shape index: {}]   ;;  %s19095_s2 = inlined_call_operand.hbm [shape: f32[1,896], index: 2, kind: input, shape index: {}]   ;;  %s19096_s3 = inlined_call_operand.hbm [shape: bf16[3,448,896], index: 3, kind: input, shape index: {}]   ;;  %s19097_s4 = inlined_call_operand.hbm [shape: f32[1,896], index: 4, kind: input, shape index: {}]   ;;  %s19098_s5 = inlined_call_operand.hbm [shape: bf16[7,448,128], index: 5, kind: input, shape index: {}]   ;;  %s19099_s6 = inlined_call_operand.hbm [shape: f32[1,128], index: 6, kind: input, shape index: {}]   ;;  %s19100_s7 = inlined_call_operand.hbm [shape: bf16[128,128], index: 7, kind: input, shape index: {}]   ;;  %s19101_s8 = inlined_call_operand.hbm [shape: f32[1,128], index: 8, kind: input, shape index: {}]   ;;  %s19102_s9 = inlined_call_operand.hbm [shape: f32[2,128], index: 9, kind: output, shape index: {}]  }
   0x1   :  { %15 = vsyncpa [#allocation7], 0 }
   0x2   :  { %16 = vsyncpa [#allocation10], 0 }
   0x3   :  { %17 = vsyncpa [#allocation13], 0 }
   0x4   :  { %18 = vsyncpa [#allocation16], 0 }
   0x5   :  { %19 = vsyncpa [#allocation5], 0  ;;  %s16210_s30 = smov [#allocation6]   ;;  %s16211_s11 = smov [#allocation9]  }
   0x6   :  { %s40_s10 = sshll.u32 %s16210_s30, 4  ;;  %s62_s12 = sshll.u32 %s16211_s11, 4  ;;  %s41_s10 = int_to_ptr.vmem [resolvable:$true] %s40_s10  ;;  %s63_s12 = int_to_ptr.vmem [resolvable:$true] %s62_s12 }
   0x7   :  { %s16000_s15 = scalar_lea.hbm %s19095_s2, 112 }
   0x8   :  { %p16001_p0 = scmp.ne.s32.totalorder %s19095_s2, %s16000_s15  ;;  %p16004_p1 = scmp.lt.u32.totalorder %s16000_s15, %s19095_s2 }
   0xa   :  { %p16006_p2 = pnand %p16004_p1, %p16001_p0 }
   0xc   :  { %16009 = shalt.err (!%p16006_p2)
}
   0xd   :  { %s16010_s20 = scalar_lea.vmem %s41_s10, 112  ;;  %s16014_s21 = scalar_lea.vmem %s41_s10, 128 }
   0xe   :  { %p16011_p3 = scmp.ne.s32.totalorder %s41_s10, %s16010_s20  ;;  %p16015_p4 = scmp.lt.s32.totalorder %s41_s10, %s41_s10 }
   0xf   :  { %p16016_p5 = scmp.lt.s32.totalorder %s16014_s21, %s16010_s20 }
  0x11   :  { %p16017_p6 = por %p16016_p5, %p16015_p4 }
  0x13   :  { %p16018_p7 = pnand %p16017_p6, %p16011_p3 }
  0x15   :  { %16021 = shalt.err (!%p16018_p7)
}
  0x16   :  { %43 = dma.hbm_to_vmem [thread:$0]  %s19095_s2, 112, %s41_s10, [#allocation7]  }
  0x17   :  { %s16022_s26 = scalar_lea.hbm %s19097_s4, 112 }
  0x18   :  { %p16023_p8 = scmp.ne.s32.totalorder %s19097_s4, %s16022_s26  ;;  %p16026_p9 = scmp.lt.u32.totalorder %s16022_s26, %s19097_s4 }
  0x1a   :  { %p16028_p10 = pnand %p16026_p9, %p16023_p8 }
  0x1c   :  { %16031 = shalt.err (!%p16028_p10)
}
  0x1d   :  { %s16032_s11 = scalar_lea.vmem %s63_s12, 112  ;;  %s16036_s13 = scalar_lea.vmem %s63_s12, 128 }
  0x1e   :  { %p16033_p11 = scmp.ne.s32.totalorder %s63_s12, %s16032_s11  ;;  %p16037_p12 = scmp.lt.s32.totalorder %s63_s12, %s63_s12 }
  0x1f   :  { %p16038_p13 = scmp.lt.s32.totalorder %s16036_s13, %s16032_s11 }
  0x21   :  { %p16039_p0 = por %p16038_p13, %p16037_p12 }
  0x23   :  { %p16040_p1 = pnand %p16039_p0, %p16033_p11 }
  0x25   :  { %16043 = shalt.err (!%p16040_p1)
}
  0x26   :  { %65 = dma.hbm_to_vmem [thread:$0]  %s19097_s4, 112, %s63_s12, [#allocation10]  }
  0x27   :  { %s16212_s14 = smov [#allocation12]   ;;  %s16213_s16 = smov [#allocation3]  }
  0x28   :  { %s84_s15 = sshll.u32 %s16212_s14, 4  ;;  %s27_s17 = sshll.u32 %s16213_s16, 4  ;;  %s85_s15 = int_to_ptr.vmem [resolvable:$true] %s84_s15  ;;  %s16301_s17 = int_to_ptr.vmem [resolvable:$true] %s27_s17 }
  0x29   :  { %s16044_s20 = scalar_lea.hbm %s19099_s6, 16 }
  0x2a   :  { %p16045_p2 = scmp.ne.s32.totalorder %s19099_s6, %s16044_s20  ;;  %p16048_p3 = scmp.lt.u32.totalorder %s16044_s20, %s19099_s6 }
  0x2c   :  { %p16050_p4 = pnand %p16048_p3, %p16045_p2 }
  0x2e   :  { %16053 = shalt.err (!%p16050_p4)
}
  0x2f   :  { %s16054_s4 = scalar_lea.vmem %s85_s15, 16  ;;  %s16058_s12 = scalar_lea.vmem %s85_s15, 32 }
  0x30   :  { %p16055_p5 = scmp.ne.s32.totalorder %s85_s15, %s16054_s4  ;;  %p16059_p6 = scmp.lt.s32.totalorder %s85_s15, %s85_s15 }
  0x31   :  { %p16060_p7 = scmp.lt.s32.totalorder %s16058_s12, %s16054_s4 }
  0x33   :  { %p16061_p8 = por %p16060_p7, %p16059_p6 }
  0x35   :  { %p16062_p9 = pnand %p16061_p8, %p16055_p5 }
  0x37   :  { %16065 = shalt.err (!%p16062_p9)
}
  0x38   :  { %87 = dma.hbm_to_vmem [thread:$0]  %s19099_s6, 16, %s85_s15, [#allocation13]  }
  0x39   :  { %s16066_s29 = scalar_lea.hbm %s19094_s1, 5376 }
  0x3a   :  { %p16067_p10 = scmp.ne.s32.totalorder %s19094_s1, %s16066_s29  ;;  %p16070_p11 = scmp.lt.u32.totalorder %s16066_s29, %s19094_s1 }
  0x3c   :  { %p16072_p12 = pnand %p16070_p11, %p16067_p10 }
  0x3e   :  { %16075 = shalt.err (!%p16072_p12)
}
  0x3f   :  { %s16076_s10 = scalar_lea.vmem %s16301_s17, 5376  ;;  %p16081_p0 = scmp.lt.s32.totalorder %s16301_s17, %s16301_s17 }
  0x40   :  { %p16077_p13 = scmp.ne.s32.totalorder %s16301_s17, %s16076_s10  ;;  %p16082_p1 = scmp.lt.s32.totalorder %s16076_s10, %s16076_s10 }
  0x42   :  { %p16083_p2 = por %p16082_p1, %p16081_p0 }
  0x44   :  { %p16084_p3 = pnand %p16083_p2, %p16077_p13 }
  0x46   :  { %16087 = shalt.err (!%p16084_p3)
}
  0x47   :  { %s16214_s6 = smov 448   ;;  %s16215_s14 = smov 28  }
  0x48   :  { %33 = dma.hbm_to_vmem [thread:$0]  %s19094_s1, 5376, %s16301_s17, [#allocation4], %s16214_s6, %s16214_s6, %s16215_s14  }
  0x49   :  { %s16216_s18 = smov [#allocation8]   ;;  %s16217_s20 = smov [#allocation11]  }
  0x4a   :  { %s49_s19 = sshll.u32 %s16216_s18, 4  ;;  %s71_s21 = sshll.u32 %s16217_s20, 4  ;;  %s50_s19 = int_to_ptr.vmem [resolvable:$true] %s49_s19  ;;  %s16332_s21 = int_to_ptr.vmem [resolvable:$true] %s71_s21 }
  0x4b   :  { %s16088_s24 = scalar_lea.hbm %s19096_s3, 75264 }
  0x4c   :  { %p16089_p4 = scmp.ne.s32.totalorder %s19096_s3, %s16088_s24  ;;  %p16092_p5 = scmp.lt.u32.totalorder %s16088_s24, %s19096_s3 }
  0x4e   :  { %p16094_p6 = pnand %p16092_p5, %p16089_p4 }
  0x50   :  { %16097 = shalt.err (!%p16094_p6)
}
  0x51   :  { %s16098_s1 = scalar_lea.vmem %s50_s19, 75264  ;;  %p16103_p8 = scmp.lt.s32.totalorder %s50_s19, %s50_s19 }
  0x52   :  { %p16099_p7 = scmp.ne.s32.totalorder %s50_s19, %s16098_s1  ;;  %p16104_p9 = scmp.lt.s32.totalorder %s16098_s1, %s16098_s1 }
  0x54   :  { %p16105_p10 = por %p16104_p9, %p16103_p8 }
  0x56   :  { %p16106_p11 = pnand %p16105_p10, %p16099_p7 }
  0x58   :  { %16109 = shalt.err (!%p16106_p11)
}
  0x59   :  { %55 = dma.hbm_to_vmem [thread:$0]  %s19096_s3, 75264, %s50_s19, [#allocation7], %s16214_s6, %s16214_s6, %s16215_s14  }
  0x5a   :  { %s16110_s30 = scalar_lea.hbm %s19098_s5, 25088 }
  0x5b   :  { %p16111_p12 = scmp.ne.s32.totalorder %s19098_s5, %s16110_s30  ;;  %p16114_p13 = scmp.lt.u32.totalorder %s16110_s30, %s19098_s5 }
  0x5d   :  { %p16116_p0 = pnand %p16114_p13, %p16111_p12 }
  0x5f   :  { %16119 = shalt.err (!%p16116_p0)
}
  0x60   :  { %s16120_s15 = scalar_lea.vmem %s16332_s21, 25088  ;;  %p16125_p2 = scmp.lt.s32.totalorder %s16332_s21, %s16332_s21 }
  0x61   :  { %p16121_p1 = scmp.ne.s32.totalorder %s16332_s21, %s16120_s15  ;;  %p16126_p3 = scmp.lt.s32.totalorder %s16120_s15, %s16120_s15 }
  0x63   :  { %p16127_p4 = por %p16126_p3, %p16125_p2 }
  0x65   :  { %p16128_p5 = pnand %p16127_p4, %p16121_p1 }
  0x67   :  { %16131 = shalt.err (!%p16128_p5)
}
  0x68   :  { %s16218_s3 = smov 64   ;;  %s16219_s6 = smov 4  }
  0x69   :  { %77 = dma.hbm_to_vmem [thread:$0]  %s19098_s5, 25088, %s16332_s21, [#allocation10], %s16218_s3, %s16218_s3, %s16219_s6  }
  0x6a   :  { %s16220_s18 = smov [#allocation14]   ;;  %s16221_s20 = smov [#allocation15]  }
  0x6b   :  { %s93_s19 = sshll.u32 %s16220_s18, 4  ;;  %s106_s22 = sshll.u32 %s16221_s20, 4  ;;  %s94_s19 = int_to_ptr.vmem [resolvable:$true] %s93_s19  ;;  %s107_s22 = int_to_ptr.vmem [resolvable:$true] %s106_s22 }
  0x6c   :  { %s16132_s4 = scalar_lea.hbm %s19100_s7, 1024 }
  0x6d   :  { %p16133_p6 = scmp.ne.s32.totalorder %s19100_s7, %s16132_s4  ;;  %p16136_p7 = scmp.lt.u32.totalorder %s16132_s4, %s19100_s7 }
  0x6f   :  { %p16138_p8 = pnand %p16136_p7, %p16133_p6 }
  0x71   :  { %16141 = shalt.err (!%p16138_p8)
}
  0x72   :  { %s16142_s5 = scalar_lea.vmem %s94_s19, 1024  ;;  %p16147_p10 = scmp.lt.s32.totalorder %s94_s19, %s94_s19 }
  0x73   :  { %p16143_p9 = scmp.ne.s32.totalorder %s94_s19, %s16142_s5  ;;  %p16148_p11 = scmp.lt.s32.totalorder %s16142_s5, %s16142_s5 }
  0x75   :  { %p16149_p12 = por %p16148_p11, %p16147_p10 }
  0x77   :  { %p16150_p13 = pnand %p16149_p12, %p16143_p9 }
  0x79   :  { %16153 = shalt.err (!%p16150_p13)
}
  0x7a   :  { %99 = dma.hbm_to_vmem [thread:$0]  %s19100_s7, 1024, %s94_s19, [#allocation13], %s16218_s3, %s16218_s3, %s16219_s6  }
  0x7b   :  { %s16154_s29 = scalar_lea.hbm %s19101_s8, 16 }
  0x7c   :  { %p16155_p0 = scmp.ne.s32.totalorder %s19101_s8, %s16154_s29  ;;  %p16158_p1 = scmp.lt.u32.totalorder %s16154_s29, %s19101_s8 }
  0x7e   :  { %p16160_p2 = pnand %p16158_p1, %p16155_p0 }
  0x80   :  { %16163 = shalt.err (!%p16160_p2)
}
  0x81   :  { %s16164_s10 = scalar_lea.vmem %s107_s22, 16  ;;  %s16168_s15 = scalar_lea.vmem %s107_s22, 32 }
  0x82   :  { %p16165_p3 = scmp.ne.s32.totalorder %s107_s22, %s16164_s10  ;;  %p16169_p4 = scmp.lt.s32.totalorder %s107_s22, %s107_s22 }
  0x83   :  { %p16170_p5 = scmp.lt.s32.totalorder %s16168_s15, %s16164_s10 }
  0x85   :  { %p16171_p6 = por %p16170_p5, %p16169_p4 }
  0x87   :  { %p16172_p7 = pnand %p16171_p6, %p16165_p3 }
  0x89   :  { %16175 = shalt.err (!%p16172_p7)
}
  0x8a   :  { %109 = dma.hbm_to_vmem [thread:$0]  %s19101_s8, 16, %s107_s22, [#allocation16]  }
  0x8b   :  { %16198 = dma.done.wait [#allocation4], 5376  }
  0x8c   :  { %16199 = vsyncadd [#allocation4], 4294961920 }
  0x8d   :  { %16200 = dma.done.wait [#allocation7], 75376  }
  0x8e   :  { %16201 = vsyncadd [#allocation7], 4294891920 }
  0x8f   :  { %16202 = dma.done.wait [#allocation10], 25200  }
  0x90   :  { %16203 = vsyncadd [#allocation10], 4294942096 }
  0x91   :  { %16204 = dma.done.wait [#allocation13], 1040  }
  0x92   :  { %16205 = vsyncadd [#allocation13], 4294966256 }
  0x93   :  { %16206 = dma.done.wait [#allocation16], 16  }
  0x94   :  { %16207 = vsyncadd [#allocation16], 4294967280  ;;  %v19112_v0 = vmov 0   ;;  %v14803_v1 = vld [vmem:[#allocation3 + $0x74] ss:$28 sps:$4 sm:$0xff]   ;;  %vm347_vm0 = vcmask 1046528  }
  0x95   :  { %401 = vmatprep.mubr.bf16.mxu0 %v19112_v0  ;;  %431 = vmatprep.mubr.bf16.mxu1 %v19112_v0  ;;  %v14805_v2 = vld [vmem:[#allocation3 + $0x70] ss:$28 sps:$4 sm:$0xff]   ;;  %v14808_v4 = vld [vmem:[#allocation3 + $0xa8] ss:$28 sps:$4 sm:$0x7f]   ;;  %vm334_vm1 = vcmask 244736  }
  0x96   :  { %369 = vmatprep.subr.bf16.mxu0 %v14803_v1  ;;  %14579 = vmatprep.subr.bf16.mxu1 %v14803_v1  ;;  %v14806_v3 = vld [vmem:[#allocation3 + $0xac] ss:$28 sps:$4 sm:$0x7f]   ;;  %v218_v7 = vld [vmem:[%s19093_s0 + $0x31] sm:$0xff]  ;;  %v349_v8 = vsel %vm347_vm0, %v14808_v4, 0  ;;  %v156_v54 = vld [vmem:[%s19093_s0] sm:$0xff] }
  0x97   :  { %370 = vmatpush1.bf16.msra.mxu0 %v14805_v2  ;;  %14581 = vmatpush1.bf16.msra.mxu1 %v14805_v2  ;;  %v212_v5 = vld [vmem:[%s19093_s0 + $0x1] sm:$0xff]  ;;  %v213_v6 = vld [vmem:[%s19093_s0 + $0x9] sm:$0xff]  ;;  %v219_v11 = vld [vmem:[%s19093_s0 + $0x39] sm:$0xf]  ;;  %v233_v12 = vcombine.high %v218_v7, %v218_v7  ;;  %v172_v58 = vcombine.high %v156_v54, %v156_v54  ;;  %vm142_vm2 = vcmask 523264   ;;  %vm2667_vm3 = vcmask 1041408  }
  0x98   :  { %13288 = vmatprep.subr.msk.bf16.mxu0 %vm347_vm0, %v14806_v3  ;;  %14580 = vmatprep.subr.msk.bf16.mxu1 %vm347_vm0, %v14806_v3  ;;  %v228_v9 = vcombine.high %v212_v5, %v212_v5  ;;  %v229_v10 = vcombine.high %v213_v6, %v213_v6  ;;  %v14812_v13 = vld [vmem:[#allocation3 + $0x78] ss:$28 sps:$4 sm:$0xff]   ;;  %v14815_v18 = vld [vmem:[#allocation3 + $0x80] ss:$28 sps:$4 sm:$0xff]   ;;  %v14823_v30 = vld [vmem:[#allocation3 + $0x88] ss:$28 sps:$4 sm:$0xff]  }
  0x99   :  { %v14814_v14 = vld [vmem:[#allocation3 + $0x7c] ss:$28 sps:$4 sm:$0xff]   ;;  %v240_v17 = vcombine.low %v233_v12, %v219_v11  ;;  %v14817_v19 = vld [vmem:[#allocation3 + $0x84] ss:$28 sps:$4 sm:$0xff]   ;;  %v217_v33 = vld [vmem:[%s19093_s0 + $0x29] sm:$0xff]  ;;  %v178_v61 = vcombine.low %v156_v54, %v172_v58  ;;  %vm2689_vm4 = vcmask 517120  }
  0x9a   :  { %v234_v15 = vcombine.low %v212_v5, %v228_v9  ;;  %v235_v16 = vcombine.low %v213_v6, %v229_v10  ;;  %v14818_v20 = vld [vmem:[#allocation3 + $0xb4] ss:$28 sps:$4 sm:$0x7f]   ;;  %v215_v25 = vld [vmem:[%s19093_s0 + $0x19] sm:$0xf]  ;;  %v216_v26 = vld [vmem:[%s19093_s0 + $0x21] sm:$0xff]  ;;  %v232_v37 = vcombine.high %v217_v33, %v217_v33 }
  0x9b   :  { %372 = vmatpush1.bf16.msra.mxu0 %v349_v8  ;;  %14582 = vmatpush1.bf16.msra.mxu1 %v349_v8  ;;  %v16410_v22 = vpack.c.bf16 %v240_v17, %v240_v17  ;;  %v14820_v23 = vld [vmem:[#allocation3 + $0xb0] ss:$28 sps:$4 sm:$0x7f]   ;;  %v237_v29 = vcombine.low %v215_v25, %v216_v26  ;;  %v14824_v32 = vld [vmem:[#allocation3 + $0xbc] ss:$28 sps:$4 sm:$0x7f]   ;;  %v231_v36 = vcombine.high %v216_v26, %v216_v26 }
  0x9c   :  { %v16408_v21 = vpack.c.bf16 %v235_v16, %v234_v15  ;;  %440 = vmatprep.subr.bf16.mxu1 %v14814_v14  ;;  %511 = vmatprep.subr.bf16.mxu0 %v14817_v19  ;;  %v214_v24 = vld [vmem:[%s19093_s0 + $0x11] sm:$0xff]  ;;  %v355_v28 = vsel %vm347_vm0, %v14820_v23, 0  ;;  %v14832_v39 = vld [vmem:[#allocation3 + $0x4] ss:$28 sps:$4 sm:$0xff]   ;;  %v239_v42 = vcombine.low %v232_v37, %v218_v7  ;;  %v14835_v44 = vld [vmem:[#allocation3 + $0xc] ss:$28 sps:$4 sm:$0xff]  }
  0x9d   :  { %v230_v27 = vcombine.high %v214_v24, %v214_v24  ;;  %v14828_v34 = vld [vmem:[#allocation3 + $0xb8] ss:$28 sps:$4 sm:$0x7f]   ;;  %v14829_v40 = vld [vmem:[#allocation3 + $0xc0] ss:$28 sps:$4 sm:$0x7f]   ;;  %v238_v41 = vcombine.low %v231_v36, %v217_v33 }
  0x9e   :  { %13289 = vmatmul.mubr.msk.bf16.vlgmr.msra.gmra.mrb[0].mxu0 %vm334_vm1, %v16408_v21  ;;  %13292 = vmatmul.mubr.msk.bf16.vlgmr.msra.gmra.mrb[0].mxu1 %vm334_vm1, %v16410_v22  ;;  %v361_v38 = vsel %vm347_vm0, %v14828_v34, 0  ;;  %v367_v43 = vsel %vm347_vm0, %v14829_v40, 0  ;;  %v14836_v46 = vld [vmem:[#allocation3 + $0x3c] ss:$28 sps:$4 sm:$0x7f]   ;;  %v157_v55 = vld [vmem:[%s19093_s0 + $0x8] sm:$0xff] }
  0x9f   :  { %441 = vmatpush1.bf16.msra.mxu1 %v14812_v13  ;;  %512 = vmatpush1.bf16.msra.mxu0 %v14815_v18  ;;  %v236_v31 = vcombine.low %v214_v24, %v230_v27  ;;  %v250_v45 = vpack.c.bf16 %v239_v42, %v238_v41  ;;  %v14830_v47 = vld [vmem:[#allocation3] ss:$28 sps:$4 sm:$0xff]   ;;  %v14838_v48 = vld [vmem:[#allocation3 + $0x38] ss:$28 sps:$4 sm:$0x7f]   ;;  %v173_v59 = vcombine.high %v157_v55, %v157_v55  ;;  %v161_v8 = vld [vmem:[%s19093_s0 + $0x28] sm:$0xff] }
  0xa0   :  { %13293 = vmatprep.subr.msk.bf16.mxu1 %vm347_vm0, %v14818_v20  ;;  %411 = vmatprep.mubr.bf16.mxu0 %v19112_v0  ;;  %v724_v49 = vsel %vm347_vm0, %v14838_v48, 0  ;;  %v14847_v50 = vld [vmem:[#allocation3 + $0x14] ss:$28 sps:$4 sm:$0xff]   ;;  %v14833_v51 = vld [vmem:[#allocation3 + $0x8] ss:$28 sps:$4 sm:$0xff]   ;;  %v176_v18 = vcombine.high %v161_v8, %v161_v8  ;;  %vm3565_vm5 = vcmask 1042434  }
  0xa1   :  { %472 = vmatprep.mubr.bf16.mxu1 %v19112_v0  ;;  %13298 = vmatprep.subr.msk.bf16.mxu0 %vm347_vm0, %v14824_v32  ;;  %v249_v35 = vpack.c.bf16 %v237_v29, %v236_v31  ;;  %v14839_v52 = vld [vmem:[#allocation3 + $0x44] ss:$28 sps:$4 sm:$0x7f]   ;;  %v14844_v56 = vld [vmem:[#allocation3 + $0x18] ss:$28 sps:$4 sm:$0xff]   ;;  %v179_v62 = vcombine.low %v157_v55, %v173_v59  ;;  %v1022_v33 = vld [vmem:[%s19093_s0 + $0xa] sm:$0xff] }
  0xa2   :  { %v14841_v53 = vld [vmem:[#allocation3 + $0x40] ss:$28 sps:$4 sm:$0x7f]   ;;  %v158_v60 = vld [vmem:[%s19093_s0 + $0x10] sm:$0xff]  ;;  %v159_v1 = vld [vmem:[%s19093_s0 + $0x18] sm:$0xf] }
  0xa3   :  { %443 = vmatpush1.bf16.msra.mxu1 %v355_v28  ;;  %514 = vmatpush1.bf16.msra.mxu0 %v361_v38  ;;  %v730_v57 = vsel %vm347_vm0, %v14841_v53, 0  ;;  %v14845_v63 = vld [vmem:[#allocation3 + $0x10] ss:$28 sps:$4 sm:$0xff]   ;;  %v160_v2 = vld [vmem:[%s19093_s0 + $0x20] sm:$0xff]  ;;  %v192_v3 = vpack.c.bf16 %v179_v62, %v178_v61  ;;  %v174_v4 = vcombine.high %v158_v60, %v158_v60  ;;  %v14868_v34 = vld [vmem:[#allocation3 + $0xf8] ss:$28 sps:$4 sm:$0xff]  }
  0xa4   :  { %14523 = vmatprep.subr.bf16.mxu1 %v14823_v30  ;;  %744 = vmatprep.subr.bf16.mxu0 %v14832_v39  ;;  %v14852_v5 = vld [vmem:[#allocation3 + $0x50] ss:$28 sps:$4 sm:$0x7f]   ;;  %v14855_v6 = vld [vmem:[#allocation3 + $0x48] ss:$28 sps:$4 sm:$0x7f]   ;;  %v181_v10 = vcombine.low %v159_v1, %v160_v2  ;;  %v175_v17 = vcombine.high %v160_v2, %v160_v2  ;;  %v1038_v39 = vcombine.high %v1022_v33, %v1022_v33 }
  0xa5   :  { %v14853_v7 = vld [vmem:[#allocation3 + $0x4c] ss:$28 sps:$4 sm:$0x7f]   ;;  %v180_v9 = vcombine.low %v158_v60, %v174_v4  ;;  %v14862_v12 = vld [vmem:[#allocation3 + $0xe4] ss:$28 sps:$4 sm:$0xff]   ;;  %v742_v13 = vsel %vm347_vm0, %v14852_v5, 0 }
  0xa6   :  { %13290 = vmatmul.mubr.msk.bf16.gmra.mrb[4].mxu0 %vm334_vm1, %v249_v35  ;;  %13294 = vmatmul.mubr.msk.bf16.vlgmr.msra.gmra.mrb[4].mxu1 %vm334_vm1, %v16408_v21  ;;  %v14859_v11 = vld [vmem:[#allocation3 + $0xec] ss:$28 sps:$4 sm:$0xff]   ;;  %v736_v14 = vsel %vm347_vm0, %v14855_v6, 0  ;;  %v162_v15 = vld [vmem:[%s19093_s0 + $0x30] sm:$0xff]  ;;  %v182_v19 = vcombine.low %v175_v17, %v161_v8  ;;  %v14860_v27 = vld [vmem:[#allocation3 + $0xe0] ss:$28 sps:$4 sm:$0xff]   ;;  %v1044_v42 = vcombine.low %v1022_v33, %v1038_v39 }
  0xa7   :  { %14524 = vmatpush3.bf16.msra.mxu1 %v14823_v30  ;;  %421 = vmatprep.mubr.bf16.mxu0 %v19112_v0  ;;  %v193_v16 = vpack.c.bf16 %v181_v10, %v180_v9  ;;  %v183_v20 = vcombine.low %v176_v18, %v162_v15  ;;  %v177_v23 = vcombine.high %v162_v15, %v162_v15  ;;  %v14857_v26 = vld [vmem:[#allocation3 + $0xe8] ss:$28 sps:$4 sm:$0xff]   ;;  %v14865_v28 = vld [vmem:[#allocation3 + $0x120] ss:$28 sps:$4 sm:$0x7f]   ;;  %vm3567_vm6 = vcmask 1043459  }
  0xa8   :  { %482 = vmatprep.mubr.bf16.mxu1 %v19112_v0  ;;  %14783 = vmatprep.subr.msk.bf16.mxu1 %vm347_vm0, %v14829_v40  ;;  %v14871_v29 = vld [vmem:[#allocation3 + $0x118] ss:$28 sps:$4 sm:$0x7f]   ;;  %v14863_v30 = vld [vmem:[#allocation3 + $0x124] ss:$28 sps:$4 sm:$0x7f]  }
  0xa9   :  { %v14869_v31 = vld [vmem:[#allocation3 + $0x11c] ss:$28 sps:$4 sm:$0x7f]   ;;  %v1021_v32 = vld [vmem:[%s19093_s0 + $0x2] sm:$0xff]  ;;  %v1162_v36 = vsel %vm347_vm0, %v14865_v28, 0  ;;  %v1156_v37 = vsel %vm347_vm0, %v14871_v29, 0 }
  0xaa   :  { %v1037_v38 = vcombine.high %v1021_v32, %v1021_v32  ;;  %v1023_v40 = vld [vmem:[%s19093_s0 + $0x12] sm:$0xff]  ;;  %v1026_v48 = vld [vmem:[%s19093_s0 + $0x2a] sm:$0xff]  ;;  %v1028_v59 = vld [vmem:[%s19093_s0 + $0x3a] sm:$0xf]  ;;  %vm3569_vm7 = vcmask 1044484   ;;  %vm3571_vm8 = vcmask 1045509  }
  0xab   :  { %14526 = vmatpush3.bf16.msra.mxu1 %v367_v43  ;;  %v1024_v43 = vld [vmem:[%s19093_s0 + $0x1a] sm:$0xf]  ;;  %v1041_v55 = vcombine.high %v1026_v48, %v1026_v48  ;;  %v14877_v58 = vld [vmem:[#allocation3 + $0xf0] ss:$28 sps:$4 sm:$0xff]   ;;  %vm3573_vm9 = vcmask 1046534   ;;  %vm3575_vm10 = vcmask 1047559  }
  0xac   :  { %815 = vmatprep.subr.bf16.mxu1 %v14835_v44  ;;  %v1043_v41 = vcombine.low %v1021_v32, %v1037_v38  ;;  %v1025_v44 = vld [vmem:[%s19093_s0 + $0x22] sm:$0xff]  ;;  %v16597_v38 = vld [vmem:[#allocation6] sm:$0xff]  ;;  %vm3687_vm11 = vcmask 523265   ;;  %vm3595_vm12 = vcmask 1041409   ;;  %vm3692_vm13 = vcmask 522240  }
  0xad   :  { %v1040_v54 = vcombine.high %v1025_v44, %v1025_v44  ;;  %v14881_v62 = vld [vmem:[#allocation3 + $0x12c] ss:$28 sps:$4 sm:$0x7f]   ;;  %vm4426_vm14 = vcmask 1040384  }
  0xae   :  { %13291 = vmatmul.mubr.msk.bf16.gmra.mrb[8].mxu0 %vm334_vm1, %v250_v45  ;;  %13295 = vmatmul.mubr.msk.bf16.gmra.mrb[8].mxu1 %vm334_vm1, %v249_v35  ;;  %vm4427_vm15 = vmor %vm4426_vm14, %vm3565_vm5 }
  0xaf   :  { %492 = vmatprep.mubr.bf16.mxu1 %v19112_v0  ;;  %543 = vmatprep.mubr.bf16.mxu0 %v19112_v0 }
  0xb6   :  { %13296 = vmatmul.mubr.msk.bf16.gmra.mrb[12].mxu1 %vm334_vm1, %v250_v45  ;;  %13299 = vmatmul.mubr.msk.bf16.vlgmr.msra.gmra.mrb[12].mxu0 %vm334_vm1, %v16408_v21 }
  0xb7   :  { %745 = vmatpush1.bf16.msra.mxu0 %v14830_v47  ;;  %502 = vmatprep.mubr.bf16.mxu1 %v19112_v0  ;;  %v14876_v47 = vld [vmem:[#allocation3 + $0x130] ss:$28 sps:$4 sm:$0x7f]  }
  0xb8   :  { %553 = vmatprep.mubr.bf16.mxu0 %v19112_v0  ;;  %13321 = vmatprep.subr.msk.bf16.mxu0 %vm347_vm0, %v14836_v46  ;;  %v1039_v46 = vcombine.high %v1023_v40, %v1023_v40 }
  0xbb   :  { %747 = vmatpush1.bf16.msra.mxu0 %v724_v49  ;;  %v1045_v49 = vcombine.low %v1023_v40, %v1039_v46 }
  0xbc   :  { %886 = vmatprep.subr.bf16.mxu0 %v14847_v50  ;;  %v1046_v50 = vcombine.low %v1024_v43, %v1025_v44 }
  0xbe   :  { %13297 = vmatmul.mubr.msk.bf16.gmra.mrb[16].mxu1 %vm334_vm1, %v16410_v22  ;;  %13300 = vmatmul.mubr.msk.bf16.gmra.mrb[16].mxu0 %vm334_vm1, %v249_v35  ;;  %v1058_v53 = vpack.c.bf16 %v1046_v50, %v1045_v49 }
  0xbf   :  { %563 = vmatprep.mubr.bf16.mxu0 %v19112_v0  ;;  %14527 = vmatprep.mubr.msk.bf16.mxu1 %vm334_vm1, %v16408_v21  ;;  %v163_v21 = vld [vmem:[%s19093_s0 + $0x38] sm:$0xf] }
  0xc0   :  { %v184_v24 = vcombine.low %v177_v23, %v163_v21 }
  0xc2   :  { %v195_v25 = vpack.c.bf16 %v184_v24, %v184_v24 }
  0xc6   :  { %13301 = vmatmul.mubr.msk.bf16.gmra.mrb[20].mxu0 %vm334_vm1, %v250_v45  ;;  %14528 = vmatmul.mubr.msk.bf16.vlgmr.msra.gmra.mrb[20].mxu1 %vm334_vm1, %v249_v35  ;;  %v14879_v35 = vld [vmem:[#allocation3 + $0xf4] ss:$28 sps:$4 sm:$0xff]  }
  0xc7   :  { %816 = vmatpush1.bf16.msra.mxu1 %v14833_v51  ;;  %573 = vmatprep.mubr.bf16.mxu0 %v19112_v0  ;;  %v1174_v51 = vsel %vm347_vm0, %v14876_v47, 0 }
  0xc8   :  { %14531 = vmatprep.mubr.msk.bf16.mxu1 %vm334_vm1, %v250_v45  ;;  %13326 = vmatprep.subr.msk.bf16.mxu1 %vm347_vm0, %v14839_v52  ;;  %v1057_v45 = vpack.c.bf16 %v1044_v42, %v1043_v41  ;;  %v1027_v52 = vld [vmem:[%s19093_s0 + $0x32] sm:$0xff]  ;;  %s16226_s0 = smov [#allocation17]  }
  0xc9   :  { %v1042_v61 = vcombine.high %v1027_v52, %v1027_v52 }
  0xcb   :  { %818 = vmatpush1.bf16.msra.mxu1 %v730_v57  ;;  %v1048_v57 = vcombine.low %v1041_v55, %v1027_v52  ;;  %v1049_v1 = vcombine.low %v1042_v61, %v1028_v59 }
  0xcc   :  { %14535 = vmatprep.subr.bf16.mxu1 %v14844_v56 }
  0xce   :  { %13302 = vmatmul.mubr.msk.bf16.gmra.mrb[24].mxu0 %vm334_vm1, %v16410_v22  ;;  %14532 = vmatmul.mubr.msk.bf16.gmra.mrb[24].mxu1 %vm334_vm1, %v16410_v22  ;;  %v194_v22 = vpack.c.bf16 %v183_v20, %v182_v19 }
  0xcf   :  { %776 = vmatprep.mubr.bf16.mxu0 %v19112_v0  ;;  %847 = vmatprep.mubr.bf16.mxu1 %v19112_v0 }
  0xd6   :  { %13322 = vmatmul.mubr.msk.bf16.vlgmr.msra.gmra.mrb[0].mxu0 %vm334_vm1, %v192_v3  ;;  %13327 = vmatmul.mubr.msk.bf16.vlgmr.msra.gmra.mrb[4].mxu1 %vm334_vm1, %v192_v3 }
  0xd7   :  { %14536 = vmatpush3.bf16.msra.mxu1 %v14844_v56  ;;  %887 = vmatpush1.bf16.msra.mxu0 %v14845_v63  ;;  %v1047_v56 = vcombine.low %v1040_v54, %v1026_v48  ;;  %v14883_v63 = vld [vmem:[#allocation3 + $0x128] ss:$28 sps:$4 sm:$0x7f]  }
  0xd8   :  { %786 = vmatprep.mubr.bf16.mxu0 %v19112_v0  ;;  %857 = vmatprep.mubr.bf16.mxu1 %v19112_v0  ;;  %v1168_v2 = vsel %vm347_vm0, %v14883_v63, 0 }
  0xd9   :  { %14784 = vmatprep.subr.msk.bf16.mxu1 %vm347_vm0, %v14852_v5  ;;  %13331 = vmatprep.subr.msk.bf16.mxu0 %vm347_vm0, %v14853_v7  ;;  %v1059_v60 = vpack.c.bf16 %v1048_v57, %v1047_v56 }
  0xdb   :  { %14538 = vmatpush3.bf16.msra.mxu1 %v742_v13  ;;  %889 = vmatpush1.bf16.msra.mxu0 %v736_v14 }
  0xdc   :  { %1247 = vmatprep.subr.bf16.mxu1 %v14859_v11  ;;  %1176 = vmatprep.subr.bf16.mxu0 %v14862_v12  ;;  %v1504_v12 = vlaneseq }
  0xde   :  { %13323 = vmatmul.mubr.msk.bf16.gmra.mrb[4].mxu0 %vm334_vm1, %v193_v16  ;;  %13328 = vmatmul.mubr.msk.bf16.gmra.mrb[8].mxu1 %vm334_vm1, %v193_v16  ;;  %v16584_v13 = vshrl.u32 %v1504_v12, 7 }
  0xdf   :  { %796 = vmatprep.mubr.bf16.mxu0 %v19112_v0  ;;  %867 = vmatprep.mubr.bf16.mxu1 %v19112_v0 }
  0xe0   :  { %19149 = vst [vmem:[#allocation24_spill] sm:$0xff] %v16584_v13  ;;  %v19111_v41 = vsub.s32 3, %v16584_v13  ;;  %v19105_v55 = vsub.s32 0, %v16584_v13  ;;  %v19104_v57 = vsub.s32 1, %v16584_v13 }
  0xe2   :  { %v16665_v12 = vrot.slane %v16597_v38, %v19104_v57  ;;  %v19108_v57 = vsub.s32 5, %v16584_v13 }
  0xe6   :  { %13324 = vmatmul.mubr.msk.bf16.gmra.mrb[8].mxu0 %vm334_vm1, %v194_v22  ;;  %13329 = vmatmul.mubr.msk.bf16.gmra.mrb[12].mxu1 %vm334_vm1, %v194_v22 }
  0xe7   :  { %806 = vmatprep.mubr.bf16.mxu0 %v19112_v0  ;;  %877 = vmatprep.mubr.bf16.mxu1 %v19112_v0 }
  0xee   :  { %13325 = vmatmul.mubr.msk.bf16.gmra.mrb[28].mxu0 %vm334_vm1, %v195_v25  ;;  %13330 = vmatmul.mubr.msk.bf16.gmra.mrb[28].mxu1 %vm334_vm1, %v195_v25 }
  0xef   :  { %918 = vmatprep.mubr.bf16.mxu0 %v19112_v0  ;;  %14539 = vmatprep.mubr.msk.bf16.mxu1 %vm334_vm1, %v192_v3 }
  0xf6   :  { %13332 = vmatmul.mubr.msk.bf16.vlgmr.msra.gmra.mrb[12].mxu0 %vm334_vm1, %v192_v3  ;;  %14540 = vmatmul.mubr.msk.bf16.vlgmr.msra.gmra.mrb[20].mxu1 %vm334_vm1, %v193_v16  ;;  %v1060_v3 = vpack.c.bf16 %v1049_v1, %v1049_v1 }
  0xf7   :  { %1248 = vmatpush1.bf16.msra.mxu1 %v14857_v26  ;;  %1177 = vmatpush1.bf16.msra.mxu0 %v14860_v27 }
  0xf8   :  { %928 = vmatprep.mubr.bf16.mxu0 %v19112_v0  ;;  %14543 = vmatprep.mubr.msk.bf16.mxu1 %vm334_vm1, %v194_v22 }
  0xf9   :  { %13359 = vmatprep.subr.msk.bf16.mxu1 %vm347_vm0, %v14863_v30  ;;  %13354 = vmatprep.subr.msk.bf16.mxu0 %vm347_vm0, %v14869_v31 }
  0xfb   :  { %1250 = vmatpush1.bf16.msra.mxu1 %v1162_v36  ;;  %1179 = vmatpush1.bf16.msra.mxu0 %v1156_v37 }
  0xfc   :  { %14547 = vmatprep.subr.bf16.mxu1 %v14868_v34  ;;  %1318 = vmatprep.subr.bf16.mxu0 %v14879_v35  ;;  %v19110_v35 = vsub.s32 2, %v16584_v13 }
  0xfe   :  { %13333 = vmatmul.mubr.msk.bf16.gmra.mrb[16].mxu0 %vm334_vm1, %v193_v16  ;;  %14544 = vmatmul.mubr.msk.bf16.gmra.mrb[32].mxu1 %vm334_vm1, %v195_v25  ;;  %v16607_v44 = vrot.slane %v16597_v38, %v19110_v35 }
  0xff   :  { %938 = vmatprep.mubr.bf16.mxu0 %v19112_v0  ;;  %1279 = vmatprep.mubr.bf16.mxu1 %v19112_v0 }
 0x106   :  { %13334 = vmatmul.mubr.msk.bf16.gmra.mrb[20].mxu0 %vm334_vm1, %v194_v22  ;;  %13360 = vmatmul.mubr.msk.bf16.vlgmr.msra.gmra.mrb[4].mxu1 %vm334_vm1, %v1057_v45 }
 0x107   :  { %14548 = vmatpush3.bf16.msra.mxu1 %v14868_v34  ;;  %948 = vmatprep.mubr.bf16.mxu0 %v19112_v0 }
 0x108   :  { %1289 = vmatprep.mubr.bf16.mxu1 %v19112_v0  ;;  %14785 = vmatprep.subr.msk.bf16.mxu1 %vm347_vm0, %v14876_v47 }
 0x10b   :  { %14550 = vmatpush3.bf16.msra.mxu1 %v1174_v51 }
 0x10e   :  { %13335 = vmatmul.mubr.msk.bf16.gmra.mrb[32].mxu0 %vm334_vm1, %v195_v25  ;;  %13361 = vmatmul.mubr.msk.bf16.gmra.mrb[8].mxu1 %vm334_vm1, %v1058_v53 }
 0x10f   :  { %1208 = vmatprep.mubr.bf16.mxu0 %v19112_v0  ;;  %1299 = vmatprep.mubr.bf16.mxu1 %v19112_v0 }
 0x116   :  { %13355 = vmatmul.mubr.msk.bf16.vlgmr.msra.gmra.mrb[0].mxu0 %vm334_vm1, %v1057_v45  ;;  %13362 = vmatmul.mubr.msk.bf16.gmra.mrb[12].mxu1 %vm334_vm1, %v1059_v60 }
 0x117   :  { %1319 = vmatpush1.bf16.msra.mxu0 %v14877_v58  ;;  %1218 = vmatprep.mubr.bf16.mxu0 %v19112_v0 }
 0x118   :  { %1309 = vmatprep.mubr.bf16.mxu1 %v19112_v0  ;;  %13364 = vmatprep.subr.msk.bf16.mxu0 %vm347_vm0, %v14881_v62  ;;  %vm4428_vm0 = vmor %vm4427_vm15, %vm3569_vm7 }
 0x11b   :  { %1321 = vmatpush1.bf16.msra.mxu0 %v1168_v2 }
 0x11e   :  { %13356 = vmatmul.mubr.msk.bf16.gmra.mrb[4].mxu0 %vm334_vm1, %v1058_v53  ;;  %13363 = vmatmul.mubr.msk.bf16.gmra.mrb[36].mxu1 %vm334_vm1, %v1060_v3 }
 0x11f   :  { %1228 = vmatprep.mubr.bf16.mxu0 %v19112_v0  ;;  %14551 = vmatprep.mubr.msk.bf16.mxu1 %vm334_vm1, %v1057_v45 }
 0x126   :  { %13357 = vmatmul.mubr.msk.bf16.gmra.mrb[8].mxu0 %vm334_vm1, %v1059_v60  ;;  %14552 = vmatmul.mubr.msk.bf16.vlgmr.msra.gmra.mrb[20].mxu1 %vm334_vm1, %v1058_v53 }
 0x127   :  { %1238 = vmatprep.mubr.bf16.mxu0 %v19112_v0  ;;  %14555 = vmatprep.mubr.msk.bf16.mxu1 %vm334_vm1, %v1059_v60 }
 0x12e   :  { %13358 = vmatmul.mubr.msk.bf16.gmra.mrb[36].mxu0 %vm334_vm1, %v1060_v3  ;;  %14556 = vmatmul.mubr.msk.bf16.gmra.mrb[40].mxu1 %vm334_vm1, %v1060_v3 }
 0x12f   :  { %1350 = vmatprep.mubr.bf16.mxu0 %v19112_v0 }
 0x136   :  { %13365 = vmatmul.mubr.msk.bf16.vlgmr.msra.gmra.mrb[12].mxu0 %vm334_vm1, %v1057_v45  ;;  %v16612_v45 = vrot.slane %v16597_v38, %v19111_v41 }
 0x137   :  { %1360 = vmatprep.mubr.bf16.mxu0 %v19112_v0 }
 0x13e   :  { %13366 = vmatmul.mubr.msk.bf16.gmra.mrb[16].mxu0 %vm334_vm1, %v1058_v53 }
 0x13f   :  { %1370 = vmatprep.mubr.bf16.mxu0 %v19112_v0 }
 0x146   :  { %13367 = vmatmul.mubr.msk.bf16.gmra.mrb[20].mxu0 %vm334_vm1, %v1059_v60 }
 0x147   :  { %1380 = vmatprep.mubr.bf16.mxu0 %v19112_v0 }
 0x14e   :  { %13368 = vmatmul.mubr.msk.bf16.gmra.mrb[40].mxu0 %vm334_vm1, %v1060_v3  ;;  %vm17721_vm1 = vmor %vm4428_vm0, %vm3573_vm9 }
 0x171   :  { %v433_v4 = vpop.f32.mrb[0].mxu1 }
 0x172   :  { %v435_v5 = vpop.f32.mrb[1].mxu1 }
 0x173   :  { %v437_v6 = vpop.f32.mrb[2].mxu1 }
 0x174   :  { %v438_v7 = vpop.f32.mrb[3].mxu1 }
 0x191   :  { %v504_v8 = vpop.f32.mrb[16].mxu1 }
 0x192   :  { %v506_v9 = vpop.f32.mrb[17].mxu1 }
 0x193   :  { %v508_v10 = vpop.f32.mrb[18].mxu1 }
 0x194   :  { %v509_v11 = vpop.f32.mrb[19].mxu1  ;;  %v16656_v10 = vrot.slane %v16597_v38, %v19105_v55 }
 0x1a1   :  { %v14533_v14 = vpop.f32.mrb[24].mxu1  ;;  %v575_v15 = vpop.f32.mrb[24].mxu0 }
 0x1a2   :  { %v632_v16 = vpop.f32.mrb[25].mxu1  ;;  %v577_v17 = vpop.f32.mrb[25].mxu0 }
 0x1a3   :  { %v14534_v18 = vpop.f32.mrb[26].mxu1  ;;  %v579_v19 = vpop.f32.mrb[26].mxu0 }
 0x1a4   :  { %v635_v20 = vpop.f32.mrb[27].mxu1  ;;  %v580_v21 = vpop.f32.mrb[27].mxu0 }
 0x1c1   :  { %v808_v22 = vpop.f32.mrb[28].mxu0  ;;  %v879_v23 = vpop.f32.mrb[28].mxu1 }
 0x1c2   :  { %v16586_v24 = vadd.f32 %v808_v22, %v433_v4  ;;  %v16588_v25 = vadd.f32 %v879_v23, %v504_v8  ;;  %v810_v26 = vpop.f32.mrb[29].mxu0  ;;  %v881_v27 = vpop.f32.mrb[29].mxu1 }
 0x1c3   :  { %v16590_v28 = vadd.f32 %v810_v26, %v435_v5  ;;  %v16592_v29 = vadd.f32 %v881_v27, %v506_v9  ;;  %v883_v30 = vpop.f32.mrb[30].mxu1  ;;  %v812_v31 = vpop.f32.mrb[30].mxu0 }
 0x1c4   :  { %v884_v32 = vpop.f32.mrb[31].mxu1  ;;  %v813_v33 = vpop.f32.mrb[31].mxu0 }
 0x1d1   :  { %v14545_v34 = vpop.f32.mrb[32].mxu1 }
 0x1d2   :  { %v16595_v36 = vadd.f32 %v14545_v34, %v14533_v14  ;;  %v1007_v37 = vpop.f32.mrb[33].mxu1 }
 0x1d3   :  { %v16599_v39 = vadd.f32 %v1007_v37, %v632_v16  ;;  %v14546_v40 = vpop.f32.mrb[34].mxu1 }
 0x1d4   :  { %v1010_v42 = vpop.f32.mrb[35].mxu1  ;;  %v19103_v40 = vsub.s32 6, %v16584_v13 }
 0x1d5   :  { %v16602_v43 = vadd.f32 %v1010_v42, %v635_v20 }
 0x1d9   :  { %v1281_v46 = vpop.f32.mrb[4].mxu1 }
 0x1da   :  { %v16615_v47 = vadd.f32 %v16607_v44, %v1281_v46  ;;  %v1283_v48 = vpop.f32.mrb[5].mxu1 }
 0x1db   :  { %v16618_v49 = vadd.f32 %v16612_v45, %v1283_v48  ;;  %v1285_v50 = vpop.f32.mrb[6].mxu1 }
 0x1dc   :  { %v16621_v51 = vadd.f32 %v16607_v44, %v1285_v50  ;;  %v1287_v52 = vpop.f32.mrb[7].mxu1 }
 0x1dd   :  { %v1591_v53 = vmax.f32 %v16618_v49, 0.0  ;;  %v16625_v54 = vadd.f32 %v16612_v45, %v1287_v52 }
 0x1df   :  { %v1598_v56 = vmax.f32 %v16625_v54, 0.0  ;;  %1665 = vrot.lane.b32.xlu0 %v1591_v53, %s16218_s3 }
 0x1e1   :  { %v950_v58 = vpop.f32.mrb[32].mxu0  ;;  %v1291_v59 = vpop.f32.mrb[8].mxu1 }
 0x1e2   :  { %v16633_v60 = vadd.f32 %v950_v58, %v575_v15  ;;  %v16636_v61 = vadd.f32 %v16607_v44, %v1291_v59  ;;  %v952_v62 = vpop.f32.mrb[33].mxu0  ;;  %v1293_v63 = vpop.f32.mrb[9].mxu1 }
 0x1e3   :  { %v16638_v1 = vadd.f32 %v952_v62, %v577_v17  ;;  %v16641_v2 = vadd.f32 %v16612_v45, %v1293_v63  ;;  %1673 = vrot.lane.b32.xlu0 %v1598_v56, %s16218_s3  ;;  %v1295_v3 = vpop.f32.mrb[10].mxu1  ;;  %v954_v4 = vpop.f32.mrb[34].mxu0 }
 0x1e4   :  { %v16647_v5 = vadd.f32 %v16607_v44, %v1295_v3  ;;  %v1297_v6 = vpop.f32.mrb[11].mxu1  ;;  %v955_v7 = vpop.f32.mrb[35].mxu0 }
 0x1e5   :  { %v1605_v8 = vmax.f32 %v16641_v2, 0.0  ;;  %v16651_v9 = vadd.f32 %v16612_v45, %v1297_v6 }
 0x1e7   :  { %v1612_v11 = vmax.f32 %v16651_v9, 0.0  ;;  %1681 = vrot.lane.b32.xlu0 %v1605_v8, %s16218_s3 }
 0x1e9   :  { %v1210_v14 = vpop.f32.mrb[0].mxu0  ;;  %v1301_v15 = vpop.f32.mrb[12].mxu1 }
 0x1ea   :  { %v16668_v16 = vadd.f32 %v16656_v10, %v1210_v14  ;;  %v16671_v17 = vadd.f32 %v16607_v44, %v1301_v15  ;;  %v1212_v18 = vpop.f32.mrb[1].mxu0  ;;  %v1303_v19 = vpop.f32.mrb[13].mxu1 }
 0x1eb   :  { %v16674_v20 = vadd.f32 %v16665_v12, %v1212_v18  ;;  %v16677_v21 = vadd.f32 %v16612_v45, %v1303_v19  ;;  %1689 = vrot.lane.b32.xlu0 %v1612_v11, %s16218_s3  ;;  %v1214_v22 = vpop.f32.mrb[2].mxu0  ;;  %v1305_v23 = vpop.f32.mrb[14].mxu1 }
 0x1ec   :  { %v16683_v26 = vadd.f32 %v16656_v10, %v1214_v22  ;;  %v16686_v27 = vadd.f32 %v16607_v44, %v1305_v23  ;;  %v1216_v30 = vpop.f32.mrb[3].mxu0  ;;  %v1307_v31 = vpop.f32.mrb[15].mxu1 }
 0x1ed   :  { %v1619_v32 = vmax.f32 %v16677_v21, 0.0  ;;  %v16690_v33 = vadd.f32 %v16665_v12, %v1216_v30  ;;  %v16693_v34 = vadd.f32 %v16612_v45, %v1307_v31 }
 0x1ee   :  { %19150 = vst [vmem:[#allocation25_spill] sm:$0xff] %v16686_v27 }
 0x1ef   :  { %19151 = vst [vmem:[#allocation26_spill] sm:$0xff] %v16693_v34  ;;  %v19115_v37 = vmax.f32 %v16693_v34, 0.0  ;;  %1697 = vrot.lane.b32.xlu0 %v1619_v32, %s16218_s3 }
 0x1f1   :  { %v1220_v42 = vpop.f32.mrb[4].mxu0  ;;  %v1311_v46 = vpop.f32.mrb[36].mxu1 }
 0x1f2   :  { %v16701_v48 = vadd.f32 %v16656_v10, %v1220_v42  ;;  %v1497_v50 = vadd.f32 %v1311_v46, %v16588_v25  ;;  %v1222_v52 = vpop.f32.mrb[5].mxu0  ;;  %v1313_v58 = vpop.f32.mrb[37].mxu1 }
 0x1f3   :  { %v16705_v59 = vadd.f32 %v16665_v12, %v1222_v52  ;;  %v1498_v62 = vadd.f32 %v1313_v58, %v16592_v29  ;;  %1705 = vrot.lane.b32.xlu0 %v19115_v37, %s16218_s3  ;;  %v1224_v63 = vpop.f32.mrb[6].mxu0  ;;  %v1315_v3 = vpop.f32.mrb[38].mxu1  ;;  %v16726_v29 = vrot.slane %v16597_v38, %v19103_v40 }
 0x1f4   :  { %v16712_v4 = vadd.f32 %v16607_v44, %v1497_v50  ;;  %v16715_v6 = vadd.f32 %v16656_v10, %v1224_v63  ;;  %v1226_v25 = vpop.f32.mrb[7].mxu0  ;;  %v1316_v7 = vpop.f32.mrb[39].mxu1 }
 0x1f5   :  { %v16718_v14 = vadd.f32 %v16665_v12, %v1226_v25  ;;  %v16721_v15 = vadd.f32 %v16612_v45, %v1498_v62 }
 0x1f6   :  { %19152 = vst [vmem:[#allocation27_spill] sm:$0xff] %v16712_v4 }
 0x1f7   :  { %19153 = vst [vmem:[#allocation28_spill] sm:$0xff] %v16721_v15 }
 0x1f9   :  { %v1230_v18 = vpop.f32.mrb[8].mxu0  ;;  %v14553_v19 = vpop.f32.mrb[20].mxu1 }
 0x1fa   :  { %v16729_v44 = vadd.f32 %v16656_v10, %v1230_v18  ;;  %v1232_v22 = vpop.f32.mrb[9].mxu0  ;;  %v1423_v23 = vpop.f32.mrb[21].mxu1  ;;  %v1559_v30 = vadd.f32 %v14553_v19, %v16726_v29 }
 0x1fb   :  { %v16733_v31 = vadd.f32 %v16665_v12, %v1232_v22  ;;  %v1234_v42 = vpop.f32.mrb[10].mxu0  ;;  %v14554_v45 = vpop.f32.mrb[22].mxu1  ;;  %v1545_v46 = vadd.f32 %v16726_v29, %v1423_v23 }
 0x1fc   :  { %v16737_v50 = vadd.f32 %v16656_v10, %v1234_v42  ;;  %v1236_v52 = vpop.f32.mrb[11].mxu0  ;;  %v1426_v58 = vpop.f32.mrb[23].mxu1  ;;  %v1608_v62 = vmax.f32 %v1559_v30, 0.0  ;;  %v1566_v25 = vadd.f32 %v14554_v45, %v16726_v29  ;;  %v19109_v30 = vsub.s32 4, %v16584_v13 }
 0x1fd   :  { %v16740_v63 = vadd.f32 %v16665_v12, %v1236_v52  ;;  %v1594_v3 = vmax.f32 %v1545_v46, 0.0  ;;  %v1552_v52 = vadd.f32 %v16726_v29, %v1426_v58 }
 0x1fe   :  { %19154 = vst [vmem:[#allocation29_spill] sm:$0xff] %v16737_v50  ;;  %1687 = vrot.lane.b32.xlu1 %v1608_v62, %s16218_s3 }
 0x1ff   :  { %19155 = vst [vmem:[#allocation30_spill] sm:$0xff] %v16740_v63 }
 0x201   :  { %v1240_v7 = vpop.f32.mrb[36].mxu0  ;;  %v14557_v18 = vpop.f32.mrb[40].mxu1 }
 0x202   :  { %v1495_v19 = vadd.f32 %v1240_v7, %v16586_v24  ;;  %v16746_v22 = vadd.f32 %v14557_v18, %v16595_v36  ;;  %1671 = vrot.lane.b32.xlu1 %v1594_v3, %s16218_s3  ;;  %v1242_v23 = vpop.f32.mrb[37].mxu0  ;;  %v1439_v42 = vpop.f32.mrb[41].mxu1  ;;  %v1615_v24 = vmax.f32 %v1566_v25, 0.0 }
 0x203   :  { %v1496_v62 = vadd.f32 %v1242_v23, %v16590_v28  ;;  %v1487_v46 = vadd.f32 %v1439_v42, %v16599_v39  ;;  %v14558_v45 = vpop.f32.mrb[42].mxu1  ;;  %v1244_v40 = vpop.f32.mrb[38].mxu0  ;;  %v1523_v28 = vrot.slane %v16597_v38, %v19109_v30  ;;  %v1601_v39 = vmax.f32 %v1552_v52, 0.0 }
 0x204   :  { %v16755_v36 = vadd.f32 %v16656_v10, %v1495_v19  ;;  %v1442_v7 = vpop.f32.mrb[43].mxu1  ;;  %v1245_v3 = vpop.f32.mrb[39].mxu0  ;;  %v1527_v40 = vrot.slane %v16597_v38, %v19108_v57 }
 0x205   :  { %v16758_v18 = vadd.f32 %v16665_v12, %v1496_v62  ;;  %v1494_v55 = vadd.f32 %v1442_v7, %v16602_v43  ;;  %v1573_v10 = vadd.f32 %v16726_v29, %v1487_v46 }
 0x206   :  { %19156 = vst [vmem:[#allocation31_spill] sm:$0xff] %v16755_v36  ;;  %1695 = vrot.lane.b32.xlu1 %v1615_v24, %s16218_s3 }
 0x207   :  { %19157 = vst [vmem:[#allocation32_spill] sm:$0xff] %v16758_v18  ;;  %v1622_v23 = vmax.f32 %v1573_v10, 0.0 }
 0x209   :  { %v1352_v58 = vpop.f32.mrb[12].mxu0 }
 0x20a   :  { %v1543_v25 = vadd.f32 %v1523_v28, %v1352_v58  ;;  %1679 = vrot.lane.b32.xlu1 %v1601_v39, %s16218_s3  ;;  %v1354_v12 = vpop.f32.mrb[13].mxu0 }
 0x20b   :  { %v1544_v19 = vadd.f32 %v1527_v40, %v1354_v12  ;;  %v1356_v43 = vpop.f32.mrb[14].mxu0 }
 0x20c   :  { %v1592_v42 = vmax.f32 %v1543_v25, 0.0  ;;  %v1358_v62 = vpop.f32.mrb[15].mxu0  ;;  %v1550_v38 = vadd.f32 %v1523_v28, %v1356_v43 }
 0x20d   :  { %v1551_v45 = vadd.f32 %v1527_v40, %v1358_v62  ;;  %v1593_v52 = vmax.f32 %v1544_v19, 0.0 }
 0x20e   :  { %1703 = vrot.lane.b32.xlu1 %v1622_v23, %s16218_s3  ;;  %1667 = vrot.lane.b32.xlu0 %v1592_v42, %s16218_s3  ;;  %v1599_v10 = vmax.f32 %v1550_v38, 0.0 }
 0x20f   :  { %v1600_v24 = vmax.f32 %v1551_v45, 0.0 }
 0x211   :  { %v1362_v7 = vpop.f32.mrb[16].mxu0 }
 0x212   :  { %1669 = vrot.lane.b32.xlu1 %v1593_v52, %s16218_s3  ;;  %1677 = vrot.lane.b32.xlu0 %v1600_v24, %s16218_s3  ;;  %v1364_v46 = vpop.f32.mrb[17].mxu0  ;;  %v1557_v3 = vadd.f32 %v1523_v28, %v1362_v7 }
 0x213   :  { %v1558_v39 = vadd.f32 %v1527_v40, %v1364_v46  ;;  %v1366_v58 = vpop.f32.mrb[18].mxu0 }
 0x214   :  { %v1368_v25 = vpop.f32.mrb[19].mxu0  ;;  %v1606_v23 = vmax.f32 %v1557_v3, 0.0  ;;  %v1564_v19 = vadd.f32 %v1523_v28, %v1366_v58 }
 0x215   :  { %v1607_v12 = vmax.f32 %v1558_v39, 0.0  ;;  %v1565_v62 = vadd.f32 %v1527_v40, %v1368_v25 }
 0x216   :  { %1675 = vrot.lane.b32.xlu1 %v1599_v10, %s16218_s3  ;;  %v1613_v38 = vmax.f32 %v1564_v19, 0.0  ;;  %v1587_v19 = vadd.f32 %v16726_v29, %v16746_v22 }
 0x217   :  { %1685 = vrot.lane.b32.xlu0 %v1607_v12, %s16218_s3  ;;  %v1614_v43 = vmax.f32 %v1565_v62, 0.0 }
 0x219   :  { %v1372_v42 = vpop.f32.mrb[20].mxu0 }
 0x21a   :  { %1683 = vrot.lane.b32.xlu1 %v1606_v23, %s16218_s3  ;;  %v1374_v45 = vpop.f32.mrb[21].mxu0  ;;  %v1571_v52 = vadd.f32 %v1523_v28, %v1372_v42 }
 0x21b   :  { %v1572_v24 = vadd.f32 %v1527_v40, %v1374_v45  ;;  %1693 = vrot.lane.b32.xlu0 %v1614_v43, %s16218_s3  ;;  %v1376_v7 = vpop.f32.mrb[22].mxu0  ;;  %v1580_v43 = vadd.f32 %v16726_v29, %v1494_v55  ;;  %v19114_v45 = vmax.f32 %v16721_v15, 0.0 }
 0x21c   :  { %v1378_v46 = vpop.f32.mrb[23].mxu0  ;;  %v1620_v3 = vmax.f32 %v1571_v52, 0.0  ;;  %v1578_v58 = vadd.f32 %v1523_v28, %v1376_v7 }
 0x21d   :  { %v1621_v39 = vmax.f32 %v1572_v24, 0.0  ;;  %v1579_v25 = vadd.f32 %v1527_v40, %v1378_v46 }
 0x21e   :  { %1691 = vrot.lane.b32.xlu1 %v1613_v38, %s16218_s3  ;;  %v1627_v24 = vmax.f32 %v1578_v58, 0.0 }
 0x21f   :  { %1701 = vrot.lane.b32.xlu0 %v1621_v39, %s16218_s3  ;;  %v1628_v10 = vmax.f32 %v1579_v25, 0.0  ;;  %v1636_v39 = vmax.f32 %v1587_v19, 0.0 }
 0x221   :  { %v1382_v12 = vpop.f32.mrb[40].mxu0 }
 0x222   :  { %v1499_v62 = vadd.f32 %v1382_v12, %v16633_v60  ;;  %1699 = vrot.lane.b32.xlu1 %v1620_v3, %s16218_s3  ;;  %v1384_v23 = vpop.f32.mrb[41].mxu0  ;;  %v1629_v60 = vmax.f32 %v1580_v43, 0.0  ;;  %v16224_v43 = vmov 1983009808  }
 0x223   :  { %v1500_v42 = vadd.f32 %v1384_v23, %v16638_v1  ;;  %1709 = vrot.lane.b32.xlu0 %v1628_v10, %s16218_s3  ;;  %v1386_v52 = vpop.f32.mrb[42].mxu0  ;;  %v19106_v1 = vmov 0.0   ;;  %v1832_v19 = vunpack.c.l.s4 %v16224_v43  ;;  %v1595_v43 = vmax.f32 %v16683_v26, 0.0 }
 0x224   :  { %v1585_v7 = vadd.f32 %v1523_v28, %v1499_v62  ;;  %v1387_v38 = vpop.f32.mrb[43].mxu0  ;;  %141 = vst [vmem:[#allocation2 + $0x10] sm:$0xff] %v19106_v1  ;;  %143 = vst.msk [vmem:[#allocation2 + $0x18] sm:$0xff] %vm142_vm2, %v19106_v1  ;;  %v1597_v52 = vmax.f32 %v16621_v51, 0.0  ;;  %v1596_v51 = vmax.f32 %v16690_v33, 0.0 }
 0x225   :  { %v1586_v46 = vadd.f32 %v1527_v40, %v1500_v42  ;;  %139 = vst [vmem:[#allocation2] sm:$0xff] %v19106_v1  ;;  %140 = vst [vmem:[#allocation2 + $0x8] sm:$0xff] %v19106_v1  ;;  %v1590_v42 = vmax.f32 %v16615_v47, 0.0  ;;  %v1588_v38 = vmax.f32 %v16668_v16, 0.0  ;;  %v14886_v16 = vld [vmem:[#allocation8 + $0x624] ss:$28 sps:$4 sm:$0xff]  }
 0x226   :  { %1707 = vrot.lane.b32.xlu1 %v1627_v24, %s16218_s3  ;;  %v1634_v29 = vmax.f32 %v1585_v7, 0.0  ;;  %144 = vst [vmem:[#allocation2 + $0x20] sm:$0xff] %v19106_v1  ;;  %145 = vst [vmem:[#allocation2 + $0x28] sm:$0xff] %v19106_v1  ;;  %5863 = vmatprep.subr.bf16.mxu1 %v14886_v16 }
 0x227   :  { %1713 = vrot.lane.b32.xlu0 %v19114_v45, %s16218_s3  ;;  %v1635_v55 = vmax.f32 %v1586_v46, 0.0  ;;  %146 = vst [vmem:[#allocation2 + $0x30] sm:$0xff] %v19106_v1  ;;  %147 = vst.msk [vmem:[#allocation2 + $0x38] sm:$0xff] %vm142_vm2, %v19106_v1 }
 0x228   :  { %148 = vst [vmem:[#allocation2 + $0x40] sm:$0xff] %v19106_v1  ;;  %149 = vst [vmem:[#allocation2 + $0x48] sm:$0xff] %v19106_v1 }
 0x229   :  { %150 = vst [vmem:[#allocation2 + $0x50] sm:$0xff] %v19106_v1  ;;  %151 = vst.msk [vmem:[#allocation2 + $0x58] sm:$0xff] %vm142_vm2, %v19106_v1 }
 0x22a   :  { %1711 = vrot.lane.b32.xlu1 %v1629_v60, %s16218_s3  ;;  %152 = vst [vmem:[#allocation2 + $0x60] sm:$0xff] %v19106_v1  ;;  %153 = vst [vmem:[#allocation2 + $0x68] sm:$0xff] %v19106_v1  ;;  %v1589_v60 = vmax.f32 %v16674_v20, 0.0 }
 0x22b   :  { %1717 = vrot.lane.b32.xlu0 %v1635_v55, %s16218_s3  ;;  %154 = vst [vmem:[#allocation2 + $0x70] sm:$0xff] %v19106_v1  ;;  %155 = vst.msk [vmem:[#allocation2 + $0x78] sm:$0xff] %vm142_vm2, %v19106_v1 }
 0x22e   :  { %1715 = vrot.lane.b32.xlu1 %v1634_v29, %s16218_s3  ;;  %v1833_v29 = vunpack.c.0.s8 %v1832_v19 }
 0x230   :  { %v16853_v57 = vsub.s32 %v1833_v29, %v16584_v13 }
 0x232   :  { %1719 = vrot.lane.b32.xlu1 %v1636_v39, %s16218_s3 }
 0x251   :  { %v1666_v22 = vpop.permute.xlu0 %1665 }
 0x255   :  { %v1674_v28 = vpop.permute.xlu0 %1673 }
 0x259   :  { %v16816_v40 = vpop.permute.xlu0 %1681 }
 0x25d   :  { %v16818_v25 = vpop.permute.xlu0 %1689 }
 0x261   :  { %v16822_v10 = vpop.permute.xlu0 %1697 }
 0x265   :  { %v16826_v62 = vpop.permute.xlu0 %1705 }
 0x270   :  { %v16820_v3 = vpop.permute.xlu1 %1687 }
 0x271   :  { %v16863_v29 = vmax.f32 %v1605_v8, %v16820_v3 }
 0x274   :  { %v1672_v58 = vpop.permute.xlu1 %1671 }
 0x275   :  { %v1774_v35 = vmax.f32 %v1591_v53, %v1672_v58 }
 0x278   :  { %v16824_v12 = vpop.permute.xlu1 %1695 }
 0x279   :  { %v16868_v49 = vmax.f32 %v1612_v11, %v16824_v12 }
 0x27c   :  { %v1680_v23 = vpop.permute.xlu1 %1679 }
 0x27d   :  { %v1778_v53 = vmax.f32 %v1598_v56, %v1680_v23 }
 0x280   :  { %v16835_v39 = vpop.permute.xlu1 %1703  ;;  %v1668_v55 = vpop.permute.xlu0 %1667 }
 0x281   :  { %v1722_v41 = vsel %vm142_vm2, %v1666_v22, %v1668_v55 }
 0x282   :  { %v1771_v46 = vmax.f32 %v1588_v38, %v1722_v41  ;;  %v16875_v41 = vmax.f32 %v1619_v32, %v16835_v39 }
 0x284   :  { %v1670_v37 = vpop.permute.xlu1 %1669  ;;  %v1678_v47 = vpop.permute.xlu0 %1677 }
 0x285   :  { %v1723_v19 = vsel %vm142_vm2, %v1668_v55, %v1670_v37  ;;  %v1724_v26 = vsel %vm142_vm2, %v1670_v37, %v1672_v58  ;;  %v1727_v22 = vsel %vm142_vm2, %v1678_v47, %v1680_v23 }
 0x286   :  { %v1772_v33 = vmax.f32 %v1589_v60, %v1723_v19  ;;  %v1773_v20 = vmax.f32 %v1590_v42, %v1724_v26  ;;  %v1777_v0 = vmax.f32 %v1597_v52, %v1727_v22 }
 0x288   :  { %v1827_v37 = vcombine.low %v1771_v46, %v1772_v33  ;;  %v1828_v58 = vcombine.high %v1771_v46, %v1772_v33  ;;  %v1829_v2 = vcombine.low %v1773_v20, %v1774_v35  ;;  %v1830_v8 = vcombine.high %v1773_v20, %v1774_v35  ;;  %v1676_v42 = vpop.permute.xlu1 %1675 }
 0x289   :  { %v1865_v52 = vcombine.low %v1777_v0, %v1778_v53  ;;  %v1866_v38 = vcombine.high %v1777_v0, %v1778_v53  ;;  %v1725_v9 = vsel %vm142_vm2, %v1674_v28, %v1676_v42  ;;  %v1726_v11 = vsel %vm142_vm2, %v1676_v42, %v1678_v47 }
 0x28a   :  { %v1837_v54 = vrot.slane %v1827_v37, %v16853_v57  ;;  %v1844_v56 = vrot.slane %v1828_v58, %v16853_v57  ;;  %v1851_v21 = vrot.slane %v1829_v2, %v16853_v57  ;;  %v1858_v32 = vrot.slane %v1830_v8, %v16853_v57 }
 0x28b   :  { %v16884_v23 = vrot.slane %v1865_v52, %v16853_v57  ;;  %v16887_v35 = vrot.slane %v1866_v38, %v16853_v57  ;;  %v16889_v46 = vmax.f32 %v1595_v43, %v1725_v9  ;;  %v16891_v0 = vmax.f32 %v1596_v51, %v1726_v11 }
 0x28c   :  { %v1859_v28 = vcombine.low %v1837_v54, %v1851_v21  ;;  %v1860_v60 = vcombine.high %v1837_v54, %v1851_v21  ;;  %v1861_v55 = vcombine.low %v1844_v56, %v1858_v32  ;;  %v1862_v47 = vcombine.high %v1844_v56, %v1858_v32 }
 0x28d   :  { %v13373_v20 = vcombine.low %v1851_v21, %v1851_v21  ;;  %v13374_v19 = vcombine.high %v1851_v21, %v1851_v21  ;;  %v13375_v26 = vcombine.low %v1858_v32, %v1858_v32  ;;  %v13376_v33 = vcombine.high %v1858_v32, %v1858_v32  ;;  %v14884_v21 = vld [vmem:[#allocation8 + $0x620] ss:$28 sps:$4 sm:$0xff]  }
 0x28e   :  { %v2086_v22 = vrot.slane %v1859_v28, %v16853_v57  ;;  %v2103_v53 = vrot.slane %v1860_v60, %v16853_v57  ;;  %v16896_v37 = vrot.slane %v1861_v55, %v16853_v57  ;;  %v16899_v43 = vrot.slane %v1862_v47, %v16853_v57  ;;  %5864 = vmatpush1.bf16.msra.mxu1 %v14884_v21 }
 0x28f   :  { %v2093_v51 = vrot.slane %v13373_v20, %v16853_v57  ;;  %v2110_v58 = vrot.slane %v13374_v19, %v16853_v57  ;;  %v16904_v2 = vrot.slane %v13375_v26, %v16853_v57  ;;  %v16907_v8 = vrot.slane %v13376_v33, %v16853_v57 }
 0x290   :  { %v2094_v42 = vcombine.high %v2086_v22, %v2086_v22  ;;  %v2111_v52 = vcombine.high %v2103_v53, %v2103_v53  ;;  %v2668_v32 = vsel %vm2667_vm3, %v2086_v22, -inf  ;;  %v2697_v55 = vsel %vm2667_vm3, %v2103_v53, -inf }
 0x291   :  { %v2095_v11 = vcombine.high %v2093_v51, %v2093_v51  ;;  %v2112_v54 = vcombine.high %v2110_v58, %v2110_v58  ;;  %v2682_v60 = vsel %vm2667_vm3, %v2093_v51, -inf  ;;  %v2669_v47 = vrot.slane %v2668_v32, 4  ;;  %v14887_v51 = vld [vmem:[#allocation8 + $0x628] ss:$28 sps:$4 sm:$0xff]  }
 0x292   :  { %v2675_v28 = vsel %vm2667_vm3, %v2094_v42, -inf  ;;  %v2683_v19 = vrot.slane %v2682_v60, 4  ;;  %v2698_v45 = vrot.slane %v2697_v55, 4  ;;  %v2704_v30 = vsel %vm2667_vm3, %v2111_v52, -inf }
 0x293   :  { %v2676_v20 = vrot.slane %v2675_v28, 4  ;;  %v2690_v26 = vsel %vm2689_vm4, %v2095_v11, -inf  ;;  %v2711_v7 = vsel %vm2667_vm3, %v2110_v58, -inf  ;;  %v2670_v1 = vmax.f32 %v2668_v32, %v2669_v47  ;;  %v14889_v11 = vld [vmem:[#allocation8 + $0x62c] ss:$28 sps:$4 sm:$0xff]  }
 0x294   :  { %v2691_v33 = vrot.slane %v2690_v26, 4  ;;  %v2684_v24 = vmax.f32 %v2682_v60, %v2683_v19  ;;  %v2705_v42 = vrot.slane %v2704_v30, 4  ;;  %v2699_v53 = vmax.f32 %v2697_v55, %v2698_v45  ;;  %5969 = vmatprep.subr.bf16.mxu0 %v14889_v11 }
 0x295   :  { %v2677_v22 = vmax.f32 %v2675_v28, %v2676_v20  ;;  %v2712_v56 = vrot.slane %v2711_v7, 4  ;;  %v2718_v38 = vsel %vm2689_vm4, %v2112_v54, -inf  ;;  %v2671_v13 = vrot.slane %v2670_v1, 2  ;;  %5970 = vmatpush1.bf16.msra.mxu0 %v14887_v51 }
 0x296   :  { %v2692_v9 = vmax.f32 %v2690_v26, %v2691_v33  ;;  %v2685_v4 = vrot.slane %v2684_v24, 2  ;;  %v2706_v52 = vmax.f32 %v2704_v30, %v2705_v42  ;;  %v2700_v18 = vrot.slane %v2699_v53, 2 }
 0x297   :  { %v2678_v15 = vrot.slane %v2677_v22, 2  ;;  %v2713_v32 = vmax.f32 %v2711_v7, %v2712_v56  ;;  %v2719_v28 = vrot.slane %v2718_v38, 4  ;;  %v2672_v60 = vmax.f32 %v2670_v1, %v2671_v13 }
 0x298   :  { %v2693_v58 = vrot.slane %v2692_v9, 2  ;;  %v2686_v20 = vmax.f32 %v2684_v24, %v2685_v4  ;;  %v2707_v19 = vrot.slane %v2706_v52, 2  ;;  %v2701_v55 = vmax.f32 %v2699_v53, %v2700_v18 }
 0x299   :  { %v2679_v47 = vmax.f32 %v2677_v22, %v2678_v15  ;;  %v2714_v54 = vrot.slane %v2713_v32, 2  ;;  %v2720_v16 = vmax.f32 %v2718_v38, %v2719_v28  ;;  %v2673_v26 = vrot.slane %v2672_v60, 1 }
 0x29a   :  { %v2694_v45 = vmax.f32 %v2692_v9, %v2693_v58  ;;  %v2687_v36 = vrot.slane %v2686_v20, 1  ;;  %v2708_v34 = vmax.f32 %v2706_v52, %v2707_v19  ;;  %v2702_v21 = vrot.slane %v2701_v55, 1 }
 0x29b   :  { %v2680_v33 = vrot.slane %v2679_v47, 1  ;;  %v2715_v42 = vmax.f32 %v2713_v32, %v2714_v54  ;;  %v2721_v27 = vrot.slane %v2720_v16, 2  ;;  %v16925_v7 = vmax.f32 %v2672_v60, %v2673_v26 }
 0x29c   :  { %v2695_v30 = vrot.slane %v2694_v45, 1  ;;  %v16929_v13 = vmax.f32 %v2686_v20, %v2687_v36  ;;  %v2709_v4 = vrot.slane %v2708_v34, 1  ;;  %v2703_v18 = vmax.f32 %v2701_v55, %v2702_v21 }
 0x29d   :  { %v16927_v56 = vmax.f32 %v2679_v47, %v2680_v33  ;;  %v2716_v1 = vrot.slane %v2715_v42, 1  ;;  %v2722_v24 = vmax.f32 %v2720_v16, %v2721_v27  ;;  %v2725_v9 = vsel %vm2667_vm3, %v16896_v37, -inf }
 0x29e   :  { %v16931_v15 = vmax.f32 %v2694_v45, %v2695_v30  ;;  %v2710_v38 = vmax.f32 %v2708_v34, %v2709_v4  ;;  %v19158_v22 = vcombine.high %v16896_v37, %v16896_v37  ;;  %v2739_v53 = vsel %vm2667_vm3, %v16904_v2, -inf }
 0x29f   :  { %v2717_v36 = vmax.f32 %v2715_v42, %v2716_v1  ;;  %v2723_v11 = vrot.slane %v2722_v24, 1  ;;  %v2726_v52 = vrot.slane %v2725_v9, 4  ;;  %v2740_v32 = vrot.slane %v2739_v53, 4 }
 0x2a0   :  { %v2732_v51 = vsel %vm2667_vm3, %v19158_v22, -inf  ;;  %v19159_v27 = vcombine.high %v16904_v2, %v16904_v2  ;;  %v2753_v28 = vsel %vm2667_vm3, %v16899_v43, -inf  ;;  %v19160_v37 = vcombine.high %v16899_v43, %v16899_v43 }
 0x2a1   :  { %v2733_v58 = vrot.slane %v2732_v51, 4  ;;  %v2724_v47 = vmax.f32 %v2722_v24, %v2723_v11  ;;  %v2727_v20 = vmax.f32 %v2725_v9, %v2726_v52  ;;  %v2741_v55 = vmax.f32 %v2739_v53, %v2740_v32 }
 0x2a2   :  { %v2746_v34 = vsel %vm2689_vm4, %v19159_v27, -inf  ;;  %v2760_v60 = vsel %vm2667_vm3, %v19160_v37, -inf  ;;  %v2754_v54 = vrot.slane %v2753_v28, 4  ;;  %v2767_v2 = vsel %vm2667_vm3, %v16907_v8, -inf }
 0x2a3   :  { %v2734_v19 = vmax.f32 %v2732_v51, %v2733_v58  ;;  %v2747_v45 = vrot.slane %v2746_v34, 4  ;;  %v2761_v16 = vrot.slane %v2760_v60, 4  ;;  %v2728_v26 = vrot.slane %v2727_v20, 2 }
 0x2a4   :  { %v2768_v21 = vrot.slane %v2767_v2, 4  ;;  %v2742_v42 = vrot.slane %v2741_v55, 2  ;;  %v2755_v43 = vmax.f32 %v2753_v28, %v2754_v54  ;;  %v19161_v1 = vcombine.high %v16907_v8, %v16907_v8 }
 0x2a5   :  { %v2735_v33 = vrot.slane %v2734_v19, 2  ;;  %v2748_v30 = vmax.f32 %v2746_v34, %v2747_v45  ;;  %v2762_v4 = vmax.f32 %v2760_v60, %v2761_v16  ;;  %v2729_v9 = vmax.f32 %v2727_v20, %v2728_v26 }
 0x2a6   :  { %v2774_v24 = vsel %vm2689_vm4, %v19161_v1, -inf  ;;  %v2769_v53 = vmax.f32 %v2767_v2, %v2768_v21  ;;  %v2743_v11 = vmax.f32 %v2741_v55, %v2742_v42  ;;  %v2756_v52 = vrot.slane %v2755_v43, 2 }
 0x2a7   :  { %v2736_v22 = vmax.f32 %v2734_v19, %v2735_v33  ;;  %v2749_v51 = vrot.slane %v2748_v30, 2  ;;  %v2763_v58 = vrot.slane %v2762_v4, 2  ;;  %v2775_v32 = vrot.slane %v2774_v24, 4 }
 0x2a8   :  { %v2730_v27 = vrot.slane %v2729_v9, 1  ;;  %v2770_v45 = vrot.slane %v2769_v53, 2  ;;  %v2744_v63 = vrot.slane %v2743_v11, 1  ;;  %v2757_v28 = vmax.f32 %v2755_v43, %v2756_v52 }
 0x2a9   :  { %v2737_v37 = vrot.slane %v2736_v22, 1  ;;  %v2750_v34 = vmax.f32 %v2748_v30, %v2749_v51  ;;  %v2764_v60 = vmax.f32 %v2762_v4, %v2763_v58  ;;  %v2776_v54 = vmax.f32 %v2774_v24, %v2775_v32 }
 0x2aa   :  { %v2731_v16 = vmax.f32 %v2729_v9, %v2730_v27  ;;  %v2771_v1 = vmax.f32 %v2769_v53, %v2770_v45  ;;  %v2745_v20 = vmax.f32 %v2743_v11, %v2744_v63  ;;  %v2758_v19 = vrot.slane %v2757_v28, 1 }
 0x2ab   :  { %v2738_v8 = vmax.f32 %v2736_v22, %v2737_v37  ;;  %v2751_v50 = vrot.slane %v2750_v34, 1  ;;  %v2765_v26 = vrot.slane %v2764_v60, 1  ;;  %v2777_v2 = vrot.slane %v2776_v54, 2 }
 0x2ac   :  { %v2772_v33 = vrot.slane %v2771_v1, 1  ;;  %v3566_v21 = vsel %vm3565_vm5, %v2703_v18, %v16925_v7  ;;  %v3577_v30 = vsel %vm3565_vm5, %v2710_v38, %v16927_v56  ;;  %v2759_v42 = vmax.f32 %v2757_v28, %v2758_v19  ;;  %v16974_v38 = vpop.permute.xlu0 %1685 }
 0x2ad   :  { %v2752_v55 = vmax.f32 %v2750_v34, %v2751_v50  ;;  %v2766_v43 = vmax.f32 %v2764_v60, %v2765_v26  ;;  %v2778_v4 = vmax.f32 %v2776_v54, %v2777_v2  ;;  %v3568_v24 = vsel %vm3567_vm6, %v2731_v16, %v3566_v21 }
 0x2ae   :  { %v2773_v9 = vmax.f32 %v2771_v1, %v2772_v33  ;;  %v3578_v22 = vsel %vm3567_vm6, %v2738_v8, %v3577_v30  ;;  %v3583_v63 = vsel %vm3565_vm5, %v2717_v36, %v16929_v13  ;;  %v3589_v50 = vsel %vm3565_vm5, %v2724_v47, %v16931_v15 }
 0x2af   :  { %v2779_v51 = vrot.slane %v2778_v4, 1  ;;  %v16968_v7 = vsel %vm3569_vm7, %v2759_v42, %v3568_v24  ;;  %v16971_v56 = vsel %vm3569_vm7, %v2766_v43, %v3578_v22  ;;  %v3584_v18 = vsel %vm3567_vm6, %v2745_v20, %v3583_v63 }
 0x2b0   :  { %v16977_v53 = vsel %vm3569_vm7, %v2773_v9, %v3584_v18  ;;  %v3590_v11 = vsel %vm3567_vm6, %v2752_v55, %v3589_v50  ;;  %v13377_v13 = vcombine.low %v16884_v23, %v16884_v23  ;;  %v13378_v15 = vcombine.high %v16884_v23, %v16884_v23 }
 0x2b1   :  { %v2780_v36 = vmax.f32 %v2778_v4, %v2779_v51  ;;  %v13379_v47 = vcombine.low %v16887_v35, %v16887_v35  ;;  %v13380_v52 = vcombine.high %v16887_v35, %v16887_v35  ;;  %v1863_v58 = vcombine.low %v16889_v46, %v16891_v0 }
 0x2b2   :  { %v2161_v32 = vrot.slane %v13377_v13, %v16853_v57  ;;  %v2178_v27 = vrot.slane %v13378_v15, %v16853_v57  ;;  %v1864_v37 = vcombine.high %v16889_v46, %v16891_v0  ;;  %v16997_v34 = vsel %vm142_vm2, %v16974_v38, %v16820_v3 }
 0x2b3   :  { %v17000_v45 = vsel %vm3569_vm7, %v2780_v36, %v3590_v11  ;;  %v2195_v28 = vrot.slane %v13379_v47, %v16853_v57  ;;  %v2212_v60 = vrot.slane %v13380_v52, %v16853_v57  ;;  %v17005_v54 = vrot.slane %v1863_v58, %v16853_v57  ;;  %v14892_v58 = vld [vmem:[#allocation8 + $0x65c] ss:$28 sps:$4 sm:$0xff]  }
 0x2b4   :  { %v2163_v16 = vcombine.high %v2161_v32, %v2161_v32  ;;  %v2180_v8 = vcombine.high %v2178_v27, %v2178_v27  ;;  %v2795_v1 = vsel %vm2667_vm3, %v2161_v32, -inf  ;;  %v2823_v20 = vsel %vm2667_vm3, %v2178_v27, -inf  ;;  %v14895_v32 = vld [vmem:[#allocation8 + $0x664] ss:$28 sps:$4 sm:$0xff]   ;;  %5865 = vmatprep.subr.bf16.mxu1 %v14892_v58 }
 0x2b5   :  { %v2197_v19 = vcombine.high %v2195_v28, %v2195_v28  ;;  %v2214_v26 = vcombine.high %v2212_v60, %v2212_v60  ;;  %v2796_v3 = vrot.slane %v2795_v1, 4  ;;  %v2824_v2 = vrot.slane %v2823_v20, 4  ;;  %5971 = vmatprep.subr.bf16.mxu0 %v14895_v32 }
 0x2b6   :  { %v2802_v55 = vsel %vm2689_vm4, %v2163_v16, -inf  ;;  %v2830_v33 = vsel %vm2689_vm4, %v2180_v8, -inf  ;;  %v2851_v21 = vsel %vm2667_vm3, %v2195_v28, -inf  ;;  %v2879_v30 = vsel %vm2667_vm3, %v2212_v60, -inf  ;;  %v14890_v8 = vld [vmem:[#allocation8 + $0x658] ss:$28 sps:$4 sm:$0xff]  }
 0x2b7   :  { %v2797_v42 = vmax.f32 %v2795_v1, %v2796_v3  ;;  %v2803_v43 = vrot.slane %v2802_v55, 4  ;;  %v2825_v4 = vmax.f32 %v2823_v20, %v2824_v2  ;;  %v2831_v24 = vrot.slane %v2830_v33, 4  ;;  %v14893_v1 = vld [vmem:[#allocation8 + $0x660] ss:$28 sps:$4 sm:$0xff]   ;;  %5866 = vmatpush1.bf16.msra.mxu1 %v14890_v8  ;;  %v1684_v8 = vpop.permute.xlu1 %1683 }
 0x2b8   :  { %v2852_v9 = vrot.slane %v2851_v21, 4  ;;  %v2858_v22 = vsel %vm2689_vm4, %v2197_v19, -inf  ;;  %v2880_v63 = vrot.slane %v2879_v30, 4  ;;  %v2886_v50 = vsel %vm2689_vm4, %v2214_v26, -inf  ;;  %5972 = vmatpush1.bf16.msra.mxu0 %v14893_v1 }
 0x2b9   :  { %v2798_v51 = vrot.slane %v2797_v42, 2  ;;  %v2804_v18 = vmax.f32 %v2802_v55, %v2803_v43  ;;  %v2826_v11 = vrot.slane %v2825_v4, 2  ;;  %v2832_v13 = vmax.f32 %v2830_v33, %v2831_v24 }
 0x2ba   :  { %v2853_v15 = vmax.f32 %v2851_v21, %v2852_v9  ;;  %v2859_v36 = vrot.slane %v2858_v22, 4  ;;  %v2881_v47 = vmax.f32 %v2879_v30, %v2880_v63  ;;  %v2887_v52 = vrot.slane %v2886_v50, 4 }
 0x2bb   :  { %v2799_v27 = vmax.f32 %v2797_v42, %v2798_v51  ;;  %v2805_v28 = vrot.slane %v2804_v18, 2  ;;  %v2827_v60 = vmax.f32 %v2825_v4, %v2826_v11  ;;  %v2833_v16 = vrot.slane %v2832_v13, 2 }
 0x2bc   :  { %v2854_v20 = vrot.slane %v2853_v15, 2  ;;  %v2860_v19 = vmax.f32 %v2858_v22, %v2859_v36  ;;  %v2882_v26 = vrot.slane %v2881_v47, 2  ;;  %v2888_v3 = vmax.f32 %v2886_v50, %v2887_v52 }
 0x2bd   :  { %v2800_v2 = vrot.slane %v2799_v27, 1  ;;  %v2806_v55 = vmax.f32 %v2804_v18, %v2805_v28  ;;  %v2828_v33 = vrot.slane %v2827_v60, 1  ;;  %v2834_v21 = vmax.f32 %v2832_v13, %v2833_v16 }
 0x2be   :  { %v2855_v30 = vmax.f32 %v2853_v15, %v2854_v20  ;;  %v2861_v42 = vrot.slane %v2860_v19, 2  ;;  %v2883_v43 = vmax.f32 %v2881_v47, %v2882_v26  ;;  %v2889_v4 = vrot.slane %v2888_v3, 2 }
 0x2bf   :  { %v2801_v24 = vmax.f32 %v2799_v27, %v2800_v2  ;;  %v2807_v9 = vrot.slane %v2806_v55, 1  ;;  %v2829_v63 = vmax.f32 %v2827_v60, %v2828_v33  ;;  %v2835_v51 = vrot.slane %v2834_v21, 1 }
 0x2c0   :  { %v2856_v11 = vrot.slane %v2855_v30, 1  ;;  %v2862_v22 = vmax.f32 %v2860_v19, %v2861_v42  ;;  %v2884_v36 = vrot.slane %v2883_v43, 1  ;;  %v2890_v50 = vmax.f32 %v2888_v3, %v2889_v4 }
 0x2c1   :  { %v2808_v52 = vmax.f32 %v2806_v55, %v2807_v9  ;;  %v2836_v58 = vmax.f32 %v2834_v21, %v2835_v51  ;;  %v3586_v18 = vsel %vm3571_vm8, %v2801_v24, %v16977_v53  ;;  %v1880_v13 = vrot.slane %v1864_v37, %v16853_v57 }
 0x2c2   :  { %v2857_v15 = vmax.f32 %v2855_v30, %v2856_v11  ;;  %v2863_v47 = vrot.slane %v2862_v22, 1  ;;  %v17021_v32 = vmax.f32 %v2883_v43, %v2884_v36  ;;  %v2891_v27 = vrot.slane %v2890_v50, 1 }
 0x2c3   :  { %v3587_v28 = vsel %vm3573_vm9, %v2829_v63, %v3586_v18  ;;  %v3592_v60 = vsel %vm3571_vm8, %v2808_v52, %v17000_v45  ;;  %v1895_v16 = vcombine.low %v17005_v54, %v16884_v23  ;;  %v1896_v53 = vcombine.high %v17005_v54, %v16884_v23 }
 0x2c4   :  { %v2864_v1 = vmax.f32 %v2862_v22, %v2863_v47  ;;  %v17030_v46 = vmax.f32 %v2890_v50, %v2891_v27  ;;  %v3588_v0 = vsel %vm3575_vm10, %v2857_v15, %v3587_v28  ;;  %v3593_v37 = vsel %vm3573_vm9, %v2836_v58, %v3592_v60  ;;  %v14898_v58 = vld [vmem:[#allocation8 + $0x694] ss:$28 sps:$4 sm:$0xff]  }
 0x2c5   :  { %3686 = vst [vmem:[#allocation2 + $0x10] sm:$0xfe] %v3588_v0  ;;  %v1897_v20 = vcombine.low %v1880_v13, %v16887_v35  ;;  %v1898_v19 = vcombine.high %v1880_v13, %v16887_v35  ;;  %v2154_v45 = vrot.slane %v1895_v16, %v16853_v57  ;;  %v2171_v26 = vrot.slane %v1896_v53, %v16853_v57  ;;  %v14896_v27 = vld [vmem:[#allocation8 + $0x690] ss:$28 sps:$4 sm:$0xff]   ;;  %v14899_v28 = vld [vmem:[#allocation8 + $0x698] ss:$28 sps:$4 sm:$0xff]  }
 0x2c6   :  { %v3594_v3 = vsel %vm3575_vm10, %v2864_v1, %v3593_v37  ;;  %v19162_v23 = vmax.f32 %v16636_v61, 0.0  ;;  %v17046_v2 = vsel %vm142_vm2, %v16816_v40, %v1684_v8  ;;  %v17050_v55 = vsel %vm142_vm2, %v1684_v8, %v16974_v38  ;;  %5867 = vmatprep.subr.bf16.mxu1 %v14898_v58  ;;  %v14901_v1 = vld [vmem:[#allocation8 + $0x69c] ss:$28 sps:$4 sm:$0xff]  }
 0x2c7   :  { %3688 = vst.msk [vmem:[#allocation2 + $0x18] sm:$0xfe] %vm3687_vm11, %v3594_v3  ;;  %v2162_v35 = vcombine.high %v2154_v45, %v2154_v45  ;;  %v2179_v33 = vcombine.high %v2171_v26, %v2171_v26  ;;  %v2188_v21 = vrot.slane %v1897_v20, %v16853_v57  ;;  %v2205_v30 = vrot.slane %v1898_v19, %v16853_v57 }
 0x2c8   :  { %v17042_v54 = vmax.f32 %v19162_v23, %v16997_v34  ;;  %v2781_v61 = vsel %vm2667_vm3, %v2154_v45, -inf  ;;  %v2809_v34 = vsel %vm2667_vm3, %v2171_v26, -inf  ;;  %5868 = vmatpush1.bf16.msra.mxu1 %v14896_v27  ;;  %5973 = vmatprep.subr.bf16.mxu0 %v14901_v1 }
 0x2c9   :  { %v2196_v38 = vcombine.high %v2188_v21, %v2188_v21  ;;  %v2213_v43 = vcombine.high %v2205_v30, %v2205_v30  ;;  %v2782_v4 = vrot.slane %v2781_v61, 4  ;;  %v2788_v24 = vsel %vm2667_vm3, %v2162_v35, -inf  ;;  %5974 = vmatpush1.bf16.msra.mxu0 %v14899_v28 }
 0x2ca   :  { %v1901_v40 = vcombine.low %v17042_v54, %v16863_v29  ;;  %v1902_v42 = vcombine.high %v17042_v54, %v16863_v29  ;;  %v2789_v9 = vrot.slane %v2788_v24, 4  ;;  %v2810_v63 = vrot.slane %v2809_v34, 4 }
 0x2cb   :  { %v2816_v51 = vsel %vm2667_vm3, %v2179_v33, -inf  ;;  %v2837_v11 = vsel %vm2667_vm3, %v2188_v21, -inf  ;;  %v2783_v22 = vmax.f32 %v2781_v61, %v2782_v4  ;;  %v2844_v52 = vsel %vm2667_vm3, %v2196_v38, -inf }
 0x2cc   :  { %v2817_v36 = vrot.slane %v2816_v51, 4  ;;  %v2838_v50 = vrot.slane %v2837_v11, 4  ;;  %v2790_v18 = vmax.f32 %v2788_v24, %v2789_v9  ;;  %v2811_v13 = vmax.f32 %v2809_v34, %v2810_v63 }
 0x2cd   :  { %v2845_v15 = vrot.slane %v2844_v52, 4  ;;  %v2865_v47 = vsel %vm2667_vm3, %v2205_v30, -inf  ;;  %v2784_v60 = vrot.slane %v2783_v22, 2  ;;  %v2872_v19 = vsel %vm2667_vm3, %v2213_v43, -inf }
 0x2ce   :  { %v2818_v16 = vmax.f32 %v2816_v51, %v2817_v36  ;;  %v2839_v53 = vmax.f32 %v2837_v11, %v2838_v50  ;;  %v2866_v8 = vrot.slane %v2865_v47, 4  ;;  %v2791_v0 = vrot.slane %v2790_v18, 2 }
 0x2cf   :  { %v2812_v37 = vrot.slane %v2811_v13, 2  ;;  %v2846_v20 = vmax.f32 %v2844_v52, %v2845_v15  ;;  %v2785_v45 = vmax.f32 %v2783_v22, %v2784_v60  ;;  %v2873_v30 = vrot.slane %v2872_v19, 4 }
 0x2d0   :  { %v2819_v26 = vrot.slane %v2818_v16, 2  ;;  %v2840_v3 = vrot.slane %v2839_v53, 2  ;;  %v2867_v23 = vmax.f32 %v2865_v47, %v2866_v8  ;;  %v2792_v35 = vmax.f32 %v2790_v18, %v2791_v0  ;;  %v17072_v8 = vpop.permute.xlu0 %1693 }
 0x2d1   :  { %v2813_v33 = vmax.f32 %v2811_v13, %v2812_v37  ;;  %v2847_v21 = vrot.slane %v2846_v20, 2  ;;  %v2786_v61 = vrot.slane %v2785_v45, 1  ;;  %v2874_v51 = vmax.f32 %v2872_v19, %v2873_v30 }
 0x2d2   :  { %v2820_v34 = vmax.f32 %v2818_v16, %v2819_v26  ;;  %v2841_v38 = vmax.f32 %v2839_v53, %v2840_v3  ;;  %v2868_v4 = vrot.slane %v2867_v23, 2  ;;  %v2793_v24 = vrot.slane %v2792_v35, 1 }
 0x2d3   :  { %v2814_v9 = vrot.slane %v2813_v33, 1  ;;  %v2848_v63 = vmax.f32 %v2846_v20, %v2847_v21  ;;  %v2787_v43 = vmax.f32 %v2785_v45, %v2786_v61  ;;  %v2875_v18 = vrot.slane %v2874_v51, 2 }
 0x2d4   :  { %v2821_v11 = vrot.slane %v2820_v34, 1  ;;  %v2842_v22 = vrot.slane %v2841_v38, 1  ;;  %v2869_v36 = vmax.f32 %v2867_v23, %v2868_v4  ;;  %v2794_v50 = vmax.f32 %v2792_v35, %v2793_v24 }
 0x2d5   :  { %v2815_v52 = vmax.f32 %v2813_v33, %v2814_v9  ;;  %v2849_v58 = vrot.slane %v2848_v63, 1  ;;  %v3572_v27 = vsel %vm3571_vm8, %v2787_v43, %v16968_v7  ;;  %v2876_v60 = vmax.f32 %v2874_v51, %v2875_v18 }
 0x2d6   :  { %v2822_v13 = vmax.f32 %v2820_v34, %v2821_v11  ;;  %v2843_v15 = vmax.f32 %v2841_v38, %v2842_v22  ;;  %v2870_v47 = vrot.slane %v2869_v36, 1  ;;  %v3580_v53 = vsel %vm3571_vm8, %v2794_v50, %v16971_v56 }
 0x2d7   :  { %v2850_v28 = vmax.f32 %v2848_v63, %v2849_v58  ;;  %v3574_v16 = vsel %vm3573_vm9, %v2815_v52, %v3572_v27  ;;  %v17082_v7 = vrot.slane %v1901_v40, %v16853_v57  ;;  %v2877_v20 = vrot.slane %v2876_v60, 1 }
 0x2d8   :  { %v17074_v1 = vmax.f32 %v2869_v36, %v2870_v47  ;;  %v3576_v0 = vsel %vm3575_vm10, %v2843_v15, %v3574_v16  ;;  %v3581_v37 = vsel %vm3573_vm9, %v2822_v13, %v3580_v53  ;;  %v17089_v56 = vrot.slane %v1902_v42, %v16853_v57 }
 0x2d9   :  { %v3582_v19 = vsel %vm3575_vm10, %v2850_v28, %v3581_v37  ;;  %3684 = vst [vmem:[#allocation2] sm:$0xfe] %v3576_v0  ;;  %v19163_v45 = vmax.f32 %v16701_v48, 0.0  ;;  %v13381_v40 = vcombine.low %v17082_v7, %v17082_v7  ;;  %v13382_v3 = vcombine.high %v17082_v7, %v17082_v7 }
 0x2da   :  { %3685 = vst [vmem:[#allocation2 + $0x8] sm:$0xfe] %v3582_v19  ;;  %v19164_v23 = vmax.f32 %v16705_v59, 0.0  ;;  %v1733_v29 = vsel %vm142_vm2, %v17072_v8, %v16824_v12  ;;  %v17108_v54 = vmax.f32 %v2876_v60, %v2877_v20  ;;  %v13383_v48 = vcombine.low %v17089_v56, %v17089_v56 }
 0x2db   :  { %v17094_v26 = vmax.f32 %v19163_v45, %v17046_v2  ;;  %v13384_v2 = vcombine.high %v17089_v56, %v17089_v56  ;;  %v19165_v42 = vmax.f32 %v16647_v5, 0.0  ;;  %v2229_v59 = vrot.slane %v13381_v40, %v16853_v57 }
 0x2dc   :  { %v17103_v35 = vmax.f32 %v19164_v23, %v17050_v55  ;;  %v2246_v55 = vrot.slane %v13382_v3, %v16853_v57  ;;  %v2263_v30 = vrot.slane %v13383_v48, %v16853_v57 }
 0x2dd   :  { %v17116_v33 = vmax.f32 %v19165_v42, %v1733_v29  ;;  %v2280_v61 = vrot.slane %v13384_v2, %v16853_v57  ;;  %v2231_v38 = vcombine.high %v2229_v59, %v2229_v59  ;;  %v2907_v24 = vsel %vm2667_vm3, %v2229_v59, -inf  ;;  %v14904_v2 = vld [vmem:[#allocation8 + $0x6cc] ss:$28 sps:$4 sm:$0xff]   ;;  %v14907_v42 = vld [vmem:[#allocation8 + $0x6d4] ss:$28 sps:$4 sm:$0xff]  }
 0x2de   :  { %v1899_v21 = vcombine.low %v17094_v26, %v17103_v35  ;;  %v1900_v12 = vcombine.high %v17094_v26, %v17103_v35  ;;  %v2248_v4 = vcombine.high %v2246_v55, %v2246_v55  ;;  %v2935_v9 = vsel %vm2667_vm3, %v2246_v55, -inf  ;;  %5869 = vmatprep.subr.bf16.mxu1 %v14904_v2  ;;  %5975 = vmatprep.subr.bf16.mxu0 %v14907_v42 }
 0x2df   :  { %v1937_v34 = vcombine.low %v17116_v33, %v16868_v49  ;;  %v1938_v5 = vcombine.high %v17116_v33, %v16868_v49  ;;  %v2265_v63 = vcombine.high %v2263_v30, %v2263_v30  ;;  %v2282_v51 = vcombine.high %v2280_v61, %v2280_v61 }
 0x2e0   :  { %v2908_v43 = vrot.slane %v2907_v24, 4  ;;  %v2936_v11 = vrot.slane %v2935_v9, 4  ;;  %v2914_v22 = vsel %vm2689_vm4, %v2231_v38, -inf  ;;  %v2942_v36 = vsel %vm2689_vm4, %v2248_v4, -inf  ;;  %v14902_v38 = vld [vmem:[#allocation8 + $0x6c8] ss:$28 sps:$4 sm:$0xff]  }
 0x2e1   :  { %v2963_v50 = vsel %vm2667_vm3, %v2263_v30, -inf  ;;  %v2991_v52 = vsel %vm2667_vm3, %v2280_v61, -inf  ;;  %v2915_v18 = vrot.slane %v2914_v22, 4  ;;  %v2943_v15 = vrot.slane %v2942_v36, 4  ;;  %v14905_v4 = vld [vmem:[#allocation8 + $0x6d0] ss:$28 sps:$4 sm:$0xff]   ;;  %5870 = vmatpush1.bf16.msra.mxu1 %v14902_v38 }
 0x2e2   :  { %v2909_v58 = vmax.f32 %v2907_v24, %v2908_v43  ;;  %v2937_v13 = vmax.f32 %v2935_v9, %v2936_v11  ;;  %v2964_v47 = vrot.slane %v2963_v50, 4  ;;  %v2970_v27 = vsel %vm2689_vm4, %v2265_v63, -inf  ;;  %5976 = vmatpush1.bf16.msra.mxu0 %v14905_v4 }
 0x2e3   :  { %v2992_v28 = vrot.slane %v2991_v52, 4  ;;  %v2998_v60 = vsel %vm2689_vm4, %v2282_v51, -inf  ;;  %v2916_v53 = vmax.f32 %v2914_v22, %v2915_v18  ;;  %v2944_v37 = vmax.f32 %v2942_v36, %v2943_v15 }
 0x2e4   :  { %v2910_v16 = vrot.slane %v2909_v58, 2  ;;  %v2938_v0 = vrot.slane %v2937_v13, 2  ;;  %v2965_v20 = vmax.f32 %v2963_v50, %v2964_v47  ;;  %v2971_v19 = vrot.slane %v2970_v27, 4 }
 0x2e5   :  { %v2993_v45 = vmax.f32 %v2991_v52, %v2992_v28  ;;  %v2999_v40 = vrot.slane %v2998_v60, 4  ;;  %v2917_v23 = vrot.slane %v2916_v53, 2  ;;  %v2945_v48 = vrot.slane %v2944_v37, 2 }
 0x2e6   :  { %v2911_v3 = vmax.f32 %v2909_v58, %v2910_v16  ;;  %v2939_v29 = vmax.f32 %v2937_v13, %v2938_v0  ;;  %v2966_v59 = vrot.slane %v2965_v20, 2  ;;  %v2972_v55 = vmax.f32 %v2970_v27, %v2971_v19 }
 0x2e7   :  { %v2994_v30 = vrot.slane %v2993_v45, 2  ;;  %v3000_v61 = vmax.f32 %v2998_v60, %v2999_v40  ;;  %v2918_v9 = vmax.f32 %v2916_v53, %v2917_v23  ;;  %v2946_v51 = vmax.f32 %v2944_v37, %v2945_v48 }
 0x2e8   :  { %v2912_v24 = vrot.slane %v2911_v3, 1  ;;  %v2940_v63 = vrot.slane %v2939_v29, 1  ;;  %v2967_v43 = vmax.f32 %v2965_v20, %v2966_v59  ;;  %v2973_v11 = vrot.slane %v2972_v55, 2 }
 0x2e9   :  { %v2995_v22 = vmax.f32 %v2993_v45, %v2994_v30  ;;  %v3001_v36 = vrot.slane %v3000_v61, 2  ;;  %v2919_v52 = vrot.slane %v2918_v9, 1  ;;  %v2947_v18 = vrot.slane %v2946_v51, 1 }
 0x2ea   :  { %v2913_v50 = vmax.f32 %v2911_v3, %v2912_v24  ;;  %v2941_v58 = vmax.f32 %v2939_v29, %v2940_v63  ;;  %v2968_v13 = vrot.slane %v2967_v43, 1  ;;  %v2974_v15 = vmax.f32 %v2972_v55, %v2973_v11 }
 0x2eb   :  { %v2996_v47 = vrot.slane %v2995_v22, 1  ;;  %v3002_v27 = vmax.f32 %v3000_v61, %v3001_v36  ;;  %v2920_v28 = vmax.f32 %v2918_v9, %v2919_v52  ;;  %v2948_v60 = vmax.f32 %v2946_v51, %v2947_v18 }
 0x2ec   :  { %v3608_v16 = vsel %vm3595_vm12, %v2913_v50, %v17021_v32  ;;  %v1909_v53 = vrot.slane %v1899_v21, %v16853_v57  ;;  %v2969_v0 = vmax.f32 %v2967_v43, %v2968_v13  ;;  %v2975_v37 = vrot.slane %v2974_v15, 1 }
 0x2ed   :  { %v2997_v20 = vmax.f32 %v2995_v22, %v2996_v47  ;;  %v3003_v19 = vrot.slane %v3002_v27, 1  ;;  %v3609_v45 = vsel %vm3565_vm5, %v2941_v58, %v3608_v16  ;;  %v3614_v40 = vsel %vm3595_vm12, %v2920_v28, %v17030_v46  ;;  %v14910_v16 = vld [vmem:[#allocation8 + $0x704] ss:$28 sps:$4 sm:$0xff]  }
 0x2ee   :  { %v1916_v3 = vrot.slane %v1900_v12, %v16853_v57  ;;  %v1931_v32 = vcombine.low %v1909_v53, %v17082_v7  ;;  %v2976_v23 = vmax.f32 %v2974_v15, %v2975_v37  ;;  %v3610_v21 = vsel %vm3567_vm6, %v2969_v0, %v3609_v45  ;;  %v14908_v45 = vld [vmem:[#allocation8 + $0x700] ss:$28 sps:$4 sm:$0xff]   ;;  %5871 = vmatprep.subr.bf16.mxu1 %v14910_v16 }
 0x2ef   :  { %v3004_v29 = vmax.f32 %v3002_v27, %v3003_v19  ;;  %v3615_v48 = vsel %vm3565_vm5, %v2948_v60, %v3614_v40  ;;  %v17155_v2 = vsel %vm3569_vm7, %v2997_v20, %v3610_v21  ;;  %v1932_v42 = vcombine.high %v1909_v53, %v17082_v7  ;;  %v14913_v53 = vld [vmem:[#allocation8 + $0x70c] ss:$28 sps:$4 sm:$0xff]   ;;  %5872 = vmatpush1.bf16.msra.mxu1 %v14908_v45 }
 0x2f0   :  { %v1933_v46 = vcombine.low %v1916_v3, %v17089_v56  ;;  %v1934_v59 = vcombine.high %v1916_v3, %v17089_v56  ;;  %v3616_v26 = vsel %vm3567_vm6, %v2976_v23, %v3615_v48  ;;  %v2222_v35 = vrot.slane %v1931_v32, %v16853_v57  ;;  %v14911_v40 = vld [vmem:[#allocation8 + $0x708] ss:$28 sps:$4 sm:$0xff]   ;;  %5977 = vmatprep.subr.bf16.mxu0 %v14913_v53 }
 0x2f1   :  { %v17166_v12 = vrot.slane %v1937_v34, %v16853_v57  ;;  %v17172_v55 = vrot.slane %v1938_v5, %v16853_v57  ;;  %v17175_v7 = vsel %vm3569_vm7, %v3004_v29, %v3616_v26  ;;  %v2239_v56 = vrot.slane %v1932_v42, %v16853_v57  ;;  %5978 = vmatpush1.bf16.msra.mxu0 %v14911_v40 }
 0x2f2   :  { %v2256_v30 = vrot.slane %v1933_v46, %v16853_v57  ;;  %v2273_v61 = vrot.slane %v1934_v59, %v16853_v57  ;;  %v2230_v38 = vcombine.high %v2222_v35, %v2222_v35  ;;  %v2893_v4 = vsel %vm2667_vm3, %v2222_v35, -inf }
 0x2f3   :  { %v13385_v34 = vcombine.low %v17166_v12, %v17166_v12  ;;  %v13386_v49 = vcombine.high %v17166_v12, %v17166_v12  ;;  %v2247_v33 = vcombine.high %v2239_v56, %v2239_v56  ;;  %v2894_v9 = vrot.slane %v2893_v4, 4 }
 0x2f4   :  { %v2264_v5 = vcombine.high %v2256_v30, %v2256_v30  ;;  %v2281_v24 = vcombine.high %v2273_v61, %v2273_v61  ;;  %v2900_v63 = vsel %vm2667_vm3, %v2230_v38, -inf  ;;  %v2921_v51 = vsel %vm2667_vm3, %v2239_v56, -inf }
 0x2f5   :  { %v2949_v43 = vsel %vm2667_vm3, %v2256_v30, -inf  ;;  %v2977_v11 = vsel %vm2667_vm3, %v2273_v61, -inf  ;;  %v2895_v22 = vmax.f32 %v2893_v4, %v2894_v9  ;;  %v2901_v36 = vrot.slane %v2900_v63, 4 }
 0x2f6   :  { %v2922_v50 = vrot.slane %v2921_v51, 4  ;;  %v2928_v52 = vsel %vm2667_vm3, %v2247_v33, -inf  ;;  %v2950_v18 = vrot.slane %v2949_v43, 4  ;;  %v2956_v13 = vsel %vm2667_vm3, %v2264_v5, -inf }
 0x2f7   :  { %v2929_v58 = vrot.slane %v2928_v52, 4  ;;  %v2978_v15 = vrot.slane %v2977_v11, 4  ;;  %v2896_v47 = vrot.slane %v2895_v22, 2  ;;  %v2902_v27 = vmax.f32 %v2900_v63, %v2901_v36 }
 0x2f8   :  { %v2923_v28 = vmax.f32 %v2921_v51, %v2922_v50  ;;  %v2957_v60 = vrot.slane %v2956_v13, 4  ;;  %v2951_v37 = vmax.f32 %v2949_v43, %v2950_v18  ;;  %v2984_v19 = vsel %vm2667_vm3, %v2281_v24, -inf }
 0x2f9   :  { %v2930_v0 = vmax.f32 %v2928_v52, %v2929_v58  ;;  %v2979_v20 = vmax.f32 %v2977_v11, %v2978_v15  ;;  %v2897_v3 = vmax.f32 %v2895_v22, %v2896_v47  ;;  %v2903_v32 = vrot.slane %v2902_v27, 2 }
 0x2fa   :  { %v2924_v23 = vrot.slane %v2923_v28, 2  ;;  %v2958_v29 = vmax.f32 %v2956_v13, %v2957_v60  ;;  %v2952_v48 = vrot.slane %v2951_v37, 2  ;;  %v2985_v46 = vrot.slane %v2984_v19, 4 }
 0x2fb   :  { %v2931_v21 = vrot.slane %v2930_v0, 2  ;;  %v2980_v42 = vrot.slane %v2979_v20, 2  ;;  %v2898_v59 = vrot.slane %v2897_v3, 1  ;;  %v2904_v26 = vmax.f32 %v2902_v27, %v2903_v32 }
 0x2fc   :  { %v2925_v35 = vmax.f32 %v2923_v28, %v2924_v23  ;;  %v2959_v56 = vrot.slane %v2958_v29, 2  ;;  %v2953_v61 = vmax.f32 %v2951_v37, %v2952_v48  ;;  %v2986_v4 = vmax.f32 %v2984_v19, %v2985_v46 }
 0x2fd   :  { %v2932_v30 = vmax.f32 %v2930_v0, %v2931_v21  ;;  %v2981_v38 = vmax.f32 %v2979_v20, %v2980_v42  ;;  %v2899_v33 = vmax.f32 %v2897_v3, %v2898_v59  ;;  %v2905_v5 = vrot.slane %v2904_v26, 1 }
 0x2fe   :  { %v2926_v24 = vrot.slane %v2925_v35, 1  ;;  %v2960_v9 = vmax.f32 %v2958_v29, %v2959_v56  ;;  %v2954_v51 = vrot.slane %v2953_v61, 1  ;;  %v2987_v11 = vrot.slane %v2986_v4, 2 }
 0x2ff   :  { %v2933_v63 = vrot.slane %v2932_v30, 1  ;;  %v2982_v43 = vrot.slane %v2981_v38, 1  ;;  %v2906_v22 = vmax.f32 %v2904_v26, %v2905_v5  ;;  %v3596_v52 = vsel %vm3595_vm12, %v2899_v33, %v17074_v1 }
 0x300   :  { %v2927_v36 = vmax.f32 %v2925_v35, %v2926_v24  ;;  %v2961_v50 = vrot.slane %v2960_v9, 1  ;;  %v2955_v18 = vmax.f32 %v2953_v61, %v2954_v51  ;;  %v2988_v15 = vmax.f32 %v2986_v4, %v2987_v11 }
 0x301   :  { %v2934_v58 = vmax.f32 %v2932_v30, %v2933_v63  ;;  %v2983_v13 = vmax.f32 %v2981_v38, %v2982_v43  ;;  %v3602_v28 = vsel %vm3595_vm12, %v2906_v22, %v17108_v54  ;;  %v2297_v60 = vrot.slane %v13385_v34, %v16853_v57  ;;  %v17225_v30 = vpop.permute.xlu1 %1691 }
 0x302   :  { %v2962_v47 = vmax.f32 %v2960_v9, %v2961_v50  ;;  %v3597_v27 = vsel %vm3565_vm5, %v2927_v36, %v3596_v52  ;;  %v2989_v16 = vrot.slane %v2988_v15, 1  ;;  %v2314_v0 = vrot.slane %v13386_v49, %v16853_v57 }
 0x303   :  { %v3598_v53 = vsel %vm3567_vm6, %v2955_v18, %v3597_v27  ;;  %v3603_v1 = vsel %vm3565_vm5, %v2934_v58, %v3602_v28  ;;  %v2299_v20 = vcombine.high %v2297_v60, %v2297_v60  ;;  %v13387_v19 = vcombine.low %v17172_v55, %v17172_v55  ;;  %v14916_v27 = vld [vmem:[#allocation8 + $0x73c] ss:$28 sps:$4 sm:$0xff]   ;;  %v14919_v28 = vld [vmem:[#allocation8 + $0x744] ss:$28 sps:$4 sm:$0xff]  }
 0x304   :  { %v17208_v37 = vsel %vm3569_vm7, %v2983_v13, %v3598_v53  ;;  %v3604_v54 = vsel %vm3567_vm6, %v2962_v47, %v3603_v1  ;;  %v2990_v34 = vmax.f32 %v2988_v15, %v2989_v16  ;;  %v2316_v45 = vcombine.high %v2314_v0, %v2314_v0  ;;  %5873 = vmatprep.subr.bf16.mxu1 %v14916_v27 }
 0x305   :  { %v13388_v40 = vcombine.high %v17172_v55, %v17172_v55  ;;  %v3019_v3 = vsel %vm2667_vm3, %v2297_v60, -inf  ;;  %v2331_v32 = vrot.slane %v13387_v19, %v16853_v57  ;;  %v3026_v49 = vsel %vm2689_vm4, %v2299_v20, -inf  ;;  %5979 = vmatprep.subr.bf16.mxu0 %v14919_v28 }
 0x306   :  { %v3020_v23 = vrot.slane %v3019_v3, 4  ;;  %v3047_v29 = vsel %vm2667_vm3, %v2314_v0, -inf  ;;  %v17220_v21 = vsel %vm3569_vm7, %v2990_v34, %v3604_v54  ;;  %v3027_v42 = vrot.slane %v3026_v49, 4  ;;  %v1700_v0 = vpop.permute.xlu1 %1699  ;;  %v14914_v54 = vld [vmem:[#allocation8 + $0x738] ss:$28 sps:$4 sm:$0xff]  }
 0x307   :  { %v2348_v48 = vrot.slane %v13388_v40, %v16853_v57  ;;  %v3048_v46 = vrot.slane %v3047_v29, 4  ;;  %v2333_v59 = vcombine.high %v2331_v32, %v2331_v32  ;;  %v3054_v35 = vsel %vm2689_vm4, %v2316_v45, -inf  ;;  %v14917_v40 = vld [vmem:[#allocation8 + $0x740] ss:$28 sps:$4 sm:$0xff]   ;;  %5874 = vmatpush1.bf16.msra.mxu1 %v14914_v54 }
 0x308   :  { %v3021_v26 = vmax.f32 %v3019_v3, %v3020_v23  ;;  %v3075_v56 = vsel %vm2667_vm3, %v2331_v32, -inf  ;;  %v3028_v38 = vmax.f32 %v3026_v49, %v3027_v42  ;;  %v3055_v33 = vrot.slane %v3054_v35, 4  ;;  %5980 = vmatpush1.bf16.msra.mxu0 %v14917_v40 }
 0x309   :  { %v2350_v61 = vcombine.high %v2348_v48, %v2348_v48  ;;  %v3049_v4 = vmax.f32 %v3047_v29, %v3048_v46  ;;  %v3076_v24 = vrot.slane %v3075_v56, 4  ;;  %v3082_v9 = vsel %vm2689_vm4, %v2333_v59, -inf  ;;  %v14922_v59 = vld [vmem:[#allocation8 + $0x774] ss:$28 sps:$4 sm:$0xff]  }
 0x30a   :  { %v3022_v5 = vrot.slane %v3021_v26, 2  ;;  %v3103_v63 = vsel %vm2667_vm3, %v2348_v48, -inf  ;;  %v3029_v51 = vrot.slane %v3028_v38, 2  ;;  %v3056_v11 = vmax.f32 %v3054_v35, %v3055_v33  ;;  %v14923_v33 = vld [vmem:[#allocation8 + $0x778] ss:$28 sps:$4 sm:$0xff]   ;;  %5875 = vmatprep.subr.bf16.mxu1 %v14922_v59 }
 0x30b   :  { %v3050_v43 = vrot.slane %v3049_v4, 2  ;;  %v3083_v22 = vrot.slane %v3082_v9, 4  ;;  %v3077_v50 = vmax.f32 %v3075_v56, %v3076_v24  ;;  %v3104_v52 = vrot.slane %v3103_v63, 4 }
 0x30c   :  { %v3023_v36 = vmax.f32 %v3021_v26, %v3022_v5  ;;  %v3110_v58 = vsel %vm2689_vm4, %v2350_v61, -inf  ;;  %v3030_v18 = vmax.f32 %v3028_v38, %v3029_v51  ;;  %v3057_v15 = vrot.slane %v3056_v11, 2  ;;  %v14925_v26 = vld [vmem:[#allocation8 + $0x77c] ss:$28 sps:$4 sm:$0xff]   ;;  %v1702_v51 = vpop.permute.xlu0 %1701 }
 0x30d   :  { %v3051_v13 = vmax.f32 %v3049_v4, %v3050_v43  ;;  %v3084_v47 = vmax.f32 %v3082_v9, %v3083_v22  ;;  %v3078_v16 = vrot.slane %v3077_v50, 2  ;;  %v3105_v53 = vmax.f32 %v3103_v63, %v3104_v52  ;;  %v14920_v4 = vld [vmem:[#allocation8 + $0x770] ss:$28 sps:$4 sm:$0xff]   ;;  %5981 = vmatprep.subr.bf16.mxu0 %v14925_v26 }
 0x30e   :  { %v3024_v60 = vrot.slane %v3023_v36, 1  ;;  %v3111_v1 = vrot.slane %v3110_v58, 4  ;;  %v3031_v20 = vrot.slane %v3030_v18, 1  ;;  %v3058_v34 = vmax.f32 %v3056_v11, %v3057_v15  ;;  %5876 = vmatpush1.bf16.msra.mxu1 %v14920_v4  ;;  %5982 = vmatpush1.bf16.msra.mxu0 %v14923_v33  ;;  %v14931_v15 = vld [vmem:[#allocation8 + $0x7b4] ss:$28 sps:$4 sm:$0xff]  }
 0x30f   :  { %v3052_v19 = vrot.slane %v3051_v13, 1  ;;  %v3085_v45 = vrot.slane %v3084_v47, 2  ;;  %v3079_v32 = vmax.f32 %v3077_v50, %v3078_v16  ;;  %v3106_v23 = vrot.slane %v3105_v53, 2  ;;  %v14926_v16 = vld [vmem:[#allocation8 + $0x7a8] ss:$28 sps:$4 sm:$0xff]   ;;  %5983 = vmatprep.subr.bf16.mxu0 %v14931_v15 }
 0x310   :  { %v3025_v3 = vmax.f32 %v3023_v36, %v3024_v60  ;;  %v3112_v49 = vmax.f32 %v3110_v58, %v3111_v1  ;;  %v3032_v29 = vmax.f32 %v3030_v18, %v3031_v20  ;;  %v3059_v42 = vrot.slane %v3058_v34, 1  ;;  %v1708_v36 = vpop.permute.xlu1 %1707  ;;  %v17271_v40 = vpop.permute.xlu0 %1709 }
 0x311   :  { %v3053_v48 = vmax.f32 %v3051_v13, %v3052_v19  ;;  %v3086_v46 = vmax.f32 %v3084_v47, %v3085_v45  ;;  %v3080_v35 = vrot.slane %v3079_v32, 1  ;;  %v3107_v56 = vmax.f32 %v3105_v53, %v3106_v23  ;;  %v14928_v13 = vld [vmem:[#allocation8 + $0x7ac] ss:$28 sps:$4 sm:$0xff]  }
 0x312   :  { %v3113_v61 = vrot.slane %v3112_v49, 2  ;;  %v3612_v38 = vsel %vm3571_vm8, %v3025_v3, %v17155_v2  ;;  %v3060_v5 = vmax.f32 %v3058_v34, %v3059_v42  ;;  %v3618_v63 = vsel %vm3571_vm8, %v3032_v29, %v17175_v7  ;;  %v14929_v53 = vld [vmem:[#allocation8 + $0x7b0] ss:$28 sps:$4 sm:$0xff]   ;;  %5877 = vmatprep.subr.bf16.mxu1 %v14928_v13  ;;  %v14934_v3 = vld [vmem:[#allocation8 + $0x7e4] ss:$28 sps:$4 sm:$0xff]  }
 0x313   :  { %v3087_v24 = vrot.slane %v3086_v46, 1  ;;  %v3613_v9 = vsel %vm3573_vm9, %v3053_v48, %v3612_v38  ;;  %v3081_v43 = vmax.f32 %v3079_v32, %v3080_v35  ;;  %v3108_v11 = vrot.slane %v3107_v56, 1  ;;  %5878 = vmatpush1.bf16.msra.mxu1 %v14926_v16  ;;  %v14937_v32 = vld [vmem:[#allocation8 + $0x7ec] ss:$28 sps:$4 sm:$0xff]   ;;  %5984 = vmatpush1.bf16.msra.mxu0 %v14929_v53 }
 0x314   :  { %v3114_v22 = vmax.f32 %v3112_v49, %v3113_v61  ;;  %3691 = vst [vmem:[#allocation2 + $0x30] sm:$0x7f] %v3613_v9  ;;  %v1731_v2 = vsel %vm142_vm2, %v16818_v25, %v17225_v30  ;;  %v3619_v52 = vsel %vm3573_vm9, %v3060_v5, %v3618_v63  ;;  %v1732_v7 = vsel %vm142_vm2, %v17225_v30, %v17072_v8  ;;  %v14935_v29 = vld [vmem:[#allocation8 + $0x7e8] ss:$28 sps:$4 sm:$0xff]  }
 0x315   :  { %v3088_v50 = vmax.f32 %v3086_v46, %v3087_v24  ;;  %v19166_v58 = vmax.f32 %v16715_v6, 0.0  ;;  %v3109_v47 = vmax.f32 %v3107_v56, %v3108_v11  ;;  %3693 = vst.msk [vmem:[#allocation2 + $0x38] sm:$0x7f] %vm3692_vm13, %v3619_v52  ;;  %v19167_v25 = vmax.f32 %v16718_v14, 0.0  ;;  %5879 = vmatprep.subr.bf16.mxu1 %v14934_v3  ;;  %5985 = vmatprep.subr.bf16.mxu0 %v14937_v32  ;;  %v14940_v24 = vld [vmem:[#allocation8 + $0x81c] ss:$28 sps:$4 sm:$0xff]  }
 0x316   :  { %v3115_v27 = vrot.slane %v3114_v22, 1  ;;  %v1736_v60 = vsel %vm142_vm2, %v1702_v51, %v16835_v39  ;;  %v19168_v8 = vmax.f32 %v16671_v17, 0.0  ;;  %v1734_v6 = vsel %vm142_vm2, %v16822_v10, %v1700_v0  ;;  %v14941_v11 = vld [vmem:[#allocation8 + $0x820] ss:$28 sps:$4 sm:$0xff]  }
 0x317   :  { %v1783_v18 = vmax.f32 %v19166_v58, %v1731_v2  ;;  %v1784_v28 = vmax.f32 %v19167_v25, %v1732_v7  ;;  %v1735_v1 = vsel %vm142_vm2, %v1700_v0, %v1702_v51  ;;  %v17256_v54 = vsel %vm142_vm2, %v16826_v62, %v1708_v36  ;;  %5986 = vmatpush1.bf16.msra.mxu0 %v14935_v29  ;;  %v14946_v25 = vld [vmem:[#allocation8 + $0x854] ss:$28 sps:$4 sm:$0xff]  }
 0x318   :  { %v1789_v30 = vmax.f32 %v19168_v8, %v1736_v60  ;;  %v3116_v14 = vmax.f32 %v3114_v22, %v3115_v27  ;;  %v17259_v20 = vsel %vm3565_vm5, %v3109_v47, %v3081_v43  ;;  %v19169_v10 = vmax.f32 %v16729_v44, 0.0  ;;  %v14938_v43 = vld [vmem:[#allocation8 + $0x818] ss:$28 sps:$4 sm:$0xff]   ;;  %v14944_v8 = vld [vmem:[#allocation8 + $0x850] ss:$28 sps:$4 sm:$0xff]  }
 0x319   :  { %v1935_v39 = vcombine.low %v1783_v18, %v1784_v28  ;;  %v1936_v19 = vcombine.high %v1783_v18, %v1784_v28  ;;  %v19170_v0 = vmax.f32 %v16733_v31, 0.0  ;;  %v17280_v44 = vsel %vm142_vm2, %v1708_v36, %v17271_v40  ;;  %v14932_v31 = vld [vmem:[#allocation8 + $0x7e0] ss:$28 sps:$4 sm:$0xff]   ;;  %v14955_v29 = vld [vmem:[#allocation8 + $0x894] ss:$28 sps:$4 sm:$0xff]  }
 0x31a   :  { %v1973_v17 = vcombine.low %v1789_v30, %v16875_v41  ;;  %v1974_v34 = vcombine.high %v1789_v30, %v16875_v41  ;;  %v17265_v45 = vmax.f32 %v19169_v10, %v1734_v6  ;;  %v17274_v23 = vsel %vm3565_vm5, %v3116_v14, %v3088_v50  ;;  %5880 = vmatpush1.bf16.msra.mxu1 %v14932_v31  ;;  %v14952_v31 = vld [vmem:[#allocation8 + $0x88c] ss:$28 sps:$4 sm:$0xff]  }
 0x31b   :  { %v17269_v62 = vmax.f32 %v19170_v0, %v1735_v1  ;;  %v1945_v49 = vrot.slane %v1935_v39, %v16853_v57  ;;  %v1952_v41 = vrot.slane %v1936_v19, %v16853_v57  ;;  %5881 = vmatprep.subr.bf16.mxu1 %v14940_v24  ;;  %v14947_v39 = vld [vmem:[#allocation8 + $0x858] ss:$28 sps:$4 sm:$0xff]  }
 0x31c   :  { %v17283_v48 = vrot.slane %v1973_v17, %v16853_v57  ;;  %v17286_v42 = vrot.slane %v1974_v34, %v16853_v57  ;;  %v14949_v0 = vld [vmem:[#allocation8 + $0x85c] ss:$28 sps:$4 sm:$0xff]  }
 0x31d   :  { %v1971_v46 = vcombine.low %v17265_v45, %v17269_v62  ;;  %v1972_v59 = vcombine.high %v17265_v45, %v17269_v62  ;;  %v1967_v26 = vcombine.low %v1945_v49, %v17166_v12  ;;  %v1968_v35 = vcombine.high %v1945_v49, %v17166_v12  ;;  %v14943_v12 = vld [vmem:[#allocation8 + $0x824] ss:$28 sps:$4 sm:$0xff]  }
 0x31e   :  { %v1969_v56 = vcombine.low %v1952_v41, %v17172_v55  ;;  %v1970_v61 = vcombine.high %v1952_v41, %v17172_v55  ;;  %v13389_v38 = vcombine.low %v17283_v48, %v17283_v48  ;;  %v13390_v4 = vcombine.high %v17283_v48, %v17283_v48  ;;  %5987 = vmatprep.subr.bf16.mxu0 %v14943_v12  ;;  %v14953_v12 = vld [vmem:[#allocation8 + $0x890] ss:$28 sps:$4 sm:$0xff]  }
 0x31f   :  { %v13391_v33 = vcombine.low %v17286_v42, %v17286_v42  ;;  %v13392_v5 = vcombine.high %v17286_v42, %v17286_v42  ;;  %v2290_v9 = vrot.slane %v1967_v26, %v16853_v57  ;;  %v2307_v55 = vrot.slane %v1968_v35, %v16853_v57  ;;  %5882 = vmatpush1.bf16.msra.mxu1 %v14938_v43 }
 0x320   :  { %v2324_v63 = vrot.slane %v1969_v56, %v16853_v57  ;;  %v2341_v51 = vrot.slane %v1970_v61, %v16853_v57  ;;  %v17309_v22 = vrot.slane %v13389_v38, %v16853_v57  ;;  %v17312_v2 = vrot.slane %v13390_v4, %v16853_v57  ;;  %5988 = vmatpush1.bf16.msra.mxu0 %v14941_v11  ;;  %v14950_v38 = vld [vmem:[#allocation8 + $0x888] ss:$28 sps:$4 sm:$0xff]  }
 0x321   :  { %v17315_v36 = vrot.slane %v13391_v33, %v16853_v57  ;;  %v17318_v50 = vrot.slane %v13392_v5, %v16853_v57  ;;  %v2298_v52 = vcombine.high %v2290_v9, %v2290_v9  ;;  %v2315_v7 = vcombine.high %v2307_v55, %v2307_v55  ;;  %5883 = vmatprep.subr.bf16.mxu1 %v14946_v25  ;;  %v14956_v25 = vld [vmem:[#allocation8 + $0x8c0] ss:$28 sps:$4 sm:$0xff]  }
 0x322   :  { %v2332_v58 = vcombine.high %v2324_v63, %v2324_v63  ;;  %v2349_v18 = vcombine.high %v2341_v51, %v2341_v51  ;;  %v3005_v13 = vsel %vm2667_vm3, %v2290_v9, -inf  ;;  %v3033_v15 = vsel %vm2667_vm3, %v2307_v55, -inf  ;;  %5989 = vmatprep.subr.bf16.mxu0 %v14949_v0  ;;  %v14962_v0 = vld [vmem:[#allocation8 + $0x8f8] ss:$28 sps:$4 sm:$0xff]  }
 0x323   :  { %v3061_v47 = vsel %vm2667_vm3, %v2324_v63, -inf  ;;  %v3089_v27 = vsel %vm2667_vm3, %v2341_v51, -inf  ;;  %v3006_v28 = vrot.slane %v3005_v13, 4  ;;  %v3012_v60 = vsel %vm2667_vm3, %v2298_v52, -inf  ;;  %5884 = vmatpush1.bf16.msra.mxu1 %v14944_v8  ;;  %v14959_v8 = vld [vmem:[#allocation8 + $0x8c8] ss:$28 sps:$4 sm:$0xff]  }
 0x324   :  { %v3034_v16 = vrot.slane %v3033_v15, 4  ;;  %v3040_v53 = vsel %vm2667_vm3, %v2315_v7, -inf  ;;  %v3013_v30 = vrot.slane %v3012_v60, 4  ;;  %v3062_v1 = vrot.slane %v3061_v47, 4  ;;  %5990 = vmatpush1.bf16.msra.mxu0 %v14947_v39  ;;  %5885 = vmatprep.subr.bf16.mxu1 %v14952_v31  ;;  %v14964_v39 = vld [vmem:[#allocation8 + $0x8fc] ss:$28 sps:$4 sm:$0xff]  }
 0x325   :  { %v3041_v6 = vrot.slane %v3040_v53, 4  ;;  %v3068_v14 = vsel %vm2667_vm3, %v2332_v58, -inf  ;;  %v3007_v19 = vmax.f32 %v3005_v13, %v3006_v28  ;;  %v3090_v10 = vrot.slane %v3089_v27, 4  ;;  %5991 = vmatprep.subr.bf16.mxu0 %v14955_v29  ;;  %v14958_v58 = vld [vmem:[#allocation8 + $0x8c4] ss:$28 sps:$4 sm:$0xff]  }
 0x326   :  { %v3035_v17 = vmax.f32 %v3033_v15, %v3034_v16  ;;  %v3069_v34 = vrot.slane %v3068_v14, 4  ;;  %v3014_v3 = vmax.f32 %v3012_v60, %v3013_v30  ;;  %v3063_v49 = vmax.f32 %v3061_v47, %v3062_v1  ;;  %v14970_v29 = vld [vmem:[#allocation8 + $0x934] ss:$28 sps:$4 sm:$0xff]  }
 0x327   :  { %v3042_v32 = vmax.f32 %v3040_v53, %v3041_v6  ;;  %v3096_v41 = vsel %vm2667_vm3, %v2349_v18, -inf  ;;  %v3008_v26 = vrot.slane %v3007_v19, 2  ;;  %v3091_v61 = vmax.f32 %v3089_v27, %v3090_v10  ;;  %5886 = vmatpush1.bf16.msra.mxu1 %v14950_v38  ;;  %v14961_v18 = vld [vmem:[#allocation8 + $0x8cc] ss:$28 sps:$4 sm:$0xff]   ;;  %v14965_v38 = vld [vmem:[#allocation8 + $0x900] ss:$28 sps:$4 sm:$0xff]  }
 0x328   :  { %v3036_v35 = vrot.slane %v3035_v17, 2  ;;  %v3070_v56 = vmax.f32 %v3068_v14, %v3069_v34  ;;  %v3015_v4 = vrot.slane %v3014_v3, 2  ;;  %v3064_v5 = vrot.slane %v3063_v49, 2  ;;  %5992 = vmatpush1.bf16.msra.mxu0 %v14953_v12  ;;  %5887 = vmatprep.subr.bf16.mxu1 %v14958_v58 }
 0x329   :  { %v3043_v33 = vrot.slane %v3042_v32, 2  ;;  %v3097_v24 = vrot.slane %v3096_v41, 4  ;;  %v3009_v9 = vmax.f32 %v3007_v19, %v3008_v26  ;;  %v3092_v51 = vrot.slane %v3091_v61, 2  ;;  %5993 = vmatprep.subr.bf16.mxu0 %v14961_v18 }
 0x32a   :  { %v3037_v55 = vmax.f32 %v3035_v17, %v3036_v35  ;;  %v3071_v63 = vrot.slane %v3070_v56, 2  ;;  %v3016_v43 = vmax.f32 %v3014_v3, %v3015_v4  ;;  %v3065_v52 = vmax.f32 %v3063_v49, %v3064_v5  ;;  %v14967_v3 = vld [vmem:[#allocation8 + $0x904] ss:$28 sps:$4 sm:$0xff]  }
 0x32b   :  { %v3044_v11 = vmax.f32 %v3042_v32, %v3043_v33  ;;  %v3098_v7 = vmax.f32 %v3096_v41, %v3097_v24  ;;  %v3010_v13 = vrot.slane %v3009_v9, 1  ;;  %v3093_v27 = vmax.f32 %v3091_v61, %v3092_v51  ;;  %5888 = vmatpush1.bf16.msra.mxu1 %v14956_v25  ;;  %v14973_v24 = vld [vmem:[#allocation8 + $0x93c] ss:$28 sps:$4 sm:$0xff]  }
 0x32c   :  { %v3038_v15 = vrot.slane %v3037_v55, 1  ;;  %v3072_v47 = vmax.f32 %v3070_v56, %v3071_v63  ;;  %v3017_v28 = vrot.slane %v3016_v43, 1  ;;  %v3066_v16 = vrot.slane %v3065_v52, 1  ;;  %5889 = vmatprep.subr.bf16.mxu1 %v14964_v39  ;;  %5994 = vmatpush1.bf16.msra.mxu0 %v14959_v8  ;;  %v14968_v63 = vld [vmem:[#allocation8 + $0x930] ss:$28 sps:$4 sm:$0xff]  }
 0x32d   :  { %v3045_v60 = vrot.slane %v3044_v11, 1  ;;  %v3099_v53 = vrot.slane %v3098_v7, 2  ;;  %v3011_v30 = vmax.f32 %v3009_v9, %v3010_v13  ;;  %v3094_v14 = vrot.slane %v3093_v27, 1  ;;  %5995 = vmatprep.subr.bf16.mxu0 %v14967_v3  ;;  %v14977_v39 = vld [vmem:[#allocation8 + $0x970] ss:$28 sps:$4 sm:$0xff]  }
 0x32e   :  { %v3039_v6 = vmax.f32 %v3037_v55, %v3038_v15  ;;  %v3073_v1 = vrot.slane %v3072_v47, 1  ;;  %v3018_v19 = vmax.f32 %v3016_v43, %v3017_v28  ;;  %v3067_v34 = vmax.f32 %v3065_v52, %v3066_v16  ;;  %v14979_v28 = vld [vmem:[#allocation8 + $0x974] ss:$28 sps:$4 sm:$0xff]  }
 0x32f   :  { %v3046_v17 = vmax.f32 %v3044_v11, %v3045_v60  ;;  %v3100_v10 = vmax.f32 %v3098_v7, %v3099_v53  ;;  %v3095_v49 = vmax.f32 %v3093_v27, %v3094_v14  ;;  %v3600_v41 = vsel %vm3571_vm8, %v3011_v30, %v17208_v37  ;;  %5890 = vmatpush1.bf16.msra.mxu1 %v14962_v0  ;;  %v14976_v7 = vld [vmem:[#allocation8 + $0x96c] ss:$28 sps:$4 sm:$0xff]  }
 0x330   :  { %v3074_v32 = vmax.f32 %v3072_v47, %v3073_v1  ;;  %v2367_v31 = vcombine.high %v17309_v22, %v17309_v22  ;;  %v3601_v35 = vsel %vm3573_vm9, %v3039_v6, %v3600_v41  ;;  %v3606_v56 = vsel %vm3571_vm8, %v3018_v19, %v17220_v21  ;;  %5891 = vmatprep.subr.bf16.mxu1 %v14970_v29  ;;  %v14974_v30 = vld [vmem:[#allocation8 + $0x968] ss:$28 sps:$4 sm:$0xff]  }
 0x331   :  { %v3101_v26 = vrot.slane %v3100_v10, 1  ;;  %v2384_v61 = vcombine.high %v17312_v2, %v17312_v2  ;;  %v3607_v4 = vsel %vm3573_vm9, %v3046_v17, %v3606_v56  ;;  %v17339_v37 = vsel %vm3565_vm5, %v3095_v49, %v3067_v34  ;;  %3689 = vst [vmem:[#allocation2 + $0x20] sm:$0x7f] %v3601_v35  ;;  %5996 = vmatpush1.bf16.msra.mxu0 %v14965_v38 }
 0x332   :  { %v2401_v33 = vcombine.high %v17315_v36, %v17315_v36  ;;  %v2418_v5 = vcombine.high %v17318_v50, %v17318_v50  ;;  %3690 = vst [vmem:[#allocation2 + $0x28] sm:$0x7f] %v3607_v4  ;;  %v3131_v12 = vsel %vm2667_vm3, %v17309_v22, -inf  ;;  %v3138_v9 = vsel %vm2689_vm4, %v2367_v31, -inf  ;;  %5997 = vmatprep.subr.bf16.mxu0 %v14973_v24 }
 0x333   :  { %v3102_v21 = vmax.f32 %v3100_v10, %v3101_v26  ;;  %v3159_v55 = vsel %vm2667_vm3, %v17312_v2, -inf  ;;  %v3132_v51 = vrot.slane %v3131_v12, 4  ;;  %v3139_v43 = vrot.slane %v3138_v9, 4  ;;  %v14971_v2 = vld [vmem:[#allocation8 + $0x938] ss:$28 sps:$4 sm:$0xff]   ;;  %5892 = vmatpush1.bf16.msra.mxu1 %v14968_v63 }
 0x334   :  { %v3160_v11 = vrot.slane %v3159_v55, 4  ;;  %v3166_v52 = vsel %vm2689_vm4, %v2384_v61, -inf  ;;  %v3187_v22 = vsel %vm2667_vm3, %v17315_v36, -inf  ;;  %v3194_v13 = vsel %vm2689_vm4, %v2401_v33, -inf  ;;  %5893 = vmatprep.subr.bf16.mxu1 %v14976_v7 }
 0x335   :  { %v17352_v58 = vsel %vm3565_vm5, %v3102_v21, %v3074_v32  ;;  %v3167_v18 = vrot.slane %v3166_v52, 4  ;;  %v3133_v15 = vmax.f32 %v3131_v12, %v3132_v51  ;;  %v3140_v47 = vmax.f32 %v3138_v9, %v3139_v43  ;;  %5998 = vmatpush1.bf16.msra.mxu0 %v14971_v2 }
 0x336   :  { %v3161_v27 = vmax.f32 %v3159_v55, %v3160_v11  ;;  %v3188_v25 = vrot.slane %v3187_v22, 4  ;;  %v3195_v16 = vrot.slane %v3194_v13, 4  ;;  %v3215_v53 = vsel %vm2667_vm3, %v17318_v50, -inf  ;;  %5999 = vmatprep.subr.bf16.mxu0 %v14979_v28  ;;  %v14998_v55 = vld [vmem:[#allocation8 + $0x9a4] ss:$28 sps:$4 sm:$0xff]  }
 0x337   :  { %v3168_v60 = vmax.f32 %v3166_v52, %v3167_v18  ;;  %v3222_v8 = vsel %vm2689_vm4, %v2418_v5, -inf  ;;  %v3134_v36 = vrot.slane %v3133_v15, 2  ;;  %v3141_v6 = vrot.slane %v3140_v47, 2  ;;  %5894 = vmatpush1.bf16.msra.mxu1 %v14974_v30  ;;  %v15001_v52 = vld [vmem:[#allocation8 + $0x9ac] ss:$28 sps:$4 sm:$0xff]  }
 0x338   :  { %v3162_v1 = vrot.slane %v3161_v27, 2  ;;  %v3189_v14 = vmax.f32 %v3187_v22, %v3188_v25  ;;  %v3196_v17 = vmax.f32 %v3194_v13, %v3195_v16  ;;  %v3216_v34 = vrot.slane %v3215_v53, 4  ;;  %5916 = vmatprep.subr.bf16.mxu1 %v14998_v55 }
 0x339   :  { %v3169_v19 = vrot.slane %v3168_v60, 2  ;;  %v3223_v10 = vrot.slane %v3222_v8, 4  ;;  %v3135_v0 = vmax.f32 %v3133_v15, %v3134_v36  ;;  %v3142_v3 = vmax.f32 %v3140_v47, %v3141_v6  ;;  %6000 = vmatpush1.bf16.msra.mxu0 %v14977_v39  ;;  %v19171_v6 = vld [vmem:[#allocation29_spill] sm:$0xff] }
 0x33a   :  { %v3163_v32 = vmax.f32 %v3161_v27, %v3162_v1  ;;  %v3190_v49 = vrot.slane %v3189_v14, 2  ;;  %v3197_v41 = vrot.slane %v3196_v17, 2  ;;  %v3217_v31 = vmax.f32 %v3215_v53, %v3216_v34  ;;  %6022 = vmatprep.subr.bf16.mxu0 %v15001_v52 }
 0x33b   :  { %v3170_v50 = vmax.f32 %v3168_v60, %v3169_v19  ;;  %v3224_v29 = vmax.f32 %v3222_v8, %v3223_v10  ;;  %v3136_v26 = vrot.slane %v3135_v0, 1  ;;  %v3143_v35 = vrot.slane %v3142_v3, 1 }
 0x33c   :  { %v3164_v56 = vrot.slane %v3163_v32, 1  ;;  %v3191_v61 = vmax.f32 %v3189_v14, %v3190_v49  ;;  %v3198_v4 = vmax.f32 %v3196_v17, %v3197_v41  ;;  %v3218_v33 = vrot.slane %v3217_v31, 2 }
 0x33d   :  { %v3171_v38 = vrot.slane %v3170_v50, 1  ;;  %v3225_v5 = vrot.slane %v3224_v29, 2  ;;  %v3137_v24 = vmax.f32 %v3135_v0, %v3136_v26  ;;  %v3144_v21 = vmax.f32 %v3142_v3, %v3143_v35 }
 0x33e   :  { %v3165_v12 = vmax.f32 %v3163_v32, %v3164_v56  ;;  %v3192_v9 = vrot.slane %v3191_v61, 1  ;;  %v3199_v51 = vrot.slane %v3198_v4, 1  ;;  %v3219_v43 = vmax.f32 %v3217_v31, %v3218_v33  ;;  %v1712_v33 = vpop.permute.xlu1 %1711 }
 0x33f   :  { %v3172_v63 = vmax.f32 %v3170_v50, %v3171_v38  ;;  %v3226_v11 = vmax.f32 %v3224_v29, %v3225_v5  ;;  %v3633_v18 = vsel %vm3567_vm6, %v3137_v24, %v17259_v20  ;;  %v3639_v22 = vsel %vm3567_vm6, %v3144_v21, %v17274_v23 }
 0x340   :  { %v3193_v7 = vmax.f32 %v3191_v61, %v3192_v9  ;;  %v1981_v13 = vrot.slane %v1971_v46, %v16853_v57  ;;  %v3200_v2 = vmax.f32 %v3198_v4, %v3199_v51  ;;  %v3220_v15 = vrot.slane %v3219_v43, 1 }
 0x341   :  { %v3227_v47 = vrot.slane %v3226_v11, 1  ;;  %v3634_v27 = vsel %vm3569_vm7, %v3165_v12, %v3633_v18  ;;  %v3640_v28 = vsel %vm3569_vm7, %v3172_v63, %v3639_v22  ;;  %v1988_v20 = vrot.slane %v1972_v59, %v16853_v57 }
 0x342   :  { %v3635_v25 = vsel %vm3571_vm8, %v3193_v7, %v3634_v27  ;;  %v2003_v23 = vcombine.low %v1981_v13, %v17283_v48  ;;  %v3221_v60 = vmax.f32 %v3219_v43, %v3220_v15  ;;  %v3641_v16 = vsel %vm3571_vm8, %v3200_v2, %v3640_v28 }
 0x343   :  { %v3228_v46 = vmax.f32 %v3226_v11, %v3227_v47  ;;  %v2004_v53 = vcombine.high %v1981_v13, %v17283_v48  ;;  %v2005_v8 = vcombine.low %v1988_v20, %v17286_v42  ;;  %v2006_v30 = vcombine.high %v1988_v20, %v17286_v42  ;;  %v19173_v48 = vld [vmem:[#allocation30_spill] sm:$0xff] }
 0x344   :  { %v2358_v36 = vrot.slane %v2003_v23, %v16853_v57  ;;  %v19172_v1 = vmax.f32 %v19171_v6, 0.0  ;;  %v17387_v45 = vsel %vm3573_vm9, %v3221_v60, %v3635_v25  ;;  %v19174_v39 = vmax.f32 %v19173_v48, 0.0  ;;  %v1714_v48 = vpop.permute.xlu0 %1713 }
 0x345   :  { %v17390_v62 = vsel %vm3573_vm9, %v3228_v46, %v3641_v16  ;;  %v2375_v59 = vrot.slane %v2004_v53, %v16853_v57  ;;  %v2392_v17 = vrot.slane %v2005_v8, %v16853_v57  ;;  %v2409_v34 = vrot.slane %v2006_v30, %v16853_v57  ;;  %v1716_v46 = vpop.permute.xlu1 %1715 }
 0x346   :  { %v17384_v14 = vmax.f32 %v19172_v1, %v17256_v54  ;;  %v17396_v19 = vmax.f32 %v19174_v39, %v17280_v44  ;;  %v2366_v42 = vcombine.high %v2358_v36, %v2358_v36  ;;  %v3117_v54 = vsel %vm2667_vm3, %v2358_v36, -inf }
 0x347   :  { %v2383_v10 = vcombine.high %v2375_v59, %v2375_v59  ;;  %v3118_v0 = vrot.slane %v3117_v54, 4  ;;  %v3145_v3 = vsel %vm2667_vm3, %v2375_v59, -inf  ;;  %v2400_v49 = vcombine.high %v2392_v17, %v2392_v17 }
 0x348   :  { %v2007_v32 = vcombine.low %v17384_v14, %v17396_v19  ;;  %v2417_v50 = vcombine.high %v2409_v34, %v2409_v34  ;;  %v3124_v41 = vsel %vm2667_vm3, %v2366_v42, -inf  ;;  %v3146_v44 = vrot.slane %v3145_v3, 4 }
 0x349   :  { %v3119_v31 = vmax.f32 %v3117_v54, %v3118_v0  ;;  %v3125_v29 = vrot.slane %v3124_v41, 4  ;;  %v3152_v26 = vsel %vm2667_vm3, %v2383_v10, -inf  ;;  %v3173_v35 = vsel %vm2667_vm3, %v2392_v17, -inf }
 0x34a   :  { %v3147_v56 = vmax.f32 %v3145_v3, %v3146_v44  ;;  %v3153_v61 = vrot.slane %v3152_v26, 4  ;;  %v3174_v38 = vrot.slane %v3173_v35, 4  ;;  %v3180_v4 = vsel %vm2667_vm3, %v2400_v49, -inf }
 0x34b   :  { %v3120_v5 = vrot.slane %v3119_v31, 2  ;;  %v3126_v24 = vmax.f32 %v3124_v41, %v3125_v29  ;;  %v3181_v21 = vrot.slane %v3180_v4, 4  ;;  %v3201_v12 = vsel %vm2667_vm3, %v2409_v34, -inf }
 0x34c   :  { %v3148_v9 = vrot.slane %v3147_v56, 2  ;;  %v3154_v55 = vmax.f32 %v3152_v26, %v3153_v61  ;;  %v3175_v63 = vmax.f32 %v3173_v35, %v3174_v38  ;;  %v3202_v51 = vrot.slane %v3201_v12, 4  ;;  %v1720_v35 = vpop.permute.xlu1 %1719 }
 0x34d   :  { %v3121_v43 = vmax.f32 %v3119_v31, %v3120_v5  ;;  %v3127_v11 = vrot.slane %v3126_v24, 2  ;;  %v3182_v52 = vmax.f32 %v3180_v4, %v3181_v21  ;;  %v3208_v7 = vsel %vm2667_vm3, %v2417_v50, -inf  ;;  %v14980_v4 = vld [vmem:[#allocation2] ss:$8 sps:$4 sm:$0xee]   ;;  %v19175_v21 = vld [vmem:[#allocation25_spill] sm:$0xff] }
 0x34e   :  { %v3149_v18 = vmax.f32 %v3147_v56, %v3148_v9  ;;  %v3155_v22 = vrot.slane %v3154_v55, 2  ;;  %v3176_v13 = vrot.slane %v3175_v63, 2  ;;  %v3203_v2 = vmax.f32 %v3201_v12, %v3202_v51  ;;  %v14982_v5 = vld [vmem:[#allocation2 + $0x4] ss:$8 sps:$4 sm:$0xff]  }
 0x34f   :  { %v3122_v15 = vrot.slane %v3121_v43, 1  ;;  %v3128_v47 = vmax.f32 %v3126_v24, %v3127_v11  ;;  %v3183_v27 = vrot.slane %v3182_v52, 2  ;;  %v3209_v25 = vrot.slane %v3208_v7, 4  ;;  %v19179_v11 = vld [vmem:[#allocation31_spill] sm:$0xff] }
 0x350   :  { %v3150_v28 = vrot.slane %v3149_v18, 1  ;;  %v3156_v20 = vmax.f32 %v3154_v55, %v3155_v22  ;;  %v3177_v23 = vmax.f32 %v3175_v63, %v3176_v13  ;;  %v3204_v60 = vrot.slane %v3203_v2, 2  ;;  %v19177_v55 = vld [vmem:[#allocation26_spill] sm:$0xff] }
 0x351   :  { %v3123_v16 = vmax.f32 %v3121_v43, %v3122_v15  ;;  %v3129_v53 = vrot.slane %v3128_v47, 1  ;;  %v3184_v8 = vmax.f32 %v3182_v52, %v3183_v27  ;;  %v3210_v30 = vmax.f32 %v3208_v7, %v3209_v25  ;;  %v14985_v22 = vld [vmem:[#allocation2 + $0x14] ss:$8 sps:$4 sm:$0xff]   ;;  %v19181_v15 = vld [vmem:[#allocation32_spill] sm:$0xff] }
 0x352   :  { %v3151_v36 = vmax.f32 %v3149_v18, %v3150_v28  ;;  %v3157_v6 = vrot.slane %v3156_v20, 1  ;;  %v3178_v1 = vrot.slane %v3177_v23, 1  ;;  %v3205_v59 = vmax.f32 %v3203_v2, %v3204_v60  ;;  %v14983_v18 = vld [vmem:[#allocation2 + $0x10] ss:$8 sps:$4 sm:$0xee]  }
 0x353   :  { %v3130_v39 = vmax.f32 %v3128_v47, %v3129_v53  ;;  %v3185_v42 = vrot.slane %v3184_v8, 1  ;;  %v3211_v17 = vrot.slane %v3210_v30, 2  ;;  %v3621_v34 = vsel %vm3567_vm6, %v3123_v16, %v17339_v37 }
 0x354   :  { %v3158_v54 = vmax.f32 %v3156_v20, %v3157_v6  ;;  %v3179_v10 = vmax.f32 %v3177_v23, %v3178_v1  ;;  %v3206_v0 = vrot.slane %v3205_v59, 1  ;;  %v3622_v3 = vsel %vm3569_vm7, %v3151_v36, %v3621_v34  ;;  %v19185_v23 = vld [vmem:[#allocation28_spill] sm:$0xff] }
 0x355   :  { %v3186_v49 = vmax.f32 %v3184_v8, %v3185_v42  ;;  %v3212_v50 = vmax.f32 %v3210_v30, %v3211_v17  ;;  %v3627_v41 = vsel %vm3567_vm6, %v3130_v39, %v17352_v58  ;;  %v2008_v44 = vcombine.high %v17384_v14, %v17396_v19 }
 0x356   :  { %v3207_v31 = vmax.f32 %v3205_v59, %v3206_v0  ;;  %v3623_v29 = vsel %vm3571_vm8, %v3179_v10, %v3622_v3  ;;  %v3628_v26 = vsel %vm3569_vm7, %v3158_v54, %v3627_v41  ;;  %v2017_v37 = vrot.slane %v2007_v32, %v16853_v57  ;;  %v1718_v32 = vpop.permute.xlu0 %1717 }
 0x357   :  { %v3213_v56 = vrot.slane %v3212_v50, 1  ;;  %v3629_v61 = vsel %vm3571_vm8, %v3186_v49, %v3628_v26  ;;  %v2024_v38 = vrot.slane %v2008_v44, %v16853_v57  ;;  %v1739_v58 = vsel %vm142_vm2, %v17271_v40, %v1712_v33 }
 0x358   :  { %v17428_v24 = vsel %vm3573_vm9, %v3207_v31, %v3623_v29  ;;  %v19176_v12 = vmax.f32 %v19175_v21, 0.0  ;;  %v19178_v14 = vmax.f32 %v19177_v55, 0.0  ;;  %v1740_v63 = vsel %vm142_vm2, %v1714_v48, %v1716_v46 }
 0x359   :  { %v3214_v51 = vmax.f32 %v3212_v50, %v3213_v56  ;;  %v1741_v43 = vsel %vm142_vm2, %v1716_v46, %v1718_v32  ;;  %v19180_v52 = vmax.f32 %v19179_v11, 0.0  ;;  %v1742_v7 = vsel %vm142_vm2, %v1718_v32, %v1720_v35 }
 0x35a   :  { %v1793_v9 = vmax.f32 %v19176_v12, %v1739_v58  ;;  %v1794_v19 = vmax.f32 %v19178_v14, %v1712_v33  ;;  %v19182_v47 = vmax.f32 %v19181_v15, 0.0  ;;  %v19183_v33 = vld [vmem:[#allocation27_spill] sm:$0xff]  ;;  %v19186_v60 = vmax.f32 %v19185_v23, 0.0 }
 0x35b   :  { %v17438_v40 = vmax.f32 %v19180_v52, %v1740_v63  ;;  %v19184_v25 = vmax.f32 %v19183_v33, 0.0  ;;  %v17450_v20 = vsel %vm3573_vm9, %v3214_v51, %v3629_v61  ;;  %v17457_v16 = vrot.slane %v14980_v4, %v16853_v57 }
 0x35c   :  { %v2009_v13 = vcombine.low %v1793_v9, %v1794_v19  ;;  %v2010_v2 = vcombine.high %v1793_v9, %v1794_v19  ;;  %v17443_v27 = vmax.f32 %v19182_v47, %v1741_v43  ;;  %v17454_v46 = vmax.f32 %v19186_v60, %v1720_v35 }
 0x35d   :  { %v17447_v28 = vmax.f32 %v19184_v25, %v1742_v7  ;;  %v17460_v53 = vrot.slane %v14982_v5, %v16853_v57  ;;  %v17473_v48 = vrot.slane %v14983_v18, %v16853_v57  ;;  %v17476_v39 = vrot.slane %v14985_v22, %v16853_v57 }
 0x35e   :  { %v2031_v8 = vrot.slane %v2009_v13, %v16853_v57  ;;  %v2038_v30 = vrot.slane %v2010_v2, %v16853_v57  ;;  %v2043_v36 = vcombine.low %v17438_v40, %v17443_v27  ;;  %v2044_v6 = vcombine.high %v17438_v40, %v17443_v27 }
 0x35f   :  { %v2045_v1 = vcombine.low %v17447_v28, %v17454_v46  ;;  %v2046_v59 = vcombine.high %v17447_v28, %v17454_v46  ;;  %v4316_v40 = vcombine.low %v17460_v53, %v17476_v39  ;;  %v4317_v27 = vcombine.high %v17460_v53, %v17476_v39 }
 0x360   :  { %v2039_v42 = vcombine.low %v2017_v37, %v2031_v8  ;;  %v2040_v17 = vcombine.high %v2017_v37, %v2031_v8  ;;  %v2041_v34 = vcombine.low %v2024_v38, %v2038_v30  ;;  %v2042_v54 = vcombine.high %v2024_v38, %v2038_v30 }
 0x361   :  { %v13393_v10 = vcombine.low %v2031_v8, %v2031_v8  ;;  %v13394_v0 = vcombine.high %v2031_v8, %v2031_v8  ;;  %v13395_v3 = vcombine.low %v2038_v30, %v2038_v30  ;;  %v13396_v49 = vcombine.high %v2038_v30, %v2038_v30 }
 0x362   :  { %v2426_v50 = vrot.slane %v2039_v42, %v16853_v57  ;;  %v2443_v41 = vrot.slane %v2040_v17, %v16853_v57  ;;  %v17481_v44 = vrot.slane %v2041_v34, %v16853_v57  ;;  %v17484_v31 = vrot.slane %v2042_v54, %v16853_v57 }
 0x363   :  { %v2433_v29 = vrot.slane %v13393_v10, %v16853_v57  ;;  %v2450_v26 = vrot.slane %v13394_v0, %v16853_v57  ;;  %v17489_v37 = vrot.slane %v13395_v3, %v16853_v57  ;;  %v17492_v35 = vrot.slane %v13396_v49, %v16853_v57 }
 0x364   :  { %v2434_v56 = vcombine.high %v2426_v50, %v2426_v50  ;;  %v2451_v61 = vcombine.high %v2443_v41, %v2443_v41  ;;  %v2468_v38 = vcombine.high %v17481_v44, %v17481_v44  ;;  %v2485_v58 = vcombine.high %v17484_v31, %v17484_v31 }
 0x365   :  { %v2435_v4 = vcombine.high %v2433_v29, %v2433_v29  ;;  %v2452_v5 = vcombine.high %v2450_v26, %v2450_v26  ;;  %v2469_v21 = vcombine.high %v17489_v37, %v17489_v37  ;;  %v2486_v12 = vcombine.high %v17492_v35, %v17492_v35 }
 0x366   :  { %v3229_v9 = vsel %vm2667_vm3, %v2426_v50, -inf  ;;  %v3236_v55 = vsel %vm2667_vm3, %v2434_v56, -inf  ;;  %v3243_v14 = vsel %vm2667_vm3, %v2433_v29, -inf  ;;  %v3257_v19 = vsel %vm2667_vm3, %v2443_v41, -inf }
 0x367   :  { %v3230_v32 = vrot.slane %v3229_v9, 4  ;;  %v3237_v63 = vrot.slane %v3236_v55, 4  ;;  %v3244_v51 = vrot.slane %v3243_v14, 4  ;;  %v3250_v43 = vsel %vm2689_vm4, %v2435_v4, -inf }
 0x368   :  { %v3251_v11 = vrot.slane %v3250_v43, 4  ;;  %v3258_v52 = vrot.slane %v3257_v19, 4  ;;  %v3264_v7 = vsel %vm2667_vm3, %v2451_v61, -inf  ;;  %v3271_v18 = vsel %vm2667_vm3, %v2450_v26, -inf }
 0x369   :  { %v3231_v22 = vmax.f32 %v3229_v9, %v3230_v32  ;;  %v3238_v13 = vmax.f32 %v3236_v55, %v3237_v63  ;;  %v3245_v2 = vmax.f32 %v3243_v14, %v3244_v51  ;;  %v3265_v15 = vrot.slane %v3264_v7, 4 }
 0x36a   :  { %v3252_v47 = vmax.f32 %v3250_v43, %v3251_v11  ;;  %v3259_v33 = vmax.f32 %v3257_v19, %v3258_v52  ;;  %v3272_v25 = vrot.slane %v3271_v18, 4  ;;  %v3278_v23 = vsel %vm2689_vm4, %v2452_v5, -inf }
 0x36b   :  { %v3232_v60 = vrot.slane %v3231_v22, 2  ;;  %v3239_v8 = vrot.slane %v3238_v13, 2  ;;  %v3246_v30 = vrot.slane %v3245_v2, 2  ;;  %v3266_v42 = vmax.f32 %v3264_v7, %v3265_v15 }
 0x36c   :  { %v3253_v17 = vrot.slane %v3252_v47, 2  ;;  %v3260_v34 = vrot.slane %v3259_v33, 2  ;;  %v3273_v54 = vmax.f32 %v3271_v18, %v3272_v25  ;;  %v3279_v10 = vrot.slane %v3278_v23, 4 }
 0x36d   :  { %v3233_v0 = vmax.f32 %v3231_v22, %v3232_v60  ;;  %v3240_v3 = vmax.f32 %v3238_v13, %v3239_v8  ;;  %v3247_v49 = vmax.f32 %v3245_v2, %v3246_v30  ;;  %v3267_v50 = vrot.slane %v3266_v42, 2 }
 0x36e   :  { %v3254_v41 = vmax.f32 %v3252_v47, %v3253_v17  ;;  %v3261_v29 = vmax.f32 %v3259_v33, %v3260_v34  ;;  %v3274_v26 = vrot.slane %v3273_v54, 2  ;;  %v3280_v56 = vmax.f32 %v3278_v23, %v3279_v10 }
 0x36f   :  { %v3234_v61 = vrot.slane %v3233_v0, 1  ;;  %v3241_v4 = vrot.slane %v3240_v3, 1  ;;  %v3248_v9 = vrot.slane %v3247_v49, 1  ;;  %v3268_v5 = vmax.f32 %v3266_v42, %v3267_v50 }
 0x370   :  { %v3255_v55 = vrot.slane %v3254_v41, 1  ;;  %v3262_v14 = vrot.slane %v3261_v29, 1  ;;  %v3275_v19 = vmax.f32 %v3273_v54, %v3274_v26  ;;  %v3281_v32 = vrot.slane %v3280_v56, 2 }
 0x371   :  { %v17510_v63 = vmax.f32 %v3233_v0, %v3234_v61  ;;  %v17512_v51 = vmax.f32 %v3240_v3, %v3241_v4  ;;  %v17514_v43 = vmax.f32 %v3247_v49, %v3248_v9  ;;  %v3269_v11 = vrot.slane %v3268_v5, 1 }
 0x372   :  { %v17516_v52 = vmax.f32 %v3254_v41, %v3255_v55  ;;  %v17518_v7 = vmax.f32 %v3261_v29, %v3262_v14  ;;  %v3276_v18 = vrot.slane %v3275_v19, 1  ;;  %v3282_v22 = vmax.f32 %v3280_v56, %v3281_v32 }
 0x373   :  { %v17520_v13 = vmax.f32 %v3268_v5, %v3269_v11  ;;  %v3285_v2 = vsel %vm2667_vm3, %v17481_v44, -inf  ;;  %v3292_v15 = vsel %vm2667_vm3, %v2468_v38, -inf  ;;  %v3299_v47 = vsel %vm2667_vm3, %v17489_v37, -inf }
 0x374   :  { %v17527_v33 = vmax.f32 %v3275_v19, %v3276_v18  ;;  %v3283_v25 = vrot.slane %v3282_v22, 1  ;;  %v3286_v23 = vrot.slane %v3285_v2, 4  ;;  %v3293_v60 = vrot.slane %v3292_v15, 4 }
 0x375   :  { %v3300_v8 = vrot.slane %v3299_v47, 4  ;;  %v3306_v30 = vsel %vm2689_vm4, %v2469_v21, -inf  ;;  %v3313_v42 = vsel %vm2667_vm3, %v17484_v31, -inf  ;;  %v3320_v44 = vsel %vm2667_vm3, %v2485_v58, -inf }
 0x376   :  { %v17539_v38 = vmax.f32 %v3282_v22, %v3283_v25  ;;  %v3287_v17 = vmax.f32 %v3285_v2, %v3286_v23  ;;  %v3294_v34 = vmax.f32 %v3292_v15, %v3293_v60  ;;  %v3307_v54 = vrot.slane %v3306_v30, 4 }
 0x377   :  { %v3301_v10 = vmax.f32 %v3299_v47, %v3300_v8  ;;  %v3314_v0 = vrot.slane %v3313_v42, 4  ;;  %v3321_v3 = vrot.slane %v3320_v44, 4  ;;  %v3327_v37 = vsel %vm2667_vm3, %v17492_v35, -inf }
 0x378   :  { %v3288_v21 = vrot.slane %v3287_v17, 2  ;;  %v3295_v49 = vrot.slane %v3294_v34, 2  ;;  %v3308_v50 = vmax.f32 %v3306_v30, %v3307_v54  ;;  %v3328_v41 = vrot.slane %v3327_v37, 4 }
 0x379   :  { %v3302_v29 = vrot.slane %v3301_v10, 2  ;;  %v3315_v26 = vmax.f32 %v3313_v42, %v3314_v0  ;;  %v3322_v31 = vmax.f32 %v3320_v44, %v3321_v3  ;;  %v3334_v58 = vsel %vm2689_vm4, %v2486_v12, -inf }
 0x37a   :  { %v3289_v56 = vmax.f32 %v3287_v17, %v3288_v21  ;;  %v3296_v61 = vmax.f32 %v3294_v34, %v3295_v49  ;;  %v3309_v4 = vrot.slane %v3308_v50, 2  ;;  %v3329_v9 = vmax.f32 %v3327_v37, %v3328_v41 }
 0x37b   :  { %v3303_v5 = vmax.f32 %v3301_v10, %v3302_v29  ;;  %v3316_v55 = vrot.slane %v3315_v26, 2  ;;  %v3323_v14 = vrot.slane %v3322_v31, 2  ;;  %v3335_v19 = vrot.slane %v3334_v58, 4 }
 0x37c   :  { %v3290_v32 = vrot.slane %v3289_v56, 1  ;;  %v3297_v11 = vrot.slane %v3296_v61, 1  ;;  %v3310_v18 = vmax.f32 %v3308_v50, %v3309_v4  ;;  %v3330_v22 = vrot.slane %v3329_v9, 2 }
 0x37d   :  { %v3304_v2 = vrot.slane %v3303_v5, 1  ;;  %v3317_v15 = vmax.f32 %v3315_v26, %v3316_v55  ;;  %v3324_v47 = vmax.f32 %v3322_v31, %v3323_v14  ;;  %v3336_v25 = vmax.f32 %v3334_v58, %v3335_v19 }
 0x37e   :  { %v3291_v23 = vmax.f32 %v3289_v56, %v3290_v32  ;;  %v3298_v35 = vmax.f32 %v3296_v61, %v3297_v11  ;;  %v3311_v60 = vrot.slane %v3310_v18, 1  ;;  %v3331_v12 = vmax.f32 %v3329_v9, %v3330_v22 }
 0x37f   :  { %v3305_v8 = vmax.f32 %v3303_v5, %v3304_v2  ;;  %v3318_v30 = vrot.slane %v3317_v15, 1  ;;  %v3325_v42 = vrot.slane %v3324_v47, 1  ;;  %v3337_v44 = vrot.slane %v3336_v25, 2 }
 0x380   :  { %v3312_v17 = vmax.f32 %v3310_v18, %v3311_v60  ;;  %v3332_v34 = vrot.slane %v3331_v12, 1  ;;  %v3625_v54 = vsel %vm3575_vm10, %v17510_v63, %v17428_v24  ;;  %v3631_v10 = vsel %vm3575_vm10, %v17512_v51, %v17450_v20  ;;  %v14986_v63 = vld [vmem:[#allocation2 + $0x20] ss:$8 sps:$4 sm:$0xff]  }
 0x381   :  { %v3319_v0 = vmax.f32 %v3317_v15, %v3318_v30  ;;  %v3326_v3 = vmax.f32 %v3324_v47, %v3325_v42  ;;  %v3338_v37 = vmax.f32 %v3336_v25, %v3337_v44  ;;  %v3637_v21 = vsel %vm3575_vm10, %v17514_v43, %v17387_v45  ;;  %3694 = vst [vmem:[#allocation2 + $0x40] sm:$0xfe] %v3625_v54 }
 0x382   :  { %3695 = vst [vmem:[#allocation2 + $0x48] sm:$0xfe] %v3631_v10  ;;  %v3333_v49 = vmax.f32 %v3331_v12, %v3332_v34  ;;  %v3643_v50 = vsel %vm3575_vm10, %v17516_v52, %v17390_v62  ;;  %v3644_v24 = vsel %vm3595_vm12, %v3291_v23, %v17518_v7  ;;  %v3650_v20 = vsel %vm3595_vm12, %v3298_v35, %v17520_v13 }
 0x383   :  { %3696 = vst [vmem:[#allocation2 + $0x50] sm:$0xfe] %v3637_v21  ;;  %v3339_v51 = vrot.slane %v3338_v37, 1  ;;  %v17564_v41 = vsel %vm3565_vm5, %v3319_v0, %v3644_v24  ;;  %v17567_v45 = vsel %vm3565_vm5, %v3326_v3, %v3650_v20  ;;  %v3656_v43 = vsel %vm3595_vm12, %v3305_v8, %v17527_v33  ;;  %3697 = vst.msk [vmem:[#allocation2 + $0x58] sm:$0xfe] %vm3687_vm11, %v3643_v50 }
 0x384   :  { %v17573_v62 = vsel %vm3565_vm5, %v3333_v49, %v3656_v43  ;;  %v3662_v52 = vsel %vm3595_vm12, %v3312_v17, %v17539_v38  ;;  %v2053_v7 = vrot.slane %v2043_v36, %v16853_v57  ;;  %v2060_v13 = vrot.slane %v2044_v6, %v16853_v57 }
 0x385   :  { %v3340_v29 = vmax.f32 %v3338_v37, %v3339_v51  ;;  %v2067_v33 = vrot.slane %v2045_v1, %v16853_v57  ;;  %v2074_v38 = vrot.slane %v2046_v59, %v16853_v57  ;;  %v4314_v26 = vcombine.low %v17457_v16, %v17473_v48 }
 0x386   :  { %v4315_v36 = vcombine.high %v17457_v16, %v17473_v48  ;;  %v17602_v6 = vrot.slane %v14986_v63, %v16853_v57 }
 0x387   :  { %v17605_v1 = vsel %vm3565_vm5, %v3340_v29, %v3662_v52  ;;  %v2075_v28 = vcombine.low %v2053_v7, %v2067_v33  ;;  %v2076_v46 = vcombine.high %v2053_v7, %v2067_v33  ;;  %v2077_v59 = vcombine.low %v2060_v13, %v2074_v38 }
 0x388   :  { %v2078_v31 = vcombine.high %v2060_v13, %v2074_v38  ;;  %v13397_v58 = vcombine.low %v2067_v33, %v2067_v33  ;;  %v13398_v56 = vcombine.high %v2067_v33, %v2067_v33  ;;  %v13399_v61 = vcombine.low %v2074_v38, %v2074_v38 }
 0x389   :  { %v2494_v4 = vrot.slane %v2075_v28, %v16853_v57  ;;  %v2511_v9 = vrot.slane %v2076_v46, %v16853_v57  ;;  %v17610_v5 = vrot.slane %v2077_v59, %v16853_v57  ;;  %v13400_v55 = vcombine.high %v2074_v38, %v2074_v38 }
 0x38a   :  { %v2501_v14 = vrot.slane %v13397_v58, %v16853_v57  ;;  %v2518_v19 = vrot.slane %v13398_v56, %v16853_v57  ;;  %v17615_v32 = vrot.slane %v13399_v61, %v16853_v57  ;;  %v17618_v11 = vrot.slane %v2078_v31, %v16853_v57 }
 0x38b   :  { %v2502_v18 = vcombine.high %v2494_v4, %v2494_v4  ;;  %v2519_v22 = vcombine.high %v2511_v9, %v2511_v9  ;;  %v2536_v2 = vcombine.high %v17610_v5, %v17610_v5  ;;  %v17623_v15 = vrot.slane %v13400_v55, %v16853_v57 }
 0x38c   :  { %v2503_v47 = vcombine.high %v2501_v14, %v2501_v14  ;;  %v2520_v25 = vcombine.high %v2518_v19, %v2518_v19  ;;  %v2537_v23 = vcombine.high %v17615_v32, %v17615_v32  ;;  %v2553_v35 = vcombine.high %v17618_v11, %v17618_v11 }
 0x38d   :  { %v2554_v60 = vcombine.high %v17623_v15, %v17623_v15  ;;  %v3341_v12 = vsel %vm2667_vm3, %v2494_v4, -inf  ;;  %v3348_v8 = vsel %vm2667_vm3, %v2502_v18, -inf  ;;  %v3355_v30 = vsel %vm2667_vm3, %v2501_v14, -inf }
 0x38e   :  { %v3342_v42 = vrot.slane %v3341_v12, 4  ;;  %v3349_v44 = vrot.slane %v3348_v8, 4  ;;  %v3356_v17 = vrot.slane %v3355_v30, 4  ;;  %v3362_v34 = vsel %vm2689_vm4, %v2503_v47, -inf }
 0x38f   :  { %v3363_v54 = vrot.slane %v3362_v34, 4  ;;  %v3369_v10 = vsel %vm2667_vm3, %v2511_v9, -inf  ;;  %v3376_v0 = vsel %vm2667_vm3, %v2519_v22, -inf  ;;  %v3383_v3 = vsel %vm2667_vm3, %v2518_v19, -inf }
 0x390   :  { %v3343_v37 = vmax.f32 %v3341_v12, %v3342_v42  ;;  %v3350_v21 = vmax.f32 %v3348_v8, %v3349_v44  ;;  %v3357_v49 = vmax.f32 %v3355_v30, %v3356_v17  ;;  %v3370_v50 = vrot.slane %v3369_v10, 4 }
 0x391   :  { %v3364_v24 = vmax.f32 %v3362_v34, %v3363_v54  ;;  %v3377_v20 = vrot.slane %v3376_v0, 4  ;;  %v3384_v63 = vrot.slane %v3383_v3, 4  ;;  %v3390_v51 = vsel %vm2689_vm4, %v2520_v25, -inf }
 0x392   :  { %v3344_v43 = vrot.slane %v3343_v37, 2  ;;  %v3351_v52 = vrot.slane %v3350_v21, 2  ;;  %v3358_v7 = vrot.slane %v3357_v49, 2  ;;  %v3371_v13 = vmax.f32 %v3369_v10, %v3370_v50 }
 0x393   :  { %v3365_v29 = vrot.slane %v3364_v24, 2  ;;  %v3378_v33 = vmax.f32 %v3376_v0, %v3377_v20  ;;  %v3385_v38 = vmax.f32 %v3383_v3, %v3384_v63  ;;  %v3391_v28 = vrot.slane %v3390_v51, 4 }
 0x394   :  { %v3345_v46 = vmax.f32 %v3343_v37, %v3344_v43  ;;  %v3352_v59 = vmax.f32 %v3350_v21, %v3351_v52  ;;  %v3359_v31 = vmax.f32 %v3357_v49, %v3358_v7  ;;  %v3372_v58 = vrot.slane %v3371_v13, 2 }
 0x395   :  { %v3366_v56 = vmax.f32 %v3364_v24, %v3365_v29  ;;  %v3379_v61 = vrot.slane %v3378_v33, 2  ;;  %v3386_v4 = vrot.slane %v3385_v38, 2  ;;  %v3392_v9 = vmax.f32 %v3390_v51, %v3391_v28 }
 0x396   :  { %v3346_v55 = vrot.slane %v3345_v46, 1  ;;  %v3353_v14 = vrot.slane %v3352_v59, 1  ;;  %v3360_v19 = vrot.slane %v3359_v31, 1  ;;  %v3373_v18 = vmax.f32 %v3371_v13, %v3372_v58 }
 0x397   :  { %v3367_v22 = vrot.slane %v3366_v56, 1  ;;  %v3380_v47 = vmax.f32 %v3378_v33, %v3379_v61  ;;  %v3387_v25 = vmax.f32 %v3385_v38, %v3386_v4  ;;  %v3393_v12 = vrot.slane %v3392_v9, 2 }
 0x398   :  { %v17639_v8 = vmax.f32 %v3345_v46, %v3346_v55  ;;  %v17641_v30 = vmax.f32 %v3352_v59, %v3353_v14  ;;  %v17643_v42 = vmax.f32 %v3359_v31, %v3360_v19  ;;  %v3374_v44 = vrot.slane %v3373_v18, 1 }
 0x399   :  { %v17645_v17 = vmax.f32 %v3366_v56, %v3367_v22  ;;  %v3381_v34 = vrot.slane %v3380_v47, 1  ;;  %v3388_v54 = vrot.slane %v3387_v25, 1  ;;  %v3394_v10 = vmax.f32 %v3392_v9, %v3393_v12 }
 0x39a   :  { %v3375_v0 = vmax.f32 %v3373_v18, %v3374_v44  ;;  %v3397_v3 = vsel %vm2667_vm3, %v17610_v5, -inf  ;;  %v3404_v37 = vsel %vm2667_vm3, %v2536_v2, -inf  ;;  %v3411_v21 = vsel %vm2667_vm3, %v17615_v32, -inf }
 0x39b   :  { %v3382_v49 = vmax.f32 %v3380_v47, %v3381_v34  ;;  %v17652_v50 = vmax.f32 %v3387_v25, %v3388_v54  ;;  %v3395_v24 = vrot.slane %v3394_v10, 1  ;;  %v3398_v20 = vrot.slane %v3397_v3, 4 }
 0x39c   :  { %v3405_v63 = vrot.slane %v3404_v37, 4  ;;  %v3412_v51 = vrot.slane %v3411_v21, 4  ;;  %v3418_v43 = vsel %vm2689_vm4, %v2537_v23, -inf  ;;  %v3425_v5 = vsel %vm2667_vm3, %v17618_v11, -inf }
 0x39d   :  { %v17660_v52 = vmax.f32 %v3394_v10, %v3395_v24  ;;  %v3399_v2 = vmax.f32 %v3397_v3, %v3398_v20  ;;  %v3419_v7 = vrot.slane %v3418_v43, 4  ;;  %v3426_v13 = vrot.slane %v3425_v5, 4 }
 0x39e   :  { %v3406_v29 = vmax.f32 %v3404_v37, %v3405_v63  ;;  %v3413_v33 = vmax.f32 %v3411_v21, %v3412_v51  ;;  %v3432_v38 = vsel %vm2667_vm3, %v2553_v35, -inf  ;;  %v3439_v32 = vsel %vm2667_vm3, %v17623_v15, -inf }
 0x39f   :  { %v3400_v28 = vrot.slane %v3399_v2, 2  ;;  %v3420_v23 = vmax.f32 %v3418_v43, %v3419_v7  ;;  %v3427_v46 = vmax.f32 %v3425_v5, %v3426_v13  ;;  %v3433_v59 = vrot.slane %v3432_v38, 4  ;;  %v14988_v7 = vld [vmem:[#allocation2 + $0x24] ss:$8 sps:$4 sm:$0x77]  }
 0x3a0   :  { %v3407_v31 = vrot.slane %v3406_v29, 2  ;;  %v3414_v58 = vrot.slane %v3413_v33, 2  ;;  %v3440_v56 = vrot.slane %v3439_v32, 4  ;;  %v3446_v61 = vsel %vm2689_vm4, %v2554_v60, -inf }
 0x3a1   :  { %v3401_v4 = vmax.f32 %v3399_v2, %v3400_v28  ;;  %v3421_v9 = vrot.slane %v3420_v23, 2  ;;  %v3428_v11 = vrot.slane %v3427_v46, 2  ;;  %v3434_v55 = vmax.f32 %v3432_v38, %v3433_v59 }
 0x3a2   :  { %v3408_v35 = vmax.f32 %v3406_v29, %v3407_v31  ;;  %v3415_v14 = vmax.f32 %v3413_v33, %v3414_v58  ;;  %v3441_v19 = vmax.f32 %v3439_v32, %v3440_v56  ;;  %v3447_v18 = vrot.slane %v3446_v61, 4  ;;  %v14989_v32 = vld [vmem:[#allocation2 + $0x30] ss:$8 sps:$4 sm:$0xff]  }
 0x3a3   :  { %v3402_v22 = vrot.slane %v3401_v4, 1  ;;  %v3422_v47 = vmax.f32 %v3420_v23, %v3421_v9  ;;  %v3429_v25 = vmax.f32 %v3427_v46, %v3428_v11  ;;  %v3435_v12 = vrot.slane %v3434_v55, 2 }
 0x3a4   :  { %v3409_v44 = vrot.slane %v3408_v35, 1  ;;  %v3416_v34 = vrot.slane %v3415_v14, 1  ;;  %v3442_v54 = vrot.slane %v3441_v19, 2  ;;  %v3448_v10 = vmax.f32 %v3446_v61, %v3447_v18  ;;  %v14994_v61 = vld [vmem:[#allocation2 + $0x50] ss:$8 sps:$4 sm:$0xee]  }
 0x3a5   :  { %v3403_v3 = vmax.f32 %v3401_v4, %v3402_v22  ;;  %v3423_v15 = vrot.slane %v3422_v47, 1  ;;  %v3430_v37 = vrot.slane %v3429_v25, 1  ;;  %v3436_v60 = vmax.f32 %v3434_v55, %v3435_v12 }
 0x3a6   :  { %v3410_v21 = vmax.f32 %v3408_v35, %v3409_v44  ;;  %v3417_v24 = vmax.f32 %v3415_v14, %v3416_v34  ;;  %v3443_v20 = vmax.f32 %v3441_v19, %v3442_v54  ;;  %v3449_v63 = vrot.slane %v3448_v10, 2 }
 0x3a7   :  { %v3424_v51 = vmax.f32 %v3422_v47, %v3423_v15  ;;  %v3431_v43 = vmax.f32 %v3429_v25, %v3430_v37  ;;  %v3437_v5 = vrot.slane %v3436_v60, 1  ;;  %v3646_v2 = vsel %vm3567_vm6, %v17639_v8, %v17564_v41  ;;  %v14991_v41 = vld [vmem:[#allocation2 + $0x34] ss:$8 sps:$4 sm:$0x77]  }
 0x3a8   :  { %v3444_v13 = vrot.slane %v3443_v20, 1  ;;  %v3450_v29 = vmax.f32 %v3448_v10, %v3449_v63  ;;  %v3647_v33 = vsel %vm3569_vm7, %v3375_v0, %v3646_v2  ;;  %v3652_v38 = vsel %vm3567_vm6, %v17641_v30, %v17567_v45  ;;  %v14992_v8 = vld [vmem:[#allocation2 + $0x40] ss:$8 sps:$4 sm:$0xee]   ;;  %v15021_v15 = vld [vmem:[#allocation2 + $0x54] ss:$8 sps:$4 sm:$0xff]  }
 0x3a9   :  { %v3438_v28 = vmax.f32 %v3436_v60, %v3437_v5  ;;  %v3648_v23 = vsel %vm3571_vm8, %v3403_v3, %v3647_v33  ;;  %v3653_v46 = vsel %vm3569_vm7, %v3382_v49, %v3652_v38  ;;  %v3658_v59 = vsel %vm3567_vm6, %v17643_v42, %v17573_v62  ;;  %v15020_v3 = vld [vmem:[#allocation2 + $0x44] ss:$8 sps:$4 sm:$0xff]  }
 0x3aa   :  { %v3445_v31 = vmax.f32 %v3443_v20, %v3444_v13  ;;  %v3451_v58 = vrot.slane %v3450_v29, 1  ;;  %v3649_v0 = vsel %vm3573_vm9, %v3431_v43, %v3648_v23  ;;  %v3654_v56 = vsel %vm3571_vm8, %v3410_v21, %v3653_v46 }
 0x3ab   :  { %v3655_v45 = vsel %vm3573_vm9, %v3438_v28, %v3654_v56  ;;  %v3659_v30 = vsel %vm3569_vm7, %v17652_v50, %v3658_v59  ;;  %v3664_v49 = vsel %vm3567_vm6, %v17645_v17, %v17605_v1  ;;  %3698 = vst [vmem:[#allocation2 + $0x60] sm:$0x7f] %v3649_v0  ;;  %v4335_v62 = vrot.slane %v14988_v7, %v16853_v57 }
 0x3ac   :  { %v3452_v42 = vmax.f32 %v3450_v29, %v3451_v58  ;;  %v3660_v4 = vsel %vm3571_vm8, %v3417_v24, %v3659_v30  ;;  %v3665_v9 = vsel %vm3569_vm7, %v17660_v52, %v3664_v49  ;;  %3699 = vst [vmem:[#allocation2 + $0x68] sm:$0x7f] %v3655_v45  ;;  %v4342_v11 = vrot.slane %v14989_v32, %v16853_v57 }
 0x3ad   :  { %v3661_v55 = vsel %vm3573_vm9, %v3445_v31, %v3660_v4  ;;  %v3666_v50 = vsel %vm3571_vm8, %v3424_v51, %v3665_v9  ;;  %v4349_v35 = vrot.slane %v14991_v41, %v16853_v57  ;;  %v4364_v1 = vrot.slane %v14992_v8, %v16853_v57 }
 0x3ae   :  { %v3667_v17 = vsel %vm3573_vm9, %v3452_v42, %v3666_v50  ;;  %3700 = vst [vmem:[#allocation2 + $0x70] sm:$0x7f] %v3661_v55  ;;  %v4350_v14 = vcombine.low %v17602_v6, %v4342_v11  ;;  %v4351_v19 = vcombine.high %v17602_v6, %v4342_v11  ;;  %v4378_v52 = vrot.slane %v14994_v61, %v16853_v57 }
 0x3af   :  { %3701 = vst.msk [vmem:[#allocation2 + $0x78] sm:$0x7f] %vm3692_vm13, %v3667_v17  ;;  %v4352_v18 = vcombine.low %v4335_v62, %v4349_v35  ;;  %v4353_v22 = vcombine.high %v4335_v62, %v4349_v35  ;;  %v13409_v47 = vrot.slane %v4314_v26, 9  ;;  %v4432_v44 = vrot.slane %v4315_v36, 7 }
 0x3b0   :  { %v4386_v25 = vcombine.low %v4364_v1, %v4378_v52  ;;  %v4387_v12 = vcombine.high %v4364_v1, %v4378_v52  ;;  %v4435_v6 = vrot.slane %v4316_v40, 7  ;;  %v4438_v34 = vrot.slane %v4317_v27, 7  ;;  %v14996_v1 = vld [vmem:[#allocation8 + $0x9a0] ss:$28 sps:$4 sm:$0xff]  }
 0x3b1   :  { %v4441_v54 = vrot.slane %v4350_v14, 7  ;;  %v4444_v26 = vrot.slane %v4351_v19, 7  ;;  %v4447_v10 = vrot.slane %v4352_v18, 7  ;;  %v4434_v16 = vrot.slane %v4432_v44, 2 }
 0x3b2   :  { %v4437_v48 = vrot.slane %v4435_v6, 2  ;;  %v4450_v36 = vrot.slane %v4353_v22, 7  ;;  %v13410_v40 = vrot.slane %v4386_v25, 9  ;;  %v17727_v60 = vsel %vm17721_vm1, %v13409_v47, %v4432_v44  ;;  %v14999_v22 = vld [vmem:[#allocation8 + $0x9a8] ss:$28 sps:$4 sm:$0xff]  }
 0x3b3   :  { %v4440_v53 = vrot.slane %v4438_v34, 2  ;;  %v4443_v39 = vrot.slane %v4441_v54, 2  ;;  %v4446_v27 = vrot.slane %v4444_v26, 2  ;;  %v17731_v21 = vsel %vm17721_vm1, %v4434_v16, %v4435_v6  ;;  %v15022_v51 = vld [vmem:[#allocation2 + $0x60] ss:$8 sps:$4 sm:$0xff]  }
 0x3b4   :  { %v17735_v24 = vsel %vm17721_vm1, %v4437_v48, %v4438_v34  ;;  %v4449_v20 = vrot.slane %v4447_v10, 2  ;;  %v4454_v63 = vrot.slane %v4387_v12, 7  ;;  %v4474_v7 = vcombine.low %v17727_v60, %v17731_v21  ;;  %v15024_v13 = vld [vmem:[#allocation2 + $0x64] ss:$8 sps:$4 sm:$0x77]  }
 0x3b5   :  { %v17739_v43 = vsel %vm17721_vm1, %v4440_v53, %v4441_v54  ;;  %v17743_v5 = vsel %vm17721_vm1, %v4443_v39, %v4444_v26  ;;  %v17747_v2 = vsel %vm17721_vm1, %v4446_v27, %v4447_v10  ;;  %v4371_v59 = vrot.slane %v15020_v3, %v16853_v57  ;;  %v15004_v25 = vld [vmem:[#allocation8 + $0x9dc] ss:$28 sps:$4 sm:$0xff]   ;;  %v15007_v6 = vld [vmem:[#allocation8 + $0x9e4] ss:$28 sps:$4 sm:$0xff]  }
 0x3b6   :  { %v17753_v29 = vsel %vm17721_vm1, %v4449_v20, %v4450_v36  ;;  %v17757_v33 = vsel %vm17721_vm1, %v13410_v40, %v4454_v63  ;;  %v4476_v38 = vcombine.low %v17735_v24, %v17739_v43  ;;  %v4510_v32 = vcombine.low %v17743_v5, %v17747_v2  ;;  %v15025_v28 = vld [vmem:[#allocation2 + $0x70] ss:$8 sps:$4 sm:$0xff]   ;;  %v15027_v8 = vld [vmem:[#allocation2 + $0x74] ss:$8 sps:$4 sm:$0x77]  }
 0x3b7   :  { %v4484_v23 = vrot.slane %v4474_v7, %v16853_v57  ;;  %v4512_v46 = vcombine.low %v17753_v29, %v17757_v33  ;;  %v4385_v41 = vrot.slane %v15021_v15, %v16853_v57  ;;  %v4400_v0 = vrot.slane %v15022_v51, %v16853_v57  ;;  %v15002_v53 = vld [vmem:[#allocation8 + $0x9d8] ss:$28 sps:$4 sm:$0xff]   ;;  %v15005_v39 = vld [vmem:[#allocation8 + $0x9e0] ss:$28 sps:$4 sm:$0xff]  }
 0x3b8   :  { %v4498_v31 = vrot.slane %v4476_v38, %v16853_v57  ;;  %v4520_v58 = vrot.slane %v4510_v32, %v16853_v57  ;;  %v4407_v56 = vrot.slane %v15024_v13, %v16853_v57  ;;  %v4414_v49 = vrot.slane %v15025_v28, %v16853_v57  ;;  %v15010_v51 = vld [vmem:[#allocation8 + $0xa14] ss:$28 sps:$4 sm:$0xff]   ;;  %v15013_v7 = vld [vmem:[#allocation8 + $0xa1c] ss:$28 sps:$4 sm:$0xff]  }
 0x3b9   :  { %v4534_v61 = vrot.slane %v4512_v46, %v16853_v57  ;;  %v4388_v45 = vcombine.low %v4371_v59, %v4385_v41  ;;  %v4389_v30 = vcombine.high %v4371_v59, %v4385_v41  ;;  %v4421_v4 = vrot.slane %v15027_v8, %v16853_v57  ;;  %v15008_v8 = vld [vmem:[#allocation8 + $0xa10] ss:$28 sps:$4 sm:$0xff]  }
 0x3ba   :  { %v4506_v62 = vcombine.low %v4484_v23, %v4498_v31  ;;  %v4507_v42 = vcombine.high %v4484_v23, %v4498_v31  ;;  %v4456_v9 = vrot.slane %v4454_v63, 2  ;;  %v4422_v50 = vcombine.low %v4400_v0, %v4414_v49  ;;  %v15016_v31 = vld [vmem:[#allocation8 + $0xa4c] ss:$28 sps:$4 sm:$0xff]  }
 0x3bb   :  { %v4542_v11 = vcombine.low %v4520_v58, %v4534_v61  ;;  %v4543_v55 = vcombine.high %v4520_v58, %v4534_v61  ;;  %v4423_v35 = vcombine.high %v4400_v0, %v4414_v49  ;;  %v4424_v17 = vcombine.low %v4407_v56, %v4421_v4  ;;  %v15014_v61 = vld [vmem:[#allocation8 + $0xa48] ss:$28 sps:$4 sm:$0xff]  }
 0x3bc   :  { %v4425_v14 = vcombine.high %v4407_v56, %v4421_v4  ;;  %v4457_v19 = vrot.slane %v4388_v45, 7  ;;  %v4460_v52 = vrot.slane %v4389_v30, 7  ;;  %v4463_v12 = vrot.slane %v4422_v50, 7  ;;  %v15017_v45 = vld [vmem:[#allocation8 + $0xa50] ss:$28 sps:$4 sm:$0xff]  }
 0x3bd   :  { %v17775_v18 = vpack.c.bf16 %v4543_v55, %v4507_v42  ;;  %v17777_v47 = vpack.c.bf16 %v4542_v11, %v4506_v62  ;;  %v4466_v44 = vrot.slane %v4423_v35, 7  ;;  %v4469_v10 = vrot.slane %v4424_v17, 7  ;;  %v15030_v42 = vld [vmem:[#allocation8 + $0xa84] ss:$28 sps:$4 sm:$0xff]   ;;  %v15033_v4 = vld [vmem:[#allocation8 + $0xa8c] ss:$28 sps:$4 sm:$0xff]  }
 0x3be   :  { %v17781_v34 = vsel %vm17721_vm1, %v4456_v9, %v4457_v19  ;;  %v4459_v54 = vrot.slane %v4457_v19, 2  ;;  %v4462_v26 = vrot.slane %v4460_v52, 2  ;;  %v4465_v3 = vrot.slane %v4463_v12, 2  ;;  %v15028_v11 = vld [vmem:[#allocation8 + $0xa80] ss:$28 sps:$4 sm:$0xff]  }
 0x3bf   :  { %5895 = vmatprep.mubr.bf16.mxu1 %v17775_v18  ;;  %6001 = vmatprep.mubr.bf16.mxu0 %v17775_v18  ;;  %v4468_v15 = vrot.slane %v4466_v44, 2  ;;  %v4471_v36 = vrot.slane %v4469_v10, 2  ;;  %v4472_v40 = vrot.slane %v4425_v14, 7  ;;  %v4477_v32 = vcombine.high %v17735_v24, %v17739_v43  ;;  %v15011_v24 = vld [vmem:[#allocation8 + $0xa18] ss:$28 sps:$4 sm:$0xff]  }
 0x3c0   :  { %5896 = vmatmul.mubr.bf16.vlgmr.msra.gmra.mrb[44].mxu1 %v17777_v47  ;;  %6002 = vmatmul.mubr.bf16.vlgmr.msra.gmra.mrb[44].mxu0 %v17777_v47  ;;  %v17789_v16 = vsel %vm17721_vm1, %v4459_v54, %v4460_v52  ;;  %v17793_v48 = vsel %vm17721_vm1, %v4462_v26, %v4463_v12  ;;  %v17797_v27 = vsel %vm17721_vm1, %v4465_v3, %v4466_v44  ;;  %v15031_v55 = vld [vmem:[#allocation8 + $0xa88] ss:$28 sps:$4 sm:$0xff]   ;;  %v15036_v50 = vld [vmem:[#allocation8 + $0xabc] ss:$28 sps:$4 sm:$0xff]   ;;  %v15042_v14 = vld [vmem:[#allocation8 + $0xaf4] ss:$28 sps:$4 sm:$0xff]  }
 0x3c1   :  { %5917 = vmatpush1.bf16.msra.mxu1 %v14996_v1  ;;  %6023 = vmatpush1.bf16.msra.mxu0 %v14999_v22  ;;  %v17801_v20 = vsel %vm17721_vm1, %v4468_v15, %v4469_v10  ;;  %v4546_v63 = vcombine.low %v17781_v34, %v17789_v16  ;;  %v17807_v13 = vsel %vm17721_vm1, %v4471_v36, %v4472_v40  ;;  %v15039_v35 = vld [vmem:[#allocation8 + $0xac4] ss:$28 sps:$4 sm:$0xff]   ;;  %v15034_v1 = vld [vmem:[#allocation8 + $0xab8] ss:$28 sps:$4 sm:$0xff]   ;;  %v15040_v52 = vld [vmem:[#allocation8 + $0xaf0] ss:$28 sps:$4 sm:$0xff]  }
 0x3c2   :  { %5918 = vmatprep.subr.bf16.mxu1 %v15004_v25  ;;  %6024 = vmatprep.subr.bf16.mxu0 %v15007_v6  ;;  %v4548_v38 = vcombine.low %v17793_v48, %v17797_v27  ;;  %v4582_v28 = vcombine.low %v17801_v20, %v17807_v13  ;;  %v4511_v23 = vcombine.high %v17743_v5, %v17747_v2  ;;  %v15019_v5 = vld [vmem:[#allocation8 + $0xa54] ss:$28 sps:$4 sm:$0xff]   ;;  %v15037_v17 = vld [vmem:[#allocation8 + $0xac0] ss:$28 sps:$4 sm:$0xff]   ;;  %v15048_v25 = vld [vmem:[#allocation8 + $0xb2c] ss:$28 sps:$4 sm:$0xff]  }
 0x3c3   :  { %v4556_v46 = vrot.slane %v4546_v63, %v16853_v57  ;;  %v4475_v37 = vcombine.high %v17727_v60, %v17731_v21  ;;  %v4513_v41 = vcombine.high %v17753_v29, %v17757_v33  ;;  %v17825_v0 = vrot.slane %v4477_v32, %v16853_v57  ;;  %v15045_v19 = vld [vmem:[#allocation8 + $0xafc] ss:$28 sps:$4 sm:$0xff]   ;;  %v15051_v12 = vld [vmem:[#allocation8 + $0xb34] ss:$28 sps:$4 sm:$0xff]   ;;  %v15046_v44 = vld [vmem:[#allocation8 + $0xb28] ss:$28 sps:$4 sm:$0xff]  }
 0x3c4   :  { %v4570_v59 = vrot.slane %v4548_v38, %v16853_v57  ;;  %v4590_v43 = vrot.slane %v4582_v28, %v16853_v57  ;;  %v17828_v60 = vrot.slane %v4511_v23, %v16853_v57  ;;  %v15043_v22 = vld [vmem:[#allocation8 + $0xaf8] ss:$28 sps:$4 sm:$0xff]   ;;  %v15049_v6 = vld [vmem:[#allocation8 + $0xb30] ss:$28 sps:$4 sm:$0xff]   ;;  %v15054_v54 = vld [vmem:[#allocation8 + $0xb64] ss:$28 sps:$4 sm:$0xff]   ;;  %v4549_v23 = vcombine.high %v17793_v48, %v17797_v27 }
 0x3c5   :  { %5919 = vmatpush1.bf16.msra.mxu1 %v15002_v53  ;;  %6025 = vmatpush1.bf16.msra.mxu0 %v15005_v39  ;;  %v17831_v21 = vrot.slane %v4513_v41, %v16853_v57  ;;  %v17836_v33 = vrot.slane %v4475_v37, %v16853_v57  ;;  %v15057_v26 = vld [vmem:[#allocation8 + $0xb6c] ss:$28 sps:$4 sm:$0xff]   ;;  %v15052_v10 = vld [vmem:[#allocation8 + $0xb60] ss:$28 sps:$4 sm:$0xff]   ;;  %v15058_v63 = vld [vmem:[#allocation8 + $0xb98] ss:$28 sps:$4 sm:$0xff]   ;;  %v4547_v48 = vcombine.high %v17781_v34, %v17789_v16 }
 0x3c6   :  { %5920 = vmatprep.subr.bf16.mxu1 %v15010_v51  ;;  %6026 = vmatprep.subr.bf16.mxu0 %v15013_v7  ;;  %v4579_v2 = vcombine.high %v4556_v46, %v4570_v59  ;;  %v4578_v58 = vcombine.low %v4556_v46, %v4570_v59  ;;  %v4598_v56 = vcombine.high %v4590_v43, %v4590_v43  ;;  %v15055_v3 = vld [vmem:[#allocation8 + $0xb68] ss:$28 sps:$4 sm:$0xff]   ;;  %v15060_v15 = vld [vmem:[#allocation8 + $0xb9c] ss:$28 sps:$4 sm:$0xff]   ;;  %v15464_v40 = vld [vmem:[#allocation2 + $0x4] ss:$8 sps:$4 sm:$0xff]  }
 0x3c7   :  { %v4545_v49 = vcombine.high %v17828_v60, %v17831_v21  ;;  %v4509_v62 = vcombine.high %v17836_v33, %v17825_v0  ;;  %v15063_v36 = vld [vmem:[#allocation8 + $0xba4] ss:$28 sps:$4 sm:$0xff]   ;;  %v15468_v39 = vld [vmem:[#allocation2 + $0x20] ss:$8 sps:$4 sm:$0xff]   ;;  %v15069_v32 = vld [vmem:[#allocation8 + $0xbdc] ss:$28 sps:$4 sm:$0xff]   ;;  %v4583_v46 = vcombine.high %v17801_v20, %v17807_v13  ;;  %v17859_v59 = vrot.slane %v15464_v40, %v16853_v57 }
 0x3c8   :  { %v17833_v29 = vpack.c.bf16 %v4590_v43, %v4578_v58  ;;  %v17838_v30 = vpack.c.bf16 %v4598_v56, %v4579_v2  ;;  %v15467_v53 = vld [vmem:[#allocation2 + $0x14] ss:$8 sps:$4 sm:$0xff]   ;;  %v15471_v7 = vld [vmem:[#allocation2 + $0x30] ss:$8 sps:$4 sm:$0xff]   ;;  %v15066_v38 = vld [vmem:[#allocation8 + $0xbd4] ss:$28 sps:$4 sm:$0xff]   ;;  %v4577_v58 = vrot.slane %v4549_v23, %v16853_v57 }
 0x3c9   :  { %5921 = vmatpush1.bf16.msra.mxu1 %v15008_v8  ;;  %6027 = vmatpush1.bf16.msra.mxu0 %v15011_v24  ;;  %v17848_v9 = vpack.c.bf16 %v4545_v49, %v4509_v62  ;;  %v15061_v51 = vld [vmem:[#allocation8 + $0xba0] ss:$28 sps:$4 sm:$0xff]   ;;  %v15470_v28 = vld [vmem:[#allocation2 + $0x24] ss:$8 sps:$4 sm:$0xff]   ;;  %v17862_v37 = vrot.slane %v15467_v53, %v16853_v57  ;;  %v17865_v8 = vrot.slane %v15468_v39, %v16853_v57  ;;  %v15070_v16 = vld [vmem:[#allocation8 + $0xc08] ss:$28 sps:$4 sm:$0xff]  }
 0x3ca   :  { %5922 = vmatprep.subr.bf16.mxu1 %v15016_v31  ;;  %6028 = vmatprep.subr.bf16.mxu0 %v15019_v5  ;;  %v15465_v41 = vld [vmem:[#allocation2 + $0x10] ss:$8 sps:$4 sm:$0xcc]   ;;  %v15575_v24 = vld [vmem:[#allocation2 + $0x34] ss:$8 sps:$4 sm:$0xff]   ;;  %v17870_v20 = vrot.slane %v15470_v28, %v16853_v57  ;;  %v17873_v13 = vrot.slane %v15471_v7, %v16853_v57  ;;  %v4597_v56 = vrot.slane %v4583_v46, %v16853_v57 }
 0x3cb   :  { %5905 = vmatprep.mubr.bf16.mxu1 %v17838_v30  ;;  %6011 = vmatprep.mubr.bf16.mxu0 %v17838_v30  ;;  %v15064_v43 = vld [vmem:[#allocation8 + $0xbd0] ss:$28 sps:$4 sm:$0xff]   ;;  %v15067_v31 = vld [vmem:[#allocation8 + $0xbd8] ss:$28 sps:$4 sm:$0xff]   ;;  %v4563_v62 = vrot.slane %v4547_v48, %v16853_v57  ;;  %v15081_v53 = vld [vmem:[#allocation8 + $0x668] ss:$28 sps:$4 sm:$0xff]  }
 0x3cc   :  { %5906 = vmatmul.mubr.bf16.gmra.mrb[48].mxu1 %v17833_v29  ;;  %6012 = vmatmul.mubr.bf16.gmra.mrb[48].mxu0 %v17833_v29  ;;  %v15072_v5 = vld [vmem:[#allocation8 + $0xc0c] ss:$28 sps:$4 sm:$0xff]   ;;  %v15075_v27 = vld [vmem:[#allocation8 + $0xc14] ss:$28 sps:$4 sm:$0xff]   ;;  %v7808_v34 = vcombine.low %v17865_v8, %v17873_v13  ;;  %v15086_v23 = vld [vmem:[#allocation8 + $0x6a0] ss:$28 sps:$4 sm:$0xff]  }
 0x3cd   :  { %5923 = vmatpush1.bf16.msra.mxu1 %v15014_v61  ;;  %6029 = vmatpush1.bf16.msra.mxu0 %v15017_v45  ;;  %v15576_v2 = vld [vmem:[#allocation2 + $0x50] ss:$8 sps:$4 sm:$0xcc]   ;;  %v7774_v61 = vcombine.low %v17859_v59, %v17862_v37  ;;  %v7807_v45 = vrot.slane %v15575_v24, %v16853_v57  ;;  %v15073_v49 = vld [vmem:[#allocation8 + $0xc10] ss:$28 sps:$4 sm:$0xff]  }
 0x3ce   :  { %13607 = vmatprep.mubr.msk.bf16.mxu1 %vm142_vm2, %v17848_v9  ;;  %13609 = vmatprep.mubr.msk.bf16.mxu0 %vm142_vm2, %v17848_v9  ;;  %v15085_v39 = vld [vmem:[#allocation8 + $0x670] ss:$28 sps:$4 sm:$0xff]   ;;  %v15090_v46 = vld [vmem:[#allocation8 + $0x6a8] ss:$28 sps:$4 sm:$0xff]   ;;  %v15094_v24 = vld [vmem:[#allocation8 + $0x8a0] ss:$28 sps:$4 sm:$0xff]  }
 0x3cf   :  { %5924 = vmatprep.subr.bf16.mxu1 %v15030_v42  ;;  %6030 = vmatprep.subr.bf16.mxu0 %v15033_v4  ;;  %v17884_v42 = vrot.slane %v15465_v41, %v16853_v57  ;;  %v4544_v4 = vcombine.low %v17828_v60, %v17831_v21  ;;  %v15093_v41 = vld [vmem:[#allocation8 + $0x6dc] ss:$28 sps:$4 sm:$0xff]  }
 0x3d0   :  { %v15099_v48 = vld [vmem:[#allocation8 + $0x8d8] ss:$28 sps:$4 sm:$0xff]  }
 0x3d1   :  { %5925 = vmatpush1.bf16.msra.mxu1 %v15028_v11  ;;  %6031 = vmatpush1.bf16.msra.mxu0 %v15031_v55  ;;  %v15078_v11 = vld [vmem:[#allocation8 + $0x634] ss:$28 sps:$4 sm:$0xff]  }
 0x3d2   :  { %5926 = vmatprep.subr.bf16.mxu1 %v15036_v50  ;;  %6032 = vmatprep.subr.bf16.mxu0 %v15039_v35  ;;  %v15079_v55 = vld [vmem:[#allocation8 + $0x7f8] ss:$28 sps:$4 sm:$0xff]   ;;  %v7810_v50 = vcombine.low %v17870_v20, %v7807_v45  ;;  %v7836_v35 = vrot.slane %v15576_v2, %v16853_v57 }
 0x3d3   :  { %v15100_v2 = vld [vmem:[#allocation8 + $0x718] ss:$28 sps:$4 sm:$0xff]  }
 0x3d4   :  { %v13826_v60 = vcombine.high %v7807_v45, %v7836_v35  ;;  %v15108_v45 = vld [vmem:[#allocation8 + $0x784] ss:$28 sps:$4 sm:$0xff]   ;;  %v15116_v35 = vld [vmem:[#allocation8 + $0x7f0] ss:$28 sps:$4 sm:$0xff]  }
 0x3d5   :  { %5927 = vmatpush1.bf16.msra.mxu1 %v15034_v1  ;;  %6033 = vmatpush1.bf16.msra.mxu0 %v15037_v17  ;;  %v4581_v1 = vcombine.high %v4563_v62, %v4577_v58  ;;  %v4599_v17 = vcombine.high %v4597_v56, %v4597_v56 }
 0x3d6   :  { %5928 = vmatprep.subr.bf16.mxu1 %v15042_v14  ;;  %6034 = vmatprep.subr.bf16.mxu0 %v15045_v19  ;;  %v13820_v14 = vcombine.high %v17884_v42, %v7774_v61  ;;  %v13822_v19 = vcombine.high %v17862_v37, %v7808_v34  ;;  %v15101_v61 = vld [vmem:[#allocation8 + $0x748] ss:$28 sps:$4 sm:$0xff]  }
 0x3d7   :  { %v15109_v34 = vld [vmem:[#allocation8 + $0x948] ss:$28 sps:$4 sm:$0xff]  }
 0x3d8   :  { %v7900_v21 = vrot.slane %v13820_v14, %v16853_v57  ;;  %v15122_v14 = vld [vmem:[#allocation8 + $0x82c] ss:$28 sps:$4 sm:$0xff]  }
 0x3d9   :  { %5929 = vmatpush1.bf16.msra.mxu1 %v15040_v52  ;;  %6035 = vmatpush1.bf16.msra.mxu0 %v15043_v22  ;;  %v4508_v52 = vcombine.low %v17836_v33, %v17825_v0  ;;  %v13824_v22 = vcombine.high %v17873_v13, %v7810_v50  ;;  %v17901_v0 = vpack.c.bf16 %v4599_v17, %v4581_v1  ;;  %v15083_v33 = vld [vmem:[#allocation8 + $0x66c] ss:$28 sps:$4 sm:$0xff]   ;;  %v15118_v50 = vld [vmem:[#allocation8 + $0x7f4] ss:$28 sps:$4 sm:$0xff]   ;;  %v19189_v1 = vmov 0  }
 0x3da   :  { %5930 = vmatprep.subr.bf16.mxu1 %v15048_v25  ;;  %6036 = vmatprep.subr.bf16.mxu0 %v15051_v12  ;;  %v7914_v25 = vrot.slane %v13822_v19, %v16853_v57  ;;  %v15119_v17 = vld [vmem:[#allocation8 + $0x9b8] ss:$28 sps:$4 sm:$0xff]   ;;  %v15120_v19 = vld [vmem:[#allocation8 + $0x828] ss:$28 sps:$4 sm:$0xff]  }
 0x3db   :  { %v17897_v12 = vpack.c.bf16 %v4544_v4, %v4508_v52  ;;  %v15114_v4 = vld [vmem:[#allocation8 + $0x980] ss:$28 sps:$4 sm:$0xff]   ;;  %v15123_v52 = vld [vmem:[#allocation8 + $0x9f0] ss:$28 sps:$4 sm:$0xff]  }
 0x3dd   :  { %5931 = vmatpush1.bf16.msra.mxu1 %v15046_v44  ;;  %6037 = vmatpush1.bf16.msra.mxu0 %v15049_v6  ;;  %v15076_v44 = vld [vmem:[#allocation8 + $0x630] ss:$28 sps:$4 sm:$0xff]   ;;  %v15080_v6 = vld [vmem:[#allocation8 + $0x638] ss:$28 sps:$4 sm:$0xff]  }
 0x3de   :  { %5932 = vmatprep.subr.bf16.mxu1 %v15054_v54  ;;  %6038 = vmatprep.subr.bf16.mxu0 %v15057_v26  ;;  %v7936_v54 = vrot.slane %v13824_v22, %v16853_v57  ;;  %v7950_v26 = vrot.slane %v13826_v60, %v16853_v57  ;;  %v15126_v22 = vld [vmem:[#allocation8 + $0x864] ss:$28 sps:$4 sm:$0xff]  }
 0x3df   :  { %v15124_v60 = vld [vmem:[#allocation8 + $0x860] ss:$28 sps:$4 sm:$0xff]  }
 0x3e0   :  { %v7954_v40 = vcombine.high %v7936_v54, %v7950_v26 }
 0x3e1   :  { %5933 = vmatpush1.bf16.msra.mxu1 %v15052_v10  ;;  %6039 = vmatpush1.bf16.msra.mxu0 %v15055_v3  ;;  %v15084_v10 = vld [vmem:[#allocation8 + $0x830] ss:$28 sps:$4 sm:$0xff]   ;;  %v7917_v3 = vcombine.low %v7900_v21, %v7914_v25 }
 0x3e2   :  { %5934 = vmatprep.subr.bf16.mxu1 %v15060_v15  ;;  %6040 = vmatprep.subr.bf16.mxu0 %v15063_v36  ;;  %v7918_v15 = vcombine.high %v7900_v21, %v7914_v25  ;;  %v7953_v36 = vcombine.low %v7936_v54, %v7950_v26  ;;  %v15127_v21 = vld [vmem:[#allocation8 + $0xa28] ss:$28 sps:$4 sm:$0xff]   ;;  %v15130_v25 = vld [vmem:[#allocation8 + $0x89c] ss:$28 sps:$4 sm:$0xff]   ;;  %v15134_v54 = vld [vmem:[#allocation8 + $0x8d4] ss:$28 sps:$4 sm:$0xff]  }
 0x3e3   :  { %v15132_v26 = vld [vmem:[#allocation8 + $0x8d0] ss:$28 sps:$4 sm:$0xff]  }
 0x3e4   :  { %v17911_v7 = vpack.c.bf16 %v7953_v36, %v7917_v3  ;;  %v15136_v3 = vld [vmem:[#allocation8 + $0x908] ss:$28 sps:$4 sm:$0xff]  }
 0x3e5   :  { %5935 = vmatpush1.bf16.msra.mxu1 %v15058_v63  ;;  %6041 = vmatpush1.bf16.msra.mxu0 %v15061_v51  ;;  %v4580_v63 = vcombine.low %v4563_v62, %v4577_v58  ;;  %v17909_v51 = vpack.c.bf16 %v7954_v40, %v7918_v15  ;;  %v15103_v58 = vld [vmem:[#allocation8 + $0x74c] ss:$28 sps:$4 sm:$0xff]   ;;  %v15113_v62 = vld [vmem:[#allocation8 + $0x7bc] ss:$28 sps:$4 sm:$0xff]   ;;  %v15142_v36 = vld [vmem:[#allocation8 + $0x944] ss:$28 sps:$4 sm:$0xff]  }
 0x3e6   :  { %5936 = vmatprep.subr.bf16.mxu1 %v15066_v38  ;;  %6042 = vmatprep.subr.bf16.mxu0 %v15069_v32  ;;  %v15088_v38 = vld [vmem:[#allocation8 + $0x6a4] ss:$28 sps:$4 sm:$0xff]   ;;  %v15139_v15 = vld [vmem:[#allocation8 + $0xad0] ss:$28 sps:$4 sm:$0xff]  }
 0x3e7   :  { %v15089_v32 = vld [vmem:[#allocation8 + $0x868] ss:$28 sps:$4 sm:$0xff]   ;;  %v17913_v28 = vpack.c.bf16 %v4597_v56, %v4580_v63  ;;  %v15104_v56 = vld [vmem:[#allocation8 + $0x910] ss:$28 sps:$4 sm:$0xff]   ;;  %v15140_v40 = vld [vmem:[#allocation8 + $0x940] ss:$28 sps:$4 sm:$0xff]  }
 0x3e8   :  { %v15144_v63 = vld [vmem:[#allocation8 + $0x978] ss:$28 sps:$4 sm:$0xff]  }
 0x3e9   :  { %5937 = vmatpush1.bf16.msra.mxu1 %v15064_v43  ;;  %6043 = vmatpush1.bf16.msra.mxu0 %v15067_v31  ;;  %v15091_v43 = vld [vmem:[#allocation8 + $0x6d8] ss:$28 sps:$4 sm:$0xff]   ;;  %v15095_v31 = vld [vmem:[#allocation8 + $0x6e0] ss:$28 sps:$4 sm:$0xff]  }
 0x3ea   :  { %5938 = vmatprep.subr.bf16.mxu1 %v15072_v5  ;;  %6044 = vmatprep.subr.bf16.mxu0 %v15075_v27  ;;  %v15098_v5 = vld [vmem:[#allocation8 + $0x714] ss:$28 sps:$4 sm:$0xff]  }
 0x3eb   :  { %v15096_v27 = vld [vmem:[#allocation8 + $0x710] ss:$28 sps:$4 sm:$0xff]  }
 0x3ed   :  { %5939 = vmatpush1.bf16.msra.mxu1 %v15070_v16  ;;  %6045 = vmatpush1.bf16.msra.mxu0 %v15073_v49  ;;  %v15106_v16 = vld [vmem:[#allocation8 + $0x780] ss:$28 sps:$4 sm:$0xff]   ;;  %v15110_v49 = vld [vmem:[#allocation8 + $0x788] ss:$28 sps:$4 sm:$0xff]  }
 0x3ee   :  { %6075 = vmatprep.subr.bf16.mxu1 %v15078_v11  ;;  %14276 = vmatprep.subr.bf16.mxu0 %v15079_v55  ;;  %v15111_v11 = vld [vmem:[#allocation8 + $0x7b8] ss:$28 sps:$4 sm:$0xff]   ;;  %v15115_v55 = vld [vmem:[#allocation8 + $0x7c0] ss:$28 sps:$4 sm:$0xff]  }
 0x3f0   :  { %5949 = vmatmul.mubr.bf16.vlgmr.msra.gmra.mrb[44].mxu1 %v17897_v12  ;;  %6055 = vmatmul.mubr.bf16.vlgmr.msra.gmra.mrb[44].mxu0 %v17897_v12 }
 0x3f1   :  { %13608 = vmatprep.mubr.msk.bf16.mxu1 %vm142_vm2, %v17901_v0  ;;  %13610 = vmatprep.mubr.msk.bf16.mxu0 %vm142_vm2, %v17901_v0 }
 0x3f2   :  { %6076 = vmatpush1.bf16.msra.mxu1 %v15076_v44  ;;  %14277 = vmatpush3.bf16.msra.mxu0 %v15080_v6  ;;  %v15128_v44 = vld [vmem:[#allocation8 + $0x898] ss:$28 sps:$4 sm:$0xff]   ;;  %v15131_v6 = vld [vmem:[#allocation8 + $0xa60] ss:$28 sps:$4 sm:$0xff]  }
 0x3f3   :  { %6077 = vmatprep.subr.bf16.mxu1 %v15083_v33  ;;  %14278 = vmatprep.subr.bf16.mxu0 %v15084_v10  ;;  %v15135_v33 = vld [vmem:[#allocation8 + $0xa98] ss:$28 sps:$4 sm:$0xff]   ;;  %v15138_v10 = vld [vmem:[#allocation8 + $0x90c] ss:$28 sps:$4 sm:$0xff]  }
 0x3f6   :  { %6078 = vmatpush1.bf16.msra.mxu1 %v15081_v53  ;;  %14279 = vmatpush3.bf16.msra.mxu0 %v15085_v39  ;;  %v15143_v53 = vld [vmem:[#allocation8 + $0xb08] ss:$28 sps:$4 sm:$0xff]   ;;  %v15146_v39 = vld [vmem:[#allocation8 + $0x97c] ss:$28 sps:$4 sm:$0xff]  }
 0x3f7   :  { %6079 = vmatprep.subr.bf16.mxu1 %v15088_v38  ;;  %14280 = vmatprep.subr.bf16.mxu0 %v15089_v32  ;;  %v15147_v38 = vld [vmem:[#allocation8 + $0xb40] ss:$28 sps:$4 sm:$0xff]   ;;  %v15150_v32 = vld [vmem:[#allocation8 + $0x9b4] ss:$28 sps:$4 sm:$0xff]  }
 0x3f8   :  { %5959 = vmatmul.mubr.bf16.gmra.mrb[48].mxu1 %v17913_v28  ;;  %6065 = vmatmul.mubr.bf16.gmra.mrb[48].mxu0 %v17913_v28 }
 0x3f9   :  { %6107 = vmatprep.mubr.bf16.mxu1 %v17775_v18  ;;  %6213 = vmatprep.mubr.bf16.mxu0 %v17775_v18  ;;  %v15105_v18 = vld [vmem:[#allocation8 + $0x750] ss:$28 sps:$4 sm:$0xff]  }
 0x3fa   :  { %6080 = vmatpush1.bf16.msra.mxu1 %v15086_v23  ;;  %14281 = vmatpush3.bf16.msra.mxu0 %v15090_v46  ;;  %v15148_v23 = vld [vmem:[#allocation8 + $0x9b0] ss:$28 sps:$4 sm:$0xff]   ;;  %v15151_v46 = vld [vmem:[#allocation8 + $0xb78] ss:$28 sps:$4 sm:$0xff]  }
 0x3fb   :  { %6081 = vmatprep.subr.bf16.mxu1 %v15093_v41  ;;  %14282 = vmatprep.subr.bf16.mxu0 %v15094_v24  ;;  %v15154_v41 = vld [vmem:[#allocation8 + $0x9ec] ss:$28 sps:$4 sm:$0xff]  }
 0x3fc   :  { %v15152_v24 = vld [vmem:[#allocation8 + $0x9e8] ss:$28 sps:$4 sm:$0xff]  }
 0x3fe   :  { %6082 = vmatpush1.bf16.msra.mxu1 %v15091_v43  ;;  %14283 = vmatpush3.bf16.msra.mxu0 %v15095_v31  ;;  %v15155_v43 = vld [vmem:[#allocation8 + $0xbb0] ss:$28 sps:$4 sm:$0xff]   ;;  %v15158_v31 = vld [vmem:[#allocation8 + $0xa24] ss:$28 sps:$4 sm:$0xff]  }
 0x3ff   :  { %6083 = vmatprep.subr.bf16.mxu1 %v15098_v5  ;;  %14284 = vmatprep.subr.bf16.mxu0 %v15099_v48  ;;  %v15188_v5 = vld [vmem:[#allocation2 + $0x40] ss:$8 sps:$4 sm:$0xff]   ;;  %v15156_v48 = vld [vmem:[#allocation8 + $0xa20] ss:$28 sps:$4 sm:$0xff]  }
 0x402   :  { %6084 = vmatpush1.bf16.msra.mxu1 %v15096_v27  ;;  %14285 = vmatpush3.bf16.msra.mxu0 %v15100_v2  ;;  %v15187_v27 = vld [vmem:[#allocation2 + $0x24] ss:$8 sps:$4 sm:$0x33]   ;;  %v15159_v2 = vld [vmem:[#allocation8 + $0xbe8] ss:$28 sps:$4 sm:$0xff]  }
 0x403   :  { %6085 = vmatprep.subr.bf16.mxu1 %v15103_v58  ;;  %14286 = vmatprep.subr.bf16.mxu0 %v15104_v56  ;;  %v15162_v58 = vld [vmem:[#allocation8 + $0xa5c] ss:$28 sps:$4 sm:$0xff]   ;;  %v15182_v56 = vld [vmem:[#allocation2] ss:$8 sps:$4 sm:$0xff]  }
 0x406   :  { %6086 = vmatpush1.bf16.msra.mxu1 %v15101_v61  ;;  %14287 = vmatpush3.bf16.msra.mxu0 %v15105_v18  ;;  %v15184_v61 = vld [vmem:[#allocation2 + $0x4] ss:$8 sps:$4 sm:$0xff]   ;;  %v15163_v18 = vld [vmem:[#allocation8 + $0xc20] ss:$28 sps:$4 sm:$0xff]  }
 0x407   :  { %6087 = vmatprep.subr.bf16.mxu1 %v15108_v45  ;;  %14288 = vmatprep.subr.bf16.mxu0 %v15109_v34  ;;  %v15166_v45 = vld [vmem:[#allocation8 + $0xa94] ss:$28 sps:$4 sm:$0xff]  }
 0x408   :  { %v15185_v34 = vld [vmem:[#allocation2 + $0x20] ss:$8 sps:$4 sm:$0xff]  }
 0x40a   :  { %6088 = vmatpush1.bf16.msra.mxu1 %v15106_v16  ;;  %14289 = vmatpush3.bf16.msra.mxu0 %v15110_v49  ;;  %v3787_v16 = vrot.slane %v15187_v27, %v16853_v57  ;;  %v15215_v27 = vld [vmem:[#allocation8 + $0xc18] ss:$28 sps:$4 sm:$0xff]  }
 0x40b   :  { %6089 = vmatprep.subr.bf16.mxu1 %v15113_v62  ;;  %14290 = vmatprep.subr.bf16.mxu0 %v15114_v4  ;;  %v15164_v62 = vld [vmem:[#allocation8 + $0xa90] ss:$28 sps:$4 sm:$0xff]   ;;  %v3744_v4 = vrot.slane %v15182_v56, %v16853_v57  ;;  %v15221_v56 = vld [vmem:[#allocation8] ss:$28 sps:$4 sm:$0xff]  }
 0x40e   :  { %6090 = vmatpush1.bf16.msra.mxu1 %v15111_v11  ;;  %14291 = vmatpush3.bf16.msra.mxu0 %v15115_v55  ;;  %v3751_v11 = vrot.slane %v15184_v61, %v16853_v57  ;;  %v3780_v55 = vrot.slane %v15185_v34, %v16853_v57  ;;  %v15224_v61 = vld [vmem:[#allocation8 + $0x1c8] ss:$28 sps:$4 sm:$0xff]   ;;  %v15227_v34 = vld [vmem:[#allocation8 + $0x38] ss:$28 sps:$4 sm:$0xff]  }
 0x40f   :  { %6091 = vmatprep.subr.bf16.mxu1 %v15118_v50  ;;  %6230 = vmatprep.subr.bf16.mxu0 %v19189_v1  ;;  %v15172_v50 = vld [vmem:[#allocation8 + $0xacc] ss:$28 sps:$4 sm:$0xff]  }
 0x411   :  { %6214 = vmatmul.mubr.bf16.vlgmr.msra.gmra.mrb[52].mxu0 %v17777_v47 }
 0x412   :  { %6092 = vmatpush1.bf16.msra.mxu1 %v15116_v35  ;;  %6221 = vmatprep.mubr.bf16.mxu0 %v17838_v30  ;;  %v15175_v35 = vld [vmem:[#allocation8 + $0x44] ss:$28 sps:$4 sm:$0xff]  }
 0x413   :  { %6231 = vmatpush1.bf16.msra.mxu0 %v15119_v17  ;;  %6093 = vmatprep.subr.bf16.mxu1 %v15122_v14  ;;  %v15170_v14 = vld [vmem:[#allocation8 + $0xac8] ss:$28 sps:$4 sm:$0xff]  }
 0x414   :  { %6232 = vmatprep.subr.bf16.mxu0 %v19189_v1 }
 0x416   :  { %6094 = vmatpush1.bf16.msra.mxu1 %v15120_v19  ;;  %v15173_v19 = vld [vmem:[#allocation8 + $0x40] ss:$28 sps:$4 sm:$0xff]  }
 0x417   :  { %6233 = vmatpush1.bf16.msra.mxu0 %v15123_v52  ;;  %6095 = vmatprep.subr.bf16.mxu1 %v15126_v22  ;;  %v15178_v52 = vld [vmem:[#allocation8 + $0xb04] ss:$28 sps:$4 sm:$0xff]   ;;  %v17956_v22 = vrot.slane %v3744_v4, %v16853_v57  ;;  %v15241_v4 = vld [vmem:[#allocation8 + $0xac] ss:$28 sps:$4 sm:$0xff]  }
 0x418   :  { %6234 = vmatprep.subr.bf16.mxu0 %v19189_v1 }
 0x419   :  { %6222 = vmatmul.mubr.bf16.gmra.mrb[56].mxu0 %v17833_v29 }
 0x41a   :  { %6096 = vmatpush1.bf16.msra.mxu1 %v15124_v60  ;;  %13613 = vmatprep.mubr.msk.bf16.mxu0 %vm142_vm2, %v17848_v9  ;;  %v17959_v60 = vrot.slane %v3751_v11, %v16853_v57  ;;  %v15244_v11 = vld [vmem:[#allocation8 + $0x274] ss:$28 sps:$4 sm:$0xff]  }
 0x41b   :  { %6235 = vmatpush1.bf16.msra.mxu0 %v15127_v21  ;;  %6097 = vmatprep.subr.bf16.mxu1 %v15130_v25  ;;  %v17962_v21 = vrot.slane %v3780_v55, %v16853_v57  ;;  %v15181_v25 = vld [vmem:[#allocation8 + $0x7c] ss:$28 sps:$4 sm:$0xff]   ;;  %v15239_v55 = vld [vmem:[#allocation8 + $0xa8] ss:$28 sps:$4 sm:$0xff]  }
 0x41c   :  { %6236 = vmatprep.subr.bf16.mxu0 %v19189_v1 }
 0x41e   :  { %6098 = vmatpush1.bf16.msra.mxu1 %v15128_v44 }
 0x41f   :  { %6237 = vmatpush1.bf16.msra.mxu0 %v15131_v6  ;;  %6099 = vmatprep.subr.bf16.mxu1 %v15134_v54  ;;  %v15176_v6 = vld [vmem:[#allocation8 + $0xb00] ss:$28 sps:$4 sm:$0xff]   ;;  %v15179_v54 = vld [vmem:[#allocation8 + $0x78] ss:$28 sps:$4 sm:$0xff]  }
 0x420   :  { %6238 = vmatprep.subr.bf16.mxu0 %v19189_v1 }
 0x422   :  { %6100 = vmatpush1.bf16.msra.mxu1 %v15132_v26  ;;  %v3909_v26 = vcombine.high %v17956_v22, %v17959_v60 }
 0x423   :  { %6239 = vmatpush1.bf16.msra.mxu0 %v15135_v33  ;;  %6101 = vmatprep.subr.bf16.mxu1 %v15138_v10  ;;  %v15193_v33 = vld [vmem:[#allocation8 + $0xb3c] ss:$28 sps:$4 sm:$0xff]   ;;  %v15196_v10 = vld [vmem:[#allocation8 + $0xb4] ss:$28 sps:$4 sm:$0xff]  }
 0x424   :  { %6240 = vmatprep.subr.bf16.mxu0 %v19189_v1 }
 0x426   :  { %6102 = vmatpush1.bf16.msra.mxu1 %v15136_v3 }
 0x427   :  { %6241 = vmatpush1.bf16.msra.mxu0 %v15139_v15  ;;  %6103 = vmatprep.subr.bf16.mxu1 %v15142_v36  ;;  %v15191_v15 = vld [vmem:[#allocation8 + $0xb38] ss:$28 sps:$4 sm:$0xff]   ;;  %v15194_v36 = vld [vmem:[#allocation8 + $0xb0] ss:$28 sps:$4 sm:$0xff]  }
 0x428   :  { %6242 = vmatprep.subr.bf16.mxu0 %v19189_v1 }
 0x42a   :  { %6104 = vmatpush1.bf16.msra.mxu1 %v15140_v40  ;;  %v15199_v40 = vld [vmem:[#allocation8 + $0xb74] ss:$28 sps:$4 sm:$0xff]  }
 0x42b   :  { %6243 = vmatpush1.bf16.msra.mxu0 %v15143_v53  ;;  %6105 = vmatprep.subr.bf16.mxu1 %v15146_v39  ;;  %v15202_v53 = vld [vmem:[#allocation8 + $0xec] ss:$28 sps:$4 sm:$0xff]  }
 0x42c   :  { %6244 = vmatprep.subr.bf16.mxu0 %v19189_v1  ;;  %v15197_v39 = vld [vmem:[#allocation8 + $0xb70] ss:$28 sps:$4 sm:$0xff]  }
 0x42e   :  { %6106 = vmatpush1.bf16.msra.mxu1 %v15144_v63  ;;  %v15200_v63 = vld [vmem:[#allocation8 + $0xe8] ss:$28 sps:$4 sm:$0xff]  }
 0x42f   :  { %6245 = vmatpush1.bf16.msra.mxu0 %v15147_v38  ;;  %6128 = vmatprep.subr.bf16.mxu1 %v15150_v32  ;;  %v15205_v38 = vld [vmem:[#allocation8 + $0xbac] ss:$28 sps:$4 sm:$0xff]   ;;  %v15208_v32 = vld [vmem:[#allocation8 + $0x124] ss:$28 sps:$4 sm:$0xff]  }
 0x430   :  { %6246 = vmatprep.subr.bf16.mxu0 %v19189_v1 }
 0x431   :  { %6108 = vmatmul.mubr.bf16.vlgmr.msra.gmra.mrb[52].mxu1 %v17777_v47  ;;  %v17939_v47 = vrot.slane %v15188_v5, %v16853_v57  ;;  %v15217_v5 = vld [vmem:[#allocation8 + $0xc1c] ss:$28 sps:$4 sm:$0xff]  }
 0x432   :  { %6117 = vmatprep.mubr.bf16.mxu1 %v17838_v30  ;;  %6129 = vmatpush1.bf16.msra.mxu1 %v15148_v23  ;;  %v15160_v30 = vld [vmem:[#allocation8 + $0xa58] ss:$28 sps:$4 sm:$0xff]   ;;  %v15203_v23 = vld [vmem:[#allocation8 + $0xba8] ss:$28 sps:$4 sm:$0xff]  }
 0x433   :  { %6247 = vmatpush1.bf16.msra.mxu0 %v15151_v46  ;;  %6130 = vmatprep.subr.bf16.mxu1 %v15154_v41  ;;  %v13401_v49 = vcombine.low %v3787_v16, %v17939_v47  ;;  %v15206_v46 = vld [vmem:[#allocation8 + $0x120] ss:$28 sps:$4 sm:$0xff]  }
 0x434   :  { %6248 = vmatprep.subr.bf16.mxu0 %v19189_v1  ;;  %v15211_v41 = vld [vmem:[#allocation8 + $0xbe4] ss:$28 sps:$4 sm:$0xff]  }
 0x435   :  { %v17950_v17 = vrot.slane %v13401_v49, %v16853_v57  ;;  %v15230_v16 = vld [vmem:[#allocation8 + $0x200] ss:$28 sps:$4 sm:$0xff]  }
 0x436   :  { %6131 = vmatpush1.bf16.msra.mxu1 %v15152_v24  ;;  %v15214_v24 = vld [vmem:[#allocation8 + $0x15c] ss:$28 sps:$4 sm:$0xff]  }
 0x437   :  { %6249 = vmatpush1.bf16.msra.mxu0 %v15155_v43  ;;  %6132 = vmatprep.subr.bf16.mxu1 %v15158_v31  ;;  %v3945_v44 = vcombine.high %v17962_v21, %v17950_v17  ;;  %v15209_v43 = vld [vmem:[#allocation8 + $0xbe0] ss:$28 sps:$4 sm:$0xff]   ;;  %v15212_v31 = vld [vmem:[#allocation8 + $0x158] ss:$28 sps:$4 sm:$0xff]  }
 0x438   :  { %6250 = vmatprep.subr.bf16.mxu0 %v19189_v1  ;;  %v15238_v49 = vld [vmem:[#allocation8 + $0x23c] ss:$28 sps:$4 sm:$0xff]  }
 0x439   :  { %6118 = vmatmul.mubr.bf16.gmra.mrb[56].mxu1 %v17833_v29  ;;  %v15169_v29 = vld [vmem:[#allocation8 + $0xc] ss:$28 sps:$4 sm:$0xff]   ;;  %v17968_v3 = vpack.c.bf16 %v3945_v44, %v3909_v26 }
 0x43a   :  { %6133 = vmatpush1.bf16.msra.mxu1 %v15156_v48  ;;  %13611 = vmatprep.mubr.msk.bf16.mxu1 %vm142_vm2, %v17848_v9  ;;  %v15167_v9 = vld [vmem:[#allocation8 + $0x8] ss:$28 sps:$4 sm:$0xff]   ;;  %v15220_v48 = vld [vmem:[#allocation8 + $0x194] ss:$28 sps:$4 sm:$0xff]  }
 0x43b   :  { %6251 = vmatpush1.bf16.msra.mxu0 %v15159_v2  ;;  %6134 = vmatprep.subr.bf16.mxu1 %v15162_v58  ;;  %v15218_v2 = vld [vmem:[#allocation8 + $0x190] ss:$28 sps:$4 sm:$0xff]   ;;  %v15223_v58 = vld [vmem:[#allocation8 + $0x4] ss:$28 sps:$4 sm:$0xff]  }
 0x43c   :  { %6252 = vmatprep.subr.bf16.mxu0 %v19189_v1  ;;  %v15248_v26 = vld [vmem:[#allocation8 + $0x2a8] ss:$28 sps:$4 sm:$0xff]  }
 0x43e   :  { %6135 = vmatpush1.bf16.msra.mxu1 %v15160_v30  ;;  %v15226_v30 = vld [vmem:[#allocation8 + $0x1cc] ss:$28 sps:$4 sm:$0xff]  }
 0x43f   :  { %6253 = vmatpush1.bf16.msra.mxu0 %v15163_v18  ;;  %6136 = vmatprep.subr.bf16.mxu1 %v15166_v45  ;;  %v15229_v18 = vld [vmem:[#allocation8 + $0x3c] ss:$28 sps:$4 sm:$0xff]   ;;  %v15232_v45 = vld [vmem:[#allocation8 + $0x204] ss:$28 sps:$4 sm:$0xff]  }
 0x440   :  { %7399 = vmatprep.subr.bf16.mxu0 %v15169_v29  ;;  %v15235_v29 = vld [vmem:[#allocation8 + $0x74] ss:$28 sps:$4 sm:$0xff]  }
 0x442   :  { %6263 = vmatmul.mubr.bf16.vlgmr.msra.gmra.mrb[60].mxu0 %v17897_v12  ;;  %6137 = vmatpush1.bf16.msra.mxu1 %v15164_v62  ;;  %v15233_v62 = vld [vmem:[#allocation8 + $0x70] ss:$28 sps:$4 sm:$0xff]  }
 0x443   :  { %13614 = vmatprep.mubr.msk.bf16.mxu0 %vm142_vm2, %v17901_v0  ;;  %7400 = vmatpush1.bf16.msra.mxu0 %v15167_v9  ;;  %v15236_v9 = vld [vmem:[#allocation8 + $0x238] ss:$28 sps:$4 sm:$0xff]  }
 0x444   :  { %6138 = vmatprep.subr.bf16.mxu1 %v15172_v50  ;;  %7401 = vmatprep.subr.bf16.mxu0 %v15175_v35  ;;  %v15242_v50 = vld [vmem:[#allocation8 + $0x270] ss:$28 sps:$4 sm:$0xff]   ;;  %v15247_v35 = vld [vmem:[#allocation8 + $0xe4] ss:$28 sps:$4 sm:$0xff]  }
 0x446   :  { %6139 = vmatpush1.bf16.msra.mxu1 %v15170_v14  ;;  %v15250_v14 = vld [vmem:[#allocation8 + $0x2ac] ss:$28 sps:$4 sm:$0xff]  }
 0x447   :  { %7402 = vmatpush1.bf16.msra.mxu0 %v15173_v19  ;;  %6140 = vmatprep.subr.bf16.mxu1 %v15178_v52  ;;  %v15190_v19 = vld [vmem:[#allocation2 + $0x44] ss:$8 sps:$4 sm:$0xff]   ;;  %v15275_v52 = vld [vmem:[#allocation2 + $0x50] ss:$8 sps:$4 sm:$0xff]  }
 0x448   :  { %7403 = vmatprep.subr.bf16.mxu0 %v15181_v25  ;;  %v15277_v25 = vld [vmem:[#allocation2 + $0x54] ss:$8 sps:$4 sm:$0xff]  }
 0x44a   :  { %6271 = vmatmul.mubr.bf16.gmra.mrb[64].mxu0 %v17913_v28  ;;  %6141 = vmatpush1.bf16.msra.mxu1 %v15176_v6  ;;  %v15245_v6 = vld [vmem:[#allocation8 + $0xe0] ss:$28 sps:$4 sm:$0xff]  }
 0x44b   :  { %7404 = vmatpush1.bf16.msra.mxu0 %v15179_v54  ;;  %7431 = vmatprep.mubr.bf16.mxu0 %v17968_v3  ;;  %v15280_v54 = vld [vmem:[#allocation2 + $0x64] ss:$8 sps:$4 sm:$0x33]  }
 0x44c   :  { %6142 = vmatprep.subr.bf16.mxu1 %v15193_v33  ;;  %7405 = vmatprep.subr.bf16.mxu0 %v15196_v10  ;;  %v15253_v33 = vld [vmem:[#allocation8 + $0x11c] ss:$28 sps:$4 sm:$0xff]   ;;  %v15256_v10 = vld [vmem:[#allocation8 + $0x2e4] ss:$28 sps:$4 sm:$0xff]  }
 0x44e   :  { %6143 = vmatpush1.bf16.msra.mxu1 %v15191_v15  ;;  %v17984_v15 = vrot.slane %v15190_v19, %v16853_v57  ;;  %v15285_v19 = vld [vmem:[#allocation8 + $0x1fc] ss:$28 sps:$4 sm:$0xff]  }
 0x44f   :  { %7406 = vmatpush1.bf16.msra.mxu0 %v15194_v36  ;;  %6144 = vmatprep.subr.bf16.mxu1 %v15199_v40  ;;  %v17987_v36 = vrot.slane %v15275_v52, %v16853_v57  ;;  %v17990_v40 = vrot.slane %v15277_v25, %v16853_v57  ;;  %v15288_v52 = vld [vmem:[#allocation8 + $0x3c4] ss:$28 sps:$4 sm:$0xff]  }
 0x450   :  { %7407 = vmatprep.subr.bf16.mxu0 %v15202_v53 }
 0x452   :  { %6145 = vmatpush1.bf16.msra.mxu1 %v15197_v39  ;;  %v15251_v39 = vld [vmem:[#allocation8 + $0x118] ss:$28 sps:$4 sm:$0xff]  }
 0x453   :  { %7408 = vmatpush1.bf16.msra.mxu0 %v15200_v63  ;;  %6146 = vmatprep.subr.bf16.mxu1 %v15205_v38  ;;  %v15254_v63 = vld [vmem:[#allocation8 + $0x2e0] ss:$28 sps:$4 sm:$0xff]   ;;  %v15259_v38 = vld [vmem:[#allocation8 + $0x154] ss:$28 sps:$4 sm:$0xff]  }
 0x454   :  { %7409 = vmatprep.subr.bf16.mxu0 %v15208_v32  ;;  %v17995_v32 = vrot.slane %v15280_v54, %v16853_v57  ;;  %v15291_v54 = vld [vmem:[#allocation8 + $0x234] ss:$28 sps:$4 sm:$0xff]  }
 0x456   :  { %6147 = vmatpush1.bf16.msra.mxu1 %v15203_v23  ;;  %v15262_v23 = vld [vmem:[#allocation8 + $0x31c] ss:$28 sps:$4 sm:$0xff]  }
 0x457   :  { %7410 = vmatpush1.bf16.msra.mxu0 %v15206_v46  ;;  %6148 = vmatprep.subr.bf16.mxu1 %v15211_v41  ;;  %v3838_v46 = vcombine.high %v17939_v47, %v17987_v36  ;;  %v3840_v41 = vcombine.high %v17984_v15, %v17990_v40 }
 0x458   :  { %7411 = vmatprep.subr.bf16.mxu0 %v15214_v24 }
 0x45a   :  { %6149 = vmatpush1.bf16.msra.mxu1 %v15209_v43  ;;  %v15257_v43 = vld [vmem:[#allocation8 + $0x150] ss:$28 sps:$4 sm:$0xff]  }
 0x45b   :  { %7412 = vmatpush1.bf16.msra.mxu0 %v15212_v31  ;;  %6150 = vmatprep.subr.bf16.mxu1 %v15217_v5  ;;  %v15300_v31 = vld [vmem:[#allocation2 + $0x34] ss:$8 sps:$4 sm:$0x33]   ;;  %v15260_v5 = vld [vmem:[#allocation8 + $0x318] ss:$28 sps:$4 sm:$0xff]  }
 0x45c   :  { %7413 = vmatprep.subr.bf16.mxu0 %v15220_v48  ;;  %v15265_v48 = vld [vmem:[#allocation8 + $0x18c] ss:$28 sps:$4 sm:$0xff]  }
 0x45e   :  { %6151 = vmatpush1.bf16.msra.mxu1 %v15215_v27 }
 0x45f   :  { %7414 = vmatpush1.bf16.msra.mxu0 %v15218_v2  ;;  %7293 = vmatprep.subr.bf16.mxu1 %v15223_v58  ;;  %v15268_v2 = vld [vmem:[#allocation8 + $0x354] ss:$28 sps:$4 sm:$0xff]   ;;  %v13403_v58 = vcombine.low %v3838_v46, %v17984_v15 }
 0x460   :  { %7415 = vmatprep.subr.bf16.mxu0 %v15226_v30  ;;  %v15263_v30 = vld [vmem:[#allocation8 + $0x188] ss:$28 sps:$4 sm:$0xff]  }
 0x461   :  { %6161 = vmatmul.mubr.bf16.vlgmr.msra.gmra.mrb[52].mxu1 %v17897_v12  ;;  %v15278_v12 = vld [vmem:[#allocation2 + $0x60] ss:$8 sps:$4 sm:$0xff]  }
 0x462   :  { %13612 = vmatprep.mubr.msk.bf16.mxu1 %vm142_vm2, %v17901_v0  ;;  %7294 = vmatpush1.bf16.msra.mxu1 %v15221_v56  ;;  %v15281_v0 = vld [vmem:[#allocation2 + $0x70] ss:$8 sps:$4 sm:$0xff]   ;;  %v17978_v44 = vrot.slane %v15278_v12, %v16853_v57  ;;  %v3908_v12 = vcombine.low %v17956_v22, %v17959_v60 }
 0x463   :  { %7416 = vmatpush1.bf16.msra.mxu0 %v15224_v61  ;;  %7295 = vmatprep.subr.bf16.mxu1 %v15229_v18  ;;  %v15295_v56 = vld [vmem:[#allocation2 + $0x10] ss:$8 sps:$4 sm:$0xff]   ;;  %v15297_v61 = vld [vmem:[#allocation2 + $0x14] ss:$8 sps:$4 sm:$0xff]   ;;  %v15266_v18 = vld [vmem:[#allocation8 + $0x350] ss:$28 sps:$4 sm:$0xff]  }
 0x464   :  { %7417 = vmatprep.subr.bf16.mxu0 %v15232_v45  ;;  %v13405_v27 = vcombine.low %v3840_v41, %v17978_v44  ;;  %v15271_v45 = vld [vmem:[#allocation8 + $0x1c4] ss:$28 sps:$4 sm:$0xff]   ;;  %v15283_v60 = vld [vmem:[#allocation8 + $0x1f8] ss:$28 sps:$4 sm:$0xff]  }
 0x466   :  { %7296 = vmatpush1.bf16.msra.mxu1 %v15227_v34  ;;  %v3972_v34 = vrot.slane %v13405_v27, %v16853_v57  ;;  %v15309_v27 = vld [vmem:[#allocation8 + $0x2a4] ss:$28 sps:$4 sm:$0xff]  }
 0x467   :  { %7418 = vmatpush1.bf16.msra.mxu0 %v15230_v16  ;;  %7297 = vmatprep.subr.bf16.mxu1 %v15235_v29  ;;  %v15298_v16 = vld [vmem:[#allocation2 + $0x30] ss:$8 sps:$4 sm:$0xff]   ;;  %v3801_v29 = vrot.slane %v15300_v31, %v16853_v57 }
 0x468   :  { %7419 = vmatprep.subr.bf16.mxu0 %v15238_v49  ;;  %v3944_v49 = vcombine.low %v17962_v21, %v17950_v17  ;;  %v3765_v17 = vrot.slane %v15297_v61, %v16853_v57  ;;  %v3794_v21 = vrot.slane %v15298_v16, %v16853_v57  ;;  %v15313_v61 = vld [vmem:[#allocation8 + $0x2d8] ss:$28 sps:$4 sm:$0xff]   ;;  %v15319_v16 = vld [vmem:[#allocation8 + $0x310] ss:$28 sps:$4 sm:$0xff]  }
 0x469   :  { %6171 = vmatmul.mubr.bf16.gmra.mrb[56].mxu1 %v17913_v28  ;;  %v17981_v28 = vrot.slane %v15281_v0, %v16853_v57  ;;  %v15269_v0 = vld [vmem:[#allocation8 + $0x1c0] ss:$28 sps:$4 sm:$0xff]  }
 0x46a   :  { %7298 = vmatpush1.bf16.msra.mxu1 %v15233_v62  ;;  %7325 = vmatprep.mubr.bf16.mxu1 %v17968_v3  ;;  %v15274_v62 = vld [vmem:[#allocation8 + $0x38c] ss:$28 sps:$4 sm:$0xff]  }
 0x46b   :  { %7420 = vmatpush1.bf16.msra.mxu0 %v15236_v9  ;;  %7299 = vmatprep.subr.bf16.mxu1 %v15241_v4  ;;  %v3874_v53 = vcombine.high %v17978_v44, %v17981_v28  ;;  %v3958_v9 = vrot.slane %v13403_v58, %v16853_v57  ;;  %v15307_v58 = vld [vmem:[#allocation8 + $0x2a0] ss:$28 sps:$4 sm:$0xff]  }
 0x46c   :  { %7421 = vmatprep.subr.bf16.mxu0 %v15244_v11  ;;  %v13402_v11 = vcombine.low %v3801_v29, %v17987_v36  ;;  %v15322_v29 = vld [vmem:[#allocation8 + $0x4d8] ss:$28 sps:$4 sm:$0xff]  }
 0x46d   :  { %v13407_v24 = vcombine.low %v3874_v53, %v17995_v32  ;;  %v3980_v53 = vcombine.low %v3958_v9, %v3972_v34 }
 0x46e   :  { %7300 = vmatpush1.bf16.msra.mxu1 %v15239_v55  ;;  %v3758_v55 = vrot.slane %v15295_v56, %v16853_v57  ;;  %v18021_v22 = vrot.slane %v13402_v11, %v16853_v57  ;;  %v15318_v56 = vld [vmem:[#allocation8 + $0x4a4] ss:$28 sps:$4 sm:$0xff]   ;;  %v15328_v11 = vld [vmem:[#allocation8 + $0x510] ss:$28 sps:$4 sm:$0xff]  }
 0x46f   :  { %7422 = vmatpush1.bf16.msra.mxu0 %v15242_v50  ;;  %7301 = vmatprep.subr.bf16.mxu1 %v15247_v35  ;;  %v3992_v47 = vrot.slane %v13407_v24, %v16853_v57  ;;  %v15272_v50 = vld [vmem:[#allocation8 + $0x388] ss:$28 sps:$4 sm:$0xff]   ;;  %v3981_v35 = vcombine.high %v3958_v9, %v3972_v34  ;;  %v15324_v34 = vld [vmem:[#allocation8 + $0x4dc] ss:$28 sps:$4 sm:$0xff]  }
 0x470   :  { %7423 = vmatprep.subr.bf16.mxu0 %v15250_v14  ;;  %v18016_v14 = vpack.c.bf16 %v3944_v49, %v3908_v12  ;;  %v15303_v24 = vld [vmem:[#allocation8 + $0x26c] ss:$28 sps:$4 sm:$0xff]   ;;  %v15359_v9 = vld [vmem:[#allocation2 + $0x74] ss:$8 sps:$4 sm:$0x33]  }
 0x471   :  { %v4000_v4 = vcombine.high %v3992_v47, %v3992_v47  ;;  %v18038_v41 = vpack.c.bf16 %v3992_v47, %v3980_v53  ;;  %v15310_v47 = vld [vmem:[#allocation8 + $0x468] ss:$28 sps:$4 sm:$0xff]   ;;  %v3839_v53 = vcombine.low %v17984_v15, %v17990_v40 }
 0x472   :  { %7302 = vmatpush1.bf16.msra.mxu1 %v15245_v6  ;;  %v15286_v6 = vld [vmem:[#allocation8 + $0x3c0] ss:$28 sps:$4 sm:$0xff]   ;;  %v15327_v49 = vld [vmem:[#allocation8 + $0x34c] ss:$28 sps:$4 sm:$0xff]  }
 0x473   :  { %7424 = vmatpush1.bf16.msra.mxu0 %v15248_v26  ;;  %7303 = vmatprep.subr.bf16.mxu1 %v15253_v33  ;;  %v18018_v25 = vpack.c.bf16 %v4000_v4, %v3981_v35  ;;  %v18026_v26 = vrot.slane %v3758_v55, %v16853_v57  ;;  %v18029_v33 = vrot.slane %v3765_v17, %v16853_v57  ;;  %v15325_v4 = vld [vmem:[#allocation8 + $0x348] ss:$28 sps:$4 sm:$0xff]   ;;  %v15339_v17 = vld [vmem:[#allocation8 + $0x3bc] ss:$28 sps:$4 sm:$0xff]  }
 0x474   :  { %7425 = vmatprep.subr.bf16.mxu0 %v15256_v10  ;;  %v18032_v10 = vrot.slane %v3794_v21, %v16853_v57  ;;  %v15333_v12 = vld [vmem:[#allocation8 + $0x384] ss:$28 sps:$4 sm:$0xff]   ;;  %v3872_v55 = vrot.slane %v15359_v9, %v16853_v57  ;;  %v15373_v9 = vld [vmem:[#allocation8 + $0x50c] ss:$28 sps:$4 sm:$0xff]  }
 0x475   :  { %v3911_v46 = vcombine.high %v18026_v26, %v18029_v33  ;;  %v15334_v35 = vld [vmem:[#allocation8 + $0x548] ss:$28 sps:$4 sm:$0xff]  }
 0x476   :  { %7304 = vmatpush1.bf16.msra.mxu1 %v15251_v39  ;;  %v15294_v39 = vld [vmem:[#allocation8 + $0x3fc] ss:$28 sps:$4 sm:$0xff]   ;;  %v15342_v21 = vld [vmem:[#allocation8 + $0x584] ss:$28 sps:$4 sm:$0xff]  }
 0x477   :  { %7426 = vmatpush1.bf16.msra.mxu0 %v15254_v63  ;;  %7305 = vmatprep.subr.bf16.mxu1 %v15259_v38  ;;  %v3947_v63 = vcombine.high %v18032_v10, %v18021_v22  ;;  %v15289_v38 = vld [vmem:[#allocation8 + $0x230] ss:$28 sps:$4 sm:$0xff]  }
 0x478   :  { %7427 = vmatprep.subr.bf16.mxu0 %v15262_v23  ;;  %v15292_v23 = vld [vmem:[#allocation8 + $0x3f8] ss:$28 sps:$4 sm:$0xff]  }
 0x479   :  { %v18040_v31 = vpack.c.bf16 %v3947_v63, %v3911_v46  ;;  %v13404_v46 = vcombine.high %v17987_v36, %v3839_v53  ;;  %v3946_v36 = vcombine.low %v18032_v10, %v18021_v22  ;;  %v15361_v22 = vld [vmem:[#allocation8 + $0x498] ss:$28 sps:$4 sm:$0xff]   ;;  %v15390_v53 = vld [vmem:[#allocation8 + $0x168] ss:$28 sps:$4 sm:$0xff]  }
 0x47a   :  { %7306 = vmatpush1.bf16.msra.mxu1 %v15257_v43  ;;  %v15306_v43 = vld [vmem:[#allocation8 + $0x434] ss:$28 sps:$4 sm:$0xff]  }
 0x47b   :  { %7428 = vmatpush1.bf16.msra.mxu0 %v15260_v5  ;;  %7307 = vmatprep.subr.bf16.mxu1 %v15265_v48  ;;  %v15301_v5 = vld [vmem:[#allocation8 + $0x268] ss:$28 sps:$4 sm:$0xff]   ;;  %v15304_v48 = vld [vmem:[#allocation8 + $0x430] ss:$28 sps:$4 sm:$0xff]  }
 0x47c   :  { %7429 = vmatprep.subr.bf16.mxu0 %v15268_v2  ;;  %v15312_v2 = vld [vmem:[#allocation8 + $0x46c] ss:$28 sps:$4 sm:$0xff]  }
 0x47e   :  { %7308 = vmatpush1.bf16.msra.mxu1 %v15263_v30  ;;  %v15315_v30 = vld [vmem:[#allocation8 + $0x2dc] ss:$28 sps:$4 sm:$0xff]  }
 0x47f   :  { %7430 = vmatpush1.bf16.msra.mxu0 %v15266_v18  ;;  %7309 = vmatprep.subr.bf16.mxu1 %v15271_v45  ;;  %v15316_v18 = vld [vmem:[#allocation8 + $0x4a0] ss:$28 sps:$4 sm:$0xff]   ;;  %v15321_v45 = vld [vmem:[#allocation8 + $0x314] ss:$28 sps:$4 sm:$0xff]  }
 0x480   :  { %7452 = vmatprep.subr.bf16.mxu0 %v15274_v62  ;;  %v15330_v62 = vld [vmem:[#allocation8 + $0x514] ss:$28 sps:$4 sm:$0xff]  }
 0x482   :  { %7432 = vmatmul.mubr.bf16.vlgmr.msra.gmra.mrb[44].mxu0 %v18016_v14  ;;  %7310 = vmatpush1.bf16.msra.mxu1 %v15269_v0  ;;  %v15336_v0 = vld [vmem:[#allocation8 + $0x54c] ss:$28 sps:$4 sm:$0xff]  }
 0x483   :  { %7441 = vmatprep.mubr.bf16.mxu0 %v18018_v25  ;;  %7453 = vmatpush1.bf16.msra.mxu0 %v15272_v50  ;;  %v15331_v50 = vld [vmem:[#allocation8 + $0x380] ss:$28 sps:$4 sm:$0xff]  }
 0x484   :  { %7311 = vmatprep.subr.bf16.mxu1 %v15285_v19  ;;  %7454 = vmatprep.subr.bf16.mxu0 %v15288_v52  ;;  %v3873_v19 = vcombine.low %v17978_v44, %v17981_v28  ;;  %v3875_v52 = vcombine.low %v17995_v32, %v3872_v55  ;;  %v15343_v44 = vld [vmem:[#allocation8 + $0x3f0] ss:$28 sps:$4 sm:$0xff]   ;;  %v15346_v32 = vld [vmem:[#allocation8 + $0x5b8] ss:$28 sps:$4 sm:$0xff]  }
 0x485   :  { %v15379_v55 = vld [vmem:[#allocation8 + $0x2b8] ss:$28 sps:$4 sm:$0xff]  }
 0x486   :  { %7312 = vmatpush1.bf16.msra.mxu1 %v15283_v60  ;;  %v15337_v60 = vld [vmem:[#allocation8 + $0x3b8] ss:$28 sps:$4 sm:$0xff]   ;;  %v13406_v63 = vcombine.high %v17990_v40, %v3873_v19  ;;  %v15352_v40 = vld [vmem:[#allocation8 + $0x5f0] ss:$28 sps:$4 sm:$0xff]  }
 0x487   :  { %7455 = vmatpush1.bf16.msra.mxu0 %v15286_v6  ;;  %7313 = vmatprep.subr.bf16.mxu1 %v15291_v54  ;;  %v15340_v6 = vld [vmem:[#allocation8 + $0x580] ss:$28 sps:$4 sm:$0xff]   ;;  %v15345_v54 = vld [vmem:[#allocation8 + $0x3f4] ss:$28 sps:$4 sm:$0xff]  }
 0x488   :  { %7456 = vmatprep.subr.bf16.mxu0 %v15294_v39  ;;  %v15348_v39 = vld [vmem:[#allocation8 + $0x5bc] ss:$28 sps:$4 sm:$0xff]   ;;  %v3979_v15 = vrot.slane %v13406_v63, %v16853_v57 }
 0x489   :  { %v15381_v19 = vld [vmem:[#allocation8 + $0x578] ss:$28 sps:$4 sm:$0xff]   ;;  %v15394_v63 = vld [vmem:[#allocation8 + $0x360] ss:$28 sps:$4 sm:$0xff]  }
 0x48a   :  { %7442 = vmatmul.mubr.bf16.gmra.mrb[48].mxu0 %v18038_v41  ;;  %7314 = vmatpush1.bf16.msra.mxu1 %v15289_v38  ;;  %v13408_v38 = vcombine.high %v17981_v28, %v3875_v52  ;;  %v15349_v28 = vld [vmem:[#allocation8 + $0x428] ss:$28 sps:$4 sm:$0xff]   ;;  %v15385_v52 = vld [vmem:[#allocation8 + $0x130] ss:$28 sps:$4 sm:$0xff]  }
 0x48b   :  { %7457 = vmatpush1.bf16.msra.mxu0 %v15292_v23  ;;  %13813 = vmatprep.mubr.msk.bf16.mxu0 %vm142_vm2, %v18040_v31  ;;  %v15351_v23 = vld [vmem:[#allocation8 + $0x42c] ss:$28 sps:$4 sm:$0xff]  }
 0x48c   :  { %7315 = vmatprep.subr.bf16.mxu1 %v15303_v24  ;;  %7458 = vmatprep.subr.bf16.mxu0 %v15306_v43  ;;  %v15354_v24 = vld [vmem:[#allocation8 + $0x5f4] ss:$28 sps:$4 sm:$0xff]   ;;  %v3999_v43 = vrot.slane %v13408_v38, %v16853_v57  ;;  %v15391_v38 = vld [vmem:[#allocation8 + $0x5e8] ss:$28 sps:$4 sm:$0xff]  }
 0x48e   :  { %7316 = vmatpush1.bf16.msra.mxu1 %v15301_v5  ;;  %v15357_v5 = vld [vmem:[#allocation8 + $0x464] ss:$28 sps:$4 sm:$0xff]  }
 0x48f   :  { %7459 = vmatpush1.bf16.msra.mxu0 %v15304_v48  ;;  %7317 = vmatprep.subr.bf16.mxu1 %v15309_v27  ;;  %v3965_v48 = vrot.slane %v13404_v46, %v16853_v57  ;;  %v15358_v27 = vld [vmem:[#allocation8 + $0x1d8] ss:$28 sps:$4 sm:$0xff]  }
 0x490   :  { %7460 = vmatprep.subr.bf16.mxu0 %v15312_v2  ;;  %v15399_v46 = vld [vmem:[#allocation8 + $0x398] ss:$28 sps:$4 sm:$0xff]  }
 0x491   :  { %v3983_v2 = vcombine.high %v3965_v48, %v3979_v15  ;;  %v3982_v10 = vcombine.low %v3965_v48, %v3979_v15  ;;  %v15400_v15 = vld [vmem:[#allocation8 + $0x48] ss:$28 sps:$4 sm:$0xff]   ;;  %v15410_v48 = vld [vmem:[#allocation8 + $0xbc] ss:$28 sps:$4 sm:$0xff]  }
 0x492   :  { %7318 = vmatpush1.bf16.msra.mxu1 %v15307_v58  ;;  %v4001_v58 = vcombine.high %v3999_v43, %v3999_v43 }
 0x493   :  { %7461 = vmatpush1.bf16.msra.mxu0 %v15310_v47  ;;  %7319 = vmatprep.subr.bf16.mxu1 %v15315_v30  ;;  %v3910_v47 = vcombine.low %v18026_v26, %v18029_v33  ;;  %v15355_v30 = vld [vmem:[#allocation8 + $0x460] ss:$28 sps:$4 sm:$0xff]   ;;  %v15365_v26 = vld [vmem:[#allocation8 + $0x50] ss:$28 sps:$4 sm:$0xff]  }
 0x494   :  { %7462 = vmatprep.subr.bf16.mxu0 %v15318_v56  ;;  %v15360_v56 = vld [vmem:[#allocation8 + $0x18] ss:$28 sps:$4 sm:$0xff]  }
 0x495   :  { %v15368_v33 = vld [vmem:[#allocation8 + $0x4d4] ss:$28 sps:$4 sm:$0xff]  }
 0x496   :  { %7320 = vmatpush1.bf16.msra.mxu1 %v15313_v61  ;;  %v18066_v61 = vpack.c.bf16 %v3946_v36, %v3910_v47  ;;  %v15408_v36 = vld [vmem:[#allocation8 + $0xb8] ss:$28 sps:$4 sm:$0xff]  }
 0x497   :  { %7463 = vmatpush1.bf16.msra.mxu0 %v15316_v18  ;;  %7321 = vmatprep.subr.bf16.mxu1 %v15321_v45  ;;  %v15363_v18 = vld [vmem:[#allocation8 + $0x49c] ss:$28 sps:$4 sm:$0xff]   ;;  %v15364_v45 = vld [vmem:[#allocation8 + $0x210] ss:$28 sps:$4 sm:$0xff]  }
 0x498   :  { %7464 = vmatprep.subr.bf16.mxu0 %v15324_v34  ;;  %v18068_v34 = vpack.c.bf16 %v4001_v58, %v3983_v2  ;;  %v15414_v2 = vld [vmem:[#allocation8 + $0xf4] ss:$28 sps:$4 sm:$0xff]  }
 0x499   :  { %v15412_v58 = vld [vmem:[#allocation8 + $0xf0] ss:$28 sps:$4 sm:$0xff]   ;;  %v15415_v47 = vld [vmem:[#allocation8 + $0x478] ss:$28 sps:$4 sm:$0xff]  }
 0x49a   :  { %7322 = vmatpush1.bf16.msra.mxu1 %v15319_v16  ;;  %v15369_v16 = vld [vmem:[#allocation8 + $0x248] ss:$28 sps:$4 sm:$0xff]  }
 0x49b   :  { %7465 = vmatpush1.bf16.msra.mxu0 %v15322_v29  ;;  %7323 = vmatprep.subr.bf16.mxu1 %v15327_v49  ;;  %v15366_v29 = vld [vmem:[#allocation8 + $0x4d0] ss:$28 sps:$4 sm:$0xff]   ;;  %v15370_v49 = vld [vmem:[#allocation8 + $0x88] ss:$28 sps:$4 sm:$0xff]  }
 0x49c   :  { %7466 = vmatprep.subr.bf16.mxu0 %v15330_v62  ;;  %v18073_v62 = vpack.c.bf16 %v3999_v43, %v3982_v10  ;;  %v15403_v43 = vld [vmem:[#allocation8 + $0x3d0] ss:$28 sps:$4 sm:$0xff]  }
 0x49e   :  { %7324 = vmatpush1.bf16.msra.mxu1 %v15325_v4  ;;  %v15374_v4 = vld [vmem:[#allocation8 + $0x280] ss:$28 sps:$4 sm:$0xff]  }
 0x49f   :  { %7467 = vmatpush1.bf16.msra.mxu0 %v15328_v11  ;;  %7346 = vmatprep.subr.bf16.mxu1 %v15333_v12  ;;  %v15371_v11 = vld [vmem:[#allocation8 + $0x508] ss:$28 sps:$4 sm:$0xff]   ;;  %v15375_v12 = vld [vmem:[#allocation8 + $0xc0] ss:$28 sps:$4 sm:$0xff]  }
 0x4a0   :  { %7468 = vmatprep.subr.bf16.mxu0 %v15336_v0  ;;  %v15378_v0 = vld [vmem:[#allocation8 + $0x544] ss:$28 sps:$4 sm:$0xff]  }
 0x4a1   :  { %7326 = vmatmul.mubr.bf16.vlgmr.msra.gmra.mrb[44].mxu1 %v18016_v14 }
 0x4a2   :  { %7335 = vmatprep.mubr.bf16.mxu1 %v18018_v25  ;;  %7347 = vmatpush1.bf16.msra.mxu1 %v15331_v50  ;;  %v15376_v50 = vld [vmem:[#allocation8 + $0x540] ss:$28 sps:$4 sm:$0xff]  }
 0x4a3   :  { %7469 = vmatpush1.bf16.msra.mxu0 %v15334_v35  ;;  %7348 = vmatprep.subr.bf16.mxu1 %v15339_v17  ;;  %v15380_v35 = vld [vmem:[#allocation8 + $0xf8] ss:$28 sps:$4 sm:$0xff]  }
 0x4a4   :  { %7470 = vmatprep.subr.bf16.mxu0 %v15342_v21  ;;  %v15383_v17 = vld [vmem:[#allocation8 + $0x57c] ss:$28 sps:$4 sm:$0xff]   ;;  %v15384_v21 = vld [vmem:[#allocation8 + $0x2f0] ss:$28 sps:$4 sm:$0xff]  }
 0x4a6   :  { %7349 = vmatpush1.bf16.msra.mxu1 %v15337_v60  ;;  %v15388_v60 = vld [vmem:[#allocation8 + $0x5b4] ss:$28 sps:$4 sm:$0xff]  }
 0x4a7   :  { %7471 = vmatpush1.bf16.msra.mxu0 %v15340_v6  ;;  %7350 = vmatprep.subr.bf16.mxu1 %v15345_v54  ;;  %v15389_v6 = vld [vmem:[#allocation8 + $0x328] ss:$28 sps:$4 sm:$0xff]   ;;  %v15386_v54 = vld [vmem:[#allocation8 + $0x5b0] ss:$28 sps:$4 sm:$0xff]  }
 0x4a8   :  { %7472 = vmatprep.subr.bf16.mxu0 %v15348_v39  ;;  %v15393_v39 = vld [vmem:[#allocation8 + $0x5ec] ss:$28 sps:$4 sm:$0xff]  }
 0x4a9   :  { %7336 = vmatmul.mubr.bf16.gmra.mrb[48].mxu1 %v18038_v41 }
 0x4aa   :  { %7351 = vmatpush1.bf16.msra.mxu1 %v15343_v44  ;;  %13811 = vmatprep.mubr.msk.bf16.mxu1 %vm142_vm2, %v18040_v31  ;;  %v15395_v44 = vld [vmem:[#allocation8 + $0x1a0] ss:$28 sps:$4 sm:$0xff]  }
 0x4ab   :  { %7473 = vmatpush1.bf16.msra.mxu0 %v15346_v32  ;;  %7352 = vmatprep.subr.bf16.mxu1 %v15351_v23  ;;  %v15398_v32 = vld [vmem:[#allocation8 + $0x14] ss:$28 sps:$4 sm:$0xff]  }
 0x4ac   :  { %7474 = vmatprep.subr.bf16.mxu0 %v15354_v24  ;;  %v15396_v23 = vld [vmem:[#allocation8 + $0x10] ss:$28 sps:$4 sm:$0xff]  }
 0x4ad   :  { %v15402_v24 = vld [vmem:[#allocation8 + $0x4c] ss:$28 sps:$4 sm:$0xff]  }
 0x4ae   :  { %7353 = vmatpush1.bf16.msra.mxu1 %v15349_v28  ;;  %v15406_v28 = vld [vmem:[#allocation8 + $0x84] ss:$28 sps:$4 sm:$0xff]  }
 0x4af   :  { %7475 = vmatpush1.bf16.msra.mxu0 %v15352_v40  ;;  %7354 = vmatprep.subr.bf16.mxu1 %v15357_v5  ;;  %v15404_v40 = vld [vmem:[#allocation8 + $0x80] ss:$28 sps:$4 sm:$0xff]   ;;  %v15407_v5 = vld [vmem:[#allocation8 + $0x408] ss:$28 sps:$4 sm:$0xff]  }
 0x4b0   :  { %14304 = vmatprep.subr.bf16.mxu0 %v15358_v27  ;;  %v15411_v27 = vld [vmem:[#allocation8 + $0x440] ss:$28 sps:$4 sm:$0xff]  }
 0x4b2   :  { %7485 = vmatmul.mubr.bf16.vlgmr.msra.gmra.mrb[44].mxu0 %v18066_v61  ;;  %7355 = vmatpush1.bf16.msra.mxu1 %v15355_v30  ;;  %v15418_v30 = vld [vmem:[#allocation8 + $0x12c] ss:$28 sps:$4 sm:$0xff]  }
 0x4b3   :  { %13814 = vmatprep.mubr.msk.bf16.mxu0 %vm142_vm2, %v18068_v34  ;;  %14305 = vmatpush3.bf16.msra.mxu0 %v15360_v56 }
 0x4b4   :  { %7356 = vmatprep.subr.bf16.mxu1 %v15363_v18  ;;  %14306 = vmatprep.subr.bf16.mxu0 %v15364_v45  ;;  %v15419_v18 = vld [vmem:[#allocation8 + $0x4b0] ss:$28 sps:$4 sm:$0xff]   ;;  %v15422_v45 = vld [vmem:[#allocation8 + $0x164] ss:$28 sps:$4 sm:$0xff]  }
 0x4b6   :  { %7357 = vmatpush1.bf16.msra.mxu1 %v15361_v22 }
 0x4b7   :  { %14307 = vmatpush3.bf16.msra.mxu0 %v15365_v26  ;;  %7358 = vmatprep.subr.bf16.mxu1 %v15368_v33 }
 0x4b8   :  { %14308 = vmatprep.subr.bf16.mxu0 %v15369_v16  ;;  %v15420_v16 = vld [vmem:[#allocation8 + $0x160] ss:$28 sps:$4 sm:$0xff]  }
 0x4ba   :  { %7495 = vmatmul.mubr.bf16.gmra.mrb[48].mxu0 %v18073_v62  ;;  %7359 = vmatpush1.bf16.msra.mxu1 %v15366_v29 }
 0x4bb   :  { %14309 = vmatpush3.bf16.msra.mxu0 %v15370_v49  ;;  %7643 = vmatprep.mubr.bf16.mxu0 %v17968_v3  ;;  %v15423_v49 = vld [vmem:[#allocation8 + $0x4e8] ss:$28 sps:$4 sm:$0xff]  }
 0x4bc   :  { %7360 = vmatprep.subr.bf16.mxu1 %v15373_v9  ;;  %14310 = vmatprep.subr.bf16.mxu0 %v15374_v4  ;;  %v15426_v9 = vld [vmem:[#allocation8 + $0x19c] ss:$28 sps:$4 sm:$0xff]  }
 0x4bd   :  { %v15424_v4 = vld [vmem:[#allocation8 + $0x198] ss:$28 sps:$4 sm:$0xff]  }
 0x4be   :  { %7361 = vmatpush1.bf16.msra.mxu1 %v15371_v11 }
 0x4bf   :  { %14311 = vmatpush3.bf16.msra.mxu0 %v15375_v12  ;;  %7362 = vmatprep.subr.bf16.mxu1 %v15378_v0  ;;  %v15427_v12 = vld [vmem:[#allocation8 + $0x520] ss:$28 sps:$4 sm:$0xff]   ;;  %v15430_v0 = vld [vmem:[#allocation8 + $0x1d4] ss:$28 sps:$4 sm:$0xff]  }
 0x4c0   :  { %14312 = vmatprep.subr.bf16.mxu0 %v15379_v55 }
 0x4c2   :  { %7363 = vmatpush1.bf16.msra.mxu1 %v15376_v50 }
 0x4c3   :  { %14313 = vmatpush3.bf16.msra.mxu0 %v15380_v35  ;;  %7364 = vmatprep.subr.bf16.mxu1 %v15383_v17 }
 0x4c4   :  { %14314 = vmatprep.subr.bf16.mxu0 %v15384_v21  ;;  %v15428_v21 = vld [vmem:[#allocation8 + $0x1d0] ss:$28 sps:$4 sm:$0xff]  }
 0x4c6   :  { %7365 = vmatpush1.bf16.msra.mxu1 %v15381_v19 }
 0x4c7   :  { %14315 = vmatpush3.bf16.msra.mxu0 %v15385_v52  ;;  %7366 = vmatprep.subr.bf16.mxu1 %v15388_v60  ;;  %v15431_v52 = vld [vmem:[#allocation8 + $0x558] ss:$28 sps:$4 sm:$0xff]   ;;  %v15434_v60 = vld [vmem:[#allocation8 + $0x20c] ss:$28 sps:$4 sm:$0xff]  }
 0x4c8   :  { %14316 = vmatprep.subr.bf16.mxu0 %v15389_v6  ;;  %v15432_v6 = vld [vmem:[#allocation8 + $0x208] ss:$28 sps:$4 sm:$0xff]  }
 0x4ca   :  { %7367 = vmatpush1.bf16.msra.mxu1 %v15386_v54  ;;  %v15435_v54 = vld [vmem:[#allocation8 + $0x590] ss:$28 sps:$4 sm:$0xff]  }
 0x4cb   :  { %14317 = vmatpush3.bf16.msra.mxu0 %v15390_v53  ;;  %7368 = vmatprep.subr.bf16.mxu1 %v15393_v39  ;;  %v15438_v53 = vld [vmem:[#allocation8 + $0x244] ss:$28 sps:$4 sm:$0xff]   ;;  %v15462_v39 = vld [vmem:[#allocation2] ss:$8 sps:$4 sm:$0xcc]  }
 0x4cc   :  { %14318 = vmatprep.subr.bf16.mxu0 %v15394_v63  ;;  %v15473_v63 = vld [vmem:[#allocation2 + $0x40] ss:$8 sps:$4 sm:$0xcc]  }
 0x4ce   :  { %7369 = vmatpush1.bf16.msra.mxu1 %v15391_v38  ;;  %v15436_v38 = vld [vmem:[#allocation8 + $0x240] ss:$28 sps:$4 sm:$0xff]  }
 0x4cf   :  { %14319 = vmatpush3.bf16.msra.mxu0 %v15395_v44  ;;  %7505 = vmatprep.subr.bf16.mxu1 %v15398_v32  ;;  %v15439_v44 = vld [vmem:[#allocation8 + $0x5c8] ss:$28 sps:$4 sm:$0xff]   ;;  %v15442_v32 = vld [vmem:[#allocation8 + $0x27c] ss:$28 sps:$4 sm:$0xff]  }
 0x4d0   :  { %7660 = vmatprep.subr.bf16.mxu0 %v19189_v1 }
 0x4d1   :  { %7379 = vmatmul.mubr.bf16.vlgmr.msra.gmra.mrb[44].mxu1 %v18066_v61 }
 0x4d2   :  { %7644 = vmatmul.mubr.bf16.vlgmr.msra.gmra.mrb[68].mxu0 %v18016_v14  ;;  %13812 = vmatprep.mubr.msk.bf16.mxu1 %vm142_vm2, %v18068_v34 }
 0x4d3   :  { %7506 = vmatpush1.bf16.msra.mxu1 %v15396_v23  ;;  %7651 = vmatprep.mubr.bf16.mxu0 %v18018_v25  ;;  %v7751_v23 = vrot.slane %v15462_v39, %v16853_v57  ;;  %v15498_v39 = vld [vmem:[#allocation8 + $0xd9c] ss:$28 sps:$4 sm:$0xff]  }
 0x4d4   :  { %7661 = vmatpush1.bf16.msra.mxu0 %v15399_v46  ;;  %7507 = vmatprep.subr.bf16.mxu1 %v15402_v24  ;;  %v7822_v46 = vrot.slane %v15473_v63, %v16853_v57  ;;  %v15440_v24 = vld [vmem:[#allocation8 + $0x278] ss:$28 sps:$4 sm:$0xff]  }
 0x4d5   :  { %7662 = vmatprep.subr.bf16.mxu0 %v19189_v1 }
 0x4d7   :  { %7508 = vmatpush1.bf16.msra.mxu1 %v15400_v15  ;;  %v15443_v15 = vld [vmem:[#allocation8 + $0x600] ss:$28 sps:$4 sm:$0xff]  }
 0x4d8   :  { %7663 = vmatpush1.bf16.msra.mxu0 %v15403_v43  ;;  %7509 = vmatprep.subr.bf16.mxu1 %v15406_v28  ;;  %v15446_v43 = vld [vmem:[#allocation8 + $0x2b4] ss:$28 sps:$4 sm:$0xff]   ;;  %v7809_v28 = vcombine.high %v17865_v8, %v17873_v13  ;;  %v15452_v13 = vld [vmem:[#allocation8 + $0x2ec] ss:$28 sps:$4 sm:$0xff]  }
 0x4d9   :  { %7389 = vmatmul.mubr.bf16.gmra.mrb[48].mxu1 %v18073_v62  ;;  %7664 = vmatprep.subr.bf16.mxu0 %v19189_v1 }
 0x4da   :  { %7652 = vmatmul.mubr.bf16.gmra.mrb[72].mxu0 %v18038_v41  ;;  %7537 = vmatprep.mubr.bf16.mxu1 %v17968_v3  ;;  %v15416_v3 = vld [vmem:[#allocation8 + $0x128] ss:$28 sps:$4 sm:$0xff]  }
 0x4db   :  { %7510 = vmatpush1.bf16.msra.mxu1 %v15404_v40  ;;  %13817 = vmatprep.mubr.msk.bf16.mxu0 %vm142_vm2, %v18040_v31  ;;  %v15449_v40 = vld [vmem:[#allocation8 + $0xc4c] ss:$28 sps:$4 sm:$0xff]  }
 0x4dc   :  { %7665 = vmatpush1.bf16.msra.mxu0 %v15407_v5  ;;  %7511 = vmatprep.subr.bf16.mxu1 %v15410_v48  ;;  %v7773_v5 = vcombine.high %v7751_v23, %v17884_v42  ;;  %v7775_v48 = vcombine.high %v17859_v59, %v17862_v37  ;;  %v15450_v37 = vld [vmem:[#allocation8 + $0x2e8] ss:$28 sps:$4 sm:$0xff]   ;;  %v15496_v23 = vld [vmem:[#allocation8 + $0xd98] ss:$28 sps:$4 sm:$0xff]  }
 0x4dd   :  { %7666 = vmatprep.subr.bf16.mxu0 %v19189_v1 }
 0x4df   :  { %7512 = vmatpush1.bf16.msra.mxu1 %v15408_v36  ;;  %v13825_v36 = vcombine.high %v17870_v20, %v7822_v46  ;;  %v15501_v46 = vld [vmem:[#allocation8 + $0x43c] ss:$28 sps:$4 sm:$0xff]  }
 0x4e0   :  { %7667 = vmatpush1.bf16.msra.mxu0 %v15411_v27  ;;  %7513 = vmatprep.subr.bf16.mxu1 %v15414_v2  ;;  %v15444_v27 = vld [vmem:[#allocation8 + $0x2b0] ss:$28 sps:$4 sm:$0xff]   ;;  %v15447_v2 = vld [vmem:[#allocation8 + $0xc48] ss:$28 sps:$4 sm:$0xff]  }
 0x4e1   :  { %7668 = vmatprep.subr.bf16.mxu0 %v19189_v1  ;;  %v18119_v42 = vrot.slane %v13825_v36, %v16853_v57  ;;  %v15505_v36 = vld [vmem:[#allocation8 + $0x470] ss:$28 sps:$4 sm:$0xff]  }
 0x4e3   :  { %7514 = vmatpush1.bf16.msra.mxu1 %v15412_v58  ;;  %v13821_v58 = vcombine.low %v7775_v48, %v17865_v8  ;;  %v15458_v8 = vld [vmem:[#allocation8 + $0x324] ss:$28 sps:$4 sm:$0xff]  }
 0x4e4   :  { %7669 = vmatpush1.bf16.msra.mxu0 %v15415_v47  ;;  %v14292_v56 = vpop.f32.mrb[52].mxu0  ;;  %7515 = vmatprep.subr.bf16.mxu1 %v15418_v30  ;;  %v13823_v47 = vcombine.low %v7809_v28, %v17870_v20  ;;  %v15455_v30 = vld [vmem:[#allocation8 + $0xc84] ss:$28 sps:$4 sm:$0xff]   ;;  %v15510_v28 = vld [vmem:[#allocation8 + $0xe0c] ss:$28 sps:$4 sm:$0xff]  }
 0x4e5   :  { %v14293_v22 = vpop.f32.mrb[53].mxu0  ;;  %7670 = vmatprep.subr.bf16.mxu0 %v19189_v1  ;;  %v18125_v20 = vrot.slane %v13821_v58, %v16853_v57  ;;  %v15516_v58 = vld [vmem:[#allocation8 + $0xe44] ss:$28 sps:$4 sm:$0xff]  }
 0x4e6   :  { %v18093_v26 = vadd.f32 %v14293_v22, %v14292_v56  ;;  %v14295_v33 = vpop.f32.mrb[54].mxu0  ;;  %v15453_v56 = vld [vmem:[#allocation8 + $0xc80] ss:$28 sps:$4 sm:$0xff]  }
 0x4e7   :  { %7516 = vmatpush1.bf16.msra.mxu1 %v15416_v3  ;;  %v14296_v10 = vpop.f32.mrb[55].mxu0  ;;  %v13819_v3 = vcombine.low %v7773_v5, %v17859_v59  ;;  %v15461_v59 = vld [vmem:[#allocation8 + $0xcbc] ss:$28 sps:$4 sm:$0xff]  }
 0x4e8   :  { %7671 = vmatpush1.bf16.msra.mxu0 %v15419_v18  ;;  %v18095_v29 = vadd.f32 %v14296_v10, %v14295_v33  ;;  %7517 = vmatprep.subr.bf16.mxu1 %v15422_v45  ;;  %v18128_v18 = vrot.slane %v13823_v47, %v16853_v57  ;;  %v15456_v33 = vld [vmem:[#allocation8 + $0x320] ss:$28 sps:$4 sm:$0xff]   ;;  %v15459_v10 = vld [vmem:[#allocation8 + $0xcb8] ss:$28 sps:$4 sm:$0xff]   ;;  %v15511_v47 = vld [vmem:[#allocation8 + $0x4a8] ss:$28 sps:$4 sm:$0xff]  }
 0x4e9   :  { %7672 = vmatprep.subr.bf16.mxu0 %v19189_v1  ;;  %v18131_v45 = vrot.slane %v13819_v3, %v16853_v57  ;;  %v15517_v3 = vld [vmem:[#allocation8 + $0x4e0] ss:$28 sps:$4 sm:$0xff]  }
 0x4ea   :  { %v7952_v22 = vcombine.high %v18128_v18, %v18119_v42 }
 0x4eb   :  { %7518 = vmatpush1.bf16.msra.mxu1 %v15420_v16  ;;  %v7916_v16 = vcombine.high %v18131_v45, %v18125_v20 }
 0x4ec   :  { %7673 = vmatpush1.bf16.msra.mxu0 %v15423_v49  ;;  %v14298_v11 = vpop.f32.mrb[56].mxu0  ;;  %7519 = vmatprep.subr.bf16.mxu1 %v15426_v9  ;;  %v15477_v49 = vld [vmem:[#allocation8 + $0x35c] ss:$28 sps:$4 sm:$0xff]   ;;  %v15480_v9 = vld [vmem:[#allocation8 + $0xcf4] ss:$28 sps:$4 sm:$0xff]  }
 0x4ed   :  { %v14299_v55 = vpop.f32.mrb[57].mxu0  ;;  %7674 = vmatprep.subr.bf16.mxu0 %v19189_v1 }
 0x4ee   :  { %v18099_v50 = vadd.f32 %v14299_v55, %v14298_v11  ;;  %v14301_v35 = vpop.f32.mrb[58].mxu0  ;;  %v15475_v11 = vld [vmem:[#allocation8 + $0x358] ss:$28 sps:$4 sm:$0xff]   ;;  %v15486_v55 = vld [vmem:[#allocation8 + $0xd2c] ss:$28 sps:$4 sm:$0xff]  }
 0x4ef   :  { %7520 = vmatpush1.bf16.msra.mxu1 %v15424_v4  ;;  %v14302_v17 = vpop.f32.mrb[59].mxu0  ;;  %v18137_v4 = vpack.c.bf16 %v7952_v22, %v7916_v16  ;;  %v15531_v22 = vld [vmem:[#allocation8 + $0x554] ss:$28 sps:$4 sm:$0xff]   ;;  %v15532_v16 = vld [vmem:[#allocation8 + $0xee8] ss:$28 sps:$4 sm:$0xff]  }
 0x4f0   :  { %7675 = vmatpush1.bf16.msra.mxu0 %v15427_v12  ;;  %v18101_v19 = vadd.f32 %v14302_v17, %v14301_v35  ;;  %7521 = vmatprep.subr.bf16.mxu1 %v15430_v0  ;;  %v15478_v12 = vld [vmem:[#allocation8 + $0xcf0] ss:$28 sps:$4 sm:$0xff]   ;;  %v15484_v17 = vld [vmem:[#allocation8 + $0xd28] ss:$28 sps:$4 sm:$0xff]  }
 0x4f1   :  { %7676 = vmatprep.subr.bf16.mxu0 %v19189_v1  ;;  %v15483_v0 = vld [vmem:[#allocation8 + $0x394] ss:$28 sps:$4 sm:$0xff]  }
 0x4f2   :  { %v15481_v35 = vld [vmem:[#allocation8 + $0x390] ss:$28 sps:$4 sm:$0xff]  }
 0x4f3   :  { %7522 = vmatpush1.bf16.msra.mxu1 %v15428_v21  ;;  %v15489_v21 = vld [vmem:[#allocation8 + $0x3cc] ss:$28 sps:$4 sm:$0xff]  }
 0x4f4   :  { %7677 = vmatpush1.bf16.msra.mxu0 %v15431_v52  ;;  %7523 = vmatprep.subr.bf16.mxu1 %v15434_v60  ;;  %v15492_v52 = vld [vmem:[#allocation8 + $0xd64] ss:$28 sps:$4 sm:$0xff]  }
 0x4f5   :  { %7678 = vmatprep.subr.bf16.mxu0 %v19189_v1  ;;  %v15487_v60 = vld [vmem:[#allocation8 + $0x3c8] ss:$28 sps:$4 sm:$0xff]  }
 0x4f7   :  { %7524 = vmatpush1.bf16.msra.mxu1 %v15432_v6  ;;  %v15490_v6 = vld [vmem:[#allocation8 + $0xd60] ss:$28 sps:$4 sm:$0xff]  }
 0x4f8   :  { %7679 = vmatpush1.bf16.msra.mxu0 %v15435_v54  ;;  %7525 = vmatprep.subr.bf16.mxu1 %v15438_v53  ;;  %v15495_v54 = vld [vmem:[#allocation8 + $0x404] ss:$28 sps:$4 sm:$0xff]  }
 0x4f9   :  { %7680 = vmatprep.subr.bf16.mxu0 %v19189_v1 }
 0x4fb   :  { %7526 = vmatpush1.bf16.msra.mxu1 %v15436_v38 }
 0x4fc   :  { %7681 = vmatpush1.bf16.msra.mxu0 %v15439_v44  ;;  %7527 = vmatprep.subr.bf16.mxu1 %v15442_v32  ;;  %v15493_v32 = vld [vmem:[#allocation8 + $0x400] ss:$28 sps:$4 sm:$0xff]  }
 0x4fd   :  { %7682 = vmatprep.subr.bf16.mxu0 %v19189_v1 }
 0x4ff   :  { %7528 = vmatpush1.bf16.msra.mxu1 %v15440_v24  ;;  %v15504_v24 = vld [vmem:[#allocation8 + $0xdd4] ss:$28 sps:$4 sm:$0xff]  }
 0x500   :  { %7683 = vmatpush1.bf16.msra.mxu0 %v15443_v15  ;;  %7529 = vmatprep.subr.bf16.mxu1 %v15446_v43  ;;  %v15502_v15 = vld [vmem:[#allocation8 + $0xdd0] ss:$28 sps:$4 sm:$0xff]  }
 0x501   :  { %9378 = vmatprep.subr.bf16.mxu0 %v15449_v40  ;;  %v15507_v43 = vld [vmem:[#allocation8 + $0x474] ss:$28 sps:$4 sm:$0xff]  }
 0x503   :  { %7693 = vmatmul.mubr.bf16.vlgmr.msra.gmra.mrb[76].mxu0 %v18066_v61  ;;  %7530 = vmatpush1.bf16.msra.mxu1 %v15444_v27  ;;  %v15508_v27 = vld [vmem:[#allocation8 + $0xe08] ss:$28 sps:$4 sm:$0xff]  }
 0x504   :  { %13818 = vmatprep.mubr.msk.bf16.mxu0 %vm142_vm2, %v18068_v34  ;;  %9379 = vmatpush1.bf16.msra.mxu0 %v15447_v2  ;;  %v15513_v2 = vld [vmem:[#allocation8 + $0x4ac] ss:$28 sps:$4 sm:$0xff]  }
 0x505   :  { %7531 = vmatprep.subr.bf16.mxu1 %v15452_v13  ;;  %9380 = vmatprep.subr.bf16.mxu0 %v15455_v30  ;;  %v15519_v13 = vld [vmem:[#allocation8 + $0x4e4] ss:$28 sps:$4 sm:$0xff]   ;;  %v15522_v30 = vld [vmem:[#allocation8 + $0xe7c] ss:$28 sps:$4 sm:$0xff]  }
 0x507   :  { %7532 = vmatpush1.bf16.msra.mxu1 %v15450_v37  ;;  %v15525_v37 = vld [vmem:[#allocation8 + $0x51c] ss:$28 sps:$4 sm:$0xff]  }
 0x508   :  { %9381 = vmatpush1.bf16.msra.mxu0 %v15453_v56  ;;  %7533 = vmatprep.subr.bf16.mxu1 %v15458_v8  ;;  %v15528_v56 = vld [vmem:[#allocation8 + $0xeb4] ss:$28 sps:$4 sm:$0xff]  }
 0x509   :  { %9382 = vmatprep.subr.bf16.mxu0 %v15461_v59  ;;  %v15523_v8 = vld [vmem:[#allocation8 + $0x518] ss:$28 sps:$4 sm:$0xff]   ;;  %v15526_v59 = vld [vmem:[#allocation8 + $0xeb0] ss:$28 sps:$4 sm:$0xff]  }
 0x50b   :  { %7701 = vmatmul.mubr.bf16.gmra.mrb[80].mxu0 %v18073_v62  ;;  %7534 = vmatpush1.bf16.msra.mxu1 %v15456_v33  ;;  %v15534_v33 = vld [vmem:[#allocation8 + $0xeec] ss:$28 sps:$4 sm:$0xff]  }
 0x50c   :  { %9383 = vmatpush1.bf16.msra.mxu0 %v15459_v10  ;;  %9410 = vmatprep.mubr.bf16.mxu0 %v18137_v4  ;;  %v15529_v10 = vld [vmem:[#allocation8 + $0x550] ss:$28 sps:$4 sm:$0xff]  }
 0x50d   :  { %7535 = vmatprep.subr.bf16.mxu1 %v15477_v49  ;;  %9384 = vmatprep.subr.bf16.mxu0 %v15480_v9  ;;  %v15537_v49 = vld [vmem:[#allocation8 + $0x58c] ss:$28 sps:$4 sm:$0xff]   ;;  %v15540_v9 = vld [vmem:[#allocation8 + $0xf24] ss:$28 sps:$4 sm:$0xff]  }
 0x50f   :  { %7536 = vmatpush1.bf16.msra.mxu1 %v15475_v11  ;;  %v15560_v11 = vld [vmem:[#allocation2 + $0x60] ss:$8 sps:$4 sm:$0xff]  }
 0x510   :  { %9385 = vmatpush1.bf16.msra.mxu0 %v15478_v12  ;;  %7558 = vmatprep.subr.bf16.mxu1 %v15483_v0  ;;  %v15562_v12 = vld [vmem:[#allocation2 + $0x64] ss:$8 sps:$4 sm:$0xff]   ;;  %v15535_v0 = vld [vmem:[#allocation8 + $0x588] ss:$28 sps:$4 sm:$0xff]  }
 0x511   :  { %9386 = vmatprep.subr.bf16.mxu0 %v15486_v55  ;;  %v15538_v55 = vld [vmem:[#allocation8 + $0xf20] ss:$28 sps:$4 sm:$0xff]  }
 0x512   :  { %7538 = vmatmul.mubr.bf16.vlgmr.msra.gmra.mrb[52].mxu1 %v18016_v14 }
 0x513   :  { %7547 = vmatprep.mubr.bf16.mxu1 %v18018_v25  ;;  %7559 = vmatpush1.bf16.msra.mxu1 %v15481_v35  ;;  %v15543_v35 = vld [vmem:[#allocation8 + $0x5c4] ss:$28 sps:$4 sm:$0xff]  }
 0x514   :  { %9387 = vmatpush1.bf16.msra.mxu0 %v15484_v17  ;;  %7560 = vmatprep.subr.bf16.mxu1 %v15489_v21  ;;  %v15559_v17 = vld [vmem:[#allocation2 + $0x44] ss:$8 sps:$4 sm:$0xff]   ;;  %v15546_v21 = vld [vmem:[#allocation8 + $0xf5c] ss:$28 sps:$4 sm:$0xff]  }
 0x515   :  { %v6264_v53 = vpop.f32.mrb[60].mxu0  ;;  %9388 = vmatprep.subr.bf16.mxu0 %v15492_v52  ;;  %v7857_v52 = vrot.slane %v15560_v11, %v16853_v57  ;;  %v15604_v11 = vld [vmem:[#allocation8 + $0xdcc] ss:$28 sps:$4 sm:$0xff]  }
 0x516   :  { %v18144_v63 = vadd.f32 %v18093_v26, %v6264_v53  ;;  %v6266_v38 = vpop.f32.mrb[61].mxu0  ;;  %v15499_v26 = vld [vmem:[#allocation8 + $0x438] ss:$28 sps:$4 sm:$0xff]  }
 0x517   :  { %v6267_v44 = vpop.f32.mrb[62].mxu0  ;;  %7561 = vmatpush1.bf16.msra.mxu1 %v15487_v60  ;;  %v7864_v60 = vrot.slane %v15562_v12, %v16853_v57  ;;  %v15549_v53 = vld [vmem:[#allocation8 + $0x5fc] ss:$28 sps:$4 sm:$0xff]   ;;  %v15552_v38 = vld [vmem:[#allocation8 + $0xf94] ss:$28 sps:$4 sm:$0xff]  }
 0x518   :  { %v18147_v14 = vadd.f32 %v18095_v29, %v6267_v44  ;;  %9389 = vmatpush1.bf16.msra.mxu0 %v15490_v6  ;;  %v6269_v25 = vpop.f32.mrb[63].mxu0  ;;  %7562 = vmatprep.subr.bf16.mxu1 %v15495_v54  ;;  %v15541_v6 = vld [vmem:[#allocation8 + $0x5c0] ss:$28 sps:$4 sm:$0xff]   ;;  %v15544_v54 = vld [vmem:[#allocation8 + $0xf58] ss:$28 sps:$4 sm:$0xff]   ;;  %v7979_v44 = vrot.slane %v7857_v52, %v16853_v57 }
 0x519   :  { %9390 = vmatprep.subr.bf16.mxu0 %v15498_v39  ;;  %v7829_v39 = vrot.slane %v15559_v17, %v16853_v57  ;;  %v15547_v25 = vld [vmem:[#allocation8 + $0x5f8] ss:$28 sps:$4 sm:$0xff]   ;;  %v15613_v17 = vld [vmem:[#allocation8 + $0x118c] ss:$28 sps:$4 sm:$0xff]  }
 0x51a   :  { %7548 = vmatmul.mubr.bf16.gmra.mrb[56].mxu1 %v18038_v41  ;;  %v15607_v12 = vld [vmem:[#allocation8 + $0x1154] ss:$28 sps:$4 sm:$0xff]   ;;  %v15611_v52 = vld [vmem:[#allocation8 + $0x1188] ss:$28 sps:$4 sm:$0xff]  }
 0x51b   :  { %7563 = vmatpush1.bf16.msra.mxu1 %v15493_v32  ;;  %13815 = vmatprep.mubr.msk.bf16.mxu1 %vm142_vm2, %v18040_v31  ;;  %v7999_v32 = vrot.slane %v7864_v60, %v16853_v57  ;;  %v15616_v60 = vld [vmem:[#allocation8 + $0xe3c] ss:$28 sps:$4 sm:$0xff]  }
 0x51c   :  { %9391 = vmatpush1.bf16.msra.mxu0 %v15496_v23  ;;  %7564 = vmatprep.subr.bf16.mxu1 %v15501_v46  ;;  %v15550_v23 = vld [vmem:[#allocation8 + $0xf90] ss:$28 sps:$4 sm:$0xff]   ;;  %v15555_v46 = vld [vmem:[#allocation8 + $0xc44] ss:$28 sps:$4 sm:$0xff]  }
 0x51d   :  { %v6272_v29 = vpop.f32.mrb[64].mxu0  ;;  %9392 = vmatprep.subr.bf16.mxu0 %v15504_v24  ;;  %v7965_v24 = vrot.slane %v7829_v39, %v16853_v57  ;;  %v15614_v39 = vld [vmem:[#allocation8 + $0xe38] ss:$28 sps:$4 sm:$0xff]  }
 0x51e   :  { %v18153_v40 = vadd.f32 %v18099_v50, %v6272_v29  ;;  %v6274_v5 = vpop.f32.mrb[65].mxu0  ;;  %v15514_v50 = vld [vmem:[#allocation8 + $0xe40] ss:$28 sps:$4 sm:$0xff]   ;;  %v8007_v29 = vcombine.high %v7999_v32, %v7999_v32 }
 0x51f   :  { %v6275_v48 = vpop.f32.mrb[66].mxu0  ;;  %7565 = vmatpush1.bf16.msra.mxu1 %v15499_v26  ;;  %v7951_v26 = vcombine.low %v18128_v18, %v18119_v42  ;;  %v15553_v5 = vld [vmem:[#allocation8 + $0xc40] ss:$28 sps:$4 sm:$0xff]  }
 0x520   :  { %v18156_v41 = vadd.f32 %v18101_v19, %v6275_v48  ;;  %9393 = vmatpush1.bf16.msra.mxu0 %v15502_v15  ;;  %v6277_v31 = vpop.f32.mrb[67].mxu0  ;;  %7566 = vmatprep.subr.bf16.mxu1 %v15507_v43  ;;  %v15520_v19 = vld [vmem:[#allocation8 + $0xe78] ss:$28 sps:$4 sm:$0xff]   ;;  %v15558_v15 = vld [vmem:[#allocation8 + $0xfcc] ss:$28 sps:$4 sm:$0xff]   ;;  %v7988_v43 = vcombine.high %v7965_v24, %v7979_v44 }
 0x521   :  { %9394 = vmatprep.subr.bf16.mxu0 %v15510_v28  ;;  %v7915_v28 = vcombine.low %v18131_v45, %v18125_v20  ;;  %v15565_v31 = vld [vmem:[#allocation8 + $0xc7c] ss:$28 sps:$4 sm:$0xff]   ;;  %v15568_v42 = vld [vmem:[#allocation8 + $0x1004] ss:$28 sps:$4 sm:$0xff]   ;;  %v15571_v45 = vld [vmem:[#allocation8 + $0xcb4] ss:$28 sps:$4 sm:$0xff]  }
 0x522   :  { %v15563_v20 = vld [vmem:[#allocation8 + $0xc78] ss:$28 sps:$4 sm:$0xff]   ;;  %v15566_v18 = vld [vmem:[#allocation8 + $0x1000] ss:$28 sps:$4 sm:$0xff]  }
 0x523   :  { %7567 = vmatpush1.bf16.msra.mxu1 %v15505_v36  ;;  %v18168_v48 = vpack.c.bf16 %v7951_v26, %v7915_v28  ;;  %v15556_v36 = vld [vmem:[#allocation8 + $0xfc8] ss:$28 sps:$4 sm:$0xff]   ;;  %v15623_v26 = vld [vmem:[#allocation8 + $0x11f8] ss:$28 sps:$4 sm:$0xff]  }
 0x524   :  { %9395 = vmatpush1.bf16.msra.mxu0 %v15508_v27  ;;  %7568 = vmatprep.subr.bf16.mxu1 %v15513_v2  ;;  %v18171_v27 = vpack.c.bf16 %v8007_v29, %v7988_v43  ;;  %v7987_v2 = vcombine.low %v7965_v24, %v7979_v44  ;;  %v15622_v44 = vld [vmem:[#allocation8 + $0xe74] ss:$28 sps:$4 sm:$0xff]  }
 0x525   :  { %9396 = vmatprep.subr.bf16.mxu0 %v15516_v58  ;;  %v15574_v58 = vld [vmem:[#allocation8 + $0x103c] ss:$28 sps:$4 sm:$0xff]   ;;  %v15620_v24 = vld [vmem:[#allocation8 + $0xe70] ss:$28 sps:$4 sm:$0xff]  }
 0x526   :  { %v15631_v29 = vld [vmem:[#allocation8 + $0x1234] ss:$28 sps:$4 sm:$0xff]  }
 0x527   :  { %7569 = vmatpush1.bf16.msra.mxu1 %v15511_v47  ;;  %v18177_v47 = vpack.c.bf16 %v7999_v32, %v7987_v2  ;;  %v15636_v32 = vld [vmem:[#allocation2 + $0x54] ss:$8 sps:$4 sm:$0xff]  }
 0x528   :  { %9397 = vmatpush1.bf16.msra.mxu0 %v15514_v50  ;;  %7570 = vmatprep.subr.bf16.mxu1 %v15519_v13  ;;  %v15572_v50 = vld [vmem:[#allocation8 + $0x1038] ss:$28 sps:$4 sm:$0xff]   ;;  %v15580_v13 = vld [vmem:[#allocation8 + $0xcec] ss:$28 sps:$4 sm:$0xff]   ;;  %v7843_v43 = vrot.slane %v15636_v32, %v16853_v57  ;;  %v15676_v32 = vld [vmem:[#allocation8 + $0x10a0] ss:$28 sps:$4 sm:$0xff]  }
 0x529   :  { %9398 = vmatprep.subr.bf16.mxu0 %v15522_v30  ;;  %v15578_v30 = vld [vmem:[#allocation8 + $0xce8] ss:$28 sps:$4 sm:$0xff]  }
 0x52b   :  { %7571 = vmatpush1.bf16.msra.mxu1 %v15517_v3  ;;  %v15581_v3 = vld [vmem:[#allocation8 + $0x1070] ss:$28 sps:$4 sm:$0xff]  }
 0x52c   :  { %9399 = vmatpush1.bf16.msra.mxu0 %v15520_v19  ;;  %7572 = vmatprep.subr.bf16.mxu1 %v15525_v37  ;;  %v15586_v19 = vld [vmem:[#allocation8 + $0xd24] ss:$28 sps:$4 sm:$0xff]   ;;  %v15589_v37 = vld [vmem:[#allocation8 + $0x10ac] ss:$28 sps:$4 sm:$0xff]  }
 0x52d   :  { %9400 = vmatprep.subr.bf16.mxu0 %v15528_v56  ;;  %v15584_v56 = vld [vmem:[#allocation8 + $0xd20] ss:$28 sps:$4 sm:$0xff]  }
 0x52f   :  { %7573 = vmatpush1.bf16.msra.mxu1 %v15523_v8  ;;  %v15592_v8 = vld [vmem:[#allocation8 + $0xd5c] ss:$28 sps:$4 sm:$0xff]  }
 0x530   :  { %9401 = vmatpush1.bf16.msra.mxu0 %v15526_v59  ;;  %7574 = vmatprep.subr.bf16.mxu1 %v15531_v22  ;;  %v15595_v59 = vld [vmem:[#allocation8 + $0x10e4] ss:$28 sps:$4 sm:$0xff]   ;;  %v15590_v22 = vld [vmem:[#allocation8 + $0xd58] ss:$28 sps:$4 sm:$0xff]  }
 0x531   :  { %9402 = vmatprep.subr.bf16.mxu0 %v15534_v33  ;;  %v15593_v33 = vld [vmem:[#allocation8 + $0x10e0] ss:$28 sps:$4 sm:$0xff]  }
 0x533   :  { %7575 = vmatpush1.bf16.msra.mxu1 %v15529_v10  ;;  %v15598_v10 = vld [vmem:[#allocation8 + $0xd94] ss:$28 sps:$4 sm:$0xff]  }
 0x534   :  { %9403 = vmatpush1.bf16.msra.mxu0 %v15532_v16  ;;  %7576 = vmatprep.subr.bf16.mxu1 %v15537_v49  ;;  %v15601_v16 = vld [vmem:[#allocation8 + $0x111c] ss:$28 sps:$4 sm:$0xff]   ;;  %v15596_v49 = vld [vmem:[#allocation8 + $0xd90] ss:$28 sps:$4 sm:$0xff]  }
 0x535   :  { %9404 = vmatprep.subr.bf16.mxu0 %v15540_v9  ;;  %v15599_v9 = vld [vmem:[#allocation8 + $0x1118] ss:$28 sps:$4 sm:$0xff]  }
 0x537   :  { %7577 = vmatpush1.bf16.msra.mxu1 %v15535_v0  ;;  %v15602_v0 = vld [vmem:[#allocation8 + $0xdc8] ss:$28 sps:$4 sm:$0xff]  }
 0x538   :  { %9405 = vmatpush1.bf16.msra.mxu0 %v15538_v55  ;;  %7578 = vmatprep.subr.bf16.mxu1 %v15543_v35  ;;  %v15605_v55 = vld [vmem:[#allocation8 + $0x1150] ss:$28 sps:$4 sm:$0xff]   ;;  %v15610_v35 = vld [vmem:[#allocation8 + $0xe04] ss:$28 sps:$4 sm:$0xff]  }
 0x539   :  { %9406 = vmatprep.subr.bf16.mxu0 %v15546_v21  ;;  %v15608_v21 = vld [vmem:[#allocation8 + $0xe00] ss:$28 sps:$4 sm:$0xff]  }
 0x53b   :  { %7579 = vmatpush1.bf16.msra.mxu1 %v15541_v6  ;;  %v15619_v6 = vld [vmem:[#allocation8 + $0x11c4] ss:$28 sps:$4 sm:$0xff]  }
 0x53c   :  { %9407 = vmatpush1.bf16.msra.mxu0 %v15544_v54  ;;  %7580 = vmatprep.subr.bf16.mxu1 %v15549_v53  ;;  %v15637_v54 = vld [vmem:[#allocation2 + $0x70] ss:$8 sps:$4 sm:$0xff]   ;;  %v15639_v53 = vld [vmem:[#allocation2 + $0x74] ss:$8 sps:$4 sm:$0xff]  }
 0x53d   :  { %9408 = vmatprep.subr.bf16.mxu0 %v15552_v38  ;;  %v15617_v38 = vld [vmem:[#allocation8 + $0x11c0] ss:$28 sps:$4 sm:$0xff]  }
 0x53f   :  { %7581 = vmatpush1.bf16.msra.mxu1 %v15547_v25  ;;  %v15625_v25 = vld [vmem:[#allocation8 + $0x11fc] ss:$28 sps:$4 sm:$0xff]  }
 0x540   :  { %9409 = vmatpush1.bf16.msra.mxu0 %v15550_v23  ;;  %9272 = vmatprep.subr.bf16.mxu1 %v15555_v46  ;;  %v7871_v23 = vrot.slane %v15637_v54, %v16853_v57  ;;  %v7878_v46 = vrot.slane %v15639_v53, %v16853_v57  ;;  %v15673_v54 = vld [vmem:[#allocation8 + $0x106c] ss:$28 sps:$4 sm:$0xff]   ;;  %v15674_v53 = vld [vmem:[#allocation8 + $0xfa0] ss:$28 sps:$4 sm:$0xff]  }
 0x541   :  { %9431 = vmatprep.subr.bf16.mxu0 %v15558_v15  ;;  %v15628_v15 = vld [vmem:[#allocation8 + $0xeac] ss:$28 sps:$4 sm:$0xff]  }
 0x542   :  { %7591 = vmatmul.mubr.bf16.vlgmr.msra.gmra.mrb[52].mxu1 %v18066_v61  ;;  %v15569_v61 = vld [vmem:[#allocation8 + $0xcb0] ss:$28 sps:$4 sm:$0xff]   ;;  %v7986_v28 = vrot.slane %v7871_v23, %v16853_v57  ;;  %v15682_v23 = vld [vmem:[#allocation8 + $0x10dc] ss:$28 sps:$4 sm:$0xff]  }
 0x543   :  { %9411 = vmatmul.mubr.bf16.vlgmr.msra.gmra.mrb[44].mxu0 %v18168_v48  ;;  %13816 = vmatprep.mubr.msk.bf16.mxu1 %vm142_vm2, %v18068_v34  ;;  %v15583_v34 = vld [vmem:[#allocation8 + $0x1074] ss:$28 sps:$4 sm:$0xff]  }
 0x544   :  { %9273 = vmatpush1.bf16.msra.mxu1 %v15553_v5  ;;  %9420 = vmatprep.mubr.bf16.mxu0 %v18171_v27  ;;  %v8006_v5 = vrot.slane %v7878_v46, %v16853_v57  ;;  %v15680_v46 = vld [vmem:[#allocation8 + $0x10d8] ss:$28 sps:$4 sm:$0xff]  }
 0x545   :  { %9432 = vmatpush1.bf16.msra.mxu0 %v15556_v36  ;;  %9274 = vmatprep.subr.bf16.mxu1 %v15565_v31  ;;  %v15626_v36 = vld [vmem:[#allocation8 + $0xea8] ss:$28 sps:$4 sm:$0xff]   ;;  %v15629_v31 = vld [vmem:[#allocation8 + $0x1230] ss:$28 sps:$4 sm:$0xff]  }
 0x546   :  { %9433 = vmatprep.subr.bf16.mxu0 %v15568_v42  ;;  %v15634_v42 = vld [vmem:[#allocation8 + $0xee4] ss:$28 sps:$4 sm:$0xff]   ;;  %v8008_v2 = vcombine.high %v8006_v5, %v8006_v5 }
 0x548   :  { %9275 = vmatpush1.bf16.msra.mxu1 %v15563_v20  ;;  %v7972_v20 = vrot.slane %v7843_v43, %v16853_v57  ;;  %v15687_v43 = vld [vmem:[#allocation8 + $0x1048] ss:$28 sps:$4 sm:$0xff]  }
 0x549   :  { %9434 = vmatpush1.bf16.msra.mxu0 %v15566_v18  ;;  %9276 = vmatprep.subr.bf16.mxu1 %v15571_v45  ;;  %v15635_v18 = vld [vmem:[#allocation8 + $0xe18] ss:$28 sps:$4 sm:$0xff]  }
 0x54a   :  { %7601 = vmatmul.mubr.bf16.gmra.mrb[56].mxu1 %v18073_v62  ;;  %9435 = vmatprep.subr.bf16.mxu0 %v15574_v58  ;;  %v15587_v62 = vld [vmem:[#allocation8 + $0x10a8] ss:$28 sps:$4 sm:$0xff]   ;;  %v7990_v45 = vcombine.high %v7972_v20, %v7986_v28  ;;  %v15632_v58 = vld [vmem:[#allocation8 + $0xee0] ss:$28 sps:$4 sm:$0xff]  }
 0x54b   :  { %9421 = vmatmul.mubr.bf16.gmra.mrb[48].mxu0 %v18177_v47  ;;  %9304 = vmatprep.mubr.bf16.mxu1 %v18137_v4 }
 0x54c   :  { %9277 = vmatpush1.bf16.msra.mxu1 %v15569_v61  ;;  %14025 = vmatprep.mubr.msk.bf16.mxu0 %vm142_vm2, %v17909_v51  ;;  %v15640_v61 = vld [vmem:[#allocation8 + $0xc58] ss:$28 sps:$4 sm:$0xff]  }
 0x54d   :  { %9436 = vmatpush1.bf16.msra.mxu0 %v15572_v50  ;;  %9278 = vmatprep.subr.bf16.mxu1 %v15580_v13  ;;  %v15643_v50 = vld [vmem:[#allocation8 + $0xf1c] ss:$28 sps:$4 sm:$0xff]   ;;  %v15644_v13 = vld [vmem:[#allocation8 + $0xe50] ss:$28 sps:$4 sm:$0xff]  }
 0x54e   :  { %9437 = vmatprep.subr.bf16.mxu0 %v15583_v34  ;;  %v18190_v34 = vpack.c.bf16 %v8008_v2, %v7990_v45  ;;  %v15699_v2 = vld [vmem:[#allocation8 + $0x10f0] ss:$28 sps:$4 sm:$0xff]  }
 0x550   :  { %9279 = vmatpush1.bf16.msra.mxu1 %v15578_v30  ;;  %v15641_v30 = vld [vmem:[#allocation8 + $0xf18] ss:$28 sps:$4 sm:$0xff]  }
 0x551   :  { %9438 = vmatpush1.bf16.msra.mxu0 %v15581_v3  ;;  %9280 = vmatprep.subr.bf16.mxu1 %v15586_v19  ;;  %v15645_v3 = vld [vmem:[#allocation8 + $0xc90] ss:$28 sps:$4 sm:$0xff]  }
 0x552   :  { %9439 = vmatprep.subr.bf16.mxu0 %v15589_v37  ;;  %v15648_v19 = vld [vmem:[#allocation8 + $0xf54] ss:$28 sps:$4 sm:$0xff]   ;;  %v7989_v37 = vcombine.low %v7972_v20, %v7986_v28  ;;  %v15688_v28 = vld [vmem:[#allocation8 + $0x1148] ss:$28 sps:$4 sm:$0xff]   ;;  %v15698_v20 = vld [vmem:[#allocation8 + $0x11bc] ss:$28 sps:$4 sm:$0xff]  }
 0x554   :  { %9281 = vmatpush1.bf16.msra.mxu1 %v15584_v56  ;;  %v15649_v56 = vld [vmem:[#allocation8 + $0xe88] ss:$28 sps:$4 sm:$0xff]  }
 0x555   :  { %9440 = vmatpush1.bf16.msra.mxu0 %v15587_v62  ;;  %9282 = vmatprep.subr.bf16.mxu1 %v15592_v8  ;;  %v15646_v62 = vld [vmem:[#allocation8 + $0xf50] ss:$28 sps:$4 sm:$0xff]   ;;  %v15650_v8 = vld [vmem:[#allocation8 + $0xcc8] ss:$28 sps:$4 sm:$0xff]  }
 0x556   :  { %9441 = vmatprep.subr.bf16.mxu0 %v15595_v59  ;;  %v18195_v59 = vpack.c.bf16 %v8006_v5, %v7989_v37  ;;  %v15691_v5 = vld [vmem:[#allocation8 + $0x1080] ss:$28 sps:$4 sm:$0xff]   ;;  %v15703_v37 = vld [vmem:[#allocation8 + $0x1128] ss:$28 sps:$4 sm:$0xff]  }
 0x558   :  { %9283 = vmatpush1.bf16.msra.mxu1 %v15590_v22  ;;  %v15653_v22 = vld [vmem:[#allocation8 + $0xf8c] ss:$28 sps:$4 sm:$0xff]  }
 0x559   :  { %9442 = vmatpush1.bf16.msra.mxu0 %v15593_v33  ;;  %9284 = vmatprep.subr.bf16.mxu1 %v15598_v10  ;;  %v15654_v33 = vld [vmem:[#allocation8 + $0xec0] ss:$28 sps:$4 sm:$0xff]   ;;  %v15651_v10 = vld [vmem:[#allocation8 + $0xf88] ss:$28 sps:$4 sm:$0xff]  }
 0x55a   :  { %9443 = vmatprep.subr.bf16.mxu0 %v15601_v16  ;;  %v15655_v16 = vld [vmem:[#allocation8 + $0xd00] ss:$28 sps:$4 sm:$0xff]  }
 0x55c   :  { %9285 = vmatpush1.bf16.msra.mxu1 %v15596_v49  ;;  %v15658_v49 = vld [vmem:[#allocation8 + $0xfc4] ss:$28 sps:$4 sm:$0xff]  }
 0x55d   :  { %9444 = vmatpush1.bf16.msra.mxu0 %v15599_v9  ;;  %9286 = vmatprep.subr.bf16.mxu1 %v15604_v11  ;;  %v15659_v9 = vld [vmem:[#allocation8 + $0xef8] ss:$28 sps:$4 sm:$0xff]   ;;  %v15656_v11 = vld [vmem:[#allocation8 + $0xfc0] ss:$28 sps:$4 sm:$0xff]  }
 0x55e   :  { %9445 = vmatprep.subr.bf16.mxu0 %v15607_v12  ;;  %v15660_v12 = vld [vmem:[#allocation8 + $0xd38] ss:$28 sps:$4 sm:$0xff]  }
 0x560   :  { %9287 = vmatpush1.bf16.msra.mxu1 %v15602_v0  ;;  %v15663_v0 = vld [vmem:[#allocation8 + $0xffc] ss:$28 sps:$4 sm:$0xff]  }
 0x561   :  { %9446 = vmatpush1.bf16.msra.mxu0 %v15605_v55  ;;  %9288 = vmatprep.subr.bf16.mxu1 %v15610_v35  ;;  %v15664_v55 = vld [vmem:[#allocation8 + $0xf30] ss:$28 sps:$4 sm:$0xff]   ;;  %v15661_v35 = vld [vmem:[#allocation8 + $0xff8] ss:$28 sps:$4 sm:$0xff]  }
 0x562   :  { %9447 = vmatprep.subr.bf16.mxu0 %v15613_v17  ;;  %v15665_v17 = vld [vmem:[#allocation8 + $0xd70] ss:$28 sps:$4 sm:$0xff]  }
 0x564   :  { %9289 = vmatpush1.bf16.msra.mxu1 %v15608_v21  ;;  %v15668_v21 = vld [vmem:[#allocation8 + $0x1034] ss:$28 sps:$4 sm:$0xff]  }
 0x565   :  { %9448 = vmatpush1.bf16.msra.mxu0 %v15611_v52  ;;  %9290 = vmatprep.subr.bf16.mxu1 %v15616_v60  ;;  %v15669_v52 = vld [vmem:[#allocation8 + $0xf68] ss:$28 sps:$4 sm:$0xff]   ;;  %v15666_v60 = vld [vmem:[#allocation8 + $0x1030] ss:$28 sps:$4 sm:$0xff]  }
 0x566   :  { %9449 = vmatprep.subr.bf16.mxu0 %v15619_v6  ;;  %v15670_v6 = vld [vmem:[#allocation8 + $0xda8] ss:$28 sps:$4 sm:$0xff]  }
 0x568   :  { %9291 = vmatpush1.bf16.msra.mxu1 %v15614_v39  ;;  %v15671_v39 = vld [vmem:[#allocation8 + $0x1068] ss:$28 sps:$4 sm:$0xff]  }
 0x569   :  { %9450 = vmatpush1.bf16.msra.mxu0 %v15617_v38  ;;  %9292 = vmatprep.subr.bf16.mxu1 %v15622_v44  ;;  %v15675_v38 = vld [vmem:[#allocation8 + $0xde0] ss:$28 sps:$4 sm:$0xff]  }
 0x56a   :  { %9451 = vmatprep.subr.bf16.mxu0 %v15625_v25  ;;  %v15678_v44 = vld [vmem:[#allocation8 + $0x10a4] ss:$28 sps:$4 sm:$0xff]   ;;  %v15679_v25 = vld [vmem:[#allocation8 + $0xfd8] ss:$28 sps:$4 sm:$0xff]  }
 0x56c   :  { %9293 = vmatpush1.bf16.msra.mxu1 %v15620_v24  ;;  %v15683_v24 = vld [vmem:[#allocation8 + $0x1010] ss:$28 sps:$4 sm:$0xff]  }
 0x56d   :  { %9452 = vmatpush1.bf16.msra.mxu0 %v15623_v26  ;;  %9294 = vmatprep.subr.bf16.mxu1 %v15628_v15  ;;  %v15686_v26 = vld [vmem:[#allocation8 + $0x1114] ss:$28 sps:$4 sm:$0xff]  }
 0x56e   :  { %9453 = vmatprep.subr.bf16.mxu0 %v15631_v29  ;;  %v15684_v15 = vld [vmem:[#allocation8 + $0x1110] ss:$28 sps:$4 sm:$0xff]  }
 0x56f   :  { %v15690_v29 = vld [vmem:[#allocation8 + $0x114c] ss:$28 sps:$4 sm:$0xff]  }
 0x570   :  { %9295 = vmatpush1.bf16.msra.mxu1 %v15626_v36  ;;  %v15694_v36 = vld [vmem:[#allocation8 + $0x1184] ss:$28 sps:$4 sm:$0xff]  }
 0x571   :  { %9454 = vmatpush1.bf16.msra.mxu0 %v15629_v31  ;;  %9296 = vmatprep.subr.bf16.mxu1 %v15634_v42  ;;  %v15692_v31 = vld [vmem:[#allocation8 + $0x1180] ss:$28 sps:$4 sm:$0xff]   ;;  %v15695_v42 = vld [vmem:[#allocation8 + $0x10b8] ss:$28 sps:$4 sm:$0xff]  }
 0x572   :  { %14332 = vmatprep.subr.bf16.mxu0 %v15635_v18  ;;  %v15696_v18 = vld [vmem:[#allocation8 + $0x11b8] ss:$28 sps:$4 sm:$0xff]  }
 0x574   :  { %9464 = vmatmul.mubr.bf16.vlgmr.msra.gmra.mrb[44].mxu0 %v17911_v7  ;;  %9297 = vmatpush1.bf16.msra.mxu1 %v15632_v58  ;;  %v15702_v58 = vld [vmem:[#allocation8 + $0x11f4] ss:$28 sps:$4 sm:$0xff]  }
 0x575   :  { %14026 = vmatprep.mubr.msk.bf16.mxu0 %vm142_vm2, %v18190_v34  ;;  %14333 = vmatpush3.bf16.msra.mxu0 %v15640_v61 }
 0x576   :  { %9298 = vmatprep.subr.bf16.mxu1 %v15643_v50  ;;  %14334 = vmatprep.subr.bf16.mxu0 %v15644_v13 }
 0x578   :  { %9299 = vmatpush1.bf16.msra.mxu1 %v15641_v30 }
 0x579   :  { %14335 = vmatpush3.bf16.msra.mxu0 %v15645_v3  ;;  %9300 = vmatprep.subr.bf16.mxu1 %v15648_v19  ;;  %v15700_v3 = vld [vmem:[#allocation8 + $0x11f0] ss:$28 sps:$4 sm:$0xff]  }
 0x57a   :  { %14336 = vmatprep.subr.bf16.mxu0 %v15649_v56  ;;  %v15706_v56 = vld [vmem:[#allocation8 + $0x122c] ss:$28 sps:$4 sm:$0xff]  }
 0x57c   :  { %9474 = vmatmul.mubr.bf16.gmra.mrb[48].mxu0 %v18195_v59  ;;  %9301 = vmatpush1.bf16.msra.mxu1 %v15646_v62 }
 0x57d   :  { %14337 = vmatpush3.bf16.msra.mxu0 %v15650_v8  ;;  %9622 = vmatprep.mubr.bf16.mxu0 %v18137_v4 }
 0x57e   :  { %9302 = vmatprep.subr.bf16.mxu1 %v15653_v22  ;;  %14338 = vmatprep.subr.bf16.mxu0 %v15654_v33  ;;  %v15704_v22 = vld [vmem:[#allocation8 + $0x1228] ss:$28 sps:$4 sm:$0xff]  }
 0x580   :  { %9303 = vmatpush1.bf16.msra.mxu1 %v15651_v10  ;;  %v15707_v10 = vld [vmem:[#allocation8 + $0x1160] ss:$28 sps:$4 sm:$0xff]  }
 0x581   :  { %14339 = vmatpush3.bf16.msra.mxu0 %v15655_v16  ;;  %9325 = vmatprep.subr.bf16.mxu1 %v15658_v49  ;;  %v15710_v16 = vld [vmem:[#allocation8 + $0xc54] ss:$28 sps:$4 sm:$0xff]  }
 0x582   :  { %14340 = vmatprep.subr.bf16.mxu0 %v15659_v9 }
 0x583   :  { %9305 = vmatmul.mubr.bf16.vlgmr.msra.gmra.mrb[44].mxu1 %v18168_v48 }
 0x584   :  { %9314 = vmatprep.mubr.bf16.mxu1 %v18171_v27  ;;  %9326 = vmatpush1.bf16.msra.mxu1 %v15656_v11 }
 0x585   :  { %14341 = vmatpush3.bf16.msra.mxu0 %v15660_v12  ;;  %9327 = vmatprep.subr.bf16.mxu1 %v15663_v0  ;;  %v15708_v12 = vld [vmem:[#allocation8 + $0xc50] ss:$28 sps:$4 sm:$0xff]  }
 0x586   :  { %14342 = vmatprep.subr.bf16.mxu0 %v15664_v55  ;;  %v15714_v55 = vld [vmem:[#allocation8 + $0xc8c] ss:$28 sps:$4 sm:$0xff]  }
 0x588   :  { %9328 = vmatpush1.bf16.msra.mxu1 %v15661_v35 }
 0x589   :  { %14343 = vmatpush3.bf16.msra.mxu0 %v15665_v17  ;;  %9329 = vmatprep.subr.bf16.mxu1 %v15668_v21  ;;  %v15712_v21 = vld [vmem:[#allocation8 + $0xc88] ss:$28 sps:$4 sm:$0xff]  }
 0x58a   :  { %14344 = vmatprep.subr.bf16.mxu0 %v15669_v52  ;;  %v15715_v52 = vld [vmem:[#allocation8 + $0x11d0] ss:$28 sps:$4 sm:$0xff]  }
 0x58b   :  { %9315 = vmatmul.mubr.bf16.gmra.mrb[48].mxu1 %v18177_v47 }
 0x58c   :  { %9330 = vmatpush1.bf16.msra.mxu1 %v15666_v60  ;;  %14023 = vmatprep.mubr.msk.bf16.mxu1 %vm142_vm2, %v17909_v51  ;;  %v15718_v60 = vld [vmem:[#allocation8 + $0xcc4] ss:$28 sps:$4 sm:$0xff]  }
 0x58d   :  { %14345 = vmatpush3.bf16.msra.mxu0 %v15670_v6  ;;  %9331 = vmatprep.subr.bf16.mxu1 %v15673_v54  ;;  %v15719_v6 = vld [vmem:[#allocation8 + $0x1208] ss:$28 sps:$4 sm:$0xff]   ;;  %v15722_v54 = vld [vmem:[#allocation8 + $0xcfc] ss:$28 sps:$4 sm:$0xff]  }
 0x58e   :  { %14346 = vmatprep.subr.bf16.mxu0 %v15674_v53  ;;  %v15723_v53 = vld [vmem:[#allocation8 + $0x1240] ss:$28 sps:$4 sm:$0xff]  }
 0x590   :  { %9332 = vmatpush1.bf16.msra.mxu1 %v15671_v39  ;;  %v15726_v39 = vld [vmem:[#allocation8 + $0xd34] ss:$28 sps:$4 sm:$0xff]  }
 0x591   :  { %14347 = vmatpush3.bf16.msra.mxu0 %v15675_v38  ;;  %9333 = vmatprep.subr.bf16.mxu1 %v15678_v44  ;;  %v15724_v38 = vld [vmem:[#allocation8 + $0xd30] ss:$28 sps:$4 sm:$0xff]  }
 0x592   :  { %9639 = vmatprep.subr.bf16.mxu0 %v19189_v1  ;;  %v15729_v44 = vld [vmem:[#allocation8 + $0xd6c] ss:$28 sps:$4 sm:$0xff]  }
 0x594   :  { %9623 = vmatmul.mubr.bf16.vlgmr.msra.gmra.mrb[84].mxu0 %v18168_v48  ;;  %9334 = vmatpush1.bf16.msra.mxu1 %v15676_v32  ;;  %v15727_v32 = vld [vmem:[#allocation8 + $0xd68] ss:$28 sps:$4 sm:$0xff]  }
 0x595   :  { %9630 = vmatprep.mubr.bf16.mxu0 %v18171_v27  ;;  %9640 = vmatpush1.bf16.msra.mxu0 %v15679_v25  ;;  %v15730_v25 = vld [vmem:[#allocation8 + $0xda0] ss:$28 sps:$4 sm:$0xff]  }
 0x596   :  { %9335 = vmatprep.subr.bf16.mxu1 %v15682_v23  ;;  %9641 = vmatprep.subr.bf16.mxu0 %v19189_v1  ;;  %v15735_v23 = vld [vmem:[#allocation8 + $0xddc] ss:$28 sps:$4 sm:$0xff]  }
 0x598   :  { %9336 = vmatpush1.bf16.msra.mxu1 %v15680_v46  ;;  %v15733_v46 = vld [vmem:[#allocation8 + $0xdd8] ss:$28 sps:$4 sm:$0xff]  }
 0x599   :  { %9642 = vmatpush1.bf16.msra.mxu0 %v15683_v24  ;;  %9337 = vmatprep.subr.bf16.mxu1 %v15686_v26  ;;  %v15738_v24 = vld [vmem:[#allocation8 + $0xe14] ss:$28 sps:$4 sm:$0xff]  }
 0x59a   :  { %9643 = vmatprep.subr.bf16.mxu0 %v19189_v1  ;;  %v15736_v26 = vld [vmem:[#allocation8 + $0xe10] ss:$28 sps:$4 sm:$0xff]  }
 0x59c   :  { %9631 = vmatmul.mubr.bf16.gmra.mrb[88].mxu0 %v18177_v47  ;;  %9338 = vmatpush1.bf16.msra.mxu1 %v15684_v15  ;;  %v15741_v15 = vld [vmem:[#allocation8 + $0xe4c] ss:$28 sps:$4 sm:$0xff]  }
 0x59d   :  { %9644 = vmatpush1.bf16.msra.mxu0 %v15687_v43  ;;  %14029 = vmatprep.mubr.msk.bf16.mxu0 %vm142_vm2, %v17909_v51  ;;  %v15739_v43 = vld [vmem:[#allocation8 + $0xe48] ss:$28 sps:$4 sm:$0xff]  }
 0x59e   :  { %9339 = vmatprep.subr.bf16.mxu1 %v15690_v29  ;;  %9645 = vmatprep.subr.bf16.mxu0 %v19189_v1  ;;  %v15744_v29 = vld [vmem:[#allocation8 + $0xe84] ss:$28 sps:$4 sm:$0xff]  }
 0x5a0   :  { %9340 = vmatpush1.bf16.msra.mxu1 %v15688_v28 }
 0x5a1   :  { %9646 = vmatpush1.bf16.msra.mxu0 %v15691_v5  ;;  %9341 = vmatprep.subr.bf16.mxu1 %v15694_v36 }
 0x5a2   :  { %9647 = vmatprep.subr.bf16.mxu0 %v19189_v1 }
 0x5a4   :  { %9342 = vmatpush1.bf16.msra.mxu1 %v15692_v31 }
 0x5a5   :  { %9648 = vmatpush1.bf16.msra.mxu0 %v15695_v42  ;;  %v14320_v45 = vpop.f32.mrb[68].mxu0  ;;  %9343 = vmatprep.subr.bf16.mxu1 %v15698_v20  ;;  %v15742_v42 = vld [vmem:[#allocation8 + $0xe80] ss:$28 sps:$4 sm:$0xff]  }
 0x5a6   :  { %v14321_v61 = vpop.f32.mrb[69].mxu0  ;;  %9649 = vmatprep.subr.bf16.mxu0 %v19189_v1 }
 0x5a7   :  { %v14322_v50 = vadd.f32 %v14321_v61, %v14320_v45  ;;  %v14323_v13 = vpop.f32.mrb[70].mxu0  ;;  %v15747_v45 = vld [vmem:[#allocation8 + $0xebc] ss:$28 sps:$4 sm:$0xff]  }
 0x5a8   :  { %9344 = vmatpush1.bf16.msra.mxu1 %v15696_v18  ;;  %v14324_v30 = vpop.f32.mrb[71].mxu0 }
 0x5a9   :  { %9650 = vmatpush1.bf16.msra.mxu0 %v15699_v2  ;;  %v14325_v19 = vadd.f32 %v14324_v30, %v14323_v13  ;;  %9345 = vmatprep.subr.bf16.mxu1 %v15702_v58  ;;  %v18216_v62 = vadd.f32 %v14322_v50, %v18144_v63  ;;  %v15745_v2 = vld [vmem:[#allocation8 + $0xeb8] ss:$28 sps:$4 sm:$0xff]  }
 0x5aa   :  { %9651 = vmatprep.subr.bf16.mxu0 %v19189_v1  ;;  %v15750_v58 = vld [vmem:[#allocation8 + $0xef4] ss:$28 sps:$4 sm:$0xff]  }
 0x5ab   :  { %v18220_v8 = vadd.f32 %v14325_v19, %v18147_v14  ;;  %v15711_v14 = vld [vmem:[#allocation8 + $0x1198] ss:$28 sps:$4 sm:$0xff]  }
 0x5ac   :  { %9346 = vmatpush1.bf16.msra.mxu1 %v15700_v3  ;;  %v15748_v3 = vld [vmem:[#allocation8 + $0xef0] ss:$28 sps:$4 sm:$0xff]  }
 0x5ad   :  { %9652 = vmatpush1.bf16.msra.mxu0 %v15703_v37  ;;  %v14326_v33 = vpop.f32.mrb[72].mxu0  ;;  %9347 = vmatprep.subr.bf16.mxu1 %v15706_v56  ;;  %v15753_v56 = vld [vmem:[#allocation8 + $0xf2c] ss:$28 sps:$4 sm:$0xff]  }
 0x5ae   :  { %v14327_v49 = vpop.f32.mrb[73].mxu0  ;;  %9653 = vmatprep.subr.bf16.mxu0 %v19189_v1 }
 0x5af   :  { %v14328_v9 = vadd.f32 %v14327_v49, %v14326_v33  ;;  %v14329_v11 = vpop.f32.mrb[74].mxu0  ;;  %v15759_v33 = vld [vmem:[#allocation8 + $0xf9c] ss:$28 sps:$4 sm:$0xff]   ;;  %v15760_v49 = vld [vmem:[#allocation8 + $0xfd0] ss:$28 sps:$4 sm:$0xff]  }
 0x5b0   :  { %9348 = vmatpush1.bf16.msra.mxu1 %v15704_v22  ;;  %v14330_v63 = vpop.f32.mrb[75].mxu0  ;;  %v15754_v22 = vld [vmem:[#allocation8 + $0xf60] ss:$28 sps:$4 sm:$0xff]  }
 0x5b1   :  { %9654 = vmatpush1.bf16.msra.mxu0 %v15707_v10  ;;  %v14331_v0 = vadd.f32 %v14330_v63, %v14329_v11  ;;  %9484 = vmatprep.subr.bf16.mxu1 %v15710_v16  ;;  %v18224_v35 = vadd.f32 %v14328_v9, %v18153_v40  ;;  %v15716_v40 = vld [vmem:[#allocation8 + $0xcc0] ss:$28 sps:$4 sm:$0xff]   ;;  %v15757_v10 = vld [vmem:[#allocation8 + $0xf98] ss:$28 sps:$4 sm:$0xff]   ;;  %v15765_v9 = vld [vmem:[#allocation8 + $0x100c] ss:$28 sps:$4 sm:$0xff]  }
 0x5b2   :  { %9655 = vmatprep.subr.bf16.mxu0 %v19189_v1  ;;  %v15762_v16 = vld [vmem:[#allocation8 + $0xfd4] ss:$28 sps:$4 sm:$0xff]   ;;  %v15763_v11 = vld [vmem:[#allocation8 + $0x1008] ss:$28 sps:$4 sm:$0xff]  }
 0x5b3   :  { %9358 = vmatmul.mubr.bf16.vlgmr.msra.gmra.mrb[44].mxu1 %v17911_v7  ;;  %v18229_v17 = vadd.f32 %v14331_v0, %v18156_v41  ;;  %v15720_v41 = vld [vmem:[#allocation8 + $0xcf8] ss:$28 sps:$4 sm:$0xff]   ;;  %v15768_v63 = vld [vmem:[#allocation8 + $0x1044] ss:$28 sps:$4 sm:$0xff]  }
 0x5b4   :  { %14024 = vmatprep.mubr.msk.bf16.mxu1 %vm142_vm2, %v18190_v34  ;;  %9485 = vmatpush1.bf16.msra.mxu1 %v15708_v12  ;;  %v15766_v12 = vld [vmem:[#allocation8 + $0x1040] ss:$28 sps:$4 sm:$0xff]  }
 0x5b5   :  { %9656 = vmatpush1.bf16.msra.mxu0 %v15711_v14  ;;  %9486 = vmatprep.subr.bf16.mxu1 %v15714_v55  ;;  %v15771_v0 = vld [vmem:[#allocation8 + $0x107c] ss:$28 sps:$4 sm:$0xff]   ;;  %v15774_v55 = vld [vmem:[#allocation8 + $0x10b4] ss:$28 sps:$4 sm:$0xff]  }
 0x5b6   :  { %9657 = vmatprep.subr.bf16.mxu0 %v19189_v1  ;;  %v15769_v14 = vld [vmem:[#allocation8 + $0x1078] ss:$28 sps:$4 sm:$0xff]  }
 0x5b8   :  { %9487 = vmatpush1.bf16.msra.mxu1 %v15712_v21  ;;  %v15778_v21 = vld [vmem:[#allocation8 + $0x1120] ss:$28 sps:$4 sm:$0xff]  }
 0x5b9   :  { %9658 = vmatpush1.bf16.msra.mxu0 %v15715_v52  ;;  %9488 = vmatprep.subr.bf16.mxu1 %v15718_v60  ;;  %v15783_v52 = vld [vmem:[#allocation8 + $0x115c] ss:$28 sps:$4 sm:$0xff]   ;;  %v15786_v60 = vld [vmem:[#allocation8 + $0x1194] ss:$28 sps:$4 sm:$0xff]  }
 0x5ba   :  { %9659 = vmatprep.subr.bf16.mxu0 %v19189_v1 }
 0x5bb   :  { %9368 = vmatmul.mubr.bf16.gmra.mrb[48].mxu1 %v18195_v59 }
 0x5bc   :  { %9489 = vmatpush1.bf16.msra.mxu1 %v15716_v40  ;;  %9516 = vmatprep.mubr.bf16.mxu1 %v18137_v4  ;;  %v15732_v4 = vld [vmem:[#allocation8 + $0xda4] ss:$28 sps:$4 sm:$0xff]   ;;  %v15789_v40 = vld [vmem:[#allocation8 + $0x11cc] ss:$28 sps:$4 sm:$0xff]  }
 0x5bd   :  { %9660 = vmatpush1.bf16.msra.mxu0 %v15719_v6  ;;  %9490 = vmatprep.subr.bf16.mxu1 %v15722_v54  ;;  %v15787_v6 = vld [vmem:[#allocation8 + $0x11c8] ss:$28 sps:$4 sm:$0xff]  }
 0x5be   :  { %9661 = vmatprep.subr.bf16.mxu0 %v19189_v1  ;;  %v15792_v54 = vld [vmem:[#allocation8 + $0x1204] ss:$28 sps:$4 sm:$0xff]  }
 0x5c0   :  { %9491 = vmatpush1.bf16.msra.mxu1 %v15720_v41  ;;  %v15790_v41 = vld [vmem:[#allocation8 + $0x1200] ss:$28 sps:$4 sm:$0xff]  }
 0x5c1   :  { %9662 = vmatpush1.bf16.msra.mxu0 %v15723_v53  ;;  %9492 = vmatprep.subr.bf16.mxu1 %v15726_v39  ;;  %v15795_v53 = vld [vmem:[#allocation8 + $0x123c] ss:$28 sps:$4 sm:$0xff]  }
 0x5c2   :  { %v15793_v39 = vld [vmem:[#allocation8 + $0x1238] ss:$28 sps:$4 sm:$0xff]  }
 0x5c4   :  { %9672 = vmatmul.mubr.bf16.vlgmr.msra.gmra.mrb[92].mxu0 %v17911_v7  ;;  %9493 = vmatpush1.bf16.msra.mxu1 %v15724_v38  ;;  %v18263_v38 = vld [vmem:[#allocation9] sm:$0xff] }
 0x5c5   :  { %14030 = vmatprep.mubr.msk.bf16.mxu0 %vm142_vm2, %v18190_v34  ;;  %9494 = vmatprep.subr.bf16.mxu1 %v15729_v44  ;;  %v19190_v44 = vld [vmem:[#allocation24_spill] sm:$0xff] }
 0x5c8   :  { %9495 = vmatpush1.bf16.msra.mxu1 %v15727_v32  ;;  %v19191_v32 = vsub.s32 3, %v19190_v44 }
 0x5c9   :  { %9496 = vmatprep.subr.bf16.mxu1 %v15732_v4 }
 0x5ca   :  { %v9733_v4 = vrot.slane %v18263_v38, %v19191_v32 }
 0x5cc   :  { %9680 = vmatmul.mubr.bf16.gmra.mrb[96].mxu0 %v18195_v59  ;;  %9497 = vmatpush1.bf16.msra.mxu1 %v15730_v25 }
 0x5cd   :  { %9498 = vmatprep.subr.bf16.mxu1 %v15735_v23 }
 0x5d0   :  { %9499 = vmatpush1.bf16.msra.mxu1 %v15733_v46 }
 0x5d1   :  { %9500 = vmatprep.subr.bf16.mxu1 %v15738_v24 }
 0x5d4   :  { %9501 = vmatpush1.bf16.msra.mxu1 %v15736_v26 }
 0x5d5   :  { %9502 = vmatprep.subr.bf16.mxu1 %v15741_v15 }
 0x5d6   :  { %v7694_v28 = vpop.f32.mrb[76].mxu0 }
 0x5d7   :  { %v18243_v5 = vadd.f32 %v7694_v28, %v18216_v62  ;;  %v7696_v36 = vpop.f32.mrb[77].mxu0  ;;  %v15751_v62 = vld [vmem:[#allocation8 + $0xf28] ss:$28 sps:$4 sm:$0xff]  }
 0x5d8   :  { %v7697_v31 = vpop.f32.mrb[78].mxu0  ;;  %9503 = vmatpush1.bf16.msra.mxu1 %v15739_v43 }
 0x5d9   :  { %v18246_v20 = vadd.f32 %v7697_v31, %v18220_v8  ;;  %v7699_v18 = vpop.f32.mrb[79].mxu0  ;;  %9504 = vmatprep.subr.bf16.mxu1 %v15744_v29  ;;  %v15756_v8 = vld [vmem:[#allocation8 + $0xf64] ss:$28 sps:$4 sm:$0xff]  }
 0x5dc   :  { %9505 = vmatpush1.bf16.msra.mxu1 %v15742_v42 }
 0x5dd   :  { %9506 = vmatprep.subr.bf16.mxu1 %v15747_v45 }
 0x5de   :  { %v7702_v61 = vpop.f32.mrb[80].mxu0 }
 0x5df   :  { %v18249_v50 = vadd.f32 %v7702_v61, %v18224_v35  ;;  %v7704_v13 = vpop.f32.mrb[81].mxu0  ;;  %v15775_v35 = vld [vmem:[#allocation8 + $0x10e8] ss:$28 sps:$4 sm:$0xff]  }
 0x5e0   :  { %v7705_v30 = vpop.f32.mrb[82].mxu0  ;;  %9507 = vmatpush1.bf16.msra.mxu1 %v15745_v2 }
 0x5e1   :  { %v18252_v19 = vadd.f32 %v7705_v30, %v18229_v17  ;;  %v7707_v37 = vpop.f32.mrb[83].mxu0  ;;  %9508 = vmatprep.subr.bf16.mxu1 %v15750_v58  ;;  %v15780_v17 = vld [vmem:[#allocation8 + $0x1124] ss:$28 sps:$4 sm:$0xff]  }
 0x5e4   :  { %9509 = vmatpush1.bf16.msra.mxu1 %v15748_v3 }
 0x5e5   :  { %9510 = vmatprep.subr.bf16.mxu1 %v15753_v56 }
 0x5e8   :  { %9511 = vmatpush1.bf16.msra.mxu1 %v15751_v62 }
 0x5e9   :  { %9512 = vmatprep.subr.bf16.mxu1 %v15756_v8 }
 0x5ec   :  { %9513 = vmatpush1.bf16.msra.mxu1 %v15754_v22 }
 0x5ed   :  { %9514 = vmatprep.subr.bf16.mxu1 %v15759_v33 }
 0x5f0   :  { %9515 = vmatpush1.bf16.msra.mxu1 %v15757_v10 }
 0x5f1   :  { %9537 = vmatprep.subr.bf16.mxu1 %v15762_v16 }
 0x5f3   :  { %9517 = vmatmul.mubr.bf16.vlgmr.msra.gmra.mrb[52].mxu1 %v18168_v48  ;;  %v15772_v48 = vld [vmem:[#allocation8 + $0x10b0] ss:$28 sps:$4 sm:$0xff]  }
 0x5f4   :  { %9526 = vmatprep.mubr.bf16.mxu1 %v18171_v27  ;;  %9538 = vmatpush1.bf16.msra.mxu1 %v15760_v49  ;;  %v15777_v27 = vld [vmem:[#allocation8 + $0x10ec] ss:$28 sps:$4 sm:$0xff]  }
 0x5f5   :  { %9539 = vmatprep.subr.bf16.mxu1 %v15765_v9 }
 0x5f8   :  { %9540 = vmatpush1.bf16.msra.mxu1 %v15763_v11 }
 0x5f9   :  { %9541 = vmatprep.subr.bf16.mxu1 %v15768_v63  ;;  %v19193_v63 = vsub.s32 0, %v19190_v44 }
 0x5fb   :  { %9527 = vmatmul.mubr.bf16.gmra.mrb[56].mxu1 %v18177_v47  ;;  %v15781_v47 = vld [vmem:[#allocation8 + $0x1158] ss:$28 sps:$4 sm:$0xff]  }
 0x5fc   :  { %9542 = vmatpush1.bf16.msra.mxu1 %v15766_v12  ;;  %14027 = vmatprep.mubr.msk.bf16.mxu1 %vm142_vm2, %v17909_v51  ;;  %v15784_v51 = vld [vmem:[#allocation8 + $0x1190] ss:$28 sps:$4 sm:$0xff]   ;;  %v18311_v12 = vrot.slane %v18263_v38, %v19193_v63 }
 0x5fd   :  { %9543 = vmatprep.subr.bf16.mxu1 %v15771_v0 }
 0x600   :  { %9544 = vmatpush1.bf16.msra.mxu1 %v15769_v14  ;;  %v19194_v14 = vsub.s32 1, %v19190_v44 }
 0x601   :  { %9545 = vmatprep.subr.bf16.mxu1 %v15774_v55 }
 0x602   :  { %v18318_v55 = vrot.slane %v18263_v38, %v19194_v14 }
 0x604   :  { %9546 = vmatpush1.bf16.msra.mxu1 %v15772_v48 }
 0x605   :  { %9547 = vmatprep.subr.bf16.mxu1 %v15777_v27 }
 0x608   :  { %9548 = vmatpush1.bf16.msra.mxu1 %v15775_v35 }
 0x609   :  { %9549 = vmatprep.subr.bf16.mxu1 %v15780_v17 }
 0x60c   :  { %9550 = vmatpush1.bf16.msra.mxu1 %v15778_v21 }
 0x60d   :  { %9551 = vmatprep.subr.bf16.mxu1 %v15783_v52 }
 0x610   :  { %9552 = vmatpush1.bf16.msra.mxu1 %v15781_v47 }
 0x611   :  { %9553 = vmatprep.subr.bf16.mxu1 %v15786_v60  ;;  %v19195_v60 = vsub.s32 6, %v19190_v44 }
 0x614   :  { %9554 = vmatpush1.bf16.msra.mxu1 %v15784_v51  ;;  %v9745_v51 = vrot.slane %v18263_v38, %v19195_v60 }
 0x615   :  { %9555 = vmatprep.subr.bf16.mxu1 %v15789_v40 }
 0x618   :  { %9556 = vmatpush1.bf16.msra.mxu1 %v15787_v6 }
 0x619   :  { %9557 = vmatprep.subr.bf16.mxu1 %v15792_v54 }
 0x61c   :  { %9558 = vmatpush1.bf16.msra.mxu1 %v15790_v41 }
 0x61d   :  { %9559 = vmatprep.subr.bf16.mxu1 %v15795_v53 }
 0x620   :  { %9560 = vmatpush1.bf16.msra.mxu1 %v15793_v39 }
 0x623   :  { %9570 = vmatmul.mubr.bf16.vlgmr.msra.gmra.mrb[52].mxu1 %v17911_v7 }
 0x624   :  { %14028 = vmatprep.mubr.msk.bf16.mxu1 %vm142_vm2, %v18190_v34 }
 0x62b   :  { %9580 = vmatmul.mubr.bf16.gmra.mrb[56].mxu1 %v18195_v59  ;;  %v19192_v59 = vsub.s32 2, %v19190_v44 }
 0x62d   :  { %v18285_v43 = vrot.slane %v18263_v38, %v19192_v59 }
 0x647   :  { %v18268_v25 = vpop.f32.mrb[44].mxu0 }
 0x648   :  { %v9467_v23 = vpop.f32.mrb[45].mxu0 }
 0x649   :  { %v18270_v46 = vadd.f32 %v9733_v4, %v9467_v23  ;;  %v18272_v24 = vpop.f32.mrb[46].mxu0 }
 0x64a   :  { %v9471_v26 = vpop.f32.mrb[47].mxu0 }
 0x64b   :  { %v9784_v7 = vmax.f32 %v18270_v46, 0.0  ;;  %v18275_v15 = vadd.f32 %v9733_v4, %v9471_v26 }
 0x64d   :  { %9825 = vrot.lane.b32.xlu0 %v9784_v7, %s16218_s3 }
 0x64f   :  { %v18280_v34 = vpop.f32.mrb[48].mxu0 }
 0x650   :  { %v9477_v29 = vpop.f32.mrb[49].mxu0 }
 0x651   :  { %v18287_v28 = vadd.f32 %v9733_v4, %v9477_v29  ;;  %v9479_v36 = vpop.f32.mrb[50].mxu0 }
 0x652   :  { %v18290_v31 = vadd.f32 %v18285_v43, %v9479_v36  ;;  %v9481_v42 = vpop.f32.mrb[51].mxu0 }
 0x653   :  { %v9798_v18 = vmax.f32 %v18287_v28, 0.0  ;;  %v18293_v45 = vadd.f32 %v9733_v4, %v9481_v42 }
 0x655   :  { %9841 = vrot.lane.b32.xlu0 %v9798_v18, %s16218_s3 }
 0x667   :  { %v14348_v2 = vpop.f32.mrb[84].mxu0 }
 0x668   :  { %v14349_v58 = vpop.f32.mrb[85].mxu0 }
 0x669   :  { %v14350_v61 = vadd.f32 %v14349_v58, %v14348_v2  ;;  %v14351_v13 = vpop.f32.mrb[86].mxu0 }
 0x66a   :  { %v14352_v30 = vpop.f32.mrb[87].mxu0 }
 0x66b   :  { %v14353_v3 = vadd.f32 %v14352_v30, %v14351_v13  ;;  %v19196_v13 = vsub.s32 4, %v19190_v44  ;;  %v19197_v30 = vsub.s32 5, %v19190_v44 }
 0x66f   :  { %v14354_v37 = vpop.f32.mrb[88].mxu0 }
 0x670   :  { %v14355_v56 = vpop.f32.mrb[89].mxu0 }
 0x671   :  { %v14356_v62 = vadd.f32 %v14355_v56, %v14354_v37  ;;  %v14357_v8 = vpop.f32.mrb[90].mxu0 }
 0x672   :  { %v14358_v22 = vpop.f32.mrb[91].mxu0 }
 0x673   :  { %v14359_v33 = vadd.f32 %v14358_v22, %v14357_v8 }
 0x686   :  { %v18298_v10 = vpop.f32.mrb[44].mxu1 }
 0x687   :  { %v18300_v16 = vpop.f32.mrb[45].mxu1 }
 0x688   :  { %v18302_v49 = vpop.f32.mrb[46].mxu1 }
 0x689   :  { %v18304_v9 = vpop.f32.mrb[47].mxu1 }
 0x68e   :  { %v18306_v11 = vpop.f32.mrb[48].mxu1 }
 0x68f   :  { %v18313_v0 = vpop.f32.mrb[49].mxu1 }
 0x690   :  { %v9373_v48 = vpop.f32.mrb[50].mxu1 }
 0x691   :  { %v18321_v27 = vadd.f32 %v18311_v12, %v9373_v48  ;;  %v9375_v35 = vpop.f32.mrb[51].mxu1 }
 0x692   :  { %v18324_v17 = vadd.f32 %v18318_v55, %v9375_v35 }
 0x697   :  { %v9673_v21 = vpop.f32.mrb[92].mxu0 }
 0x698   :  { %v9674_v52 = vadd.f32 %v14350_v61, %v9673_v21  ;;  %v9675_v47 = vpop.f32.mrb[93].mxu0 }
 0x699   :  { %v9676_v40 = vpop.f32.mrb[94].mxu0 }
 0x69a   :  { %v9694_v6 = vadd.f32 %v9674_v52, %v18243_v5  ;;  %v9677_v54 = vadd.f32 %v14353_v3, %v9676_v40  ;;  %v9678_v41 = vpop.f32.mrb[95].mxu0  ;;  %v9741_v3 = vrot.slane %v18263_v38, %v19197_v30  ;;  %v15805_v30 = vld [vmem:[#allocation11 + $0x48] sm:$0xff]  }
 0x69c   :  { %v9701_v53 = vadd.f32 %v9677_v54, %v18246_v20  ;;  %v9759_v39 = vadd.f32 %v9745_v51, %v9694_v6  ;;  %v9737_v20 = vrot.slane %v18263_v38, %v19196_v13  ;;  %v9791_v54 = vmax.f32 %v18275_v15, 0.0  ;;  %v15803_v13 = vld [vmem:[#allocation11] sm:$0xff]  }
 0x69e   :  { %v9787_v32 = vmax.f32 %v9759_v39, 0.0  ;;  %v9766_v4 = vadd.f32 %v9745_v51, %v9701_v53  ;;  %v9805_v39 = vmax.f32 %v18293_v45, 0.0 }
 0x69f   :  { %v9681_v23 = vpop.f32.mrb[96].mxu0 }
 0x6a0   :  { %v9682_v26 = vadd.f32 %v14356_v62, %v9681_v23  ;;  %v9683_v59 = vpop.f32.mrb[97].mxu0  ;;  %9831 = vrot.lane.b32.xlu1 %v9787_v32, %s16218_s3  ;;  %v9794_v6 = vmax.f32 %v9766_v4, 0.0  ;;  %v15796_v4 = vld [vmem:[#allocation11 + $0x120] sm:$0xff]  }
 0x6a1   :  { %v9684_v29 = vpop.f32.mrb[98].mxu0  ;;  %v15797_v23 = vld [vmem:[#allocation11 + $0xe0] sm:$0xff]   ;;  %14360 = vmatprep.subr.bf16.mxu0 %v15796_v4  ;;  %v9755_v4 = vadd.f32 %v18285_v43, %v18268_v25 }
 0x6a2   :  { %v9708_v36 = vadd.f32 %v9682_v26, %v18249_v50  ;;  %v9685_v42 = vadd.f32 %v14359_v33, %v9684_v29  ;;  %v9686_v2 = vpop.f32.mrb[99].mxu0  ;;  %14361 = vmatpush3.bf16.msra.mxu0 %v15797_v23  ;;  %v9754_v23 = vadd.f32 %v18318_v55, %v18300_v16 }
 0x6a3   :  { %v15800_v2 = vld [vmem:[#allocation11 + $0x130] sm:$0xff]  }
 0x6a4   :  { %v9715_v58 = vadd.f32 %v9685_v42, %v18252_v19  ;;  %v9773_v5 = vadd.f32 %v9745_v51, %v9708_v36  ;;  %v15798_v36 = vld [vmem:[#allocation11 + $0x128] sm:$0xff]  }
 0x6a5   :  { %v15799_v42 = vld [vmem:[#allocation11 + $0xe8] sm:$0xff]   ;;  %14362 = vmatprep.subr.bf16.mxu0 %v15798_v36  ;;  %v9783_v36 = vmax.f32 %v9755_v4, 0.0 }
 0x6a6   :  { %v9780_v61 = vadd.f32 %v9745_v51, %v9715_v58  ;;  %v9801_v60 = vmax.f32 %v9773_v5, 0.0  ;;  %14363 = vmatpush3.bf16.msra.mxu0 %v15799_v42  ;;  %v15801_v58 = vld [vmem:[#allocation11 + $0x40] sm:$0xff]   ;;  %v15802_v5 = vld [vmem:[#allocation11 + $0xf0] sm:$0xff]   ;;  %v9782_v42 = vmax.f32 %v9754_v23, 0.0 }
 0x6a7   :  { %14364 = vmatprep.subr.bf16.mxu0 %v15800_v2  ;;  %14382 = vmatprep.subr.bf16.mxu1 %v15801_v58 }
 0x6a8   :  { %v9808_v29 = vmax.f32 %v9780_v61, 0.0  ;;  %14383 = vmatpush3.bf16.msra.mxu1 %v15803_v13  ;;  %v15808_v61 = vld [vmem:[#allocation11 + $0x140] sm:$0xff]  }
 0x6a9   :  { %14384 = vmatprep.subr.bf16.mxu1 %v15805_v30 }
 0x6aa   :  { %14365 = vmatpush3.bf16.msra.mxu0 %v15802_v5 }
 0x6f6   :  { %v9571_v37 = vpop.f32.mrb[52].mxu1 }
 0x6f7   :  { %v9757_v56 = vadd.f32 %v9737_v20, %v9571_v37  ;;  %v9573_v62 = vpop.f32.mrb[53].mxu1  ;;  %v15807_v37 = vld [vmem:[#allocation11 + $0x8] sm:$0xff]  }
 0x6f8   :  { %v9758_v8 = vadd.f32 %v9741_v3, %v9573_v62  ;;  %v9575_v22 = vpop.f32.mrb[54].mxu1  ;;  %14385 = vmatpush3.bf16.msra.mxu1 %v15807_v37  ;;  %v15810_v62 = vld [vmem:[#allocation11 + $0x100] sm:$0xff]  }
 0x6f9   :  { %v9785_v50 = vmax.f32 %v9757_v56, 0.0  ;;  %v9577_v33 = vpop.f32.mrb[55].mxu1  ;;  %v9764_v40 = vadd.f32 %v9737_v20, %v9575_v22  ;;  %v15809_v56 = vld [vmem:[#allocation11 + $0x50] sm:$0xff]   ;;  %v15812_v22 = vld [vmem:[#allocation11 + $0x148] sm:$0xff]  }
 0x6fa   :  { %v9786_v63 = vmax.f32 %v9758_v8, 0.0  ;;  %v9765_v38 = vadd.f32 %v9741_v3, %v9577_v33  ;;  %v15811_v8 = vld [vmem:[#allocation11 + $0x10] sm:$0xff]   ;;  %14386 = vmatprep.subr.bf16.mxu1 %v15809_v56  ;;  %v15814_v33 = vld [vmem:[#allocation11 + $0x108] sm:$0xff]   ;;  %v18375_v56 = vadd.f32 %v18285_v43, %v18272_v24  ;;  %v9767_v24 = vadd.f32 %v18311_v12, %v18306_v11 }
 0x6fb   :  { %9827 = vrot.lane.b32.xlu1 %v9785_v50, %s16218_s3  ;;  %v9792_v41 = vmax.f32 %v9764_v40, 0.0  ;;  %v15813_v50 = vld [vmem:[#allocation11 + $0x58] sm:$0xff]  }
 0x6fc   :  { %9829 = vrot.lane.b32.xlu0 %v9786_v63, %s16218_s3  ;;  %v9793_v51 = vmax.f32 %v9765_v38, 0.0  ;;  %14387 = vmatpush3.bf16.msra.mxu1 %v15811_v8  ;;  %v15815_v63 = vld [vmem:[#allocation11 + $0x18] sm:$0xff]   ;;  %v15823_v38 = vld [vmem:[#allocation11 + $0x28] sm:$0xff]  }
 0x6fd   :  { %14388 = vmatprep.subr.bf16.mxu1 %v15813_v50  ;;  %v15829_v40 = vld [vmem:[#allocation11 + $0x38] sm:$0xff]   ;;  %v18385_v50 = vadd.f32 %v18311_v12, %v18302_v49 }
 0x6fe   :  { %v9581_v19 = vpop.f32.mrb[56].mxu1 }
 0x6ff   :  { %v9771_v14 = vadd.f32 %v9737_v20, %v9581_v19  ;;  %v9583_v48 = vpop.f32.mrb[57].mxu1  ;;  %v15816_v19 = vld [vmem:[#allocation11 + $0x150] sm:$0xff]  }
 0x700   :  { %v9772_v35 = vadd.f32 %v9741_v3, %v9583_v48  ;;  %v9585_v21 = vpop.f32.mrb[58].mxu1  ;;  %14389 = vmatpush3.bf16.msra.mxu1 %v15815_v63  ;;  %v15818_v48 = vld [vmem:[#allocation11 + $0x110] sm:$0xff]  }
 0x701   :  { %v9799_v44 = vmax.f32 %v9771_v14, 0.0  ;;  %v9587_v52 = vpop.f32.mrb[59].mxu1  ;;  %v9778_v53 = vadd.f32 %v9737_v20, %v9585_v21  ;;  %v15804_v20 = vld [vmem:[#allocation11 + $0x138] sm:$0xff]   ;;  %v15817_v14 = vld [vmem:[#allocation11 + $0x60] sm:$0xff]  }
 0x702   :  { %v9800_v47 = vmax.f32 %v9772_v35, 0.0  ;;  %v9779_v32 = vadd.f32 %v9741_v3, %v9587_v52  ;;  %v15806_v3 = vld [vmem:[#allocation11 + $0xf8] sm:$0xff]   ;;  %14366 = vmatprep.subr.bf16.mxu0 %v15804_v20  ;;  %v15819_v35 = vld [vmem:[#allocation11 + $0x20] sm:$0xff]   ;;  %14390 = vmatprep.subr.bf16.mxu1 %v15817_v14 }
 0x703   :  { %9843 = vrot.lane.b32.xlu1 %v9799_v44, %s16218_s3  ;;  %v9806_v26 = vmax.f32 %v9778_v53, 0.0  ;;  %14367 = vmatpush3.bf16.msra.mxu0 %v15806_v3  ;;  %v15820_v21 = vld [vmem:[#allocation11 + $0x158] sm:$0xff]   ;;  %v15821_v44 = vld [vmem:[#allocation11 + $0x68] sm:$0xff]   ;;  %v9753_v53 = vadd.f32 %v18311_v12, %v18298_v10 }
 0x704   :  { %9845 = vrot.lane.b32.xlu0 %v9800_v47, %s16218_s3  ;;  %v9807_v59 = vmax.f32 %v9779_v32, 0.0  ;;  %14368 = vmatprep.subr.bf16.mxu0 %v15808_v61  ;;  %v15822_v52 = vld [vmem:[#allocation11 + $0x118] sm:$0xff]   ;;  %v15824_v47 = vld [vmem:[#allocation11 + $0x70] sm:$0xff]  }
 0x705   :  { %14391 = vmatpush3.bf16.msra.mxu1 %v15819_v35  ;;  %v9790_v35 = vmax.f32 %v18375_v56, 0.0 }
 0x706   :  { %14392 = vmatprep.subr.bf16.mxu1 %v15821_v44 }
 0x707   :  { %9847 = vrot.lane.b32.xlu1 %v9801_v60, %s16218_s3  ;;  %14369 = vmatpush3.bf16.msra.mxu0 %v15810_v62  ;;  %v15826_v60 = vld [vmem:[#allocation11 + $0x30] sm:$0xff]   ;;  %v9769_v62 = vadd.f32 %v18285_v43, %v18280_v34  ;;  %v9768_v34 = vadd.f32 %v18318_v55, %v18313_v0  ;;  %v9804_v0 = vmax.f32 %v18290_v31, 0.0 }
 0x708   :  { %9837 = vrot.lane.b32.xlu0 %v9793_v51, %s16218_s3  ;;  %14370 = vmatprep.subr.bf16.mxu0 %v15812_v22  ;;  %v15827_v51 = vld [vmem:[#allocation11 + $0x78] sm:$0xff]  }
 0x709   :  { %14393 = vmatpush3.bf16.msra.mxu1 %v15823_v38  ;;  %v9797_v12 = vmax.f32 %v9769_v62, 0.0 }
 0x70a   :  { %14394 = vmatprep.subr.bf16.mxu1 %v15824_v47 }
 0x70b   :  { %9839 = vrot.lane.b32.xlu1 %v9794_v6, %s16218_s3  ;;  %14371 = vmatpush3.bf16.msra.mxu0 %v15814_v33  ;;  %v15830_v6 = vld [vmem:[#allocation11 + $0x200] sm:$0xff]   ;;  %v18389_v33 = vadd.f32 %v18318_v55, %v18304_v9 }
 0x70c   :  { %9833 = vrot.lane.b32.xlu0 %v9791_v54, %s16218_s3  ;;  %14372 = vmatprep.subr.bf16.mxu0 %v15816_v19 }
 0x70d   :  { %14395 = vmatpush3.bf16.msra.mxu1 %v15826_v60  ;;  %v9788_v60 = vmax.f32 %v18385_v50, 0.0 }
 0x70e   :  { %14396 = vmatprep.subr.bf16.mxu1 %v15827_v51  ;;  %v9789_v51 = vmax.f32 %v18389_v33, 0.0 }
 0x70f   :  { %9835 = vrot.lane.b32.xlu1 %v9792_v41, %s16218_s3  ;;  %14373 = vmatpush3.bf16.msra.mxu0 %v15818_v48  ;;  %v9826_v41 = vpop.permute.xlu0 %9825 }
 0x710   :  { %9849 = vrot.lane.b32.xlu0 %v9805_v39, %s16218_s3  ;;  %14374 = vmatprep.subr.bf16.mxu0 %v15820_v21 }
 0x711   :  { %14397 = vmatpush3.bf16.msra.mxu1 %v15829_v40  ;;  %v9795_v40 = vmax.f32 %v9767_v24, 0.0 }
 0x712   :  { %14404 = vmatprep.subr.bf16.mxu1 %v15830_v6  ;;  %v9832_v32 = vpop.permute.xlu1 %9831  ;;  %v9796_v6 = vmax.f32 %v9768_v34, 0.0 }
 0x713   :  { %9851 = vrot.lane.b32.xlu1 %v9806_v26, %s16218_s3  ;;  %14375 = vmatpush3.bf16.msra.mxu0 %v15822_v52  ;;  %v18366_v26 = vpop.permute.xlu0 %9841  ;;  %v9888_v25 = vmax.f32 %v9784_v7, %v9832_v32 }
 0x714   :  { %9853 = vrot.lane.b32.xlu0 %v9807_v59, %s16218_s3  ;;  %11096 = vmatprep.subr.bf16.mxu0 %v19189_v1  ;;  %v9781_v59 = vmax.f32 %v9753_v53, 0.0  ;;  %v9803_v53 = vmax.f32 %v18324_v17, 0.0 }
 0x717   :  { %9855 = vrot.lane.b32.xlu1 %v9808_v29, %s16218_s3  ;;  %s13261_s3 = sshll.u32 %s16226_s0, 4  ;;  %s13262_s3 = int_to_ptr.vmem [resolvable:$true] %s13261_s3 }
 0x718   :  { %s16176_s30 = scalar_lea.vmem %s13262_s3, 32  ;;  %p16181_p9 = scmp.lt.s32.totalorder %s13262_s3, %s13262_s3 }
 0x719   :  { %p16177_p8 = scmp.ne.s32.totalorder %s13262_s3, %s16176_s30  ;;  %p16182_p10 = scmp.lt.s32.totalorder %s16176_s30, %s16176_s30 }
 0x71b   :  { %p16183_p11 = por %p16182_p10, %p16181_p9 }
 0x71d   :  { %p16184_p12 = pnand %p16183_p11, %p16177_p8 }
 0x76d   :  { %v9828_v29 = vpop.permute.xlu1 %9827 }
 0x76e   :  { %v9857_v2 = vsel %vm142_vm2, %v9826_v41, %v9828_v29  ;;  %v9830_v58 = vpop.permute.xlu0 %9829  ;;  %v9802_v41 = vmax.f32 %v18321_v27, 0.0 }
 0x76f   :  { %v9885_v5 = vmax.f32 %v9781_v59, %v9857_v2  ;;  %v9858_v13 = vsel %vm142_vm2, %v9828_v29, %v9830_v58  ;;  %v9859_v10 = vsel %vm142_vm2, %v9830_v58, %v9832_v32 }
 0x770   :  { %v9886_v20 = vmax.f32 %v9782_v42, %v9858_v13  ;;  %v9887_v30 = vmax.f32 %v9783_v36, %v9859_v10 }
 0x772   :  { %v9917_v16 = vcombine.low %v9885_v5, %v9886_v20  ;;  %v9918_v3 = vcombine.high %v9885_v5, %v9886_v20  ;;  %v9919_v37 = vcombine.low %v9887_v30, %v9888_v25  ;;  %v9920_v61 = vcombine.high %v9887_v30, %v9888_v25 }
 0x774   :  { %v9927_v8 = vrot.slane %v9917_v16, %v16853_v57  ;;  %v9934_v22 = vrot.slane %v9918_v3, %v16853_v57  ;;  %v9941_v46 = vrot.slane %v9919_v37, %v16853_v57  ;;  %v9948_v7 = vrot.slane %v9920_v61, %v16853_v57 }
 0x775   :  { %v9844_v43 = vpop.permute.xlu1 %9843 }
 0x776   :  { %v9949_v63 = vcombine.low %v9927_v8, %v9941_v46  ;;  %v9950_v19 = vcombine.high %v9927_v8, %v9941_v46  ;;  %v9951_v14 = vcombine.low %v9934_v22, %v9948_v7  ;;  %v9952_v48 = vcombine.high %v9934_v22, %v9948_v7  ;;  %v9846_v49 = vpop.permute.xlu0 %9845 }
 0x777   :  { %v14031_v21 = vcombine.low %v9941_v46, %v9941_v46  ;;  %v14032_v9 = vcombine.high %v9941_v46, %v9941_v46  ;;  %v14033_v11 = vcombine.low %v9948_v7, %v9948_v7  ;;  %v14034_v4 = vcombine.high %v9948_v7, %v9948_v7 }
 0x778   :  { %v18397_v44 = vrot.slane %v9949_v63, %v16853_v57  ;;  %v18400_v52 = vrot.slane %v9950_v19, %v16853_v57  ;;  %v18404_v55 = vrot.slane %v9951_v14, %v16853_v57  ;;  %v18407_v38 = vrot.slane %v9952_v48, %v16853_v57 }
 0x779   :  { %v9848_v47 = vpop.permute.xlu1 %9847  ;;  %v18414_v32 = vrot.slane %v14031_v21, %v16853_v57  ;;  %v18417_v23 = vrot.slane %v14032_v9, %v16853_v57  ;;  %v18420_v59 = vrot.slane %v14033_v11, %v16853_v57  ;;  %v9863_v25 = vsel %vm142_vm2, %v18366_v26, %v9844_v43 }
 0x77a   :  { %v10337_v29 = vsel %vm2667_vm3, %v18397_v44, -inf  ;;  %v10365_v36 = vsel %vm2667_vm3, %v18400_v52, -inf  ;;  %v10393_v58 = vsel %vm2667_vm3, %v18404_v55, -inf  ;;  %v10421_v5 = vsel %vm2667_vm3, %v18407_v38, -inf  ;;  %v18430_v13 = vpop.permute.xlu0 %9837 }
 0x77b   :  { %v10338_v42 = vrot.slane %v10337_v29, 4  ;;  %v10366_v2 = vrot.slane %v10365_v36, 4  ;;  %v9864_v20 = vsel %vm142_vm2, %v9844_v43, %v9846_v49  ;;  %v9865_v30 = vsel %vm142_vm2, %v9846_v49, %v9848_v47 }
 0x77c   :  { %v9896_v16 = vmax.f32 %v9798_v18, %v9848_v47  ;;  %v18441_v37 = vrot.slane %v14034_v4, %v16853_v57  ;;  %v9893_v62 = vmax.f32 %v9795_v40, %v9863_v25  ;;  %v9894_v8 = vmax.f32 %v9796_v6, %v9864_v20 }
 0x77d   :  { %v9840_v10 = vpop.permute.xlu1 %9839  ;;  %v10339_v61 = vmax.f32 %v10337_v29, %v10338_v42  ;;  %v10367_v56 = vmax.f32 %v10365_v36, %v10366_v2  ;;  %v9895_v22 = vmax.f32 %v9797_v12, %v9865_v30  ;;  %v10075_v46 = vcombine.high %v18400_v52, %v18400_v52 }
 0x77e   :  { %v9862_v26 = vsel %vm142_vm2, %v18430_v13, %v9840_v10  ;;  %v10394_v18 = vrot.slane %v10393_v58, 4  ;;  %v10422_v7 = vrot.slane %v10421_v5, 4  ;;  %v9989_v24 = vcombine.low %v9893_v62, %v9894_v8  ;;  %v9834_v49 = vpop.permute.xlu0 %9833 }
 0x77f   :  { %v9990_v34 = vcombine.high %v9893_v62, %v9894_v8  ;;  %v9991_v43 = vcombine.low %v9895_v22, %v9896_v16  ;;  %v9992_v63 = vcombine.high %v9895_v22, %v9896_v16  ;;  %v10340_v19 = vrot.slane %v10339_v61, 2 }
 0x780   :  { %v10368_v14 = vrot.slane %v10367_v56, 2  ;;  %v9891_v48 = vmax.f32 %v9790_v35, %v9862_v26  ;;  %v9892_v21 = vmax.f32 %v9791_v54, %v9840_v10  ;;  %v9999_v9 = vrot.slane %v9989_v24, %v16853_v57 }
 0x781   :  { %v10006_v11 = vrot.slane %v9990_v34, %v16853_v57  ;;  %v10013_v12 = vrot.slane %v9991_v43, %v16853_v57  ;;  %v10020_v47 = vrot.slane %v9992_v63, %v16853_v57  ;;  %v18459_v4 = vmax.f32 %v10393_v58, %v10394_v18  ;;  %v9836_v15 = vpop.permute.xlu1 %9835 }
 0x782   :  { %v9955_v35 = vcombine.low %v9891_v48, %v9892_v21  ;;  %v18461_v30 = vmax.f32 %v10339_v61, %v10340_v19  ;;  %v18463_v16 = vmax.f32 %v10367_v56, %v10368_v14  ;;  %v18465_v62 = vmax.f32 %v10421_v5, %v10422_v7  ;;  %v9850_v61 = vpop.permute.xlu0 %9849 }
 0x783   :  { %v10021_v54 = vcombine.low %v9999_v9, %v10013_v12  ;;  %v10022_v29 = vcombine.high %v9999_v9, %v10013_v12  ;;  %v10023_v36 = vcombine.low %v10006_v11, %v10020_v47  ;;  %v10024_v42 = vcombine.high %v10006_v11, %v10020_v47 }
 0x784   :  { %v14039_v2 = vcombine.low %v10013_v12, %v10013_v12  ;;  %v14040_v10 = vcombine.high %v10013_v12, %v10013_v12  ;;  %v14041_v25 = vcombine.low %v10020_v47, %v10020_v47  ;;  %v14042_v20 = vcombine.high %v10020_v47, %v10020_v47 }
 0x785   :  { %v18468_v8 = vrot.slane %v10021_v54, %v16853_v57  ;;  %v18474_v22 = vrot.slane %v10022_v29, %v16853_v57  ;;  %v18477_v26 = vrot.slane %v10023_v36, %v16853_v57  ;;  %v18480_v18 = vrot.slane %v10024_v42, %v16853_v57  ;;  %v9852_v14 = vpop.permute.xlu1 %9851 }
 0x786   :  { %v18471_v58 = vrot.slane %v14039_v2, %v16853_v57  ;;  %v18485_v56 = vrot.slane %v14040_v10, %v16853_v57  ;;  %v18488_v7 = vrot.slane %v14041_v25, %v16853_v57  ;;  %v18491_v24 = vrot.slane %v14042_v20, %v16853_v57  ;;  %v9854_v43 = vpop.permute.xlu0 %9853 }
 0x787   :  { %v10561_v63 = vsel %vm2667_vm3, %v18468_v8, -inf  ;;  %v9956_v19 = vcombine.high %v9891_v48, %v9892_v21  ;;  %v10370_v11 = vrot.slane %v18463_v16, 1  ;;  %v18507_v29 = vsel %vm2667_vm3, %v18474_v22, -inf }
 0x788   :  { %19198 = vst [vmem:[#allocation29_spill] sm:$0xff] %v18491_v24  ;;  %v18511_v36 = vsel %vm2667_vm3, %v18477_v26, -inf  ;;  %v18515_v48 = vsel %vm2667_vm3, %v18480_v18, -inf  ;;  %v10562_v10 = vrot.slane %v10561_v63, 4  ;;  %v18525_v25 = vsel %vm2667_vm3, %v18471_v58, -inf }
 0x789   :  { %19199 = vst [vmem:[#allocation30_spill] sm:$0xff] %v18515_v48  ;;  %v9977_v20 = vrot.slane %v9955_v35, %v16853_v57  ;;  %v9984_v34 = vrot.slane %v9956_v19, %v16853_v57  ;;  %v9860_v47 = vsel %vm142_vm2, %v9834_v49, %v9836_v15  ;;  %v9861_v42 = vsel %vm142_vm2, %v9836_v15, %v18430_v13  ;;  %v9856_v35 = vpop.permute.xlu1 %9855 }
 0x78a   :  { %v9889_v2 = vmax.f32 %v9788_v60, %v9860_v47  ;;  %v9866_v40 = vsel %vm142_vm2, %v9850_v61, %v9852_v14  ;;  %v18538_v19 = vsel %vm2667_vm3, %v18485_v56, -inf  ;;  %v18542_v49 = vsel %vm2667_vm3, %v18488_v7, -inf }
 0x78b   :  { %v14035_v6 = vcombine.low %v9977_v20, %v9977_v20  ;;  %v14036_v12 = vcombine.high %v9977_v20, %v9977_v20  ;;  %v14037_v28 = vcombine.low %v9984_v34, %v9984_v34  ;;  %v14038_v9 = vcombine.high %v9984_v34, %v9984_v34 }
 0x78c   :  { %v9890_v13 = vmax.f32 %v9789_v51, %v9861_v42  ;;  %v9867_v50 = vsel %vm142_vm2, %v9852_v14, %v9854_v43  ;;  %v10563_v60 = vmax.f32 %v10561_v63, %v10562_v10  ;;  %v18549_v15 = vsel %vm2667_vm3, %v18491_v24, -inf }
 0x78d   :  { %19200 = vst [vmem:[#allocation25_spill] sm:$0xff] %v18549_v15  ;;  %v18552_v61 = vrot.slane %v14035_v6, %v16853_v57  ;;  %v9897_v47 = vmax.f32 %v9802_v41, %v9866_v40  ;;  %v9898_v54 = vmax.f32 %v9803_v53, %v9867_v50  ;;  %v9868_v33 = vsel %vm142_vm2, %v9854_v43, %v9856_v35 }
 0x78e   :  { %v9953_v21 = vcombine.low %v9889_v2, %v9890_v13  ;;  %v9954_v3 = vcombine.high %v9889_v2, %v9890_v13  ;;  %v18561_v63 = vrot.slane %v14036_v12, %v16853_v57  ;;  %v18564_v14 = vrot.slane %v14037_v28, %v16853_v57 }
 0x78f   :  { %19201 = vst [vmem:[#allocation26_spill] sm:$0xff] %v18552_v61  ;;  %v18567_v6 = vrot.slane %v14038_v9, %v16853_v57  ;;  %v10564_v40 = vrot.slane %v10563_v60, 2  ;;  %v9899_v28 = vmax.f32 %v9804_v0, %v9868_v33  ;;  %v10025_v2 = vcombine.low %v9897_v47, %v9898_v54 }
 0x790   :  { %19202 = vst [vmem:[#allocation31_spill] sm:$0xff] %v18561_v63  ;;  %19203 = vst [vmem:[#allocation32_spill] sm:$0xff] %v18564_v14  ;;  %v9963_v9 = vrot.slane %v9953_v21, %v16853_v57  ;;  %v9970_v42 = vrot.slane %v9954_v3, %v16853_v57  ;;  %v9900_v10 = vmax.f32 %v9805_v39, %v9856_v35  ;;  %v18590_v31 = vsel %vm2667_vm3, %v18552_v61, -inf }
 0x791   :  { %19204 = vst [vmem:[#allocation27_spill] sm:$0xff] %v18590_v31  ;;  %v18594_v45 = vsel %vm2667_vm3, %v18561_v63, -inf  ;;  %v18598_v39 = vsel %vm2667_vm3, %v18564_v14, -inf  ;;  %v10372_v47 = vsel %vm2667_vm3, %v10075_v46, -inf  ;;  %v10194_v46 = vcombine.high %v18468_v8, %v18468_v8 }
 0x792   :  { %v9985_v0 = vcombine.low %v9963_v9, %v9977_v20  ;;  %v9986_v21 = vcombine.high %v9963_v9, %v9977_v20  ;;  %v9987_v3 = vcombine.low %v9970_v42, %v9984_v34  ;;  %v9988_v54 = vcombine.high %v9970_v42, %v9984_v34  ;;  %19205 = vst [vmem:[#allocation28_spill] sm:$0xff] %v18594_v45 }
 0x793   :  { %19206 = vst [vmem:[#allocation24_spill] sm:$0xff] %v18598_v39  ;;  %v10026_v35 = vcombine.low %v9899_v28, %v9900_v10  ;;  %v18617_v28 = vsel %vm2667_vm3, %v18567_v6, -inf  ;;  %v10371_v43 = vmax.f32 %v18463_v16, %v10370_v11  ;;  %v19211_v11 = vcombine.high %v18471_v58, %v18471_v58 }
 0x794   :  { %v18605_v33 = vrot.slane %v9985_v0, %v16853_v57  ;;  %v18608_v20 = vrot.slane %v9986_v21, %v16853_v57  ;;  %v18611_v34 = vrot.slane %v9987_v3, %v16853_v57  ;;  %v10169_v9 = vrot.slane %v9988_v54, %v16853_v57 }
 0x795   :  { %v10040_v52 = vrot.slane %v10026_v35, %v16853_v57  ;;  %v10033_v0 = vrot.slane %v10025_v2, %v16853_v57  ;;  %v10373_v21 = vrot.slane %v10372_v47, 4  ;;  %v10565_v3 = vmax.f32 %v10563_v60, %v10564_v40 }
 0x796   :  { %19207 = vst [vmem:[#allocation33_spill] sm:$0xff] %v18611_v34  ;;  %v10449_v54 = vsel %vm2667_vm3, %v18605_v33, -inf  ;;  %v10477_v50 = vsel %vm2667_vm3, %v18608_v20, -inf  ;;  %v10505_v42 = vsel %vm2667_vm3, %v18611_v34, -inf  ;;  %v10533_v35 = vsel %vm2667_vm3, %v10169_v9, -inf }
 0x797   :  { %v10450_v12 = vrot.slane %v10449_v54, 4  ;;  %v10478_v53 = vrot.slane %v10477_v50, 4  ;;  %v10506_v8 = vrot.slane %v10505_v42, 4  ;;  %v10534_v13 = vrot.slane %v10533_v35, 4 }
 0x798   :  { %v10041_v10 = vcombine.low %v10033_v0, %v10040_v52  ;;  %v10042_v27 = vcombine.high %v10033_v0, %v10040_v52  ;;  %v14043_v2 = vcombine.low %v10040_v52, %v10040_v52  ;;  %v10568_v60 = vsel %vm2667_vm3, %v10194_v46, -inf }
 0x799   :  { %v10535_v17 = vmax.f32 %v10533_v35, %v10534_v13  ;;  %v14044_v41 = vcombine.high %v10040_v52, %v10040_v52  ;;  %v18636_v51 = vmax.f32 %v10449_v54, %v10450_v12  ;;  %v18638_v5 = vmax.f32 %v10477_v50, %v10478_v53 }
 0x79a   :  { %v18640_v14 = vmax.f32 %v10505_v42, %v10506_v8  ;;  %v18643_v39 = vrot.slane %v10041_v10, %v16853_v57  ;;  %v18646_v46 = vrot.slane %v14043_v2, %v16853_v57  ;;  %v10374_v40 = vmax.f32 %v10372_v47, %v10373_v21 }
 0x79b   :  { %19208 = vst [vmem:[#allocation34_spill] sm:$0xff] %v18636_v51  ;;  %v10536_v0 = vrot.slane %v10535_v17, 2  ;;  %v10569_v13 = vrot.slane %v10568_v60, 4  ;;  %v10566_v53 = vrot.slane %v10565_v3, 1  ;;  %v10177_v12 = vcombine.high %v10169_v9, %v10169_v9 }
 0x79c   :  { %19209 = vst [vmem:[#allocation35_spill] sm:$0xff] %v18640_v14  ;;  %v18655_v42 = vrot.slane %v10042_v27, %v16853_v57  ;;  %v18658_v10 = vrot.slane %v14044_v41, %v16853_v57  ;;  %v19210_v57 = vcombine.high %v18417_v23, %v18417_v23  ;;  %v10582_v54 = vsel %vm2689_vm4, %v19211_v11, -inf }
 0x79d   :  { %v10537_v50 = vmax.f32 %v10535_v17, %v10536_v0  ;;  %v10375_v17 = vrot.slane %v10374_v40, 2  ;;  %v10570_v2 = vmax.f32 %v10568_v60, %v10569_v13  ;;  %v10567_v27 = vmax.f32 %v10565_v3, %v10566_v53 }
 0x79e   :  { %v10793_v0 = vpack.c.bf16 %v10371_v43, %v10371_v43  ;;  %v10386_v41 = vsel %vm2689_vm4, %v19210_v57, -inf  ;;  %v10583_v35 = vrot.slane %v10582_v54, 4  ;;  %v19212_v3 = vcombine.high %v18397_v44, %v18397_v44 }
 0x79f   :  { %v10538_v8 = vrot.slane %v10537_v50, 1  ;;  %v10376_v47 = vmax.f32 %v10374_v40, %v10375_v17  ;;  %v10571_v21 = vrot.slane %v10570_v2, 2  ;;  %v10387_v52 = vrot.slane %v10386_v41, 4 }
 0x7a0   :  { %v10797_v16 = vpack.c.bf16 %v10567_v27, %v10567_v27  ;;  %v10866_v9 = vunpack.c.l.b16 %v10793_v0  ;;  %v10344_v43 = vsel %vm2667_vm3, %v19212_v3, -inf  ;;  %v10540_v60 = vsel %vm2667_vm3, %v10177_v12, -inf }
 0x7a1   :  { %v10377_v13 = vrot.slane %v10376_v47, 1  ;;  %v10572_v53 = vmax.f32 %v10570_v2, %v10571_v21  ;;  %v10388_v57 = vmax.f32 %v10386_v41, %v10387_v52  ;;  %v10584_v14 = vmax.f32 %v10582_v54, %v10583_v35 }
 0x7a2   :  { %v10870_v58 = vunpack.c.l.b16 %v10797_v16  ;;  %v10345_v15 = vrot.slane %v10344_v43, 4  ;;  %v10541_v11 = vrot.slane %v10540_v60, 4  ;;  %v19213_v40 = vrot.slane %v18461_v30, 1 }
 0x7a3   :  { %v10378_v27 = vmax.f32 %v10376_v47, %v10377_v13  ;;  %v10573_v0 = vrot.slane %v10572_v53, 1  ;;  %v10389_v31 = vrot.slane %v10388_v57, 2  ;;  %v10585_v45 = vrot.slane %v10584_v14, 2 }
 0x7a4   :  { %v10343_v17 = vmax.f32 %v18461_v30, %v19213_v40  ;;  %v10874_v44 = vsel %vm3595_vm12, %v10870_v58, %v10866_v9  ;;  %v10346_v3 = vmax.f32 %v10344_v43, %v10345_v15  ;;  %v10542_v34 = vmax.f32 %v10540_v60, %v10541_v11  ;;  %v15825_v58 = vld [vmem:[#allocation11 + $0x160] sm:$0xff]  }
 0x7a5   :  { %v10539_v12 = vmax.f32 %v10537_v50, %v10538_v8  ;;  %v10574_v24 = vmax.f32 %v10572_v53, %v10573_v0  ;;  %v10794_v21 = vpack.c.bf16 %v10378_v27, %v10378_v27  ;;  %v10878_v52 = vpack.c.b16 %v10874_v44, %v10874_v44 }
 0x7a6   :  { %v10390_v54 = vmax.f32 %v10388_v57, %v10389_v31  ;;  %v10586_v16 = vmax.f32 %v10584_v14, %v10585_v45  ;;  %v10347_v35 = vrot.slane %v10346_v3, 2  ;;  %v10543_v2 = vrot.slane %v10542_v34, 2 }
 0x7a7   :  { %v10729_v41 = vpack.c.bf16 %v10343_v17, %v10343_v17  ;;  %v10798_v61 = vpack.c.bf16 %v10574_v24, %v10574_v24  ;;  %v10867_v48 = vunpack.c.l.b16 %v10794_v21  ;;  %v10733_v47 = vpack.c.bf16 %v10539_v12, %v10539_v12 }
 0x7a8   :  { %v10391_v30 = vrot.slane %v10390_v54, 1  ;;  %v10587_v13 = vrot.slane %v10586_v16, 1  ;;  %v10348_v40 = vmax.f32 %v10346_v3, %v10347_v35  ;;  %v10544_v51 = vmax.f32 %v10542_v34, %v10543_v2 }
 0x7a9   :  { %v11144_v63 = vunpack.c.l.b16 %v10729_v41  ;;  %v10871_v9 = vunpack.c.l.b16 %v10798_v61  ;;  %v11148_v43 = vunpack.c.l.b16 %v10733_v47  ;;  %v10211_v50 = vcombine.high %v18474_v22, %v18474_v22 }
 0x7aa   :  { %v10392_v15 = vmax.f32 %v10390_v54, %v10391_v30  ;;  %v10588_v8 = vmax.f32 %v10586_v16, %v10587_v13  ;;  %v10349_v31 = vrot.slane %v10348_v40, 1  ;;  %v10545_v14 = vrot.slane %v10544_v51, 1  ;;  %v15828_v30 = vld [vmem:[#allocation11 + $0x168] sm:$0xff]  }
 0x7ab   :  { %v19214_v45 = vcombine.high %v18404_v55, %v18404_v55  ;;  %v10875_v60 = vsel %vm3595_vm12, %v10871_v9, %v10867_v48  ;;  %v11152_v34 = vsel %vm3595_vm12, %v11148_v43, %v11144_v63  ;;  %v10596_v3 = vsel %vm2667_vm3, %v10211_v50, -inf }
 0x7ac   :  { %v10796_v53 = vpack.c.bf16 %v10392_v15, %v10392_v15  ;;  %v10879_v61 = vpack.c.b16 %v10875_v60, %v10875_v60  ;;  %v10800_v11 = vpack.c.bf16 %v10588_v8, %v10588_v8  ;;  %v10350_v17 = vmax.f32 %v10348_v40, %v10349_v31 }
 0x7ad   :  { %v10400_v24 = vsel %vm2667_vm3, %v19214_v45, -inf  ;;  %v10546_v27 = vmax.f32 %v10544_v51, %v10545_v14  ;;  %v11156_v0 = vpack.c.b16 %v11152_v34, %v11152_v34  ;;  %v10597_v54 = vrot.slane %v10596_v3, 4  ;;  %v15832_v14 = vld [vmem:[#allocation11 + $0x1c0] sm:$0xff]  }
 0x7ae   :  { %v10401_v57 = vrot.slane %v10400_v24, 4  ;;  %v10869_v22 = vunpack.c.l.b16 %v10796_v53  ;;  %11088 = vmatprep.mubr.bf16.mxu0 %v10879_v61  ;;  %v10873_v55 = vunpack.c.l.b16 %v10800_v11  ;;  %v10730_v12 = vpack.c.bf16 %v10350_v17, %v10350_v17  ;;  %v15831_v53 = vld [vmem:[#allocation11 + $0x170] sm:$0xff]  }
 0x7af   :  { %v10734_v21 = vpack.c.bf16 %v10546_v27, %v10546_v27  ;;  %11089 = vmatmul.mubr.bf16.vlgmr.msra.gmra.mrb[100].mxu0 %v10878_v52  ;;  %v19215_v63 = vrot.slane %v18459_v4, 2  ;;  %v19216_v35 = vrot.slane %v18507_v29, 4  ;;  %v10228_v2 = vcombine.high %v18477_v26, %v18477_v26 }
 0x7b0   :  { %v10402_v44 = vmax.f32 %v10400_v24, %v10401_v57  ;;  %11097 = vmatpush1.bf16.msra.mxu0 %v15825_v58  ;;  %v10877_v41 = vsel %vm3595_vm12, %v10873_v55, %v10869_v22  ;;  %v11145_v47 = vunpack.c.l.b16 %v10730_v12  ;;  %v10598_v40 = vmax.f32 %v10596_v3, %v10597_v54  ;;  %v15833_v57 = vld [vmem:[#allocation11 + $0x208] sm:$0xff]  }
 0x7b1   :  { %v10397_v16 = vmax.f32 %v18459_v4, %v19215_v63  ;;  %v10591_v51 = vmax.f32 %v18507_v29, %v19216_v35  ;;  %v11149_v13 = vunpack.c.l.b16 %v10734_v21  ;;  %v10881_v52 = vpack.c.b16 %v10877_v41, %v10877_v41  ;;  %11098 = vmatprep.subr.bf16.mxu0 %v19189_v1 }
 0x7b2   :  { %v10403_v48 = vrot.slane %v10402_v44, 2  ;;  %v10599_v50 = vrot.slane %v10598_v40, 2  ;;  %v19217_v29 = vcombine.high %v18407_v38, %v18407_v38  ;;  %v10624_v8 = vsel %vm2667_vm3, %v10228_v2, -inf  ;;  %v15836_v2 = vld [vmem:[#allocation11 + $0x210] sm:$0xff]  }
 0x7b3   :  { %v10398_v15 = vrot.slane %v10397_v16, 1  ;;  %v10592_v4 = vrot.slane %v10591_v51, 2  ;;  %v11153_v43 = vsel %vm3595_vm12, %v11149_v13, %v11145_v47  ;;  %14073 = vmatprep.mubr.msk.bf16.mxu0 %vm142_vm2, %v10881_v52  ;;  %v10625_v58 = vrot.slane %v10624_v8, 4 }
 0x7b4   :  { %v10404_v9 = vmax.f32 %v10402_v44, %v10403_v48  ;;  %v10428_v26 = vsel %vm2667_vm3, %v19217_v29, -inf  ;;  %v11157_v31 = vpack.c.b16 %v11153_v43, %v11153_v43  ;;  %11099 = vmatpush1.bf16.msra.mxu0 %v15828_v30  ;;  %v10600_v34 = vmax.f32 %v10598_v40, %v10599_v50  ;;  %v15835_v48 = vld [vmem:[#allocation11 + $0x1c8] sm:$0xff]   ;;  %v15838_v50 = vld [vmem:[#allocation11 + $0x1d0] sm:$0xff]  }
 0x7b5   :  { %v10399_v24 = vmax.f32 %v10397_v16, %v10398_v15  ;;  %v10593_v60 = vmax.f32 %v10591_v51, %v10592_v4  ;;  %v10429_v61 = vrot.slane %v10428_v26, 4  ;;  %v10379_v38 = vsel %vm2667_vm3, %v18417_v23, -inf  ;;  %11100 = vmatprep.subr.bf16.mxu0 %v19189_v1  ;;  %v15834_v51 = vld [vmem:[#allocation11 + $0x178] sm:$0xff]  }
 0x7b6   :  { %v10405_v45 = vrot.slane %v10404_v9, 1  ;;  %11366 = vmatprep.mubr.bf16.mxu1 %v11157_v31  ;;  %v10380_v22 = vrot.slane %v10379_v38, 4  ;;  %v10601_v44 = vrot.slane %v10600_v34, 1  ;;  %v10626_v55 = vmax.f32 %v10624_v8, %v10625_v58 }
 0x7b7   :  { %v10594_v17 = vrot.slane %v10593_v60, 1  ;;  %v11414_v27 = vpack.c.bf16 %v10399_v24, %v10399_v24  ;;  %11367 = vmatmul.mubr.bf16.vlgmr.msra.gmra.mrb[60].mxu1 %v11156_v0  ;;  %v10430_v3 = vmax.f32 %v10428_v26, %v10429_v61  ;;  %v19218_v12 = vrot.slane %v18525_v25, 4  ;;  %v15837_v24 = vld [vmem:[#allocation11 + $0x180] sm:$0xff]  }
 0x7b8   :  { %v10406_v11 = vmax.f32 %v10404_v9, %v10405_v45  ;;  %14405 = vmatpush3.bf16.msra.mxu1 %v15832_v14  ;;  %v10381_v16 = vmax.f32 %v10379_v38, %v10380_v22  ;;  %11101 = vmatpush1.bf16.msra.mxu0 %v15831_v53  ;;  %v10602_v35 = vmax.f32 %v10600_v34, %v10601_v44  ;;  %v10627_v0 = vrot.slane %v10626_v55, 2 }
 0x7b9   :  { %v10577_v21 = vmax.f32 %v18525_v25, %v19218_v12  ;;  %v10595_v63 = vmax.f32 %v10593_v60, %v10594_v17  ;;  %v11487_v23 = vunpack.c.l.b16 %v11414_v27  ;;  %14406 = vmatprep.subr.bf16.mxu1 %v15833_v57  ;;  %v10431_v41 = vrot.slane %v10430_v3, 2  ;;  %11102 = vmatprep.subr.bf16.mxu0 %v19189_v1  ;;  %v15839_v60 = vld [vmem:[#allocation11 + $0x218] sm:$0xff]  }
 0x7ba   :  { %v11415_v54 = vpack.c.bf16 %v10406_v11, %v10406_v11  ;;  %v10382_v40 = vrot.slane %v10381_v16, 2  ;;  %v19219_v25 = vcombine.high %v18414_v32, %v18414_v32  ;;  %v11419_v9 = vpack.c.bf16 %v10602_v35, %v10602_v35 }
 0x7bb   :  { %v10578_v30 = vrot.slane %v10577_v21, 2  ;;  %v11418_v13 = vpack.c.bf16 %v10595_v63, %v10595_v63  ;;  %v10432_v15 = vmax.f32 %v10430_v3, %v10431_v41  ;;  %v10628_v4 = vmax.f32 %v10626_v55, %v10627_v0  ;;  %v15841_v3 = vld [vmem:[#allocation11 + $0x1d8] sm:$0xff]  }
 0x7bc   :  { %v11488_v47 = vunpack.c.l.b16 %v11415_v54  ;;  %v10358_v52 = vsel %vm2689_vm4, %v19219_v25, -inf  ;;  %14407 = vmatpush3.bf16.msra.mxu1 %v15835_v48  ;;  %v10383_v26 = vmax.f32 %v10381_v16, %v10382_v40  ;;  %v19220_v31 = vcombine.high %v18567_v6, %v18567_v6  ;;  %11103 = vmatpush1.bf16.msra.mxu0 %v15834_v51  ;;  %v15840_v54 = vld [vmem:[#allocation11 + $0x188] sm:$0xff]   ;;  %v15842_v48 = vld [vmem:[#allocation11 + $0x220] sm:$0xff]  }
 0x7bd   :  { %v10579_v43 = vmax.f32 %v10577_v21, %v10578_v30  ;;  %v11491_v29 = vunpack.c.l.b16 %v11418_v13  ;;  %v10359_v8 = vrot.slane %v10358_v52, 4  ;;  %v11492_v45 = vunpack.c.l.b16 %v11419_v9  ;;  %14408 = vmatprep.subr.bf16.mxu1 %v15836_v2  ;;  %11104 = vmatprep.subr.bf16.mxu0 %v19189_v1  ;;  %v15844_v9 = vld [vmem:[#allocation11 + $0x1e0] sm:$0xff]  }
 0x7be   :  { %v10554_v14 = vsel %vm2689_vm4, %v19220_v31, -inf  ;;  %v10433_v53 = vrot.slane %v10432_v15, 1  ;;  %v10629_v34 = vrot.slane %v10628_v4, 1  ;;  %v10384_v58 = vrot.slane %v10383_v26, 1 }
 0x7bf   :  { %v10580_v57 = vrot.slane %v10579_v43, 1  ;;  %v18727_v61 = vsel %vm3595_vm12, %v11491_v29, %v11487_v23  ;;  %v10360_v38 = vmax.f32 %v10358_v52, %v10359_v8  ;;  %v10555_v11 = vrot.slane %v10554_v14, 4  ;;  %v15845_v8 = vld [vmem:[#allocation11 + $0x228] sm:$0xff]  }
 0x7c0   :  { %v10279_v6 = vcombine.high %v18655_v42, %v18655_v42  ;;  %v11496_v17 = vsel %vm3595_vm12, %v11492_v45, %v11488_v47  ;;  %v10434_v27 = vmax.f32 %v10432_v15, %v10433_v53  ;;  %v10630_v22 = vmax.f32 %v10628_v4, %v10629_v34  ;;  %14409 = vmatpush3.bf16.msra.mxu1 %v15838_v50 }
 0x7c1   :  { %v11500_v44 = vpack.c.b16 %v11496_v17, %v11496_v17  ;;  %v10385_v55 = vmax.f32 %v10383_v26, %v10384_v58  ;;  %v10581_v12 = vmax.f32 %v10579_v43, %v10580_v57  ;;  %v10361_v21 = vrot.slane %v10360_v38, 2  ;;  %11105 = vmatpush1.bf16.msra.mxu0 %v15837_v24  ;;  %14410 = vmatprep.subr.bf16.mxu1 %v15839_v60  ;;  %v15843_v26 = vld [vmem:[#allocation11 + $0x190] sm:$0xff]  }
 0x7c2   :  { %v11759_v63 = vpack.c.bf16 %v10434_v27, %v10434_v27  ;;  %v11763_v23 = vpack.c.bf16 %v10630_v22, %v10630_v22  ;;  %v10556_v16 = vmax.f32 %v10554_v14, %v10555_v11  ;;  %v19221_v35 = vcombine.high %v18441_v37, %v18441_v37  ;;  %11106 = vmatprep.subr.bf16.mxu0 %v19189_v1  ;;  %v15847_v11 = vld [vmem:[#allocation11 + $0x1e8] sm:$0xff]  }
 0x7c3   :  { %11709 = vmatprep.mubr.bf16.mxu1 %v11500_v44  ;;  %v10795_v2 = vpack.c.bf16 %v10385_v55, %v10385_v55  ;;  %v10799_v41 = vpack.c.bf16 %v10581_v12, %v10581_v12  ;;  %v10362_v0 = vmax.f32 %v10360_v38, %v10361_v21  ;;  %v19222_v25 = vrot.slane %v18465_v62, 2  ;;  %v15846_v55 = vld [vmem:[#allocation11 + $0x198] sm:$0xff]   ;;  %v15848_v12 = vld [vmem:[#allocation11 + $0x230] sm:$0xff]  }
 0x7c4   :  { %v10442_v51 = vsel %vm2689_vm4, %v19221_v35, -inf  ;;  %v11832_v47 = vunpack.c.l.b16 %v11759_v63  ;;  %v11836_v13 = vunpack.c.l.b16 %v11763_v23  ;;  %v10557_v40 = vrot.slane %v10556_v16, 2  ;;  %14411 = vmatpush3.bf16.msra.mxu1 %v15841_v3 }
 0x7c5   :  { %v10443_v30 = vrot.slane %v10442_v51, 4  ;;  %v10425_v52 = vmax.f32 %v18465_v62, %v19222_v25  ;;  %v10868_v15 = vunpack.c.l.b16 %v10795_v2  ;;  %v10872_v4 = vunpack.c.l.b16 %v10799_v41  ;;  %11107 = vmatpush1.bf16.msra.mxu0 %v15840_v54  ;;  %14412 = vmatprep.subr.bf16.mxu1 %v15842_v48 }
 0x7c6   :  { %v10363_v43 = vrot.slane %v10362_v0, 1  ;;  %v19223_v50 = vrot.slane %v18511_v36, 4  ;;  %v18744_v31 = vsel %vm3595_vm12, %v11836_v13, %v11832_v47  ;;  %v10558_v14 = vmax.f32 %v10556_v16, %v10557_v40  ;;  %11108 = vmatprep.subr.bf16.mxu0 %v19189_v1 }
 0x7c7   :  { %v10426_v45 = vrot.slane %v10425_v52, 1  ;;  %v10444_v24 = vmax.f32 %v10442_v51, %v10443_v30  ;;  %v10280_v62 = vcombine.high %v18658_v10, %v18658_v10  ;;  %v18750_v60 = vsel %vm3595_vm12, %v10872_v4, %v10868_v15  ;;  %v15850_v30 = vld [vmem:[#allocation11 + $0x1f0] sm:$0xff]   ;;  %v15851_v15 = vld [vmem:[#allocation11 + $0x238] sm:$0xff]  }
 0x7c8   :  { %v10619_v29 = vmax.f32 %v18511_v36, %v19223_v50  ;;  %v10364_v53 = vmax.f32 %v10362_v0, %v10363_v43  ;;  %v18754_v34 = vsel %vm2667_vm3, %v18643_v39, -inf  ;;  %v10559_v57 = vrot.slane %v10558_v14, 1  ;;  %14413 = vmatpush3.bf16.msra.mxu1 %v15844_v9  ;;  %v15849_v9 = vld [vmem:[#allocation11 + $0x1a0] sm:$0xff]  }
 0x7c9   :  { %v10427_v58 = vmax.f32 %v10425_v52, %v10426_v45  ;;  %v10445_v38 = vrot.slane %v10444_v24, 2  ;;  %v19224_v22 = vcombine.high %v18488_v7, %v18488_v7  ;;  %v10351_v3 = vsel %vm2667_vm3, %v18414_v32, -inf  ;;  %11109 = vmatpush1.bf16.msra.mxu0 %v15843_v26  ;;  %14414 = vmatprep.subr.bf16.mxu1 %v15845_v8 }
 0x7ca   :  { %v10620_v36 = vrot.slane %v10619_v29, 2  ;;  %v10732_v17 = vpack.c.bf16 %v10364_v53, %v10364_v53  ;;  %v11499_v21 = vpack.c.b16 %v18727_v61, %v18727_v61  ;;  %v10560_v54 = vmax.f32 %v10558_v14, %v10559_v57  ;;  %11110 = vmatprep.subr.bf16.mxu0 %v19189_v1  ;;  %v15860_v61 = vld [vmem:[#allocation11 + $0x2f0] sm:$0xff]  }
 0x7cb   :  { %v10638_v44 = vsel %vm2689_vm4, %v19224_v22, -inf  ;;  %v10446_v48 = vmax.f32 %v10444_v24, %v10445_v38  ;;  %v11758_v16 = vpack.c.bf16 %v10427_v58, %v10427_v58  ;;  %v10352_v7 = vrot.slane %v10351_v3, 4  ;;  %v15853_v58 = vld [vmem:[#allocation11 + $0x1f8] sm:$0xff]   ;;  %v15852_v22 = vld [vmem:[#allocation11 + $0x1a8] sm:$0xff]  }
 0x7cc   :  { %v10621_v27 = vmax.f32 %v10619_v29, %v10620_v36  ;;  %v10639_v63 = vrot.slane %v10638_v44, 4  ;;  %v19225_v35 = vrot.slane %v18617_v28, 4  ;;  %v10736_v32 = vpack.c.bf16 %v10560_v54, %v10560_v54  ;;  %14415 = vmatpush3.bf16.msra.mxu1 %v15847_v11 }
 0x7cd   :  { %v11147_v2 = vunpack.c.l.b16 %v10732_v17  ;;  %v10447_v41 = vrot.slane %v10446_v48, 1  ;;  %v10353_v13 = vmax.f32 %v10351_v3, %v10352_v7  ;;  %v19226_v25 = vcombine.high %v18420_v59, %v18420_v59  ;;  %11111 = vmatpush1.bf16.msra.mxu0 %v15846_v55  ;;  %14416 = vmatprep.subr.bf16.mxu1 %v15848_v12 }
 0x7ce   :  { %v10622_v23 = vrot.slane %v10621_v27, 1  ;;  %v10549_v51 = vmax.f32 %v18617_v28, %v19225_v35  ;;  %v10640_v0 = vmax.f32 %v10638_v44, %v10639_v63  ;;  %v11151_v4 = vunpack.c.l.b16 %v10736_v32  ;;  %11112 = vmatprep.subr.bf16.mxu0 %v19189_v1  ;;  %v15854_v44 = vld [vmem:[#allocation11 + $0x2e0] sm:$0xff]  }
 0x7cf   :  { %v10414_v52 = vsel %vm2689_vm4, %v19226_v25, -inf  ;;  %v10448_v28 = vmax.f32 %v10446_v48, %v10447_v41  ;;  %v10354_v26 = vrot.slane %v10353_v13, 2  ;;  %v19227_v14 = vcombine.high %v18485_v56, %v18485_v56  ;;  %v15856_v32 = vld [vmem:[#allocation11 + $0x2a0] sm:$0xff]  }
 0x7d0   :  { %v10623_v47 = vmax.f32 %v10621_v27, %v10622_v23  ;;  %v10550_v40 = vrot.slane %v10549_v51, 2  ;;  %v10641_v43 = vrot.slane %v10640_v0, 2  ;;  %v10415_v50 = vrot.slane %v10414_v52, 4  ;;  %14417 = vmatpush3.bf16.msra.mxu1 %v15850_v30 }
 0x7d1   :  { %v10610_v45 = vsel %vm2689_vm4, %v19227_v14, -inf  ;;  %v18778_v24 = vsel %vm3595_vm12, %v11151_v4, %v11147_v2  ;;  %v11761_v36 = vpack.c.bf16 %v10448_v28, %v10448_v28  ;;  %v11831_v38 = vunpack.c.l.b16 %v11758_v16  ;;  %11113 = vmatpush1.bf16.msra.mxu0 %v15849_v9  ;;  %14418 = vmatprep.subr.bf16.mxu1 %v15851_v15 }
 0x7d2   :  { %v11762_v29 = vpack.c.bf16 %v10623_v47, %v10623_v47  ;;  %v10551_v8 = vmax.f32 %v10549_v51, %v10550_v40  ;;  %v10642_v53 = vmax.f32 %v10640_v0, %v10641_v43  ;;  %v10416_v57 = vmax.f32 %v10414_v52, %v10415_v50  ;;  %11114 = vmatprep.subr.bf16.mxu0 %v19189_v1  ;;  %v15855_v47 = vld [vmem:[#allocation11 + $0x1b0] sm:$0xff]  }
 0x7d3   :  { %v10355_v17 = vmax.f32 %v10353_v13, %v10354_v26  ;;  %v11844_v56 = vpack.c.b16 %v18744_v31, %v18744_v31  ;;  %v10611_v12 = vrot.slane %v10610_v45, 4  ;;  %v10435_v23 = vsel %vm2667_vm3, %v18441_v37, -inf  ;;  %v15857_v13 = vld [vmem:[#allocation11 + $0x2e8] sm:$0xff]  }
 0x7d4   :  { %v11835_v11 = vunpack.c.l.b16 %v11762_v29  ;;  %v10552_v27 = vrot.slane %v10551_v8, 1  ;;  %v10643_v3 = vrot.slane %v10642_v53, 1  ;;  %v10417_v55 = vrot.slane %v10416_v57, 2  ;;  %14419 = vmatpush3.bf16.msra.mxu1 %v15853_v58 }
 0x7d5   :  { %v10356_v48 = vrot.slane %v10355_v17, 1  ;;  %v11834_v7 = vunpack.c.l.b16 %v11761_v36  ;;  %v10612_v51 = vmax.f32 %v10610_v45, %v10611_v12  ;;  %v10436_v41 = vrot.slane %v10435_v23, 4  ;;  %11115 = vmatpush1.bf16.msra.mxu0 %v15852_v22  ;;  %14426 = vmatprep.subr.bf16.mxu1 %v15854_v44  ;;  %v15862_v12 = vld [vmem:[#allocation11 + $0x2b0] sm:$0xff]  }
 0x7d6   :  { %v18784_v54 = vsel %vm3595_vm12, %v11835_v11, %v11831_v38  ;;  %v10553_v63 = vmax.f32 %v10551_v8, %v10552_v27  ;;  %v10644_v16 = vmax.f32 %v10642_v53, %v10643_v3  ;;  %v10418_v35 = vmax.f32 %v10416_v57, %v10417_v55  ;;  %11116 = vmatprep.subr.bf16.mxu0 %v19189_v1  ;;  %v15859_v8 = vld [vmem:[#allocation11 + $0x2a8] sm:$0xff]   ;;  %v15858_v57 = vld [vmem:[#allocation11 + $0x1b8] sm:$0xff]  }
 0x7d7   :  { %v10357_v31 = vmax.f32 %v10355_v17, %v10356_v48  ;;  %v19228_v0 = vrot.slane %v18542_v49, 4  ;;  %v10613_v37 = vrot.slane %v10612_v51, 2  ;;  %v19229_v52 = vcombine.high %v18608_v20, %v18608_v20  ;;  %11710 = vmatmul.mubr.bf16.vlgmr.msra.gmra.mrb[64].mxu1 %v11499_v21 }
 0x7d8   :  { %v10735_v2 = vpack.c.bf16 %v10553_v63, %v10553_v63  ;;  %v11765_v40 = vpack.c.bf16 %v10644_v16, %v10644_v16  ;;  %v10419_v25 = vrot.slane %v10418_v35, 1  ;;  %v10437_v28 = vmax.f32 %v10435_v23, %v10436_v41  ;;  %14427 = vmatpush3.bf16.msra.mxu1 %v15856_v32  ;;  %12053 = vmatprep.mubr.bf16.mxu1 %v11844_v56 }
 0x7d9   :  { %v10633_v30 = vmax.f32 %v18542_v49, %v19228_v0  ;;  %v10484_v9 = vsel %vm2667_vm3, %v19229_v52, -inf  ;;  %v10731_v15 = vpack.c.bf16 %v10357_v31, %v10357_v31  ;;  %v10614_v29 = vmax.f32 %v10612_v51, %v10613_v37  ;;  %11117 = vmatpush1.bf16.msra.mxu0 %v15855_v47  ;;  %14428 = vmatprep.subr.bf16.mxu1 %v15857_v13  ;;  %v15863_v31 = vld [vmem:[#allocation11 + $0x2f8] sm:$0xff]  }
 0x7da   :  { %v11150_v4 = vunpack.c.l.b16 %v10735_v2  ;;  %v11838_v49 = vunpack.c.l.b16 %v11765_v40  ;;  %v10420_v50 = vmax.f32 %v10418_v35, %v10419_v25  ;;  %v10485_v26 = vrot.slane %v10484_v9, 4  ;;  %11118 = vmatprep.subr.bf16.mxu0 %v19189_v1  ;;  %v15865_v25 = vld [vmem:[#allocation11 + $0x2b8] sm:$0xff]  }
 0x7db   :  { %v10634_v43 = vrot.slane %v10633_v30, 2  ;;  %v11146_v20 = vunpack.c.l.b16 %v10731_v15  ;;  %v10438_v14 = vrot.slane %v10437_v28, 2  ;;  %v19230_v53 = vcombine.high %v18643_v39, %v18643_v39 }
 0x7dc   :  { %v18804_v21 = vsel %vm3595_vm12, %v11838_v49, %v11834_v7  ;;  %v10615_v58 = vrot.slane %v10614_v29, 1  ;;  %v11417_v38 = vpack.c.bf16 %v10420_v50, %v10420_v50  ;;  %v10486_v11 = vmax.f32 %v10484_v9, %v10485_v26  ;;  %14429 = vmatpush3.bf16.msra.mxu1 %v15859_v8 }
 0x7dd   :  { %v10635_v45 = vmax.f32 %v10633_v30, %v10634_v43  ;;  %v10680_v36 = vsel %vm2667_vm3, %v19230_v53, -inf  ;;  %v10880_v17 = vpack.c.b16 %v18750_v60, %v18750_v60  ;;  %v18810_v27 = vsel %vm3595_vm12, %v11150_v4, %v11146_v20  ;;  %11119 = vmatpush1.bf16.msra.mxu0 %v15858_v57  ;;  %14430 = vmatprep.subr.bf16.mxu1 %v15860_v61  ;;  %v15861_v60 = vld [vmem:[#allocation11 + $0x80] sm:$0xff]   ;;  %v15864_v4 = vld [vmem:[#allocation11 + $0x88] sm:$0xff]  }
 0x7de   :  { %v10439_v39 = vmax.f32 %v10437_v28, %v10438_v14  ;;  %v11159_v44 = vpack.c.b16 %v18778_v24, %v18778_v24  ;;  %v10616_v56 = vmax.f32 %v10614_v29, %v10615_v58  ;;  %v11490_v3 = vunpack.c.l.b16 %v11417_v38  ;;  %11374 = vmatprep.subr.bf16.mxu0 %v19189_v1 }
 0x7df   :  { %v10636_v22 = vrot.slane %v10635_v45, 1  ;;  %v10487_v55 = vrot.slane %v10486_v11, 2  ;;  %v10681_v23 = vrot.slane %v10680_v36, 4  ;;  %v10407_v16 = vsel %vm2667_vm3, %v18420_v59, -inf }
 0x7e0   :  { %v10440_v48 = vrot.slane %v10439_v39, 1  ;;  %v11421_v7 = vpack.c.bf16 %v10616_v56, %v10616_v56  ;;  %v10408_v51 = vrot.slane %v10407_v16, 4  ;;  %v19231_v32 = vrot.slane %v18538_v19, 4  ;;  %11129 = vmatmul.mubr.bf16.vlgmr.msra.gmra.mrb[104].mxu0 %v10880_v17  ;;  %14431 = vmatpush3.bf16.msra.mxu1 %v15862_v12  ;;  %v15867_v17 = vld [vmem:[#allocation11 + $0x90] sm:$0xff]  }
 0x7e1   :  { %v10637_v63 = vmax.f32 %v10635_v45, %v10636_v22  ;;  %v10488_v35 = vmax.f32 %v10486_v11, %v10487_v55  ;;  %v10682_v0 = vmax.f32 %v10680_v36, %v10681_v23  ;;  %v10245_v30 = vcombine.high %v18480_v18, %v18480_v18  ;;  %11375 = vmatpush1.bf16.msra.mxu0 %v15861_v60  ;;  %v15866_v18 = vld [vmem:[#allocation11 + $0x300] sm:$0xff]  }
 0x7e2   :  { %v10605_v24 = vmax.f32 %v18538_v19, %v19231_v32  ;;  %v10441_v2 = vmax.f32 %v10439_v39, %v10440_v48  ;;  %v11494_v59 = vunpack.c.l.b16 %v11421_v7  ;;  %v10409_v13 = vmax.f32 %v10407_v16, %v10408_v51  ;;  %14102 = vmatprep.mubr.msk.bf16.mxu0 %vm142_vm2, %v11159_v44  ;;  %11376 = vmatprep.subr.bf16.mxu0 %v19189_v1  ;;  %v15868_v36 = vld [vmem:[#allocation11 + $0x2c0] sm:$0xff]   ;;  %v15869_v39 = vld [vmem:[#allocation11 + $0x308] sm:$0xff]  }
 0x7e3   :  { %v11764_v41 = vpack.c.bf16 %v10637_v63, %v10637_v63  ;;  %v10489_v47 = vrot.slane %v10488_v35, 1  ;;  %v10683_v9 = vrot.slane %v10682_v0, 2  ;;  %v19232_v19 = vcombine.high %v18605_v33, %v18605_v33  ;;  %14432 = vmatprep.subr.bf16.mxu1 %v15863_v31  ;;  %v19234_v7 = vld [vmem:[#allocation31_spill] sm:$0xff]  ;;  %v15871_v32 = vld [vmem:[#allocation11 + $0x2c8] sm:$0xff]  }
 0x7e4   :  { %v10606_v40 = vrot.slane %v10605_v24, 2  ;;  %v11760_v37 = vpack.c.bf16 %v10441_v2, %v10441_v2  ;;  %v18828_v28 = vsel %vm3595_vm12, %v11494_v59, %v11490_v3  ;;  %v10410_v49 = vrot.slane %v10409_v13, 2  ;;  %14433 = vmatpush3.bf16.msra.mxu1 %v15865_v25 }
 0x7e5   :  { %v11837_v52 = vunpack.c.l.b16 %v11764_v41  ;;  %v10456_v15 = vsel %vm2667_vm3, %v19232_v19, -inf  ;;  %v10490_v43 = vmax.f32 %v10488_v35, %v10489_v47  ;;  %v10674_v29 = vrot.slane %v18754_v34, 4  ;;  %11377 = vmatpush1.bf16.msra.mxu0 %v15864_v4  ;;  %14434 = vmatprep.subr.bf16.mxu1 %v15866_v18  ;;  %v15874_v18 = vld [vmem:[#allocation11 + $0x2d0] sm:$0xff]  }
 0x7e6   :  { %v10607_v50 = vmax.f32 %v10605_v24, %v10606_v40  ;;  %v11833_v26 = vunpack.c.l.b16 %v11760_v37  ;;  %v10684_v33 = vmax.f32 %v10682_v0, %v10683_v9  ;;  %v10457_v8 = vrot.slane %v10456_v15, 4  ;;  %11378 = vmatprep.subr.bf16.mxu0 %v19189_v1  ;;  %v15870_v0 = vld [vmem:[#allocation11 + $0x98] sm:$0xff]  }
 0x7e7   :  { %v12447_v20 = vpack.c.bf16 %v10490_v43, %v10490_v43  ;;  %v10411_v14 = vmax.f32 %v10409_v13, %v10410_v49  ;;  %v10652_v53 = vsel %vm2667_vm3, %v10245_v30, -inf  ;;  %v18838_v11 = vsel %vm2667_vm3, %v18646_v46, -inf  ;;  %v15872_v30 = vld [vmem:[#allocation11 + $0x310] sm:$0xff]  }
 0x7e8   :  { %v10608_v45 = vrot.slane %v10607_v50, 1  ;;  %v18834_v57 = vsel %vm3595_vm12, %v11837_v52, %v11833_v26  ;;  %v10685_v61 = vrot.slane %v10684_v33, 1  ;;  %v10458_v58 = vmax.f32 %v10456_v15, %v10457_v8  ;;  %14435 = vmatpush3.bf16.msra.mxu1 %v15868_v36  ;;  %v15875_v8 = vld [vmem:[#allocation11 + $0x318] sm:$0xff]  }
 0x7e9   :  { %v10653_v38 = vrot.slane %v10652_v53, 4  ;;  %v12520_v22 = vunpack.c.l.b16 %v12447_v20  ;;  %v10412_v44 = vrot.slane %v10411_v14, 1  ;;  %v19233_v48 = vrot.slane %v18638_v5, 2  ;;  %11379 = vmatpush1.bf16.msra.mxu0 %v15867_v17  ;;  %14436 = vmatprep.subr.bf16.mxu1 %v15869_v39  ;;  %v19237_v39 = vld [vmem:[#allocation34_spill] sm:$0xff] }
 0x7ea   :  { %v10609_v56 = vmax.f32 %v10607_v50, %v10608_v45  ;;  %v10686_v3 = vmax.f32 %v10684_v33, %v10685_v61  ;;  %v10459_v55 = vrot.slane %v10458_v58, 2  ;;  %v10675_v60 = vmax.f32 %v18754_v34, %v10674_v29  ;;  %11380 = vmatprep.subr.bf16.mxu0 %v19189_v1  ;;  %v15873_v33 = vld [vmem:[#allocation11 + $0xa0] sm:$0xff]  }
 0x7eb   :  { %v10654_v12 = vmax.f32 %v10652_v53, %v10653_v38  ;;  %v10481_v63 = vmax.f32 %v18638_v5, %v19233_v48  ;;  %v10413_v23 = vmax.f32 %v10411_v14, %v10412_v44  ;;  %v19235_v35 = vcombine.high %v19234_v7, %v19234_v7 }
 0x7ec   :  { %v11420_v16 = vpack.c.bf16 %v10609_v56, %v10609_v56  ;;  %v12451_v24 = vpack.c.bf16 %v10686_v3, %v10686_v3  ;;  %v10460_v31 = vmax.f32 %v10458_v58, %v10459_v55  ;;  %v10676_v47 = vrot.slane %v10675_v60, 2  ;;  %14437 = vmatpush3.bf16.msra.mxu1 %v15871_v32  ;;  %v15877_v56 = vld [vmem:[#allocation11 + $0x2d8] sm:$0xff]  }
 0x7ed   :  { %v10498_v51 = vsel %vm2689_vm4, %v19235_v35, -inf  ;;  %v10655_v2 = vrot.slane %v10654_v12, 2  ;;  %v10482_v41 = vrot.slane %v10481_v63, 1  ;;  %v11416_v5 = vpack.c.bf16 %v10413_v23, %v10413_v23  ;;  %11381 = vmatpush1.bf16.msra.mxu0 %v15870_v0  ;;  %14438 = vmatprep.subr.bf16.mxu1 %v15872_v30  ;;  %v19241_v23 = vld [vmem:[#allocation26_spill] sm:$0xff] }
 0x7ee   :  { %v11493_v59 = vunpack.c.l.b16 %v11420_v16  ;;  %v10499_v13 = vrot.slane %v10498_v51, 4  ;;  %v12524_v34 = vunpack.c.l.b16 %v12451_v24  ;;  %v10461_v40 = vrot.slane %v10460_v31, 1  ;;  %11382 = vmatprep.subr.bf16.mxu0 %v19189_v1 }
 0x7ef   :  { %v10656_v25 = vmax.f32 %v10654_v12, %v10655_v2  ;;  %v10483_v37 = vmax.f32 %v10481_v63, %v10482_v41  ;;  %v11489_v52 = vunpack.c.l.b16 %v11416_v5  ;;  %v10677_v9 = vmax.f32 %v10675_v60, %v10676_v47  ;;  %v19239_v12 = vld [vmem:[#allocation30_spill] sm:$0xff]  ;;  %v15876_v60 = vld [vmem:[#allocation11 + $0xa8] sm:$0xff]  }
 0x7f0   :  { %v10500_v19 = vmax.f32 %v10498_v51, %v10499_v13  ;;  %v19236_v15 = vcombine.high %v18646_v46, %v18646_v46  ;;  %v18855_v43 = vsel %vm3595_vm12, %v12524_v34, %v12520_v22  ;;  %v10462_v49 = vmax.f32 %v10460_v31, %v10461_v40  ;;  %14439 = vmatpush3.bf16.msra.mxu1 %v15874_v18  ;;  %v19243_v41 = vld [vmem:[#allocation29_spill] sm:$0xff]  ;;  %v15879_v34 = vld [vmem:[#allocation11 + $0x320] sm:$0xff]  }
 0x7f1   :  { %v10657_v50 = vrot.slane %v10656_v25, 1  ;;  %v12446_v29 = vpack.c.bf16 %v10483_v37, %v10483_v37  ;;  %v10688_v26 = vrot.slane %v18838_v11, 4  ;;  %v18859_v20 = vsel %vm3595_vm12, %v11493_v59, %v11489_v52  ;;  %11383 = vmatpush1.bf16.msra.mxu0 %v15873_v33  ;;  %14440 = vmatprep.subr.bf16.mxu1 %v15875_v8  ;;  %v19245_v33 = vld [vmem:[#allocation33_spill] sm:$0xff] }
 0x7f2   :  { %v10694_v4 = vsel %vm2689_vm4, %v19236_v15, -inf  ;;  %v10678_v46 = vrot.slane %v10677_v9, 1  ;;  %v10501_v14 = vrot.slane %v10500_v19, 2  ;;  %v11843_v45 = vpack.c.b16 %v18784_v54, %v18784_v54  ;;  %11384 = vmatprep.subr.bf16.mxu0 %v19189_v1 }
 0x7f3   :  { %v10658_v53 = vmax.f32 %v10656_v25, %v10657_v50  ;;  %v12103_v36 = vpack.c.bf16 %v10462_v49, %v10462_v49  ;;  %v12519_v61 = vunpack.c.l.b16 %v12446_v29  ;;  %v10695_v17 = vrot.slane %v10694_v4, 4 }
 0x7f4   :  { %v10679_v58 = vmax.f32 %v10677_v9, %v10678_v46  ;;  %v10502_v38 = vmax.f32 %v10500_v19, %v10501_v14  ;;  %v19238_v22 = vrot.slane %v19237_v39, 2  ;;  %v19240_v48 = vrot.slane %v19239_v12, 4  ;;  %14441 = vmatpush3.bf16.msra.mxu1 %v15877_v56  ;;  %v15878_v19 = vld [vmem:[#allocation11 + $0xb0] sm:$0xff]  }
 0x7f5   :  { %v12107_v3 = vpack.c.bf16 %v10658_v53, %v10658_v53  ;;  %v12176_v55 = vunpack.c.l.b16 %v12103_v36  ;;  %v19242_v54 = vcombine.high %v19241_v23, %v19241_v23  ;;  %v10696_v51 = vmax.f32 %v10694_v4, %v10695_v17  ;;  %11385 = vmatpush1.bf16.msra.mxu0 %v15876_v60  ;;  %12061 = vmatprep.subr.bf16.mxu1 %v19189_v1  ;;  %v19249_v23 = vld [vmem:[#allocation27_spill] sm:$0xff]  ;;  %v19251_v60 = vld [vmem:[#allocation25_spill] sm:$0xff] }
 0x7f6   :  { %v10453_v44 = vmax.f32 %v19237_v39, %v19238_v22  ;;  %v10647_v63 = vmax.f32 %v19239_v12, %v19240_v48  ;;  %v12450_v7 = vpack.c.bf16 %v10679_v58, %v10679_v58  ;;  %v10503_v35 = vrot.slane %v10502_v38, 1  ;;  %11386 = vmatprep.subr.bf16.mxu0 %v19189_v1 }
 0x7f7   :  { %v10470_v16 = vsel %vm2689_vm4, %v19242_v54, -inf  ;;  %v12180_v24 = vunpack.c.l.b16 %v12107_v3  ;;  %v19244_v0 = vcombine.high %v19243_v41, %v19243_v41  ;;  %v10697_v47 = vrot.slane %v10696_v51, 2  ;;  %12054 = vmatmul.mubr.bf16.vlgmr.msra.gmra.mrb[68].mxu1 %v11843_v45  ;;  %v15880_v45 = vld [vmem:[#allocation11 + $0xb8] sm:$0xff]  }
 0x7f8   :  { %v10454_v32 = vrot.slane %v10453_v44, 1  ;;  %v10648_v31 = vrot.slane %v10647_v63, 2  ;;  %v10471_v2 = vrot.slane %v10470_v16, 4  ;;  %v12523_v5 = vunpack.c.l.b16 %v12450_v7  ;;  %12062 = vmatpush1.bf16.msra.mxu1 %v15879_v34 }
 0x7f9   :  { %v10666_v30 = vsel %vm2689_vm4, %v19244_v0, -inf  ;;  %v10504_v59 = vmax.f32 %v10502_v38, %v10503_v35  ;;  %v18880_v40 = vsel %vm3595_vm12, %v12180_v24, %v12176_v55  ;;  %v18884_v9 = vsel %vm2667_vm3, %v18655_v42, -inf  ;;  %v15881_v38 = vld [vmem:[#allocation11 + $0x328] sm:$0xff]   ;;  %11387 = vmatpush1.bf16.msra.mxu0 %v15878_v19  ;;  %12063 = vmatprep.subr.bf16.mxu1 %v19189_v1  ;;  %v15883_v24 = vld [vmem:[#allocation11 + $0x330] sm:$0xff]  }
 0x7fa   :  { %v10455_v13 = vmax.f32 %v10453_v44, %v10454_v32  ;;  %v10649_v25 = vmax.f32 %v10647_v63, %v10648_v31  ;;  %v10472_v37 = vmax.f32 %v10470_v16, %v10471_v2  ;;  %v10667_v52 = vrot.slane %v10666_v30, 4  ;;  %11388 = vmatprep.subr.bf16.mxu0 %v19189_v1  ;;  %v15886_v42 = vld [vmem:[#allocation11 + $0xd0] sm:$0xff]  }
 0x7fb   :  { %v11846_v15 = vpack.c.b16 %v18804_v21, %v18804_v21  ;;  %v18890_v4 = vsel %vm3595_vm12, %v12523_v5, %v12519_v61  ;;  %v10698_v18 = vmax.f32 %v10696_v51, %v10697_v47  ;;  %v12449_v49 = vpack.c.bf16 %v10504_v59, %v10504_v59  ;;  %v19247_v21 = vld [vmem:[#allocation28_spill] sm:$0xff] }
 0x7fc   :  { %v10650_v50 = vrot.slane %v10649_v25, 1  ;;  %v12102_v29 = vpack.c.bf16 %v10455_v13, %v10455_v13  ;;  %v19246_v8 = vcombine.high %v19245_v33, %v19245_v33  ;;  %v10473_v53 = vrot.slane %v10472_v37, 2  ;;  %12064 = vmatpush1.bf16.msra.mxu1 %v15881_v38 }
 0x7fd   :  { %v10699_v14 = vrot.slane %v10698_v18, 1  ;;  %v10668_v36 = vmax.f32 %v10666_v30, %v10667_v52  ;;  %v19248_v58 = vrot.slane %v19247_v21, 4  ;;  %14160 = vmatprep.mubr.msk.bf16.mxu1 %vm142_vm2, %v11846_v15  ;;  %v12522_v17 = vunpack.c.l.b16 %v12449_v49  ;;  %11389 = vmatpush1.bf16.msra.mxu0 %v15880_v45  ;;  %v15882_v30 = vld [vmem:[#allocation11 + $0xc0] sm:$0xff]  }
 0x7fe   :  { %v18897_v46 = vsel %vm2667_vm3, %v19246_v8, -inf  ;;  %v10651_v39 = vmax.f32 %v10649_v25, %v10650_v50  ;;  %v12175_v22 = vunpack.c.l.b16 %v12102_v29  ;;  %v10689_v44 = vmax.f32 %v18838_v11, %v10688_v26  ;;  %12065 = vmatprep.subr.bf16.mxu1 %v19189_v1  ;;  %11390 = vmatprep.subr.bf16.mxu0 %v19189_v1  ;;  %v15885_v29 = vld [vmem:[#allocation11 + $0x338] sm:$0xff]  }
 0x7ff   :  { %v10493_v61 = vmax.f32 %v19247_v21, %v19248_v58  ;;  %v10700_v56 = vmax.f32 %v10698_v18, %v10699_v14  ;;  %v10474_v3 = vmax.f32 %v10472_v37, %v10473_v53  ;;  %v10669_v55 = vrot.slane %v10668_v36, 2  ;;  %v15884_v53 = vld [vmem:[#allocation11 + $0xc8] sm:$0xff]  }
 0x800   :  { %v12106_v48 = vpack.c.bf16 %v10651_v39, %v10651_v39  ;;  %v10690_v63 = vrot.slane %v10689_v44, 2  ;;  %v19250_v54 = vrot.slane %v19249_v23, 4  ;;  %v19252_v7 = vrot.slane %v19251_v60, 4  ;;  %12066 = vmatpush1.bf16.msra.mxu1 %v15883_v24 }
 0x801   :  { %v10494_v12 = vrot.slane %v10493_v61, 2  ;;  %v12453_v26 = vpack.c.bf16 %v10700_v56, %v10700_v56  ;;  %v10475_v35 = vrot.slane %v10474_v3, 1  ;;  %v10670_v51 = vmax.f32 %v10668_v36, %v10669_v55  ;;  %11391 = vmatpush1.bf16.msra.mxu0 %v15882_v30  ;;  %12067 = vmatprep.subr.bf16.mxu1 %v19189_v1  ;;  %v15887_v55 = vld [vmem:[#allocation11 + $0x340] sm:$0xff]  }
 0x802   :  { %v10465_v16 = vmax.f32 %v19249_v23, %v19250_v54  ;;  %v10661_v11 = vmax.f32 %v19251_v60, %v19252_v7  ;;  %v12179_v31 = vunpack.c.l.b16 %v12106_v48  ;;  %v10691_v2 = vmax.f32 %v10689_v44, %v10690_v63  ;;  %11392 = vmatprep.subr.bf16.mxu0 %v19189_v1  ;;  %v19253_v23 = vld [vmem:[#allocation35_spill] sm:$0xff] }
 0x803   :  { %v10495_v32 = vmax.f32 %v10493_v61, %v10494_v12  ;;  %v12526_v5 = vunpack.c.l.b16 %v12453_v26  ;;  %v10476_v59 = vmax.f32 %v10474_v3, %v10475_v35  ;;  %v10671_v47 = vrot.slane %v10670_v51, 1 }
 0x804   :  { %v10466_v41 = vrot.slane %v10465_v16, 2  ;;  %v10662_v0 = vrot.slane %v10661_v11, 2  ;;  %v18917_v34 = vsel %vm3595_vm12, %v12179_v31, %v12175_v22  ;;  %v10692_v25 = vrot.slane %v10691_v2, 1  ;;  %12068 = vmatpush1.bf16.msra.mxu1 %v15885_v29 }
 0x805   :  { %v10496_v13 = vrot.slane %v10495_v32, 1  ;;  %v10702_v19 = vrot.slane %v18884_v9, 4  ;;  %v18921_v15 = vsel %vm3595_vm12, %v12526_v5, %v12522_v17  ;;  %v10672_v18 = vmax.f32 %v10670_v51, %v10671_v47  ;;  %11393 = vmatpush1.bf16.msra.mxu0 %v15884_v53  ;;  %12069 = vmatprep.subr.bf16.mxu1 %v19189_v1  ;;  %v19255_v51 = vld [vmem:[#allocation24_spill] sm:$0xff]  ;;  %v15891_v53 = vld [vmem:[#allocation11 + $0x350] sm:$0xff]  }
 0x806   :  { %v10467_v37 = vmax.f32 %v10465_v16, %v10466_v41  ;;  %v10663_v52 = vmax.f32 %v10661_v11, %v10662_v0  ;;  %v12105_v49 = vpack.c.bf16 %v10476_v59, %v10476_v59  ;;  %v18925_v50 = vsel %vm2667_vm3, %v18658_v10, -inf  ;;  %11394 = vmatprep.subr.bf16.mxu0 %v19189_v1  ;;  %v15889_v0 = vld [vmem:[#allocation11 + $0x348] sm:$0xff]  }
 0x807   :  { %v10497_v33 = vmax.f32 %v10495_v32, %v10496_v13  ;;  %v10693_v8 = vmax.f32 %v10691_v2, %v10692_v25  ;;  %v12109_v36 = vpack.c.bf16 %v10672_v18, %v10672_v18  ;;  %v10513_v61 = vrot.slane %v18897_v46, 4  ;;  %v19256_v5 = vld [vmem:[#allocation32_spill] sm:$0xff]  ;;  %v15888_v25 = vld [vmem:[#allocation11 + $0xd8] sm:$0xff]  }
 0x808   :  { %v10468_v14 = vrot.slane %v10467_v37, 1  ;;  %v12178_v21 = vunpack.c.l.b16 %v12105_v49  ;;  %v10664_v58 = vrot.slane %v10663_v52, 1  ;;  %v10708_v22 = vsel %vm2667_vm3, %v10279_v6, -inf  ;;  %12070 = vmatpush1.bf16.msra.mxu1 %v15887_v55 }
 0x809   :  { %v12448_v38 = vpack.c.bf16 %v10497_v33, %v10497_v33  ;;  %v12452_v17 = vpack.c.bf16 %v10693_v8, %v10693_v8  ;;  %v12182_v44 = vunpack.c.l.b16 %v12109_v36  ;;  %v10514_v56 = vmax.f32 %v18897_v46, %v10513_v61  ;;  %11395 = vmatpush1.bf16.msra.mxu0 %v15886_v42  ;;  %12071 = vmatprep.subr.bf16.mxu1 %v19189_v1  ;;  %v15890_v61 = vld [vmem:[#allocation11 + $0x240] sm:$0xff]  }
 0x80a   :  { %v10469_v39 = vmax.f32 %v10467_v37, %v10468_v14  ;;  %v10665_v45 = vmax.f32 %v10663_v52, %v10664_v58  ;;  %v10709_v3 = vrot.slane %v10708_v22, 4  ;;  %v19254_v54 = vrot.slane %v19253_v23, 2  ;;  %11396 = vmatprep.subr.bf16.mxu0 %v19189_v1 }
 0x80b   :  { %v12521_v12 = vunpack.c.l.b16 %v12448_v38  ;;  %v12525_v48 = vunpack.c.l.b16 %v12452_v17  ;;  %v18940_v6 = vsel %vm3595_vm12, %v12182_v44, %v12178_v21  ;;  %v10515_v7 = vrot.slane %v10514_v56, 2 }
 0x80c   :  { %v12104_v63 = vpack.c.bf16 %v10469_v39, %v10469_v39  ;;  %v10509_v16 = vmax.f32 %v19253_v23, %v19254_v54  ;;  %v12108_v60 = vpack.c.bf16 %v10665_v45, %v10665_v45  ;;  %v10710_v46 = vmax.f32 %v10708_v22, %v10709_v3  ;;  %12072 = vmatpush1.bf16.msra.mxu1 %v15889_v0 }
 0x80d   :  { %v18944_v11 = vsel %vm3595_vm12, %v12525_v48, %v12521_v12  ;;  %v10520_v32 = vrot.slane %v19255_v51, 4  ;;  %v10516_v31 = vmax.f32 %v10514_v56, %v10515_v7  ;;  %v10716_v41 = vrot.slane %v18925_v50, 4  ;;  %11397 = vmatpush1.bf16.msra.mxu0 %v15888_v25  ;;  %12073 = vmatprep.subr.bf16.mxu1 %v19189_v1  ;;  %v15893_v48 = vld [vmem:[#allocation11 + $0x358] sm:$0xff]  }
 0x80e   :  { %v12177_v26 = vunpack.c.l.b16 %v12104_v63  ;;  %v10510_v35 = vrot.slane %v10509_v16, 1  ;;  %v12181_v24 = vunpack.c.l.b16 %v12108_v60  ;;  %v10711_v2 = vrot.slane %v10710_v46, 2  ;;  %11717 = vmatprep.subr.bf16.mxu0 %v19189_v1 }
 0x80f   :  { %v10703_v30 = vmax.f32 %v18884_v9, %v10702_v19  ;;  %v19257_v59 = vcombine.high %v19256_v5, %v19256_v5  ;;  %v10722_v13 = vsel %vm2689_vm4, %v10280_v62, -inf  ;;  %v10517_v52 = vrot.slane %v10516_v31, 1  ;;  %v15894_v5 = vld [vmem:[#allocation11 + $0x250] sm:$0xff]  }
 0x810   :  { %v18959_v37 = vsel %vm3595_vm12, %v12181_v24, %v12177_v26  ;;  %v10712_v18 = vmax.f32 %v10710_v46, %v10711_v2  ;;  %v10511_v19 = vmax.f32 %v10509_v16, %v10510_v35  ;;  %v10723_v29 = vrot.slane %v10722_v13, 4  ;;  %12074 = vmatpush1.bf16.msra.mxu1 %v15891_v53  ;;  %v15892_v16 = vld [vmem:[#allocation11 + $0x248] sm:$0xff]   ;;  %v15901_v53 = vld [vmem:[#allocation11 + $0x378] sm:$0xff]  }
 0x811   :  { %v10526_v47 = vsel %vm2689_vm4, %v19257_v59, -inf  ;;  %v10704_v49 = vrot.slane %v10703_v30, 2  ;;  %v10518_v33 = vmax.f32 %v10516_v31, %v10517_v52  ;;  %v10521_v62 = vmax.f32 %v19255_v51, %v10520_v32  ;;  %12075 = vmatprep.subr.bf16.mxu1 %v19189_v1  ;;  %v15895_v31 = vld [vmem:[#allocation11 + $0x360] sm:$0xff]  }
 0x812   :  { %v10527_v9 = vrot.slane %v10526_v47, 4  ;;  %v10713_v8 = vrot.slane %v10712_v18, 1  ;;  %v11158_v14 = vpack.c.b16 %v18810_v27, %v18810_v27  ;;  %v10724_v21 = vmax.f32 %v10722_v13, %v10723_v29 }
 0x813   :  { %v10705_v36 = vmax.f32 %v10703_v30, %v10704_v49  ;;  %v10717_v58 = vmax.f32 %v18925_v50, %v10716_v41  ;;  %v12791_v17 = vpack.c.bf16 %v10518_v33, %v10518_v33  ;;  %v10522_v22 = vrot.slane %v10521_v62, 2  ;;  %v15896_v33 = vld [vmem:[#allocation11 + $0x258] sm:$0xff]  }
 0x814   :  { %v10528_v10 = vmax.f32 %v10526_v47, %v10527_v9  ;;  %v10714_v38 = vmax.f32 %v10712_v18, %v10713_v8  ;;  %v11502_v44 = vpack.c.b16 %v18828_v28, %v18828_v28  ;;  %v10725_v27 = vrot.slane %v10724_v21, 2  ;;  %11407 = vmatmul.mubr.bf16.vlgmr.msra.gmra.mrb[108].mxu0 %v11158_v14  ;;  %12076 = vmatpush1.bf16.msra.mxu1 %v15893_v48  ;;  %v15897_v18 = vld [vmem:[#allocation11 + $0x368] sm:$0xff]   ;;  %v15898_v14 = vld [vmem:[#allocation11 + $0x260] sm:$0xff]  }
 0x815   :  { %v10706_v45 = vrot.slane %v10705_v36, 1  ;;  %v10718_v56 = vrot.slane %v10717_v58, 2  ;;  %v12790_v55 = vpack.c.bf16 %v10511_v19, %v10511_v19  ;;  %v10523_v50 = vmax.f32 %v10521_v62, %v10522_v22  ;;  %11718 = vmatpush1.bf16.msra.mxu0 %v15890_v61  ;;  %12077 = vmatprep.subr.bf16.mxu1 %v19189_v1  ;;  %v15899_v62 = vld [vmem:[#allocation11 + $0x370] sm:$0xff]   ;;  %v15907_v22 = vld [vmem:[#allocation11 + $0x468] sm:$0xff]  }
 0x816   :  { %v10529_v39 = vrot.slane %v10528_v10, 2  ;;  %v12795_v3 = vpack.c.bf16 %v10714_v38, %v10714_v38  ;;  %v10726_v23 = vmax.f32 %v10724_v21, %v10725_v27  ;;  %14131 = vmatprep.mubr.msk.bf16.mxu0 %vm142_vm2, %v11502_v44  ;;  %v12864_v42 = vunpack.c.l.b16 %v12791_v17  ;;  %11719 = vmatprep.subr.bf16.mxu0 %v19189_v1  ;;  %v15902_v21 = vld [vmem:[#allocation11 + $0x4a0] sm:$0xff]   ;;  %v15903_v38 = vld [vmem:[#allocation11 + $0x270] sm:$0xff]   ;;  %v15905_v17 = vld [vmem:[#allocation11 + $0x4a8] sm:$0xff]  }
 0x817   :  { %v10707_v63 = vmax.f32 %v10705_v36, %v10706_v45  ;;  %v10719_v54 = vmax.f32 %v10717_v58, %v10718_v56  ;;  %v10524_v7 = vrot.slane %v10523_v50, 1  ;;  %v12863_v2 = vunpack.c.l.b16 %v12790_v55  ;;  %v15900_v36 = vld [vmem:[#allocation11 + $0x268] sm:$0xff]   ;;  %v15904_v58 = vld [vmem:[#allocation11 + $0x460] sm:$0xff]   ;;  %v15906_v44 = vld [vmem:[#allocation11 + $0x278] sm:$0xff]  }
 0x818   :  { %v10530_v12 = vmax.f32 %v10528_v10, %v10529_v39  ;;  %v12868_v60 = vunpack.c.l.b16 %v12795_v3  ;;  %v10727_v26 = vrot.slane %v10726_v23, 1  ;;  %12078 = vmatpush1.bf16.msra.mxu1 %v15895_v31  ;;  %v11845_v61 = vpack.c.b16 %v18834_v57, %v18834_v57  ;;  %v15908_v45 = vld [vmem:[#allocation11 + $0x4b0] sm:$0xff]   ;;  %v15909_v27 = vld [vmem:[#allocation11 + $0x280] sm:$0xff]   ;;  %v15911_v56 = vld [vmem:[#allocation11 + $0x4b8] sm:$0xff]  }
 0x819   :  { %v12794_v46 = vpack.c.bf16 %v10707_v63, %v10707_v63  ;;  %v10720_v35 = vrot.slane %v10719_v54, 1  ;;  %v10525_v24 = vmax.f32 %v10523_v50, %v10524_v7  ;;  %11720 = vmatpush1.bf16.msra.mxu0 %v15892_v16  ;;  %12079 = vmatprep.subr.bf16.mxu1 %v19189_v1  ;;  %v12532_v39 = vpack.c.b16 %v18855_v43, %v18855_v43  ;;  %v15910_v57 = vld [vmem:[#allocation11 + $0x470] sm:$0xff]   ;;  %v15913_v43 = vld [vmem:[#allocation11 + $0x478] sm:$0xff]   ;;  %v15912_v3 = vld [vmem:[#allocation11 + $0x288] sm:$0xff]  }
 0x81a   :  { %v10531_v28 = vrot.slane %v10530_v12, 1  ;;  %v18974_v51 = vsel %vm3595_vm12, %v12868_v60, %v12864_v42  ;;  %v10728_v0 = vmax.f32 %v10726_v23, %v10727_v26  ;;  %11721 = vmatprep.subr.bf16.mxu0 %v19189_v1  ;;  %v15914_v55 = vld [vmem:[#allocation11 + $0x4c0] sm:$0xff]   ;;  %v15915_v50 = vld [vmem:[#allocation11 + $0x290] sm:$0xff]   ;;  %v15917_v48 = vld [vmem:[#allocation11 + $0x4c8] sm:$0xff]   ;;  %v12188_v26 = vpack.c.b16 %v18880_v40, %v18880_v40 }
 0x81b   :  { %v12867_v41 = vunpack.c.l.b16 %v12794_v46  ;;  %v10721_v30 = vmax.f32 %v10719_v54, %v10720_v35  ;;  %v12792_v47 = vpack.c.bf16 %v10525_v24, %v10525_v24  ;;  %v15919_v63 = vld [vmem:[#allocation11 + $0x488] sm:$0xff]   ;;  %v15918_v23 = vld [vmem:[#allocation11 + $0x298] sm:$0xff]   ;;  %v15921_v54 = vld [vmem:[#allocation11 + $0x4d0] sm:$0xff]   ;;  %v12534_v40 = vpack.c.b16 %v18921_v15, %v18921_v15 }
 0x81c   :  { %v10532_v32 = vmax.f32 %v10530_v12, %v10531_v28  ;;  %v12797_v25 = vpack.c.bf16 %v10728_v0, %v10728_v0  ;;  %12080 = vmatpush1.bf16.msra.mxu1 %v15897_v18  ;;  %v15916_v12 = vld [vmem:[#allocation11 + $0x480] sm:$0xff]   ;;  %v15923_v42 = vld [vmem:[#allocation11 + $0x490] sm:$0xff]   ;;  %v11501_v28 = vpack.c.b16 %v18859_v20, %v18859_v20  ;;  %v15924_v7 = vld [vmem:[#allocation11 + $0x3c8] sm:$0xff]   ;;  %v12531_v20 = vpack.c.b16 %v18890_v4, %v18890_v4 }
 0x81d   :  { %v18979_v13 = vsel %vm3595_vm12, %v12867_v41, %v12863_v2  ;;  %v12796_v52 = vpack.c.bf16 %v10721_v30, %v10721_v30  ;;  %v12865_v49 = vunpack.c.l.b16 %v12792_v47  ;;  %11722 = vmatpush1.bf16.msra.mxu0 %v15894_v5  ;;  %12081 = vmatprep.subr.bf16.mxu1 %v19189_v1  ;;  %v15920_v16 = vld [vmem:[#allocation11 + $0x3c0] sm:$0xff]   ;;  %v15925_v46 = vld [vmem:[#allocation11 + $0x4d8] sm:$0xff]   ;;  %v15928_v24 = vld [vmem:[#allocation11 + $0x3d0] sm:$0xff]  }
 0x81e   :  { %v12793_v59 = vpack.c.bf16 %v10532_v32, %v10532_v32  ;;  %v12870_v19 = vunpack.c.l.b16 %v12797_v25  ;;  %11723 = vmatprep.subr.bf16.mxu0 %v19189_v1  ;;  %v15922_v60 = vld [vmem:[#allocation11 + $0x380] sm:$0xff]   ;;  %v15927_v35 = vld [vmem:[#allocation11 + $0x498] sm:$0xff]   ;;  %v15926_v32 = vld [vmem:[#allocation11 + $0x388] sm:$0xff]  }
 0x81f   :  { %v12869_v29 = vunpack.c.l.b16 %v12796_v52  ;;  %v15930_v31 = vld [vmem:[#allocation11 + $0x4e0] sm:$0xff]   ;;  %v15929_v2 = vld [vmem:[#allocation11 + $0x390] sm:$0xff]   ;;  %v15931_v41 = vld [vmem:[#allocation11 + $0x3d8] sm:$0xff]  }
 0x820   :  { %v12866_v9 = vunpack.c.l.b16 %v12793_v59  ;;  %12082 = vmatpush1.bf16.msra.mxu1 %v15899_v62  ;;  %v15933_v0 = vld [vmem:[#allocation11 + $0x4e8] sm:$0xff]   ;;  %v15932_v30 = vld [vmem:[#allocation11 + $0x398] sm:$0xff]   ;;  %v15934_v5 = vld [vmem:[#allocation11 + $0x3e0] sm:$0xff]  }
 0x821   :  { %v18987_v10 = vsel %vm3595_vm12, %v12869_v29, %v12865_v49  ;;  %11724 = vmatpush1.bf16.msra.mxu0 %v15896_v33  ;;  %12083 = vmatprep.subr.bf16.mxu1 %v19189_v1  ;;  %v15936_v4 = vld [vmem:[#allocation11 + $0x4f0] sm:$0xff]   ;;  %v15935_v59 = vld [vmem:[#allocation11 + $0x3a0] sm:$0xff]   ;;  %v15937_v15 = vld [vmem:[#allocation11 + $0x3e8] sm:$0xff]  }
 0x822   :  { %v18984_v8 = vsel %vm3595_vm12, %v12870_v19, %v12866_v9  ;;  %11725 = vmatprep.subr.bf16.mxu0 %v19189_v1  ;;  %v15939_v47 = vld [vmem:[#allocation11 + $0x4f8] sm:$0xff]   ;;  %v15938_v25 = vld [vmem:[#allocation11 + $0x3a8] sm:$0xff]   ;;  %v15940_v52 = vld [vmem:[#allocation11 + $0x3f0] sm:$0xff]  }
 0x823   :  { %v15942_v18 = vld [vmem:[#allocation11 + $0x500] sm:$0xff]   ;;  %v15941_v9 = vld [vmem:[#allocation11 + $0x3b0] sm:$0xff]   ;;  %v15943_v19 = vld [vmem:[#allocation11 + $0x3f8] sm:$0xff]  }
 0x824   :  { %12084 = vmatpush1.bf16.msra.mxu1 %v15901_v53  ;;  %v15945_v49 = vld [vmem:[#allocation11 + $0x508] sm:$0xff]   ;;  %v15944_v29 = vld [vmem:[#allocation11 + $0x3b8] sm:$0xff]   ;;  %v15947_v33 = vld [vmem:[#allocation11 + $0x510] sm:$0xff]   ;;  %v12190_v53 = vpack.c.b16 %v18940_v6, %v18940_v6 }
 0x825   :  { %11726 = vmatpush1.bf16.msra.mxu0 %v15898_v14  ;;  %14470 = vmatprep.subr.bf16.mxu1 %v15902_v21  ;;  %v15946_v62 = vld [vmem:[#allocation11 + $0x400] sm:$0xff]   ;;  %v12187_v14 = vpack.c.b16 %v18917_v34, %v18917_v34  ;;  %v15948_v21 = vld [vmem:[#allocation11 + $0x408] sm:$0xff]   ;;  %v15950_v34 = vld [vmem:[#allocation11 + $0x410] sm:$0xff]  }
 0x826   :  { %11727 = vmatprep.subr.bf16.mxu0 %v19189_v1  ;;  %v15953_v6 = vld [vmem:[#allocation11 + $0x528] sm:$0xff]  }
 0x827   :  { %12094 = vmatmul.mubr.bf16.vlgmr.msra.gmra.mrb[72].mxu1 %v11845_v61  ;;  %v15952_v61 = vld [vmem:[#allocation11 + $0x418] sm:$0xff]  }
 0x828   :  { %14471 = vmatpush3.bf16.msra.mxu1 %v15904_v58  ;;  %12741 = vmatprep.mubr.bf16.mxu1 %v12532_v39  ;;  %v15951_v58 = vld [vmem:[#allocation11 + $0x520] sm:$0xff]   ;;  %v15957_v39 = vld [vmem:[#allocation11 + $0x538] sm:$0xff]  }
 0x829   :  { %11728 = vmatpush1.bf16.msra.mxu0 %v15900_v36  ;;  %14472 = vmatprep.subr.bf16.mxu1 %v15905_v17  ;;  %v15949_v36 = vld [vmem:[#allocation11 + $0x518] sm:$0xff]   ;;  %v15954_v17 = vld [vmem:[#allocation11 + $0x420] sm:$0xff]  }
 0x82a   :  { %11729 = vmatprep.subr.bf16.mxu0 %v19189_v1 }
 0x82c   :  { %14473 = vmatpush3.bf16.msra.mxu1 %v15907_v22  ;;  %v15956_v22 = vld [vmem:[#allocation11 + $0x428] sm:$0xff]  }
 0x82d   :  { %11730 = vmatpush1.bf16.msra.mxu0 %v15903_v38  ;;  %14474 = vmatprep.subr.bf16.mxu1 %v15908_v45  ;;  %v15955_v38 = vld [vmem:[#allocation11 + $0x530] sm:$0xff]  }
 0x82e   :  { %11731 = vmatprep.subr.bf16.mxu0 %v19189_v1  ;;  %v15958_v45 = vld [vmem:[#allocation11 + $0x430] sm:$0xff]  }
 0x830   :  { %14475 = vmatpush3.bf16.msra.mxu1 %v15910_v57  ;;  %v19258_v57 = vmov 0.0  }
 0x831   :  { %11732 = vmatpush1.bf16.msra.mxu0 %v15906_v44  ;;  %14476 = vmatprep.subr.bf16.mxu1 %v15911_v56  ;;  %v12533_v44 = vpack.c.b16 %v18944_v11, %v18944_v11  ;;  %v15960_v56 = vld [vmem:[#allocation11 + $0x440] sm:$0xff]  }
 0x832   :  { %11733 = vmatprep.subr.bf16.mxu0 %v19189_v1 }
 0x834   :  { %14477 = vmatpush3.bf16.msra.mxu1 %v15913_v43  ;;  %v15961_v43 = vld [vmem:[#allocation11 + $0x448] sm:$0xff]  }
 0x835   :  { %11734 = vmatpush1.bf16.msra.mxu0 %v15909_v27  ;;  %14478 = vmatprep.subr.bf16.mxu1 %v15914_v55  ;;  %v15959_v27 = vld [vmem:[#allocation11 + $0x438] sm:$0xff]  }
 0x836   :  { %11735 = vmatprep.subr.bf16.mxu0 %v19189_v1 }
 0x838   :  { %14479 = vmatpush3.bf16.msra.mxu1 %v15916_v12 }
 0x839   :  { %11736 = vmatpush1.bf16.msra.mxu0 %v15912_v3  ;;  %14480 = vmatprep.subr.bf16.mxu1 %v15917_v48 }
 0x83a   :  { %11737 = vmatprep.subr.bf16.mxu0 %v19189_v1 }
 0x83c   :  { %14481 = vmatpush3.bf16.msra.mxu1 %v15919_v63  ;;  %v15963_v63 = vld [vmem:[#allocation11 + $0x458] sm:$0xff]  }
 0x83d   :  { %11738 = vmatpush1.bf16.msra.mxu0 %v15915_v50  ;;  %14482 = vmatprep.subr.bf16.mxu1 %v15921_v54  ;;  %v15962_v50 = vld [vmem:[#allocation11 + $0x450] sm:$0xff]   ;;  %v15964_v54 = vld [vmem:[#allocation11 + $0x580] sm:$0xff]  }
 0x83e   :  { %11739 = vmatprep.subr.bf16.mxu0 %v19189_v1 }
 0x840   :  { %14483 = vmatpush3.bf16.msra.mxu1 %v15923_v42 }
 0x841   :  { %11740 = vmatpush1.bf16.msra.mxu0 %v15918_v23  ;;  %14484 = vmatprep.subr.bf16.mxu1 %v15925_v46  ;;  %v12189_v46 = vpack.c.b16 %v18959_v37, %v18959_v37  ;;  %v15973_v37 = vld [vmem:[#allocation11 + $0x560] sm:$0xff]  }
 0x842   :  { %14448 = vmatprep.subr.bf16.mxu0 %v15920_v16 }
 0x844   :  { %11750 = vmatmul.mubr.bf16.vlgmr.msra.gmra.mrb[112].mxu0 %v11501_v28  ;;  %14485 = vmatpush3.bf16.msra.mxu1 %v15927_v35  ;;  %v12876_v35 = vpack.c.b16 %v18974_v51, %v18974_v51  ;;  %v15975_v51 = vld [vmem:[#allocation11 + $0x568] sm:$0xff]  }
 0x845   :  { %14449 = vmatpush3.bf16.msra.mxu0 %v15922_v60  ;;  %12397 = vmatprep.mubr.bf16.mxu0 %v12188_v26  ;;  %v15966_v26 = vld [vmem:[#allocation11 + $0x588] sm:$0xff]  }
 0x846   :  { %14450 = vmatprep.subr.bf16.mxu0 %v15924_v7  ;;  %12749 = vmatprep.subr.bf16.mxu1 %v19189_v1  ;;  %v15965_v7 = vld [vmem:[#allocation11 + $0x540] sm:$0xff]  }
 0x847   :  { %12742 = vmatmul.mubr.bf16.vlgmr.msra.gmra.mrb[76].mxu1 %v12531_v20  ;;  %v15970_v20 = vld [vmem:[#allocation11 + $0x598] sm:$0xff]  }
 0x848   :  { %12750 = vmatpush1.bf16.msra.mxu1 %v15930_v31  ;;  %14218 = vmatprep.mubr.msk.bf16.mxu1 %vm142_vm2, %v12534_v40  ;;  %v15969_v31 = vld [vmem:[#allocation11 + $0x550] sm:$0xff]   ;;  %v15972_v40 = vld [vmem:[#allocation11 + $0x5a0] sm:$0xff]  }
 0x849   :  { %14451 = vmatpush3.bf16.msra.mxu0 %v15926_v32  ;;  %12751 = vmatprep.subr.bf16.mxu1 %v19189_v1  ;;  %v15967_v32 = vld [vmem:[#allocation11 + $0x548] sm:$0xff]  }
 0x84a   :  { %14452 = vmatprep.subr.bf16.mxu0 %v15928_v24  ;;  %v15968_v24 = vld [vmem:[#allocation11 + $0x590] sm:$0xff]  }
 0x84c   :  { %12752 = vmatpush1.bf16.msra.mxu1 %v15933_v0  ;;  %v15976_v0 = vld [vmem:[#allocation11 + $0x5b0] sm:$0xff]  }
 0x84d   :  { %14453 = vmatpush3.bf16.msra.mxu0 %v15929_v2  ;;  %12753 = vmatprep.subr.bf16.mxu1 %v19189_v1  ;;  %v15971_v2 = vld [vmem:[#allocation11 + $0x558] sm:$0xff]  }
 0x84e   :  { %14454 = vmatprep.subr.bf16.mxu0 %v15931_v41  ;;  %v15974_v41 = vld [vmem:[#allocation11 + $0x5a8] sm:$0xff]  }
 0x850   :  { %12754 = vmatpush1.bf16.msra.mxu1 %v15936_v4  ;;  %v15979_v4 = vld [vmem:[#allocation11 + $0x578] sm:$0xff]  }
 0x851   :  { %14455 = vmatpush3.bf16.msra.mxu0 %v15932_v30  ;;  %12755 = vmatprep.subr.bf16.mxu1 %v19189_v1  ;;  %v15977_v30 = vld [vmem:[#allocation11 + $0x570] sm:$0xff]  }
 0x852   :  { %14456 = vmatprep.subr.bf16.mxu0 %v15934_v5  ;;  %v15978_v5 = vld [vmem:[#allocation11 + $0x5b8] sm:$0xff]  }
 0x854   :  { %12756 = vmatpush1.bf16.msra.mxu1 %v15939_v47 }
 0x855   :  { %14457 = vmatpush3.bf16.msra.mxu0 %v15935_v59  ;;  %12757 = vmatprep.subr.bf16.mxu1 %v19189_v1 }
 0x856   :  { %14458 = vmatprep.subr.bf16.mxu0 %v15937_v15 }
 0x858   :  { %12758 = vmatpush1.bf16.msra.mxu1 %v15942_v18  ;;  %v15980_v18 = vld [vmem:[#allocation11 + $0x5c0] sm:$0xff]  }
 0x859   :  { %14459 = vmatpush3.bf16.msra.mxu0 %v15938_v25  ;;  %12759 = vmatprep.subr.bf16.mxu1 %v19189_v1 }
 0x85a   :  { %14460 = vmatprep.subr.bf16.mxu0 %v15940_v52 }
 0x85c   :  { %12760 = vmatpush1.bf16.msra.mxu1 %v15945_v49  ;;  %v15981_v49 = vld [vmem:[#allocation11 + $0x5c8] sm:$0xff]  }
 0x85d   :  { %14461 = vmatpush3.bf16.msra.mxu0 %v15941_v9  ;;  %12761 = vmatprep.subr.bf16.mxu1 %v19189_v1  ;;  %v12875_v9 = vpack.c.b16 %v18979_v13, %v18979_v13 }
 0x85e   :  { %14462 = vmatprep.subr.bf16.mxu0 %v15943_v19  ;;  %v12878_v19 = vpack.c.b16 %v18984_v8, %v18984_v8  ;;  %v15983_v8 = vld [vmem:[#allocation11 + $0x5d8] sm:$0xff]  }
 0x860   :  { %12762 = vmatpush1.bf16.msra.mxu1 %v15947_v33 }
 0x861   :  { %14463 = vmatpush3.bf16.msra.mxu0 %v15944_v29  ;;  %12763 = vmatprep.subr.bf16.mxu1 %v19189_v1 }
 0x862   :  { %12405 = vmatprep.subr.bf16.mxu0 %v19189_v1 }
 0x864   :  { %12398 = vmatmul.mubr.bf16.vlgmr.msra.gmra.mrb[116].mxu0 %v12187_v14  ;;  %12764 = vmatpush1.bf16.msra.mxu1 %v15949_v36 }
 0x865   :  { %12406 = vmatpush1.bf16.msra.mxu0 %v15946_v62  ;;  %14189 = vmatprep.mubr.msk.bf16.mxu0 %vm142_vm2, %v12190_v53  ;;  %v15982_v53 = vld [vmem:[#allocation11 + $0x5d0] sm:$0xff]  }
 0x866   :  { %12407 = vmatprep.subr.bf16.mxu0 %v19189_v1  ;;  %12765 = vmatprep.subr.bf16.mxu1 %v19189_v1 }
 0x868   :  { %12766 = vmatpush1.bf16.msra.mxu1 %v15951_v58  ;;  %v15985_v58 = vld [vmem:[#allocation11 + $0x5e8] sm:$0xff]  }
 0x869   :  { %12408 = vmatpush1.bf16.msra.mxu0 %v15948_v21  ;;  %12767 = vmatprep.subr.bf16.mxu1 %v19189_v1  ;;  %v15984_v21 = vld [vmem:[#allocation11 + $0x5e0] sm:$0xff]  }
 0x86a   :  { %12409 = vmatprep.subr.bf16.mxu0 %v19189_v1 }
 0x86c   :  { %12768 = vmatpush1.bf16.msra.mxu1 %v15953_v6  ;;  %v15987_v6 = vld [vmem:[#allocation11 + $0x5f8] sm:$0xff]  }
 0x86d   :  { %12410 = vmatpush1.bf16.msra.mxu0 %v15950_v34  ;;  %12769 = vmatprep.subr.bf16.mxu1 %v19189_v1  ;;  %v15986_v34 = vld [vmem:[#allocation11 + $0x5f0] sm:$0xff]  }
 0x86e   :  { %12411 = vmatprep.subr.bf16.mxu0 %v19189_v1 }
 0x870   :  { %12770 = vmatpush1.bf16.msra.mxu1 %v15955_v38 }
 0x871   :  { %12412 = vmatpush1.bf16.msra.mxu0 %v15952_v61  ;;  %12771 = vmatprep.subr.bf16.mxu1 %v19189_v1 }
 0x872   :  { %12413 = vmatprep.subr.bf16.mxu0 %v19189_v1 }
 0x874   :  { %12772 = vmatpush1.bf16.msra.mxu1 %v15957_v39 }
 0x875   :  { %12414 = vmatpush1.bf16.msra.mxu0 %v15954_v17  ;;  %14559 = vmatprep.subr.bf16.mxu1 %v19258_v57 }
 0x876   :  { %12415 = vmatprep.subr.bf16.mxu0 %v19189_v1 }
 0x877   :  { %12782 = vmatmul.mubr.bf16.vlgmr.msra.gmra.mrb[80].mxu1 %v12533_v44  ;;  %v15988_v44 = vld [vmem:[#allocation11 + $0x600] sm:$0xff]  }
 0x879   :  { %12416 = vmatpush1.bf16.msra.mxu0 %v15956_v22 }
 0x87a   :  { %12417 = vmatprep.subr.bf16.mxu0 %v19189_v1 }
 0x87d   :  { %12418 = vmatpush1.bf16.msra.mxu0 %v15958_v45  ;;  %v15989_v45 = vld [vmem:[#allocation11 + $0x608] sm:$0xff]  }
 0x87e   :  { %12419 = vmatprep.subr.bf16.mxu0 %v19189_v1 }
 0x881   :  { %12420 = vmatpush1.bf16.msra.mxu0 %v15959_v27  ;;  %v15990_v27 = vld [vmem:[#allocation11 + $0x610] sm:$0xff]  }
 0x882   :  { %12421 = vmatprep.subr.bf16.mxu0 %v19189_v1  ;;  %v14376_v3 = vpop.f32.mrb[100].mxu0 }
 0x883   :  { %v14377_v11 = vpop.f32.mrb[101].mxu0 }
 0x884   :  { %v19042_v55 = vadd.f32 %v14377_v11, %v14376_v3  ;;  %v14379_v12 = vpop.f32.mrb[102].mxu0 }
 0x885   :  { %12422 = vmatpush1.bf16.msra.mxu0 %v15960_v56  ;;  %v14380_v48 = vpop.f32.mrb[103].mxu0  ;;  %v15991_v56 = vld [vmem:[#allocation11 + $0x618] sm:$0xff]  }
 0x886   :  { %12423 = vmatprep.subr.bf16.mxu0 %v19189_v1 }
 0x889   :  { %12424 = vmatpush1.bf16.msra.mxu0 %v15961_v43  ;;  %v12877_v43 = vpack.c.b16 %v18987_v10, %v18987_v10  ;;  %v15995_v10 = vld [vmem:[#allocation14 + $0x18] sm:$0xff]  }
 0x88a   :  { %12425 = vmatprep.subr.bf16.mxu0 %v19189_v1  ;;  %v14398_v23 = vpop.f32.mrb[60].mxu1 }
 0x88b   :  { %v14399_v16 = vpop.f32.mrb[61].mxu1 }
 0x88c   :  { %v14400_v42 = vadd.f32 %v14399_v16, %v14398_v23  ;;  %v14401_v60 = vpop.f32.mrb[62].mxu1 }
 0x88d   :  { %12426 = vmatpush1.bf16.msra.mxu0 %v15962_v50  ;;  %v14402_v28 = vpop.f32.mrb[63].mxu1  ;;  %v15993_v60 = vld [vmem:[#allocation14 + $0x8] sm:$0xff]  }
 0x88e   :  { %12427 = vmatprep.subr.bf16.mxu0 %v19189_v1 }
 0x891   :  { %12428 = vmatpush1.bf16.msra.mxu0 %v15963_v63 }
 0x892   :  { %14492 = vmatprep.subr.bf16.mxu0 %v15964_v54 }
 0x894   :  { %12438 = vmatmul.mubr.bf16.vlgmr.msra.gmra.mrb[120].mxu0 %v12189_v46 }
 0x895   :  { %14493 = vmatpush3.bf16.msra.mxu0 %v15965_v7  ;;  %13085 = vmatprep.mubr.bf16.mxu0 %v12876_v35 }
 0x896   :  { %14494 = vmatprep.subr.bf16.mxu0 %v15966_v26  ;;  %v15996_v26 = vld [vmem:[#allocation14 + $0x20] sm:$0xff]  }
 0x899   :  { %14495 = vmatpush3.bf16.msra.mxu0 %v15967_v32 }
 0x89a   :  { %14496 = vmatprep.subr.bf16.mxu0 %v15968_v24 }
 0x89d   :  { %14497 = vmatpush3.bf16.msra.mxu0 %v15969_v31 }
 0x89e   :  { %14498 = vmatprep.subr.bf16.mxu0 %v15970_v20  ;;  %v15997_v20 = vld [vmem:[#allocation14 + $0x28] sm:$0xff]  }
 0x8a1   :  { %14499 = vmatpush3.bf16.msra.mxu0 %v15971_v2 }
 0x8a2   :  { %14500 = vmatprep.subr.bf16.mxu0 %v15972_v40 }
 0x8a5   :  { %14501 = vmatpush3.bf16.msra.mxu0 %v15973_v37 }
 0x8a6   :  { %14502 = vmatprep.subr.bf16.mxu0 %v15974_v41 }
 0x8a9   :  { %14503 = vmatpush3.bf16.msra.mxu0 %v15975_v51 }
 0x8aa   :  { %14504 = vmatprep.subr.bf16.mxu0 %v15976_v0  ;;  %v14420_v59 = vpop.f32.mrb[64].mxu1 }
 0x8ab   :  { %v14421_v15 = vpop.f32.mrb[65].mxu1 }
 0x8ac   :  { %v19050_v47 = vadd.f32 %v14421_v15, %v14420_v59  ;;  %v14423_v25 = vpop.f32.mrb[66].mxu1  ;;  %v15998_v15 = vld [vmem:[#allocation14 + $0x30] sm:$0xff]  }
 0x8ad   :  { %14505 = vmatpush3.bf16.msra.mxu0 %v15977_v30  ;;  %v14424_v52 = vpop.f32.mrb[67].mxu1 }
 0x8ae   :  { %14506 = vmatprep.subr.bf16.mxu0 %v15978_v5 }
 0x8b1   :  { %14507 = vmatpush3.bf16.msra.mxu0 %v15979_v4 }
 0x8b2   :  { %13093 = vmatprep.subr.bf16.mxu0 %v19189_v1 }
 0x8b3   :  { %v11130_v29 = vpop.f32.mrb[104].mxu0 }
 0x8b4   :  { %13086 = vmatmul.mubr.bf16.vlgmr.msra.gmra.mrb[124].mxu0 %v12875_v9  ;;  %v11131_v33 = vadd.f32 %v19042_v55, %v11130_v29  ;;  %v11132_v62 = vpop.f32.mrb[105].mxu0 }
 0x8b5   :  { %13094 = vmatpush1.bf16.msra.mxu0 %v15980_v18  ;;  %14247 = vmatprep.mubr.msk.bf16.mxu0 %vm142_vm2, %v12878_v19  ;;  %v11133_v14 = vpop.f32.mrb[106].mxu0  ;;  %vm16225_vm2 = vmmov 0  }
 0x8b6   :  { %13095 = vmatprep.subr.bf16.mxu0 %v19189_v1  ;;  %v11134_v13 = vpop.f32.mrb[107].mxu0  ;;  %v11369_v36 = vadd.f32 %v14400_v42, %v11131_v33  ;;  %v15992_v42 = vld [vmem:[#allocation14] sm:$0xff]   ;;  %14575 = vmatprep.mubr.msk.bf16.mxu1 %vm16225_vm2, %v19258_v57 }
 0x8b7   :  { %14560 = vmatpush3.bf16.msra.mxu1 %v15992_v42 }
 0x8b8   :  { %14561 = vmatprep.subr.bf16.mxu1 %v19258_v57 }
 0x8b9   :  { %13096 = vmatpush1.bf16.msra.mxu0 %v15981_v49 }
 0x8ba   :  { %13097 = vmatprep.subr.bf16.mxu0 %v19189_v1 }
 0x8bb   :  { %14562 = vmatpush3.bf16.msra.mxu1 %v15993_v60 }
 0x8bc   :  { %14563 = vmatprep.subr.bf16.mxu1 %v19258_v57 }
 0x8bd   :  { %13098 = vmatpush1.bf16.msra.mxu0 %v15982_v53 }
 0x8be   :  { %13099 = vmatprep.subr.bf16.mxu0 %v19189_v1 }
 0x8c1   :  { %13100 = vmatpush1.bf16.msra.mxu0 %v15983_v8 }
 0x8c2   :  { %13101 = vmatprep.subr.bf16.mxu0 %v19189_v1 }
 0x8c5   :  { %13102 = vmatpush1.bf16.msra.mxu0 %v15984_v21 }
 0x8c6   :  { %13103 = vmatprep.subr.bf16.mxu0 %v19189_v1 }
 0x8c9   :  { %13104 = vmatpush1.bf16.msra.mxu0 %v15985_v58 }
 0x8ca   :  { %13105 = vmatprep.subr.bf16.mxu0 %v19189_v1  ;;  %v14442_v61 = vpop.f32.mrb[68].mxu1 }
 0x8cb   :  { %v14443_v38 = vpop.f32.mrb[69].mxu1 }
 0x8cc   :  { %v14444_v17 = vadd.f32 %v14443_v38, %v14442_v61  ;;  %v14445_v39 = vpop.f32.mrb[70].mxu1  ;;  %v14248_v38 = vld [vmem:[#allocation12] ss:$0 sm:$0xff] }
 0x8cd   :  { %13106 = vmatpush1.bf16.msra.mxu0 %v15986_v34  ;;  %v14446_v22 = vpop.f32.mrb[71].mxu1 }
 0x8ce   :  { %13107 = vmatprep.subr.bf16.mxu0 %v19189_v1 }
 0x8d1   :  { %13108 = vmatpush1.bf16.msra.mxu0 %v15987_v6 }
 0x8d2   :  { %13109 = vmatprep.subr.bf16.mxu0 %v19189_v1 }
 0x8d5   :  { %13110 = vmatpush1.bf16.msra.mxu0 %v15988_v44 }
 0x8d6   :  { %13111 = vmatprep.subr.bf16.mxu0 %v19189_v1 }
 0x8d9   :  { %13112 = vmatpush1.bf16.msra.mxu0 %v15989_v45 }
 0x8da   :  { %13113 = vmatprep.subr.bf16.mxu0 %v19189_v1 }
 0x8dd   :  { %13114 = vmatpush1.bf16.msra.mxu0 %v15990_v27  ;;  %v14249_v27 = vld [vmem:[#allocation15] ss:$0 sm:$0xff] }
 0x8de   :  { %13115 = vmatprep.subr.bf16.mxu0 %v19189_v1  ;;  %v15994_v1 = vld [vmem:[#allocation14 + $0x10] sm:$0xff]  }
 0x8df   :  { %14564 = vmatpush3.bf16.msra.mxu1 %v15994_v1 }
 0x8e0   :  { %14565 = vmatprep.subr.bf16.mxu1 %v19258_v57 }
 0x8e1   :  { %13116 = vmatpush1.bf16.msra.mxu0 %v15991_v56 }
 0x8e3   :  { %14566 = vmatpush3.bf16.msra.mxu1 %v15995_v10 }
 0x8e4   :  { %13126 = vmatmul.mubr.bf16.vlgmr.msra.gmra.mrb[128].mxu0 %v12877_v43  ;;  %14567 = vmatprep.subr.bf16.mxu1 %v19258_v57 }
 0x8e7   :  { %v11408_v3 = vpop.f32.mrb[108].mxu0  ;;  %14568 = vmatpush3.bf16.msra.mxu1 %v15996_v26 }
 0x8e8   :  { %v11409_v11 = vadd.f32 %v11408_v3, %v11369_v36  ;;  %v11410_v55 = vpop.f32.mrb[109].mxu0  ;;  %14569 = vmatprep.subr.bf16.mxu1 %v19258_v57 }
 0x8e9   :  { %v11411_v12 = vpop.f32.mrb[110].mxu0 }
 0x8ea   :  { %v11412_v50 = vpop.f32.mrb[111].mxu0 }
 0x8eb   :  { %14570 = vmatpush3.bf16.msra.mxu1 %v15997_v20 }
 0x8ec   :  { %14571 = vmatprep.subr.bf16.mxu1 %v19258_v57 }
 0x8ef   :  { %14572 = vmatpush3.bf16.msra.mxu1 %v15998_v15 }
 0x8f0   :  { %14573 = vmatprep.subr.bf16.mxu1 %v19258_v57 }
 0x8fa   :  { %v12095_v48 = vpop.f32.mrb[72].mxu1 }
 0x8fb   :  { %v12096_v63 = vadd.f32 %v14444_v17, %v12095_v48  ;;  %v12097_v23 = vpop.f32.mrb[73].mxu1 }
 0x8fc   :  { %v12098_v54 = vpop.f32.mrb[74].mxu1 }
 0x8fd   :  { %v12099_v16 = vpop.f32.mrb[75].mxu1 }
 0x917   :  { %v11751_v28 = vpop.f32.mrb[112].mxu0 }
 0x918   :  { %v11752_v7 = vadd.f32 %v19050_v47, %v11751_v28  ;;  %v11753_v46 = vpop.f32.mrb[113].mxu0  ;;  %v15999_v47 = vld [vmem:[#allocation14 + $0x38] sm:$0xff]  }
 0x919   :  { %v11754_v35 = vpop.f32.mrb[114].mxu0  ;;  %14574 = vmatpush3.bf16.msra.mxu1 %v15999_v47 }
 0x91a   :  { %v11757_v32 = vadd.f32 %v11752_v7, %v11409_v11  ;;  %v11755_v24 = vpop.f32.mrb[115].mxu0  ;;  %v14486_v2 = vpop.f32.mrb[76].mxu1 }
 0x91b   :  { %v14487_v40 = vpop.f32.mrb[77].mxu1 }
 0x91c   :  { %v12101_v31 = vadd.f32 %v12096_v63, %v11757_v32  ;;  %v14488_v37 = vadd.f32 %v14487_v40, %v14486_v2  ;;  %v14489_v41 = vpop.f32.mrb[78].mxu1 }
 0x91d   :  { %v14490_v51 = vpop.f32.mrb[79].mxu1 }
 0x937   :  { %v14464_v0 = vpop.f32.mrb[116].mxu0 }
 0x938   :  { %v14465_v30 = vpop.f32.mrb[117].mxu0 }
 0x939   :  { %v14466_v5 = vadd.f32 %v14465_v30, %v14464_v0  ;;  %v14467_v4 = vpop.f32.mrb[118].mxu0 }
 0x93a   :  { %v14468_v59 = vpop.f32.mrb[119].mxu0 }
 0x94a   :  { %v12783_v25 = vpop.f32.mrb[80].mxu1 }
 0x94b   :  { %v12784_v52 = vadd.f32 %v14488_v37, %v12783_v25  ;;  %v12785_v18 = vpop.f32.mrb[81].mxu1 }
 0x94c   :  { %v12786_v9 = vpop.f32.mrb[82].mxu1 }
 0x94d   :  { %v12787_v19 = vpop.f32.mrb[83].mxu1 }
 0x967   :  { %v12439_v49 = vpop.f32.mrb[120].mxu0 }
 0x968   :  { %v12440_v29 = vadd.f32 %v14466_v5, %v12439_v49  ;;  %v12441_v33 = vpop.f32.mrb[121].mxu0 }
 0x969   :  { %v12442_v62 = vpop.f32.mrb[122].mxu0 }
 0x96a   :  { %v12445_v14 = vadd.f32 %v12440_v29, %v12101_v31  ;;  %v12443_v53 = vpop.f32.mrb[123].mxu0 }
 0x96c   :  { %v12789_v13 = vadd.f32 %v12784_v52, %v12445_v14 }
 0x987   :  { %v14508_v36 = vpop.f32.mrb[124].mxu0 }
 0x988   :  { %v14509_v8 = vpop.f32.mrb[125].mxu0 }
 0x989   :  { %v14510_v21 = vadd.f32 %v14509_v8, %v14508_v36  ;;  %v14511_v58 = vpop.f32.mrb[126].mxu0 }
 0x98a   :  { %v14512_v34 = vpop.f32.mrb[127].mxu0 }
 0x9b7   :  { %v13127_v6 = vpop.f32.mrb[128].mxu0 }
 0x9b8   :  { %v13128_v57 = vadd.f32 %v14510_v21, %v13127_v6  ;;  %v13129_v61 = vpop.f32.mrb[129].mxu0 }
 0x9b9   :  { %v13130_v17 = vpop.f32.mrb[130].mxu0 }
 0x9ba   :  { %v13133_v39 = vadd.f32 %v13128_v57, %v12789_v13  ;;  %v13131_v22 = vpop.f32.mrb[131].mxu0 }
 0x9bc   :  { %v13141_v44 = vadd.f32 %v14248_v38, %v13133_v39 }
 0x9be   :  { %v13142_v45 = vpack.c.bf16 %v13141_v44, %v13141_v44 }
 0x9c0   :  { %14576 = vmatmul.mubr.bf16.vlgmr.msra.gmra.mrb[84].mxu1 %v13142_v45 }
 0xa93   :  { %v13248_v56 = vpop.f32.mrb[84].mxu1 }
 0xa94   :  { %v13249_v43 = vadd.f32 %v14249_v27, %v13248_v56  ;;  %v14577_v3 = vpop.f32.mrb[85].mxu1 }
 0xa95   :  { %v13251_v11 = vpop.f32.mrb[86].mxu1 }
 0xa96   :  { %13254 = vst [vmem:[#allocation17] sm:$0x3] %v13249_v43  ;;  %v14578_v55 = vpop.f32.mrb[87].mxu1 }
 0xa97   :  { %16187 = shalt.err (!%p16184_p12)
}
 0xa98   :  { %s16188_s2 = scalar_lea.hbm %s19102_s9, 32 }
 0xa99   :  { %p16189_p13 = scmp.ne.s32.totalorder %s19102_s9, %s16188_s2  ;;  %p16192_p0 = scmp.lt.u32.totalorder %s16188_s2, %s19102_s9 }
 0xa9b   :  { %p16194_p1 = pnand %p16192_p0, %p16189_p13 }
 0xa9d   :  { %16197 = shalt.err (!%p16194_p1)
}
 0xa9e   :  { %13264 = dma.vmem_to_hbm [thread:$0]  %s13262_s3, 32, %s19102_s9, [#allocation5]  }
 0xa9f   :  { %16208 = dma.done.wait [#allocation5], 32  }
 0xaa0   :  { %16209 = vsyncadd [#allocation5], 4294967264 }
 0xaa1   :  { %13268 = vsyncpa [#allocation4], 1 }
 0xaa2   :  { %13269 = vsyncpa [#allocation7], 1 }
 0xaa3   :  { %13270 = vsyncpa [#allocation10], 1 }
 0xaa4   :  { %13271 = vsyncpa [#allocation13], 1 }
 0xaa5   :  { %13272 = vsyncpa [#allocation16], 1 }
 0xaa6   :  { %13273 = vsyncpa [#allocation5], 1 }

</bundles_post_ra>
